<compile_context>
chip_gen: v7x
topology: tpu7x:2x2x1
jax: 0.10.0
libtpu: 0.0.40
codegen_flags: <defaults>
</compile_context>

<pallas_src>
import functools

import jax
import jax.numpy as jnp
from jax import lax
from jax.experimental import pallas as pl
from jax.experimental.pallas import tpu as pltpu

C_PAD = 128   # lane-dense channel width for conv outputs / head
K_PAD = 32    # padded contraction width (max real Cin over all conv layers)


def _round_up(a, m):
    return (a + m - 1) // m * m


# ----------------------------- Pallas kernel --------------------------------

def _fused_forward_kernel(xflat_ref, mask_ref, wconv_ref, scale_ref, shift_ref,
                          wp_ref, bp_ref, wfc_ref, bfc_ref,
                          feat_ref, out_ref, act_ref, acc_ref,
                          *, wpitch, wbase, inv_hw):
    # xflat_ref: (B, R, K_PAD)   flattened, zero-halo-padded input rows
    # mask_ref : (M, 1)          1.0 at interior pixels, 0.0 at halo positions
    # wconv_ref: (L, 9, K_PAD, C_PAD)  3x3 conv weights, one (K,C) slab / tap
    # scale/shift_ref: (L, 1, C_PAD)   folded (eval-mode) BatchNorm affine
    # wp/bp    : (C_PAD, C_PAD) / (1, C_PAD)   projector (1x1 conv with bias)
    # wfc/bfc  : (C_PAD, C_PAD) / (1, C_PAD)   final fc (zero-padded to 128)
    # feat_ref : (B, 1, C_PAD)   pooled projector feature (valid lanes = Cp)
    # out_ref  : (B, 1, C_PAD)   logits (valid lanes = n_classes)
    # act_ref  : (R, C_PAD) VMEM activation scratch, flat layout + zero halo
    # acc_ref  : (M, C_PAD) VMEM f32 tap accumulator
    # wpitch   : row pitch of the flat layout (= padded width W+2)
    # wbase    : sublane-aligned flat row where the interior writeback starts
    # inv_hw   : 1 / (H*W) for the global average pool
    B = xflat_ref.shape[0]
    L = wconv_ref.shape[0]
    KP = wconv_ref.shape[2]
    R, C = act_ref.shape
    M = acc_ref.shape[0]
    F = wbase - wpitch - 1                 # front pad rows of the flat layout

    mask = mask_ref[...]                   # (M, 1); lane-broadcast below

    # Rows outside the interior write range are never written by the per-layer
    # writeback, so zero them once per grid step (a handful of vreg stores);
    # everything inside [wbase, wbase+M) is fully overwritten by layer 0.
    act_ref[0:wbase, :] = jnp.zeros((wbase, C), jnp.float32)
    if R > wbase + M:
        act_ref[wbase + M:R, :] = jnp.zeros((R - wbase - M, C), jnp.float32)

    for b in range(B):
        y = None
        for l in range(L):                 # unrolled: conv1 + layer1..layer4
            for k in range(9):             # 3x3 taps = contiguous row slices
                di, dj = k // 3, k % 3
                off = F + di * wpitch + dj
                if l == 0:                 # layer 0 reads the input block
                    xs = xflat_ref[b, off:off + M, :]
                else:
                    xs = act_ref[off:off + M, 0:KP]
                part = jnp.dot(xs, wconv_ref[l, k],
                               preferred_element_type=jnp.float32)
                if k == 0:
                    acc_ref[...] = part
                else:
                    acc_ref[...] += part
            # Folded-BN affine + ReLU, then re-zero interleaved halo positions
            # so SAME padding stays exact for the next layer / the pooling.
            y = jnp.maximum(acc_ref[...] * scale_ref[l] + shift_ref[l], 0.0)
            y = y * mask
            if l < L - 1:
                # Aligned, full-lane-width, unmasked interior writeback.
                act_ref[wbase:wbase + M, :] = y

        # Head: global-average-pool FIRST, then the linear 1x1 projector & fc.
        # mean(conv1x1(x)) + b == conv1x1(mean(x)) + b exactly, ~256x cheaper.
        pooled = jnp.sum(y, axis=0, keepdims=True) * inv_hw           # (1, C)
        feat = jnp.dot(pooled, wp_ref[...],
                       preferred_element_type=jnp.float32) + bp_ref[...]
        logits = jnp.dot(feat, wfc_ref[...],
                         preferred_element_type=jnp.float32) + bfc_ref[...]
        feat_ref[b] = feat.astype(feat_ref.dtype)
        out_ref[b] = logits.astype(out_ref.dtype)


# ------------------------------ JAX wrapper ----------------------------------

def _pack_params(params):
    """Zero-pad and stack per-layer weights into lane-dense, stackable slabs."""
    wconv, scales, shifts = [], [], []
    for (w, s, b) in params["backbone"]:
        kh, kw, cin, cout = w.shape
        w9 = w.reshape(kh * kw, cin, cout)
        wconv.append(jnp.pad(w9, ((0, 0), (0, K_PAD - cin), (0, C_PAD - cout))))
        scales.append(jnp.pad(s.reshape(1, cout), ((0, 0), (0, C_PAD - cout))))
        shifts.append(jnp.pad(b.reshape(1, cout), ((0, 0), (0, C_PAD - cout))))
    wconv = jnp.stack(wconv)                      # (L, 9, K_PAD, C_PAD)
    scale = jnp.stack(scales)                     # (L, 1, C_PAD)
    shift = jnp.stack(shifts)                     # (L, 1, C_PAD)
    cp_in, cp = params["wp"].shape
    ncls = params["wfc"].shape[1]
    wp = jnp.pad(params["wp"], ((0, C_PAD - cp_in), (0, C_PAD - cp)))
    bp = jnp.pad(params["bp"].reshape(1, cp), ((0, 0), (0, C_PAD - cp)))
    wfc = jnp.pad(params["wfc"], ((0, C_PAD - cp), (0, C_PAD - ncls)))
    bfc = jnp.pad(params["bfc"].reshape(1, ncls), ((0, 0), (0, C_PAD - ncls)))
    return wconv, scale, shift, wp, bp, wfc, bfc


def new_model_forward(x_nchw, params, *, samples_per_block=1):
    """Equivalent of new_model.forward: returns (project_feature, out)."""
    N, cin, H, W = x_nchw.shape
    B = samples_per_block
    assert N % B == 0, "batch must be divisible by samples_per_block"

    Hp, Wp = H + 2, W + 2
    F = (-(Wp + 1)) % 8                    # front pad so the writeback aligns
    wbase = F + Wp + 1                     # aligned interior write start row
    M = _round_up((H - 1) * Wp + W, 8)     # matmul M / flat output rows
    R = _round_up(F + 2 * Wp + 2 + M, 8)   # flat activation rows incl. halo

    # NCHW -> NHWC, zero halo ring (SAME padding), channel pad only to K_PAD
    # (4x less input DMA than padding to 128), flatten spatial, front/tail pad.
    x = jnp.transpose(x_nchw, (0, 2, 3, 1))
    xpad = jnp.pad(x, ((0, 0), (1, 1), (1, 1), (0, K_PAD - cin)))
    xflat = jnp.pad(xpad.reshape(N, Hp * Wp, K_PAD),
                    ((0, 0), (F, R - F - Hp * Wp), (0, 0)))       # (N, R, 32)

    # Interior mask for flat output row p (image flat position Wp+1+p):
    # 1.0 inside the HxW interior, 0.0 on interleaved halo columns/rows.
    q = jnp.arange(M, dtype=jnp.int32) + (Wp + 1)
    row, col = q // Wp, q % Wp
    interior = (row >= 1) & (row <= H) & (col >= 1) & (col <= W)
    mask = interior.astype(jnp.float32)[:, None]                  # (M, 1)

    wconv, scale, shift, wp, bp, wfc, bfc = _pack_params(params)
    L = wconv.shape[0]
    cp = params["wp"].shape[1]
    ncls = params["wfc"].shape[1]

    kernel = functools.partial(_fused_forward_kernel,
                               wpitch=Wp, wbase=wbase, inv_hw=1.0 / (H * W))

    feat_pad, out_pad = pl.pallas_call(
        kernel,
        out_shape=(jax.ShapeDtypeStruct((N, 1, C_PAD), x.dtype),
                   jax.ShapeDtypeStruct((N, 1, C_PAD), x.dtype)),
        grid_spec=pltpu.PrefetchScalarGridSpec(
            num_scalar_prefetch=0,
            grid=(N // B,),   # >=2 steps at N=2 -> both v7x TCs get a sample
            in_specs=[
                pl.BlockSpec((B, R, K_PAD), lambda n: (n, 0, 0)),
                pl.BlockSpec((M, 1), lambda n: (0, 0)),
                pl.BlockSpec((L, 9, K_PAD, C_PAD), lambda n: (0, 0, 0, 0)),
                pl.BlockSpec((L, 1, C_PAD), lambda n: (0, 0, 0)),
                pl.BlockSpec((L, 1, C_PAD), lambda n: (0, 0, 0)),
                pl.BlockSpec((C_PAD, C_PAD), lambda n: (0, 0)),
                pl.BlockSpec((1, C_PAD), lambda n: (0, 0)),
                pl.BlockSpec((C_PAD, C_PAD), lambda n: (0, 0)),
                pl.BlockSpec((1, C_PAD), lambda n: (0, 0)),
            ],
            out_specs=(pl.BlockSpec((B, 1, C_PAD), lambda n: (n, 0, 0)),
                       pl.BlockSpec((B, 1, C_PAD), lambda n: (n, 0, 0))),
            scratch_shapes=[pltpu.VMEM((R, C_PAD), jnp.float32),
                            pltpu.VMEM((M, C_PAD), jnp.float32)],
        ),
        compiler_params=pltpu.CompilerParams(
            dimension_semantics=("parallel",)),
    )(xflat, mask, wconv, scale, shift, wp, bp, wfc, bfc)

    feat = feat_pad.reshape(N, C_PAD)[:, :cp]
    out = out_pad.reshape(N, C_PAD)[:, :ncls]
    return feat, out


# --------------------------- parameter construction --------------------------

def _conv_bn_params(key, cin, cout, k=3):
    kw, kg, kb, km, kv = jax.random.split(key, 5)
    w = 0.1 * jax.random.normal(kw, (k, k, cin, cout), jnp.float32)  # HWIO
    gamma = 1.0 + 0.1 * jax.random.normal(kg, (cout,), jnp.float32)
    beta = 0.1 * jax.random.normal(kb, (cout,), jnp.float32)
    mean = 0.1 * jax.random.normal(km, (cout,), jnp.float32)
    var = 1.0 + 0.1 * jnp.abs(jax.random.normal(kv, (cout,), jnp.float32))
    eps = 1e-5
    scale = gamma / jnp.sqrt(var + eps)          # folded (eval-mode) BatchNorm
    shift = beta - mean * scale
    return w, scale.reshape(1, cout), shift.reshape(1, cout)


def make_params(key):
    keys = jax.random.split(key, 8)
    # channel plan: 3 -> 8 -> 16 -> 16 -> 32 -> 32 ; projector 32->32 ; fc 32->10
    backbone = [
        _conv_bn_params(keys[0], 3, 8),    # conv1 + bn1 + relu
        _conv_bn_params(keys[1], 8, 16),   # layer1
        _conv_bn_params(keys[2], 16, 16),  # layer2
        _conv_bn_params(keys[3], 16, 32),  # layer3
        _conv_bn_params(keys[4], 32, 32),  # layer4
    ]
    cp, ncls = 32, 10
    wp = 0.1 * jax.random.normal(keys[5], (32, cp), jnp.float32)   # 1x1 conv
    bp = 0.1 * jax.random.normal(keys[6], (1, cp), jnp.float32)
    kfc1, kfc2 = jax.random.split(keys[7])
    wfc = 0.1 * jax.random.normal(kfc1, (cp, ncls), jnp.float32)
    bfc = 0.1 * jax.random.normal(kfc2, (1, ncls), jnp.float32)
    return {"backbone": backbone, "wp": wp, "bp": bp, "wfc": wfc, "bfc": bfc}


# ------------------------------ pure-JAX reference ---------------------------

def ref_forward(x_nchw, params):
    x = jnp.transpose(x_nchw, (0, 2, 3, 1))
    for (w, s, b) in params["backbone"]:
        y = lax.conv_general_dilated(
            x, w, (1, 1), "SAME",
            dimension_numbers=("NHWC", "HWIO", "NHWC"),
            precision=lax.Precision.HIGHEST)
        x = jnp.maximum(y * s.reshape(-1) + b.reshape(-1), 0.0)
    proj = lax.conv_general_dilated(
        x, params["wp"][None, None], (1, 1), "SAME",
        dimension_numbers=("NHWC", "HWIO", "NHWC"),
        precision=lax.Precision.HIGHEST) + params["bp"].reshape(-1)
    feat = proj.mean(axis=(1, 2))
    out = jnp.dot(feat, params["wfc"],
                  precision=lax.Precision.HIGHEST) + params["bfc"].reshape(-1)
    return feat, out


# ----------------------------------- main ------------------------------------

if __name__ == "__main__":
    key = jax.random.PRNGKey(0)
    kx, kp = jax.random.split(key)
    x = jax.random.normal(kx, (2, 3, 16, 16), jnp.float32)  # NCHW, like PyTorch
    params = make_params(kp)

    feat, out = jax.jit(new_model_forward)(x, params)
    jax.block_until_ready((feat, out))

    feat_r, out_r = ref_forward(x, params)
    assert feat.shape == (2, 32) and out.shape == (2, 10)
    # All-f32 path with f32 accumulation: tight tolerance catches any tap /
    # offset / halo-mask indexing mistakes.
    assert jnp.allclose(feat, feat_r, atol=1e-4, rtol=1e-4)
    assert jnp.allclose(out, out_r, atol=1e-4, rtol=1e-4)

    print("KERNEL_OK")
</pallas_src>

<mosaic_0001>
module attributes {stable_mosaic.version = 11 : i64} {
  func.func @_fused_forward_kernel(%arg0: i32, %arg1: memref<1x336x32xf32, #tpu.memory_space<vmem>>, %arg2: memref<288x1xf32, #tpu.memory_space<vmem>>, %arg3: memref<5x9x32x128xf32, #tpu.memory_space<vmem>>, %arg4: memref<5x1x128xf32, #tpu.memory_space<vmem>>, %arg5: memref<5x1x128xf32, #tpu.memory_space<vmem>>, %arg6: memref<128x128xf32, #tpu.memory_space<vmem>>, %arg7: memref<1x128xf32, #tpu.memory_space<vmem>>, %arg8: memref<128x128xf32, #tpu.memory_space<vmem>>, %arg9: memref<1x128xf32, #tpu.memory_space<vmem>>, %arg10: memref<1x1x128xf32, #tpu.memory_space<vmem>>, %arg11: memref<1x1x128xf32, #tpu.memory_space<vmem>>, %arg12: memref<336x128xf32, #tpu.memory_space<vmem>>, %arg13: memref<288x128xf32, #tpu.memory_space<vmem>>) attributes {dimension_semantics = [#tpu.dimension_semantics<parallel>], iteration_bounds = array<i64: 2>, scalar_prefetch = 0 : i64, scratch_operands = 2 : i64, tpu.core_type = #tpu.core_type<tc>, window_params = [{transform_indices = @transform_0, window_bounds = array<i64: 1, 336, 32>}, {pipeline_mode = #tpu.pipeline_mode<synchronous>, transform_indices = @transform_1, window_bounds = array<i64: 288, 1>}, {pipeline_mode = #tpu.pipeline_mode<synchronous>, transform_indices = @transform_2, window_bounds = array<i64: 5, 9, 32, 128>}, {pipeline_mode = #tpu.pipeline_mode<synchronous>, transform_indices = @transform_3, window_bounds = array<i64: 5, 1, 128>}, {pipeline_mode = #tpu.pipeline_mode<synchronous>, transform_indices = @transform_4, window_bounds = array<i64: 5, 1, 128>}, {pipeline_mode = #tpu.pipeline_mode<synchronous>, transform_indices = @transform_5, window_bounds = array<i64: 128, 128>}, {pipeline_mode = #tpu.pipeline_mode<synchronous>, transform_indices = @transform_6, window_bounds = array<i64: 1, 128>}, {pipeline_mode = #tpu.pipeline_mode<synchronous>, transform_indices = @transform_7, window_bounds = array<i64: 128, 128>}, {pipeline_mode = #tpu.pipeline_mode<synchronous>, transform_indices = @transform_8, window_bounds = array<i64: 1, 128>}, {transform_indices = @transform_9, window_bounds = array<i64: 1, 1, 128>}, {transform_indices = @transform_10, window_bounds = array<i64: 1, 1, 128>}]} {
    %c0 = arith.constant 0 : index
    %c0_0 = arith.constant 0 : index
    %0 = vector.load %arg2[%c0, %c0_0] : memref<288x1xf32, #tpu.memory_space<vmem>>, vector<288x1xf32>
    %cst = arith.constant 0.000000e+00 : f32
    %1 = vector.broadcast %cst : f32 to vector<24x128xf32>
    %c0_1 = arith.constant 0 : index
    %c0_2 = arith.constant 0 : index
    %2 = vector.load %arg12[%c0_1, %c0_2] : memref<336x128xf32, #tpu.memory_space<vmem>>, vector<24x128xf32>
    tpu.vector_store %arg12[%c0_1, %c0_2], %1 {strides = array<i32>} : memref<336x128xf32, #tpu.memory_space<vmem>>, vector<24x128xf32>,
    %cst_3 = arith.constant 0.000000e+00 : f32
    %3 = vector.broadcast %cst_3 : f32 to vector<24x128xf32>
    %c312 = arith.constant 312 : index
    %c0_4 = arith.constant 0 : index
    %4 = vector.load %arg12[%c312, %c0_4] : memref<336x128xf32, #tpu.memory_space<vmem>>, vector<24x128xf32>
    tpu.vector_store %arg12[%c312, %c0_4], %3 {strides = array<i32>} : memref<336x128xf32, #tpu.memory_space<vmem>>, vector<24x128xf32>,
    %c0_5 = arith.constant 0 : index
    %c5 = arith.constant 5 : index
    %c0_6 = arith.constant 0 : index
    %5 = vector.load %arg1[%c0_5, %c5, %c0_6] : memref<1x336x32xf32, #tpu.memory_space<vmem>>, vector<1x288x32xf32>
    %6 = vector.shape_cast %5 : vector<1x288x32xf32> to vector<288x32xf32>
    %c0_7 = arith.constant 0 : index
    %c0_8 = arith.constant 0 : index
    %c0_9 = arith.constant 0 : index
    %c0_10 = arith.constant 0 : index
    %7 = vector.load %arg3[%c0_7, %c0_8, %c0_9, %c0_10] : memref<5x9x32x128xf32, #tpu.memory_space<vmem>>, vector<1x1x32x128xf32>
    %8 = vector.shape_cast %7 : vector<1x1x32x128xf32> to vector<32x128xf32>
    %cst_11 = arith.constant dense<0.000000e+00> : vector<288x128xf32>
    %9 = tpu.matmul %6, %8, %cst_11 {dimension_numbers = #tpu.dot_dimension_numbers<[1], [0], [0], [1], [0, 0, 1, 1], [], []>} : vector<288x32xf32>, vector<32x128xf32>, vector<288x128xf32> -> vector<288x128xf32>
    %c0_12 = arith.constant 0 : index
    %c0_13 = arith.constant 0 : index
    %10 = vector.load %arg13[%c0_12, %c0_13] : memref<288x128xf32, #tpu.memory_space<vmem>>, vector<288x128xf32>
    tpu.vector_store %arg13[%c0_12, %c0_13], %9 {strides = array<i32>} : memref<288x128xf32, #tpu.memory_space<vmem>>, vector<288x128xf32>,
    %c0_14 = arith.constant 0 : index
    %c6 = arith.constant 6 : index
    %c0_15 = arith.constant 0 : index
    %11 = vector.load %arg1[%c0_14, %c6, %c0_15] : memref<1x336x32xf32, #tpu.memory_space<vmem>>, vector<1x288x32xf32>
    %12 = vector.shape_cast %11 : vector<1x288x32xf32> to vector<288x32xf32>
    %c0_16 = arith.constant 0 : index
    %c1 = arith.constant 1 : index
    %c0_17 = arith.constant 0 : index
    %c0_18 = arith.constant 0 : index
    %13 = vector.load %arg3[%c0_16, %c1, %c0_17, %c0_18] : memref<5x9x32x128xf32, #tpu.memory_space<vmem>>, vector<1x1x32x128xf32>
    %14 = vector.shape_cast %13 : vector<1x1x32x128xf32> to vector<32x128xf32>
    %cst_19 = arith.constant dense<0.000000e+00> : vector<288x128xf32>
    %15 = tpu.matmul %12, %14, %cst_19 {dimension_numbers = #tpu.dot_dimension_numbers<[1], [0], [0], [1], [0, 0, 1, 1], [], []>} : vector<288x32xf32>, vector<32x128xf32>, vector<288x128xf32> -> vector<288x128xf32>
    %c0_20 = arith.constant 0 : index
    %c0_21 = arith.constant 0 : index
    %16 = vector.load %arg13[%c0_20, %c0_21] : memref<288x128xf32, #tpu.memory_space<vmem>>, vector<288x128xf32>
    %17 = arith.addf %16, %15 : vector<288x128xf32>
    %c0_22 = arith.constant 0 : index
    %c0_23 = arith.constant 0 : index
    %18 = vector.load %arg13[%c0_22, %c0_23] : memref<288x128xf32, #tpu.memory_space<vmem>>, vector<288x128xf32>
    tpu.vector_store %arg13[%c0_22, %c0_23], %17 {strides = array<i32>} : memref<288x128xf32, #tpu.memory_space<vmem>>, vector<288x128xf32>,
    %c0_24 = arith.constant 0 : index
    %c7 = arith.constant 7 : index
    %c0_25 = arith.constant 0 : index
    %19 = vector.load %arg1[%c0_24, %c7, %c0_25] : memref<1x336x32xf32, #tpu.memory_space<vmem>>, vector<1x288x32xf32>
    %20 = vector.shape_cast %19 : vector<1x288x32xf32> to vector<288x32xf32>
    %c0_26 = arith.constant 0 : index
    %c2 = arith.constant 2 : index
    %c0_27 = arith.constant 0 : index
    %c0_28 = arith.constant 0 : index
    %21 = vector.load %arg3[%c0_26, %c2, %c0_27, %c0_28] : memref<5x9x32x128xf32, #tpu.memory_space<vmem>>, vector<1x1x32x128xf32>
    %22 = vector.shape_cast %21 : vector<1x1x32x128xf32> to vector<32x128xf32>
    %cst_29 = arith.constant dense<0.000000e+00> : vector<288x128xf32>
    %23 = tpu.matmul %20, %22, %cst_29 {dimension_numbers = #tpu.dot_dimension_numbers<[1], [0], [0], [1], [0, 0, 1, 1], [], []>} : vector<288x32xf32>, vector<32x128xf32>, vector<288x128xf32> -> vector<288x128xf32>
    %c0_30 = arith.constant 0 : index
    %c0_31 = arith.constant 0 : index
    %24 = vector.load %arg13[%c0_30, %c0_31] : memref<288x128xf32, #tpu.memory_space<vmem>>, vector<288x128xf32>
    %25 = arith.addf %24, %23 : vector<288x128xf32>
    %c0_32 = arith.constant 0 : index
    %c0_33 = arith.constant 0 : index
    %26 = vector.load %arg13[%c0_32, %c0_33] : memref<288x128xf32, #tpu.memory_space<vmem>>, vector<288x128xf32>
    tpu.vector_store %arg13[%c0_32, %c0_33], %25 {strides = array<i32>} : memref<288x128xf32, #tpu.memory_space<vmem>>, vector<288x128xf32>,
    %c0_34 = arith.constant 0 : index
    %c23 = arith.constant 23 : index
    %c0_35 = arith.constant 0 : index
    %27 = vector.load %arg1[%c0_34, %c23, %c0_35] : memref<1x336x32xf32, #tpu.memory_space<vmem>>, vector<1x288x32xf32>
    %28 = vector.shape_cast %27 : vector<1x288x32xf32> to vector<288x32xf32>
    %c0_36 = arith.constant 0 : index
    %c3 = arith.constant 3 : index
    %c0_37 = arith.constant 0 : index
    %c0_38 = arith.constant 0 : index
    %29 = vector.load %arg3[%c0_36, %c3, %c0_37, %c0_38] : memref<5x9x32x128xf32, #tpu.memory_space<vmem>>, vector<1x1x32x128xf32>
    %30 = vector.shape_cast %29 : vector<1x1x32x128xf32> to vector<32x128xf32>
    %cst_39 = arith.constant dense<0.000000e+00> : vector<288x128xf32>
    %31 = tpu.matmul %28, %30, %cst_39 {dimension_numbers = #tpu.dot_dimension_numbers<[1], [0], [0], [1], [0, 0, 1, 1], [], []>} : vector<288x32xf32>, vector<32x128xf32>, vector<288x128xf32> -> vector<288x128xf32>
    %c0_40 = arith.constant 0 : index
    %c0_41 = arith.constant 0 : index
    %32 = vector.load %arg13[%c0_40, %c0_41] : memref<288x128xf32, #tpu.memory_space<vmem>>, vector<288x128xf32>
    %33 = arith.addf %32, %31 : vector<288x128xf32>
    %c0_42 = arith.constant 0 : index
    %c0_43 = arith.constant 0 : index
    %34 = vector.load %arg13[%c0_42, %c0_43] : memref<288x128xf32, #tpu.memory_space<vmem>>, vector<288x128xf32>
    tpu.vector_store %arg13[%c0_42, %c0_43], %33 {strides = array<i32>} : memref<288x128xf32, #tpu.memory_space<vmem>>, vector<288x128xf32>,
    %c0_44 = arith.constant 0 : index
    %c24 = arith.constant 24 : index
    %c0_45 = arith.constant 0 : index
    %35 = vector.load %arg1[%c0_44, %c24, %c0_45] : memref<1x336x32xf32, #tpu.memory_space<vmem>>, vector<1x288x32xf32>
    %36 = vector.shape_cast %35 : vector<1x288x32xf32> to vector<288x32xf32>
    %c0_46 = arith.constant 0 : index
    %c4 = arith.constant 4 : index
    %c0_47 = arith.constant 0 : index
    %c0_48 = arith.constant 0 : index
    %37 = vector.load %arg3[%c0_46, %c4, %c0_47, %c0_48] : memref<5x9x32x128xf32, #tpu.memory_space<vmem>>, vector<1x1x32x128xf32>
    %38 = vector.shape_cast %37 : vector<1x1x32x128xf32> to vector<32x128xf32>
    %cst_49 = arith.constant dense<0.000000e+00> : vector<288x128xf32>
    %39 = tpu.matmul %36, %38, %cst_49 {dimension_numbers = #tpu.dot_dimension_numbers<[1], [0], [0], [1], [0, 0, 1, 1], [], []>} : vector<288x32xf32>, vector<32x128xf32>, vector<288x128xf32> -> vector<288x128xf32>
    %c0_50 = arith.constant 0 : index
    %c0_51 = arith.constant 0 : index
    %40 = vector.load %arg13[%c0_50, %c0_51] : memref<288x128xf32, #tpu.memory_space<vmem>>, vector<288x128xf32>
    %41 = arith.addf %40, %39 : vector<288x128xf32>
    %c0_52 = arith.constant 0 : index
    %c0_53 = arith.constant 0 : index
    %42 = vector.load %arg13[%c0_52, %c0_53] : memref<288x128xf32, #tpu.memory_space<vmem>>, vector<288x128xf32>
    tpu.vector_store %arg13[%c0_52, %c0_53], %41 {strides = array<i32>} : memref<288x128xf32, #tpu.memory_space<vmem>>, vector<288x128xf32>,
    %c0_54 = arith.constant 0 : index
    %c25 = arith.constant 25 : index
    %c0_55 = arith.constant 0 : index
    %43 = vector.load %arg1[%c0_54, %c25, %c0_55] : memref<1x336x32xf32, #tpu.memory_space<vmem>>, vector<1x288x32xf32>
    %44 = vector.shape_cast %43 : vector<1x288x32xf32> to vector<288x32xf32>
    %c0_56 = arith.constant 0 : index
    %c5_57 = arith.constant 5 : index
    %c0_58 = arith.constant 0 : index
    %c0_59 = arith.constant 0 : index
    %45 = vector.load %arg3[%c0_56, %c5_57, %c0_58, %c0_59] : memref<5x9x32x128xf32, #tpu.memory_space<vmem>>, vector<1x1x32x128xf32>
    %46 = vector.shape_cast %45 : vector<1x1x32x128xf32> to vector<32x128xf32>
    %cst_60 = arith.constant dense<0.000000e+00> : vector<288x128xf32>
    %47 = tpu.matmul %44, %46, %cst_60 {dimension_numbers = #tpu.dot_dimension_numbers<[1], [0], [0], [1], [0, 0, 1, 1], [], []>} : vector<288x32xf32>, vector<32x128xf32>, vector<288x128xf32> -> vector<288x128xf32>
    %c0_61 = arith.constant 0 : index
    %c0_62 = arith.constant 0 : index
    %48 = vector.load %arg13[%c0_61, %c0_62] : memref<288x128xf32, #tpu.memory_space<vmem>>, vector<288x128xf32>
    %49 = arith.addf %48, %47 : vector<288x128xf32>
    %c0_63 = arith.constant 0 : index
    %c0_64 = arith.constant 0 : index
    %50 = vector.load %arg13[%c0_63, %c0_64] : memref<288x128xf32, #tpu.memory_space<vmem>>, vector<288x128xf32>
    tpu.vector_store %arg13[%c0_63, %c0_64], %49 {strides = array<i32>} : memref<288x128xf32, #tpu.memory_space<vmem>>, vector<288x128xf32>,
    %c0_65 = arith.constant 0 : index
    %c41 = arith.constant 41 : index
    %c0_66 = arith.constant 0 : index
    %51 = vector.load %arg1[%c0_65, %c41, %c0_66] : memref<1x336x32xf32, #tpu.memory_space<vmem>>, vector<1x288x32xf32>
    %52 = vector.shape_cast %51 : vector<1x288x32xf32> to vector<288x32xf32>
    %c0_67 = arith.constant 0 : index
    %c6_68 = arith.constant 6 : index
    %c0_69 = arith.constant 0 : index
    %c0_70 = arith.constant 0 : index
    %53 = vector.load %arg3[%c0_67, %c6_68, %c0_69, %c0_70] : memref<5x9x32x128xf32, #tpu.memory_space<vmem>>, vector<1x1x32x128xf32>
    %54 = vector.shape_cast %53 : vector<1x1x32x128xf32> to vector<32x128xf32>
    %cst_71 = arith.constant dense<0.000000e+00> : vector<288x128xf32>
    %55 = tpu.matmul %52, %54, %cst_71 {dimension_numbers = #tpu.dot_dimension_numbers<[1], [0], [0], [1], [0, 0, 1, 1], [], []>} : vector<288x32xf32>, vector<32x128xf32>, vector<288x128xf32> -> vector<288x128xf32>
    %c0_72 = arith.constant 0 : index
    %c0_73 = arith.constant 0 : index
    %56 = vector.load %arg13[%c0_72, %c0_73] : memref<288x128xf32, #tpu.memory_space<vmem>>, vector<288x128xf32>
    %57 = arith.addf %56, %55 : vector<288x128xf32>
    %c0_74 = arith.constant 0 : index
    %c0_75 = arith.constant 0 : index
    %58 = vector.load %arg13[%c0_74, %c0_75] : memref<288x128xf32, #tpu.memory_space<vmem>>, vector<288x128xf32>
    tpu.vector_store %arg13[%c0_74, %c0_75], %57 {strides = array<i32>} : memref<288x128xf32, #tpu.memory_space<vmem>>, vector<288x128xf32>,
    %c0_76 = arith.constant 0 : index
    %c42 = arith.constant 42 : index
    %c0_77 = arith.constant 0 : index
    %59 = vector.load %arg1[%c0_76, %c42, %c0_77] : memref<1x336x32xf32, #tpu.memory_space<vmem>>, vector<1x288x32xf32>
    %60 = vector.shape_cast %59 : vector<1x288x32xf32> to vector<288x32xf32>
    %c0_78 = arith.constant 0 : index
    %c7_79 = arith.constant 7 : index
    %c0_80 = arith.constant 0 : index
    %c0_81 = arith.constant 0 : index
    %61 = vector.load %arg3[%c0_78, %c7_79, %c0_80, %c0_81] : memref<5x9x32x128xf32, #tpu.memory_space<vmem>>, vector<1x1x32x128xf32>
    %62 = vector.shape_cast %61 : vector<1x1x32x128xf32> to vector<32x128xf32>
    %cst_82 = arith.constant dense<0.000000e+00> : vector<288x128xf32>
    %63 = tpu.matmul %60, %62, %cst_82 {dimension_numbers = #tpu.dot_dimension_numbers<[1], [0], [0], [1], [0, 0, 1, 1], [], []>} : vector<288x32xf32>, vector<32x128xf32>, vector<288x128xf32> -> vector<288x128xf32>
    %c0_83 = arith.constant 0 : index
    %c0_84 = arith.constant 0 : index
    %64 = vector.load %arg13[%c0_83, %c0_84] : memref<288x128xf32, #tpu.memory_space<vmem>>, vector<288x128xf32>
    %65 = arith.addf %64, %63 : vector<288x128xf32>
    %c0_85 = arith.constant 0 : index
    %c0_86 = arith.constant 0 : index
    %66 = vector.load %arg13[%c0_85, %c0_86] : memref<288x128xf32, #tpu.memory_space<vmem>>, vector<288x128xf32>
    tpu.vector_store %arg13[%c0_85, %c0_86], %65 {strides = array<i32>} : memref<288x128xf32, #tpu.memory_space<vmem>>, vector<288x128xf32>,
    %c0_87 = arith.constant 0 : index
    %c43 = arith.constant 43 : index
    %c0_88 = arith.constant 0 : index
    %67 = vector.load %arg1[%c0_87, %c43, %c0_88] : memref<1x336x32xf32, #tpu.memory_space<vmem>>, vector<1x288x32xf32>
    %68 = vector.shape_cast %67 : vector<1x288x32xf32> to vector<288x32xf32>
    %c0_89 = arith.constant 0 : index
    %c8 = arith.constant 8 : index
    %c0_90 = arith.constant 0 : index
    %c0_91 = arith.constant 0 : index
    %69 = vector.load %arg3[%c0_89, %c8, %c0_90, %c0_91] : memref<5x9x32x128xf32, #tpu.memory_space<vmem>>, vector<1x1x32x128xf32>
    %70 = vector.shape_cast %69 : vector<1x1x32x128xf32> to vector<32x128xf32>
    %cst_92 = arith.constant dense<0.000000e+00> : vector<288x128xf32>
    %71 = tpu.matmul %68, %70, %cst_92 {dimension_numbers = #tpu.dot_dimension_numbers<[1], [0], [0], [1], [0, 0, 1, 1], [], []>} : vector<288x32xf32>, vector<32x128xf32>, vector<288x128xf32> -> vector<288x128xf32>
    %c0_93 = arith.constant 0 : index
    %c0_94 = arith.constant 0 : index
    %72 = vector.load %arg13[%c0_93, %c0_94] : memref<288x128xf32, #tpu.memory_space<vmem>>, vector<288x128xf32>
    %73 = arith.addf %72, %71 : vector<288x128xf32>
    %c0_95 = arith.constant 0 : index
    %c0_96 = arith.constant 0 : index
    %74 = vector.load %arg13[%c0_95, %c0_96] : memref<288x128xf32, #tpu.memory_space<vmem>>, vector<288x128xf32>
    tpu.vector_store %arg13[%c0_95, %c0_96], %73 {strides = array<i32>} : memref<288x128xf32, #tpu.memory_space<vmem>>, vector<288x128xf32>,
    %c0_97 = arith.constant 0 : index
    %c0_98 = arith.constant 0 : index
    %75 = vector.load %arg13[%c0_97, %c0_98] : memref<288x128xf32, #tpu.memory_space<vmem>>, vector<288x128xf32>
    %c0_99 = arith.constant 0 : index
    %c0_100 = arith.constant 0 : index
    %c0_101 = arith.constant 0 : index
    %76 = vector.load %arg4[%c0_99, %c0_100, %c0_101] : memref<5x1x128xf32, #tpu.memory_space<vmem>>, vector<1x1x128xf32>
    %77 = vector.shape_cast %76 : vector<1x1x128xf32> to vector<1x128xf32>
    %78 = vector.broadcast %77 : vector<1x128xf32> to vector<288x128xf32>
    %79 = arith.mulf %75, %78 : vector<288x128xf32>
    %c0_102 = arith.constant 0 : index
    %c0_103 = arith.constant 0 : index
    %c0_104 = arith.constant 0 : index
    %80 = vector.load %arg5[%c0_102, %c0_103, %c0_104] : memref<5x1x128xf32, #tpu.memory_space<vmem>>, vector<1x1x128xf32>
    %81 = vector.shape_cast %80 : vector<1x1x128xf32> to vector<1x128xf32>
    %82 = vector.broadcast %81 : vector<1x128xf32> to vector<288x128xf32>
    %83 = arith.addf %79, %82 : vector<288x128xf32>
    %cst_105 = arith.constant 0.000000e+00 : f32
    %84 = vector.broadcast %cst_105 : f32 to vector<288x128xf32>
    %85 = arith.maximumf %83, %84 : vector<288x128xf32>
    %86 = vector.broadcast %0 : vector<288x1xf32> to vector<288x128xf32>
    %87 = arith.mulf %85, %86 : vector<288x128xf32>
    %c24_106 = arith.constant 24 : index
    %c0_107 = arith.constant 0 : index
    %88 = vector.load %arg12[%c24_106, %c0_107] : memref<336x128xf32, #tpu.memory_space<vmem>>, vector<288x128xf32>
    tpu.vector_store %arg12[%c24_106, %c0_107], %87 {strides = array<i32>} : memref<336x128xf32, #tpu.memory_space<vmem>>, vector<288x128xf32>,
    %c5_108 = arith.constant 5 : index
    %c0_109 = arith.constant 0 : index
    %89 = vector.load %arg12[%c5_108, %c0_109] : memref<336x128xf32, #tpu.memory_space<vmem>>, vector<288x32xf32>
    %c1_110 = arith.constant 1 : index
    %c0_111 = arith.constant 0 : index
    %c0_112 = arith.constant 0 : index
    %c0_113 = arith.constant 0 : index
    %90 = vector.load %arg3[%c1_110, %c0_111, %c0_112, %c0_113] : memref<5x9x32x128xf32, #tpu.memory_space<vmem>>, vector<1x1x32x128xf32>
    %91 = vector.shape_cast %90 : vector<1x1x32x128xf32> to vector<32x128xf32>
    %cst_114 = arith.constant dense<0.000000e+00> : vector<288x128xf32>
    %92 = tpu.matmul %89, %91, %cst_114 {dimension_numbers = #tpu.dot_dimension_numbers<[1], [0], [0], [1], [0, 0, 1, 1], [], []>} : vector<288x32xf32>, vector<32x128xf32>, vector<288x128xf32> -> vector<288x128xf32>
    %c0_115 = arith.constant 0 : index
    %c0_116 = arith.constant 0 : index
    %93 = vector.load %arg13[%c0_115, %c0_116] : memref<288x128xf32, #tpu.memory_space<vmem>>, vector<288x128xf32>
    tpu.vector_store %arg13[%c0_115, %c0_116], %92 {strides = array<i32>} : memref<288x128xf32, #tpu.memory_space<vmem>>, vector<288x128xf32>,
    %c6_117 = arith.constant 6 : index
    %c0_118 = arith.constant 0 : index
    %94 = vector.load %arg12[%c6_117, %c0_118] : memref<336x128xf32, #tpu.memory_space<vmem>>, vector<288x32xf32>
    %c1_119 = arith.constant 1 : index
    %c1_120 = arith.constant 1 : index
    %c0_121 = arith.constant 0 : index
    %c0_122 = arith.constant 0 : index
    %95 = vector.load %arg3[%c1_119, %c1_120, %c0_121, %c0_122] : memref<5x9x32x128xf32, #tpu.memory_space<vmem>>, vector<1x1x32x128xf32>
    %96 = vector.shape_cast %95 : vector<1x1x32x128xf32> to vector<32x128xf32>
    %cst_123 = arith.constant dense<0.000000e+00> : vector<288x128xf32>
    %97 = tpu.matmul %94, %96, %cst_123 {dimension_numbers = #tpu.dot_dimension_numbers<[1], [0], [0], [1], [0, 0, 1, 1], [], []>} : vector<288x32xf32>, vector<32x128xf32>, vector<288x128xf32> -> vector<288x128xf32>
    %c0_124 = arith.constant 0 : index
    %c0_125 = arith.constant 0 : index
    %98 = vector.load %arg13[%c0_124, %c0_125] : memref<288x128xf32, #tpu.memory_space<vmem>>, vector<288x128xf32>
    %99 = arith.addf %98, %97 : vector<288x128xf32>
    %c0_126 = arith.constant 0 : index
    %c0_127 = arith.constant 0 : index
    %100 = vector.load %arg13[%c0_126, %c0_127] : memref<288x128xf32, #tpu.memory_space<vmem>>, vector<288x128xf32>
    tpu.vector_store %arg13[%c0_126, %c0_127], %99 {strides = array<i32>} : memref<288x128xf32, #tpu.memory_space<vmem>>, vector<288x128xf32>,
    %c7_128 = arith.constant 7 : index
    %c0_129 = arith.constant 0 : index
    %101 = vector.load %arg12[%c7_128, %c0_129] : memref<336x128xf32, #tpu.memory_space<vmem>>, vector<288x32xf32>
    %c1_130 = arith.constant 1 : index
    %c2_131 = arith.constant 2 : index
    %c0_132 = arith.constant 0 : index
    %c0_133 = arith.constant 0 : index
    %102 = vector.load %arg3[%c1_130, %c2_131, %c0_132, %c0_133] : memref<5x9x32x128xf32, #tpu.memory_space<vmem>>, vector<1x1x32x128xf32>
    %103 = vector.shape_cast %102 : vector<1x1x32x128xf32> to vector<32x128xf32>
    %cst_134 = arith.constant dense<0.000000e+00> : vector<288x128xf32>
    %104 = tpu.matmul %101, %103, %cst_134 {dimension_numbers = #tpu.dot_dimension_numbers<[1], [0], [0], [1], [0, 0, 1, 1], [], []>} : vector<288x32xf32>, vector<32x128xf32>, vector<288x128xf32> -> vector<288x128xf32>
    %c0_135 = arith.constant 0 : index
    %c0_136 = arith.constant 0 : index
    %105 = vector.load %arg13[%c0_135, %c0_136] : memref<288x128xf32, #tpu.memory_space<vmem>>, vector<288x128xf32>
    %106 = arith.addf %105, %104 : vector<288x128xf32>
    %c0_137 = arith.constant 0 : index
    %c0_138 = arith.constant 0 : index
    %107 = vector.load %arg13[%c0_137, %c0_138] : memref<288x128xf32, #tpu.memory_space<vmem>>, vector<288x128xf32>
    tpu.vector_store %arg13[%c0_137, %c0_138], %106 {strides = array<i32>} : memref<288x128xf32, #tpu.memory_space<vmem>>, vector<288x128xf32>,
    %c23_139 = arith.constant 23 : index
    %c0_140 = arith.constant 0 : index
    %108 = vector.load %arg12[%c23_139, %c0_140] : memref<336x128xf32, #tpu.memory_space<vmem>>, vector<288x32xf32>
    %c1_141 = arith.constant 1 : index
    %c3_142 = arith.constant 3 : index
    %c0_143 = arith.constant 0 : index
    %c0_144 = arith.constant 0 : index
    %109 = vector.load %arg3[%c1_141, %c3_142, %c0_143, %c0_144] : memref<5x9x32x128xf32, #tpu.memory_space<vmem>>, vector<1x1x32x128xf32>
    %110 = vector.shape_cast %109 : vector<1x1x32x128xf32> to vector<32x128xf32>
    %cst_145 = arith.constant dense<0.000000e+00> : vector<288x128xf32>
    %111 = tpu.matmul %108, %110, %cst_145 {dimension_numbers = #tpu.dot_dimension_numbers<[1], [0], [0], [1], [0, 0, 1, 1], [], []>} : vector<288x32xf32>, vector<32x128xf32>, vector<288x128xf32> -> vector<288x128xf32>
    %c0_146 = arith.constant 0 : index
    %c0_147 = arith.constant 0 : index
    %112 = vector.load %arg13[%c0_146, %c0_147] : memref<288x128xf32, #tpu.memory_space<vmem>>, vector<288x128xf32>
    %113 = arith.addf %112, %111 : vector<288x128xf32>
    %c0_148 = arith.constant 0 : index
    %c0_149 = arith.constant 0 : index
    %114 = vector.load %arg13[%c0_148, %c0_149] : memref<288x128xf32, #tpu.memory_space<vmem>>, vector<288x128xf32>
    tpu.vector_store %arg13[%c0_148, %c0_149], %113 {strides = array<i32>} : memref<288x128xf32, #tpu.memory_space<vmem>>, vector<288x128xf32>,
    %c24_150 = arith.constant 24 : index
    %c0_151 = arith.constant 0 : index
    %115 = vector.load %arg12[%c24_150, %c0_151] : memref<336x128xf32, #tpu.memory_space<vmem>>, vector<288x32xf32>
    %c1_152 = arith.constant 1 : index
    %c4_153 = arith.constant 4 : index
    %c0_154 = arith.constant 0 : index
    %c0_155 = arith.constant 0 : index
    %116 = vector.load %arg3[%c1_152, %c4_153, %c0_154, %c0_155] : memref<5x9x32x128xf32, #tpu.memory_space<vmem>>, vector<1x1x32x128xf32>
    %117 = vector.shape_cast %116 : vector<1x1x32x128xf32> to vector<32x128xf32>
    %cst_156 = arith.constant dense<0.000000e+00> : vector<288x128xf32>
    %118 = tpu.matmul %115, %117, %cst_156 {dimension_numbers = #tpu.dot_dimension_numbers<[1], [0], [0], [1], [0, 0, 1, 1], [], []>} : vector<288x32xf32>, vector<32x128xf32>, vector<288x128xf32> -> vector<288x128xf32>
    %c0_157 = arith.constant 0 : index
    %c0_158 = arith.constant 0 : index
    %119 = vector.load %arg13[%c0_157, %c0_158] : memref<288x128xf32, #tpu.memory_space<vmem>>, vector<288x128xf32>
    %120 = arith.addf %119, %118 : vector<288x128xf32>
    %c0_159 = arith.constant 0 : index
    %c0_160 = arith.constant 0 : index
    %121 = vector.load %arg13[%c0_159, %c0_160] : memref<288x128xf32, #tpu.memory_space<vmem>>, vector<288x128xf32>
    tpu.vector_store %arg13[%c0_159, %c0_160], %120 {strides = array<i32>} : memref<288x128xf32, #tpu.memory_space<vmem>>, vector<288x128xf32>,
    %c25_161 = arith.constant 25 : index
    %c0_162 = arith.constant 0 : index
    %122 = vector.load %arg12[%c25_161, %c0_162] : memref<336x128xf32, #tpu.memory_space<vmem>>, vector<288x32xf32>
    %c1_163 = arith.constant 1 : index
    %c5_164 = arith.constant 5 : index
    %c0_165 = arith.constant 0 : index
    %c0_166 = arith.constant 0 : index
    %123 = vector.load %arg3[%c1_163, %c5_164, %c0_165, %c0_166] : memref<5x9x32x128xf32, #tpu.memory_space<vmem>>, vector<1x1x32x128xf32>
    %124 = vector.shape_cast %123 : vector<1x1x32x128xf32> to vector<32x128xf32>
    %cst_167 = arith.constant dense<0.000000e+00> : vector<288x128xf32>
    %125 = tpu.matmul %122, %124, %cst_167 {dimension_numbers = #tpu.dot_dimension_numbers<[1], [0], [0], [1], [0, 0, 1, 1], [], []>} : vector<288x32xf32>, vector<32x128xf32>, vector<288x128xf32> -> vector<288x128xf32>
    %c0_168 = arith.constant 0 : index
    %c0_169 = arith.constant 0 : index
    %126 = vector.load %arg13[%c0_168, %c0_169] : memref<288x128xf32, #tpu.memory_space<vmem>>, vector<288x128xf32>
    %127 = arith.addf %126, %125 : vector<288x128xf32>
    %c0_170 = arith.constant 0 : index
    %c0_171 = arith.constant 0 : index
    %128 = vector.load %arg13[%c0_170, %c0_171] : memref<288x128xf32, #tpu.memory_space<vmem>>, vector<288x128xf32>
    tpu.vector_store %arg13[%c0_170, %c0_171], %127 {strides = array<i32>} : memref<288x128xf32, #tpu.memory_space<vmem>>, vector<288x128xf32>,
    %c41_172 = arith.constant 41 : index
    %c0_173 = arith.constant 0 : index
    %129 = vector.load %arg12[%c41_172, %c0_173] : memref<336x128xf32, #tpu.memory_space<vmem>>, vector<288x32xf32>
    %c1_174 = arith.constant 1 : index
    %c6_175 = arith.constant 6 : index
    %c0_176 = arith.constant 0 : index
    %c0_177 = arith.constant 0 : index
    %130 = vector.load %arg3[%c1_174, %c6_175, %c0_176, %c0_177] : memref<5x9x32x128xf32, #tpu.memory_space<vmem>>, vector<1x1x32x128xf32>
    %131 = vector.shape_cast %130 : vector<1x1x32x128xf32> to vector<32x128xf32>
    %cst_178 = arith.constant dense<0.000000e+00> : vector<288x128xf32>
    %132 = tpu.matmul %129, %131, %cst_178 {dimension_numbers = #tpu.dot_dimension_numbers<[1], [0], [0], [1], [0, 0, 1, 1], [], []>} : vector<288x32xf32>, vector<32x128xf32>, vector<288x128xf32> -> vector<288x128xf32>
    %c0_179 = arith.constant 0 : index
    %c0_180 = arith.constant 0 : index
    %133 = vector.load %arg13[%c0_179, %c0_180] : memref<288x128xf32, #tpu.memory_space<vmem>>, vector<288x128xf32>
    %134 = arith.addf %133, %132 : vector<288x128xf32>
    %c0_181 = arith.constant 0 : index
    %c0_182 = arith.constant 0 : index
    %135 = vector.load %arg13[%c0_181, %c0_182] : memref<288x128xf32, #tpu.memory_space<vmem>>, vector<288x128xf32>
    tpu.vector_store %arg13[%c0_181, %c0_182], %134 {strides = array<i32>} : memref<288x128xf32, #tpu.memory_space<vmem>>, vector<288x128xf32>,
    %c42_183 = arith.constant 42 : index
    %c0_184 = arith.constant 0 : index
    %136 = vector.load %arg12[%c42_183, %c0_184] : memref<336x128xf32, #tpu.memory_space<vmem>>, vector<288x32xf32>
    %c1_185 = arith.constant 1 : index
    %c7_186 = arith.constant 7 : index
    %c0_187 = arith.constant 0 : index
    %c0_188 = arith.constant 0 : index
    %137 = vector.load %arg3[%c1_185, %c7_186, %c0_187, %c0_188] : memref<5x9x32x128xf32, #tpu.memory_space<vmem>>, vector<1x1x32x128xf32>
    %138 = vector.shape_cast %137 : vector<1x1x32x128xf32> to vector<32x128xf32>
    %cst_189 = arith.constant dense<0.000000e+00> : vector<288x128xf32>
    %139 = tpu.matmul %136, %138, %cst_189 {dimension_numbers = #tpu.dot_dimension_numbers<[1], [0], [0], [1], [0, 0, 1, 1], [], []>} : vector<288x32xf32>, vector<32x128xf32>, vector<288x128xf32> -> vector<288x128xf32>
    %c0_190 = arith.constant 0 : index
    %c0_191 = arith.constant 0 : index
    %140 = vector.load %arg13[%c0_190, %c0_191] : memref<288x128xf32, #tpu.memory_space<vmem>>, vector<288x128xf32>
    %141 = arith.addf %140, %139 : vector<288x128xf32>
    %c0_192 = arith.constant 0 : index
    %c0_193 = arith.constant 0 : index
    %142 = vector.load %arg13[%c0_192, %c0_193] : memref<288x128xf32, #tpu.memory_space<vmem>>, vector<288x128xf32>
    tpu.vector_store %arg13[%c0_192, %c0_193], %141 {strides = array<i32>} : memref<288x128xf32, #tpu.memory_space<vmem>>, vector<288x128xf32>,
    %c43_194 = arith.constant 43 : index
    %c0_195 = arith.constant 0 : index
    %143 = vector.load %arg12[%c43_194, %c0_195] : memref<336x128xf32, #tpu.memory_space<vmem>>, vector<288x32xf32>
    %c1_196 = arith.constant 1 : index
    %c8_197 = arith.constant 8 : index
    %c0_198 = arith.constant 0 : index
    %c0_199 = arith.constant 0 : index
    %144 = vector.load %arg3[%c1_196, %c8_197, %c0_198, %c0_199] : memref<5x9x32x128xf32, #tpu.memory_space<vmem>>, vector<1x1x32x128xf32>
    %145 = vector.shape_cast %144 : vector<1x1x32x128xf32> to vector<32x128xf32>
    %cst_200 = arith.constant dense<0.000000e+00> : vector<288x128xf32>
    %146 = tpu.matmul %143, %145, %cst_200 {dimension_numbers = #tpu.dot_dimension_numbers<[1], [0], [0], [1], [0, 0, 1, 1], [], []>} : vector<288x32xf32>, vector<32x128xf32>, vector<288x128xf32> -> vector<288x128xf32>
    %c0_201 = arith.constant 0 : index
    %c0_202 = arith.constant 0 : index
    %147 = vector.load %arg13[%c0_201, %c0_202] : memref<288x128xf32, #tpu.memory_space<vmem>>, vector<288x128xf32>
    %148 = arith.addf %147, %146 : vector<288x128xf32>
    %c0_203 = arith.constant 0 : index
    %c0_204 = arith.constant 0 : index
    %149 = vector.load %arg13[%c0_203, %c0_204] : memref<288x128xf32, #tpu.memory_space<vmem>>, vector<288x128xf32>
    tpu.vector_store %arg13[%c0_203, %c0_204], %148 {strides = array<i32>} : memref<288x128xf32, #tpu.memory_space<vmem>>, vector<288x128xf32>,
    %c0_205 = arith.constant 0 : index
    %c0_206 = arith.constant 0 : index
    %150 = vector.load %arg13[%c0_205, %c0_206] : memref<288x128xf32, #tpu.memory_space<vmem>>, vector<288x128xf32>
    %c1_207 = arith.constant 1 : index
    %c0_208 = arith.constant 0 : index
    %c0_209 = arith.constant 0 : index
    %151 = vector.load %arg4[%c1_207, %c0_208, %c0_209] : memref<5x1x128xf32, #tpu.memory_space<vmem>>, vector<1x1x128xf32>
    %152 = vector.shape_cast %151 : vector<1x1x128xf32> to vector<1x128xf32>
    %153 = vector.broadcast %152 : vector<1x128xf32> to vector<288x128xf32>
    %154 = arith.mulf %150, %153 : vector<288x128xf32>
    %c1_210 = arith.constant 1 : index
    %c0_211 = arith.constant 0 : index
    %c0_212 = arith.constant 0 : index
    %155 = vector.load %arg5[%c1_210, %c0_211, %c0_212] : memref<5x1x128xf32, #tpu.memory_space<vmem>>, vector<1x1x128xf32>
    %156 = vector.shape_cast %155 : vector<1x1x128xf32> to vector<1x128xf32>
    %157 = vector.broadcast %156 : vector<1x128xf32> to vector<288x128xf32>
    %158 = arith.addf %154, %157 : vector<288x128xf32>
    %cst_213 = arith.constant 0.000000e+00 : f32
    %159 = vector.broadcast %cst_213 : f32 to vector<288x128xf32>
    %160 = arith.maximumf %158, %159 : vector<288x128xf32>
    %161 = vector.broadcast %0 : vector<288x1xf32> to vector<288x128xf32>
    %162 = arith.mulf %160, %161 : vector<288x128xf32>
    %c24_214 = arith.constant 24 : index
    %c0_215 = arith.constant 0 : index
    %163 = vector.load %arg12[%c24_214, %c0_215] : memref<336x128xf32, #tpu.memory_space<vmem>>, vector<288x128xf32>
    tpu.vector_store %arg12[%c24_214, %c0_215], %162 {strides = array<i32>} : memref<336x128xf32, #tpu.memory_space<vmem>>, vector<288x128xf32>,
    %c5_216 = arith.constant 5 : index
    %c0_217 = arith.constant 0 : index
    %164 = vector.load %arg12[%c5_216, %c0_217] : memref<336x128xf32, #tpu.memory_space<vmem>>, vector<288x32xf32>
    %c2_218 = arith.constant 2 : index
    %c0_219 = arith.constant 0 : index
    %c0_220 = arith.constant 0 : index
    %c0_221 = arith.constant 0 : index
    %165 = vector.load %arg3[%c2_218, %c0_219, %c0_220, %c0_221] : memref<5x9x32x128xf32, #tpu.memory_space<vmem>>, vector<1x1x32x128xf32>
    %166 = vector.shape_cast %165 : vector<1x1x32x128xf32> to vector<32x128xf32>
    %cst_222 = arith.constant dense<0.000000e+00> : vector<288x128xf32>
    %167 = tpu.matmul %164, %166, %cst_222 {dimension_numbers = #tpu.dot_dimension_numbers<[1], [0], [0], [1], [0, 0, 1, 1], [], []>} : vector<288x32xf32>, vector<32x128xf32>, vector<288x128xf32> -> vector<288x128xf32>
    %c0_223 = arith.constant 0 : index
    %c0_224 = arith.constant 0 : index
    %168 = vector.load %arg13[%c0_223, %c0_224] : memref<288x128xf32, #tpu.memory_space<vmem>>, vector<288x128xf32>
    tpu.vector_store %arg13[%c0_223, %c0_224], %167 {strides = array<i32>} : memref<288x128xf32, #tpu.memory_space<vmem>>, vector<288x128xf32>,
    %c6_225 = arith.constant 6 : index
    %c0_226 = arith.constant 0 : index
    %169 = vector.load %arg12[%c6_225, %c0_226] : memref<336x128xf32, #tpu.memory_space<vmem>>, vector<288x32xf32>
    %c2_227 = arith.constant 2 : index
    %c1_228 = arith.constant 1 : index
    %c0_229 = arith.constant 0 : index
    %c0_230 = arith.constant 0 : index
    %170 = vector.load %arg3[%c2_227, %c1_228, %c0_229, %c0_230] : memref<5x9x32x128xf32, #tpu.memory_space<vmem>>, vector<1x1x32x128xf32>
    %171 = vector.shape_cast %170 : vector<1x1x32x128xf32> to vector<32x128xf32>
    %cst_231 = arith.constant dense<0.000000e+00> : vector<288x128xf32>
    %172 = tpu.matmul %169, %171, %cst_231 {dimension_numbers = #tpu.dot_dimension_numbers<[1], [0], [0], [1], [0, 0, 1, 1], [], []>} : vector<288x32xf32>, vector<32x128xf32>, vector<288x128xf32> -> vector<288x128xf32>
    %c0_232 = arith.constant 0 : index
    %c0_233 = arith.constant 0 : index
    %173 = vector.load %arg13[%c0_232, %c0_233] : memref<288x128xf32, #tpu.memory_space<vmem>>, vector<288x128xf32>
    %174 = arith.addf %173, %172 : vector<288x128xf32>
    %c0_234 = arith.constant 0 : index
    %c0_235 = arith.constant 0 : index
    %175 = vector.load %arg13[%c0_234, %c0_235] : memref<288x128xf32, #tpu.memory_space<vmem>>, vector<288x128xf32>
    tpu.vector_store %arg13[%c0_234, %c0_235], %174 {strides = array<i32>} : memref<288x128xf32, #tpu.memory_space<vmem>>, vector<288x128xf32>,
    %c7_236 = arith.constant 7 : index
    %c0_237 = arith.constant 0 : index
    %176 = vector.load %arg12[%c7_236, %c0_237] : memref<336x128xf32, #tpu.memory_space<vmem>>, vector<288x32xf32>
    %c2_238 = arith.constant 2 : index
    %c2_239 = arith.constant 2 : index
    %c0_240 = arith.constant 0 : index
    %c0_241 = arith.constant 0 : index
    %177 = vector.load %arg3[%c2_238, %c2_239, %c0_240, %c0_241] : memref<5x9x32x128xf32, #tpu.memory_space<vmem>>, vector<1x1x32x128xf32>
    %178 = vector.shape_cast %177 : vector<1x1x32x128xf32> to vector<32x128xf32>
    %cst_242 = arith.constant dense<0.000000e+00> : vector<288x128xf32>
    %179 = tpu.matmul %176, %178, %cst_242 {dimension_numbers = #tpu.dot_dimension_numbers<[1], [0], [0], [1], [0, 0, 1, 1], [], []>} : vector<288x32xf32>, vector<32x128xf32>, vector<288x128xf32> -> vector<288x128xf32>
    %c0_243 = arith.constant 0 : index
    %c0_244 = arith.constant 0 : index
    %180 = vector.load %arg13[%c0_243, %c0_244] : memref<288x128xf32, #tpu.memory_space<vmem>>, vector<288x128xf32>
    %181 = arith.addf %180, %179 : vector<288x128xf32>
    %c0_245 = arith.constant 0 : index
    %c0_246 = arith.constant 0 : index
    %182 = vector.load %arg13[%c0_245, %c0_246] : memref<288x128xf32, #tpu.memory_space<vmem>>, vector<288x128xf32>
    tpu.vector_store %arg13[%c0_245, %c0_246], %181 {strides = array<i32>} : memref<288x128xf32, #tpu.memory_space<vmem>>, vector<288x128xf32>,
    %c23_247 = arith.constant 23 : index
    %c0_248 = arith.constant 0 : index
    %183 = vector.load %arg12[%c23_247, %c0_248] : memref<336x128xf32, #tpu.memory_space<vmem>>, vector<288x32xf32>
    %c2_249 = arith.constant 2 : index
    %c3_250 = arith.constant 3 : index
    %c0_251 = arith.constant 0 : index
    %c0_252 = arith.constant 0 : index
    %184 = vector.load %arg3[%c2_249, %c3_250, %c0_251, %c0_252] : memref<5x9x32x128xf32, #tpu.memory_space<vmem>>, vector<1x1x32x128xf32>
    %185 = vector.shape_cast %184 : vector<1x1x32x128xf32> to vector<32x128xf32>
    %cst_253 = arith.constant dense<0.000000e+00> : vector<288x128xf32>
    %186 = tpu.matmul %183, %185, %cst_253 {dimension_numbers = #tpu.dot_dimension_numbers<[1], [0], [0], [1], [0, 0, 1, 1], [], []>} : vector<288x32xf32>, vector<32x128xf32>, vector<288x128xf32> -> vector<288x128xf32>
    %c0_254 = arith.constant 0 : index
    %c0_255 = arith.constant 0 : index
    %187 = vector.load %arg13[%c0_254, %c0_255] : memref<288x128xf32, #tpu.memory_space<vmem>>, vector<288x128xf32>
    %188 = arith.addf %187, %186 : vector<288x128xf32>
    %c0_256 = arith.constant 0 : index
    %c0_257 = arith.constant 0 : index
    %189 = vector.load %arg13[%c0_256, %c0_257] : memref<288x128xf32, #tpu.memory_space<vmem>>, vector<288x128xf32>
    tpu.vector_store %arg13[%c0_256, %c0_257], %188 {strides = array<i32>} : memref<288x128xf32, #tpu.memory_space<vmem>>, vector<288x128xf32>,
    %c24_258 = arith.constant 24 : index
    %c0_259 = arith.constant 0 : index
    %190 = vector.load %arg12[%c24_258, %c0_259] : memref<336x128xf32, #tpu.memory_space<vmem>>, vector<288x32xf32>
    %c2_260 = arith.constant 2 : index
    %c4_261 = arith.constant 4 : index
    %c0_262 = arith.constant 0 : index
    %c0_263 = arith.constant 0 : index
    %191 = vector.load %arg3[%c2_260, %c4_261, %c0_262, %c0_263] : memref<5x9x32x128xf32, #tpu.memory_space<vmem>>, vector<1x1x32x128xf32>
    %192 = vector.shape_cast %191 : vector<1x1x32x128xf32> to vector<32x128xf32>
    %cst_264 = arith.constant dense<0.000000e+00> : vector<288x128xf32>
    %193 = tpu.matmul %190, %192, %cst_264 {dimension_numbers = #tpu.dot_dimension_numbers<[1], [0], [0], [1], [0, 0, 1, 1], [], []>} : vector<288x32xf32>, vector<32x128xf32>, vector<288x128xf32> -> vector<288x128xf32>
    %c0_265 = arith.constant 0 : index
    %c0_266 = arith.constant 0 : index
    %194 = vector.load %arg13[%c0_265, %c0_266] : memref<288x128xf32, #tpu.memory_space<vmem>>, vector<288x128xf32>
    %195 = arith.addf %194, %193 : vector<288x128xf32>
    %c0_267 = arith.constant 0 : index
    %c0_268 = arith.constant 0 : index
    %196 = vector.load %arg13[%c0_267, %c0_268] : memref<288x128xf32, #tpu.memory_space<vmem>>, vector<288x128xf32>
    tpu.vector_store %arg13[%c0_267, %c0_268], %195 {strides = array<i32>} : memref<288x128xf32, #tpu.memory_space<vmem>>, vector<288x128xf32>,
    %c25_269 = arith.constant 25 : index
    %c0_270 = arith.constant 0 : index
    %197 = vector.load %arg12[%c25_269, %c0_270] : memref<336x128xf32, #tpu.memory_space<vmem>>, vector<288x32xf32>
    %c2_271 = arith.constant 2 : index
    %c5_272 = arith.constant 5 : index
    %c0_273 = arith.constant 0 : index
    %c0_274 = arith.constant 0 : index
    %198 = vector.load %arg3[%c2_271, %c5_272, %c0_273, %c0_274] : memref<5x9x32x128xf32, #tpu.memory_space<vmem>>, vector<1x1x32x128xf32>
    %199 = vector.shape_cast %198 : vector<1x1x32x128xf32> to vector<32x128xf32>
    %cst_275 = arith.constant dense<0.000000e+00> : vector<288x128xf32>
    %200 = tpu.matmul %197, %199, %cst_275 {dimension_numbers = #tpu.dot_dimension_numbers<[1], [0], [0], [1], [0, 0, 1, 1], [], []>} : vector<288x32xf32>, vector<32x128xf32>, vector<288x128xf32> -> vector<288x128xf32>
    %c0_276 = arith.constant 0 : index
    %c0_277 = arith.constant 0 : index
    %201 = vector.load %arg13[%c0_276, %c0_277] : memref<288x128xf32, #tpu.memory_space<vmem>>, vector<288x128xf32>
    %202 = arith.addf %201, %200 : vector<288x128xf32>
    %c0_278 = arith.constant 0 : index
    %c0_279 = arith.constant 0 : index
    %203 = vector.load %arg13[%c0_278, %c0_279] : memref<288x128xf32, #tpu.memory_space<vmem>>, vector<288x128xf32>
    tpu.vector_store %arg13[%c0_278, %c0_279], %202 {strides = array<i32>} : memref<288x128xf32, #tpu.memory_space<vmem>>, vector<288x128xf32>,
    %c41_280 = arith.constant 41 : index
    %c0_281 = arith.constant 0 : index
    %204 = vector.load %arg12[%c41_280, %c0_281] : memref<336x128xf32, #tpu.memory_space<vmem>>, vector<288x32xf32>
    %c2_282 = arith.constant 2 : index
    %c6_283 = arith.constant 6 : index
    %c0_284 = arith.constant 0 : index
    %c0_285 = arith.constant 0 : index
    %205 = vector.load %arg3[%c2_282, %c6_283, %c0_284, %c0_285] : memref<5x9x32x128xf32, #tpu.memory_space<vmem>>, vector<1x1x32x128xf32>
    %206 = vector.shape_cast %205 : vector<1x1x32x128xf32> to vector<32x128xf32>
    %cst_286 = arith.constant dense<0.000000e+00> : vector<288x128xf32>
    %207 = tpu.matmul %204, %206, %cst_286 {dimension_numbers = #tpu.dot_dimension_numbers<[1], [0], [0], [1], [0, 0, 1, 1], [], []>} : vector<288x32xf32>, vector<32x128xf32>, vector<288x128xf32> -> vector<288x128xf32>
    %c0_287 = arith.constant 0 : index
    %c0_288 = arith.constant 0 : index
    %208 = vector.load %arg13[%c0_287, %c0_288] : memref<288x128xf32, #tpu.memory_space<vmem>>, vector<288x128xf32>
    %209 = arith.addf %208, %207 : vector<288x128xf32>
    %c0_289 = arith.constant 0 : index
    %c0_290 = arith.constant 0 : index
    %210 = vector.load %arg13[%c0_289, %c0_290] : memref<288x128xf32, #tpu.memory_space<vmem>>, vector<288x128xf32>
    tpu.vector_store %arg13[%c0_289, %c0_290], %209 {strides = array<i32>} : memref<288x128xf32, #tpu.memory_space<vmem>>, vector<288x128xf32>,
    %c42_291 = arith.constant 42 : index
    %c0_292 = arith.constant 0 : index
    %211 = vector.load %arg12[%c42_291, %c0_292] : memref<336x128xf32, #tpu.memory_space<vmem>>, vector<288x32xf32>
    %c2_293 = arith.constant 2 : index
    %c7_294 = arith.constant 7 : index
    %c0_295 = arith.constant 0 : index
    %c0_296 = arith.constant 0 : index
    %212 = vector.load %arg3[%c2_293, %c7_294, %c0_295, %c0_296] : memref<5x9x32x128xf32, #tpu.memory_space<vmem>>, vector<1x1x32x128xf32>
    %213 = vector.shape_cast %212 : vector<1x1x32x128xf32> to vector<32x128xf32>
    %cst_297 = arith.constant dense<0.000000e+00> : vector<288x128xf32>
    %214 = tpu.matmul %211, %213, %cst_297 {dimension_numbers = #tpu.dot_dimension_numbers<[1], [0], [0], [1], [0, 0, 1, 1], [], []>} : vector<288x32xf32>, vector<32x128xf32>, vector<288x128xf32> -> vector<288x128xf32>
    %c0_298 = arith.constant 0 : index
    %c0_299 = arith.constant 0 : index
    %215 = vector.load %arg13[%c0_298, %c0_299] : memref<288x128xf32, #tpu.memory_space<vmem>>, vector<288x128xf32>
    %216 = arith.addf %215, %214 : vector<288x128xf32>
    %c0_300 = arith.constant 0 : index
    %c0_301 = arith.constant 0 : index
    %217 = vector.load %arg13[%c0_300, %c0_301] : memref<288x128xf32, #tpu.memory_space<vmem>>, vector<288x128xf32>
    tpu.vector_store %arg13[%c0_300, %c0_301], %216 {strides = array<i32>} : memref<288x128xf32, #tpu.memory_space<vmem>>, vector<288x128xf32>,
    %c43_302 = arith.constant 43 : index
    %c0_303 = arith.constant 0 : index
    %218 = vector.load %arg12[%c43_302, %c0_303] : memref<336x128xf32, #tpu.memory_space<vmem>>, vector<288x32xf32>
    %c2_304 = arith.constant 2 : index
    %c8_305 = arith.constant 8 : index
    %c0_306 = arith.constant 0 : index
    %c0_307 = arith.constant 0 : index
    %219 = vector.load %arg3[%c2_304, %c8_305, %c0_306, %c0_307] : memref<5x9x32x128xf32, #tpu.memory_space<vmem>>, vector<1x1x32x128xf32>
    %220 = vector.shape_cast %219 : vector<1x1x32x128xf32> to vector<32x128xf32>
    %cst_308 = arith.constant dense<0.000000e+00> : vector<288x128xf32>
    %221 = tpu.matmul %218, %220, %cst_308 {dimension_numbers = #tpu.dot_dimension_numbers<[1], [0], [0], [1], [0, 0, 1, 1], [], []>} : vector<288x32xf32>, vector<32x128xf32>, vector<288x128xf32> -> vector<288x128xf32>
    %c0_309 = arith.constant 0 : index
    %c0_310 = arith.constant 0 : index
    %222 = vector.load %arg13[%c0_309, %c0_310] : memref<288x128xf32, #tpu.memory_space<vmem>>, vector<288x128xf32>
    %223 = arith.addf %222, %221 : vector<288x128xf32>
    %c0_311 = arith.constant 0 : index
    %c0_312 = arith.constant 0 : index
    %224 = vector.load %arg13[%c0_311, %c0_312] : memref<288x128xf32, #tpu.memory_space<vmem>>, vector<288x128xf32>
    tpu.vector_store %arg13[%c0_311, %c0_312], %223 {strides = array<i32>} : memref<288x128xf32, #tpu.memory_space<vmem>>, vector<288x128xf32>,
    %c0_313 = arith.constant 0 : index
    %c0_314 = arith.constant 0 : index
    %225 = vector.load %arg13[%c0_313, %c0_314] : memref<288x128xf32, #tpu.memory_space<vmem>>, vector<288x128xf32>
    %c2_315 = arith.constant 2 : index
    %c0_316 = arith.constant 0 : index
    %c0_317 = arith.constant 0 : index
    %226 = vector.load %arg4[%c2_315, %c0_316, %c0_317] : memref<5x1x128xf32, #tpu.memory_space<vmem>>, vector<1x1x128xf32>
    %227 = vector.shape_cast %226 : vector<1x1x128xf32> to vector<1x128xf32>
    %228 = vector.broadcast %227 : vector<1x128xf32> to vector<288x128xf32>
    %229 = arith.mulf %225, %228 : vector<288x128xf32>
    %c2_318 = arith.constant 2 : index
    %c0_319 = arith.constant 0 : index
    %c0_320 = arith.constant 0 : index
    %230 = vector.load %arg5[%c2_318, %c0_319, %c0_320] : memref<5x1x128xf32, #tpu.memory_space<vmem>>, vector<1x1x128xf32>
    %231 = vector.shape_cast %230 : vector<1x1x128xf32> to vector<1x128xf32>
    %232 = vector.broadcast %231 : vector<1x128xf32> to vector<288x128xf32>
    %233 = arith.addf %229, %232 : vector<288x128xf32>
    %cst_321 = arith.constant 0.000000e+00 : f32
    %234 = vector.broadcast %cst_321 : f32 to vector<288x128xf32>
    %235 = arith.maximumf %233, %234 : vector<288x128xf32>
    %236 = vector.broadcast %0 : vector<288x1xf32> to vector<288x128xf32>
    %237 = arith.mulf %235, %236 : vector<288x128xf32>
    %c24_322 = arith.constant 24 : index
    %c0_323 = arith.constant 0 : index
    %238 = vector.load %arg12[%c24_322, %c0_323] : memref<336x128xf32, #tpu.memory_space<vmem>>, vector<288x128xf32>
    tpu.vector_store %arg12[%c24_322, %c0_323], %237 {strides = array<i32>} : memref<336x128xf32, #tpu.memory_space<vmem>>, vector<288x128xf32>,
    %c5_324 = arith.constant 5 : index
    %c0_325 = arith.constant 0 : index
    %239 = vector.load %arg12[%c5_324, %c0_325] : memref<336x128xf32, #tpu.memory_space<vmem>>, vector<288x32xf32>
    %c3_326 = arith.constant 3 : index
    %c0_327 = arith.constant 0 : index
    %c0_328 = arith.constant 0 : index
    %c0_329 = arith.constant 0 : index
    %240 = vector.load %arg3[%c3_326, %c0_327, %c0_328, %c0_329] : memref<5x9x32x128xf32, #tpu.memory_space<vmem>>, vector<1x1x32x128xf32>
    %241 = vector.shape_cast %240 : vector<1x1x32x128xf32> to vector<32x128xf32>
    %cst_330 = arith.constant dense<0.000000e+00> : vector<288x128xf32>
    %242 = tpu.matmul %239, %241, %cst_330 {dimension_numbers = #tpu.dot_dimension_numbers<[1], [0], [0], [1], [0, 0, 1, 1], [], []>} : vector<288x32xf32>, vector<32x128xf32>, vector<288x128xf32> -> vector<288x128xf32>
    %c0_331 = arith.constant 0 : index
    %c0_332 = arith.constant 0 : index
    %243 = vector.load %arg13[%c0_331, %c0_332] : memref<288x128xf32, #tpu.memory_space<vmem>>, vector<288x128xf32>
    tpu.vector_store %arg13[%c0_331, %c0_332], %242 {strides = array<i32>} : memref<288x128xf32, #tpu.memory_space<vmem>>, vector<288x128xf32>,
    %c6_333 = arith.constant 6 : index
    %c0_334 = arith.constant 0 : index
    %244 = vector.load %arg12[%c6_333, %c0_334] : memref<336x128xf32, #tpu.memory_space<vmem>>, vector<288x32xf32>
    %c3_335 = arith.constant 3 : index
    %c1_336 = arith.constant 1 : index
    %c0_337 = arith.constant 0 : index
    %c0_338 = arith.constant 0 : index
    %245 = vector.load %arg3[%c3_335, %c1_336, %c0_337, %c0_338] : memref<5x9x32x128xf32, #tpu.memory_space<vmem>>, vector<1x1x32x128xf32>
    %246 = vector.shape_cast %245 : vector<1x1x32x128xf32> to vector<32x128xf32>
    %cst_339 = arith.constant dense<0.000000e+00> : vector<288x128xf32>
    %247 = tpu.matmul %244, %246, %cst_339 {dimension_numbers = #tpu.dot_dimension_numbers<[1], [0], [0], [1], [0, 0, 1, 1], [], []>} : vector<288x32xf32>, vector<32x128xf32>, vector<288x128xf32> -> vector<288x128xf32>
    %c0_340 = arith.constant 0 : index
    %c0_341 = arith.constant 0 : index
    %248 = vector.load %arg13[%c0_340, %c0_341] : memref<288x128xf32, #tpu.memory_space<vmem>>, vector<288x128xf32>
    %249 = arith.addf %248, %247 : vector<288x128xf32>
    %c0_342 = arith.constant 0 : index
    %c0_343 = arith.constant 0 : index
    %250 = vector.load %arg13[%c0_342, %c0_343] : memref<288x128xf32, #tpu.memory_space<vmem>>, vector<288x128xf32>
    tpu.vector_store %arg13[%c0_342, %c0_343], %249 {strides = array<i32>} : memref<288x128xf32, #tpu.memory_space<vmem>>, vector<288x128xf32>,
    %c7_344 = arith.constant 7 : index
    %c0_345 = arith.constant 0 : index
    %251 = vector.load %arg12[%c7_344, %c0_345] : memref<336x128xf32, #tpu.memory_space<vmem>>, vector<288x32xf32>
    %c3_346 = arith.constant 3 : index
    %c2_347 = arith.constant 2 : index
    %c0_348 = arith.constant 0 : index
    %c0_349 = arith.constant 0 : index
    %252 = vector.load %arg3[%c3_346, %c2_347, %c0_348, %c0_349] : memref<5x9x32x128xf32, #tpu.memory_space<vmem>>, vector<1x1x32x128xf32>
    %253 = vector.shape_cast %252 : vector<1x1x32x128xf32> to vector<32x128xf32>
    %cst_350 = arith.constant dense<0.000000e+00> : vector<288x128xf32>
    %254 = tpu.matmul %251, %253, %cst_350 {dimension_numbers = #tpu.dot_dimension_numbers<[1], [0], [0], [1], [0, 0, 1, 1], [], []>} : vector<288x32xf32>, vector<32x128xf32>, vector<288x128xf32> -> vector<288x128xf32>
    %c0_351 = arith.constant 0 : index
    %c0_352 = arith.constant 0 : index
    %255 = vector.load %arg13[%c0_351, %c0_352] : memref<288x128xf32, #tpu.memory_space<vmem>>, vector<288x128xf32>
    %256 = arith.addf %255, %254 : vector<288x128xf32>
    %c0_353 = arith.constant 0 : index
    %c0_354 = arith.constant 0 : index
    %257 = vector.load %arg13[%c0_353, %c0_354] : memref<288x128xf32, #tpu.memory_space<vmem>>, vector<288x128xf32>
    tpu.vector_store %arg13[%c0_353, %c0_354], %256 {strides = array<i32>} : memref<288x128xf32, #tpu.memory_space<vmem>>, vector<288x128xf32>,
    %c23_355 = arith.constant 23 : index
    %c0_356 = arith.constant 0 : index
    %258 = vector.load %arg12[%c23_355, %c0_356] : memref<336x128xf32, #tpu.memory_space<vmem>>, vector<288x32xf32>
    %c3_357 = arith.constant 3 : index
    %c3_358 = arith.constant 3 : index
    %c0_359 = arith.constant 0 : index
    %c0_360 = arith.constant 0 : index
    %259 = vector.load %arg3[%c3_357, %c3_358, %c0_359, %c0_360] : memref<5x9x32x128xf32, #tpu.memory_space<vmem>>, vector<1x1x32x128xf32>
    %260 = vector.shape_cast %259 : vector<1x1x32x128xf32> to vector<32x128xf32>
    %cst_361 = arith.constant dense<0.000000e+00> : vector<288x128xf32>
    %261 = tpu.matmul %258, %260, %cst_361 {dimension_numbers = #tpu.dot_dimension_numbers<[1], [0], [0], [1], [0, 0, 1, 1], [], []>} : vector<288x32xf32>, vector<32x128xf32>, vector<288x128xf32> -> vector<288x128xf32>
    %c0_362 = arith.constant 0 : index
    %c0_363 = arith.constant 0 : index
    %262 = vector.load %arg13[%c0_362, %c0_363] : memref<288x128xf32, #tpu.memory_space<vmem>>, vector<288x128xf32>
    %263 = arith.addf %262, %261 : vector<288x128xf32>
    %c0_364 = arith.constant 0 : index
    %c0_365 = arith.constant 0 : index
    %264 = vector.load %arg13[%c0_364, %c0_365] : memref<288x128xf32, #tpu.memory_space<vmem>>, vector<288x128xf32>
    tpu.vector_store %arg13[%c0_364, %c0_365], %263 {strides = array<i32>} : memref<288x128xf32, #tpu.memory_space<vmem>>, vector<288x128xf32>,
    %c24_366 = arith.constant 24 : index
    %c0_367 = arith.constant 0 : index
    %265 = vector.load %arg12[%c24_366, %c0_367] : memref<336x128xf32, #tpu.memory_space<vmem>>, vector<288x32xf32>
    %c3_368 = arith.constant 3 : index
    %c4_369 = arith.constant 4 : index
    %c0_370 = arith.constant 0 : index
    %c0_371 = arith.constant 0 : index
    %266 = vector.load %arg3[%c3_368, %c4_369, %c0_370, %c0_371] : memref<5x9x32x128xf32, #tpu.memory_space<vmem>>, vector<1x1x32x128xf32>
    %267 = vector.shape_cast %266 : vector<1x1x32x128xf32> to vector<32x128xf32>
    %cst_372 = arith.constant dense<0.000000e+00> : vector<288x128xf32>
    %268 = tpu.matmul %265, %267, %cst_372 {dimension_numbers = #tpu.dot_dimension_numbers<[1], [0], [0], [1], [0, 0, 1, 1], [], []>} : vector<288x32xf32>, vector<32x128xf32>, vector<288x128xf32> -> vector<288x128xf32>
    %c0_373 = arith.constant 0 : index
    %c0_374 = arith.constant 0 : index
    %269 = vector.load %arg13[%c0_373, %c0_374] : memref<288x128xf32, #tpu.memory_space<vmem>>, vector<288x128xf32>
    %270 = arith.addf %269, %268 : vector<288x128xf32>
    %c0_375 = arith.constant 0 : index
    %c0_376 = arith.constant 0 : index
    %271 = vector.load %arg13[%c0_375, %c0_376] : memref<288x128xf32, #tpu.memory_space<vmem>>, vector<288x128xf32>
    tpu.vector_store %arg13[%c0_375, %c0_376], %270 {strides = array<i32>} : memref<288x128xf32, #tpu.memory_space<vmem>>, vector<288x128xf32>,
    %c25_377 = arith.constant 25 : index
    %c0_378 = arith.constant 0 : index
    %272 = vector.load %arg12[%c25_377, %c0_378] : memref<336x128xf32, #tpu.memory_space<vmem>>, vector<288x32xf32>
    %c3_379 = arith.constant 3 : index
    %c5_380 = arith.constant 5 : index
    %c0_381 = arith.constant 0 : index
    %c0_382 = arith.constant 0 : index
    %273 = vector.load %arg3[%c3_379, %c5_380, %c0_381, %c0_382] : memref<5x9x32x128xf32, #tpu.memory_space<vmem>>, vector<1x1x32x128xf32>
    %274 = vector.shape_cast %273 : vector<1x1x32x128xf32> to vector<32x128xf32>
    %cst_383 = arith.constant dense<0.000000e+00> : vector<288x128xf32>
    %275 = tpu.matmul %272, %274, %cst_383 {dimension_numbers = #tpu.dot_dimension_numbers<[1], [0], [0], [1], [0, 0, 1, 1], [], []>} : vector<288x32xf32>, vector<32x128xf32>, vector<288x128xf32> -> vector<288x128xf32>
    %c0_384 = arith.constant 0 : index
    %c0_385 = arith.constant 0 : index
    %276 = vector.load %arg13[%c0_384, %c0_385] : memref<288x128xf32, #tpu.memory_space<vmem>>, vector<288x128xf32>
    %277 = arith.addf %276, %275 : vector<288x128xf32>
    %c0_386 = arith.constant 0 : index
    %c0_387 = arith.constant 0 : index
    %278 = vector.load %arg13[%c0_386, %c0_387] : memref<288x128xf32, #tpu.memory_space<vmem>>, vector<288x128xf32>
    tpu.vector_store %arg13[%c0_386, %c0_387], %277 {strides = array<i32>} : memref<288x128xf32, #tpu.memory_space<vmem>>, vector<288x128xf32>,
    %c41_388 = arith.constant 41 : index
    %c0_389 = arith.constant 0 : index
    %279 = vector.load %arg12[%c41_388, %c0_389] : memref<336x128xf32, #tpu.memory_space<vmem>>, vector<288x32xf32>
    %c3_390 = arith.constant 3 : index
    %c6_391 = arith.constant 6 : index
    %c0_392 = arith.constant 0 : index
    %c0_393 = arith.constant 0 : index
    %280 = vector.load %arg3[%c3_390, %c6_391, %c0_392, %c0_393] : memref<5x9x32x128xf32, #tpu.memory_space<vmem>>, vector<1x1x32x128xf32>
    %281 = vector.shape_cast %280 : vector<1x1x32x128xf32> to vector<32x128xf32>
    %cst_394 = arith.constant dense<0.000000e+00> : vector<288x128xf32>
    %282 = tpu.matmul %279, %281, %cst_394 {dimension_numbers = #tpu.dot_dimension_numbers<[1], [0], [0], [1], [0, 0, 1, 1], [], []>} : vector<288x32xf32>, vector<32x128xf32>, vector<288x128xf32> -> vector<288x128xf32>
    %c0_395 = arith.constant 0 : index
    %c0_396 = arith.constant 0 : index
    %283 = vector.load %arg13[%c0_395, %c0_396] : memref<288x128xf32, #tpu.memory_space<vmem>>, vector<288x128xf32>
    %284 = arith.addf %283, %282 : vector<288x128xf32>
    %c0_397 = arith.constant 0 : index
    %c0_398 = arith.constant 0 : index
    %285 = vector.load %arg13[%c0_397, %c0_398] : memref<288x128xf32, #tpu.memory_space<vmem>>, vector<288x128xf32>
    tpu.vector_store %arg13[%c0_397, %c0_398], %284 {strides = array<i32>} : memref<288x128xf32, #tpu.memory_space<vmem>>, vector<288x128xf32>,
    %c42_399 = arith.constant 42 : index
    %c0_400 = arith.constant 0 : index
    %286 = vector.load %arg12[%c42_399, %c0_400] : memref<336x128xf32, #tpu.memory_space<vmem>>, vector<288x32xf32>
    %c3_401 = arith.constant 3 : index
    %c7_402 = arith.constant 7 : index
    %c0_403 = arith.constant 0 : index
    %c0_404 = arith.constant 0 : index
    %287 = vector.load %arg3[%c3_401, %c7_402, %c0_403, %c0_404] : memref<5x9x32x128xf32, #tpu.memory_space<vmem>>, vector<1x1x32x128xf32>
    %288 = vector.shape_cast %287 : vector<1x1x32x128xf32> to vector<32x128xf32>
    %cst_405 = arith.constant dense<0.000000e+00> : vector<288x128xf32>
    %289 = tpu.matmul %286, %288, %cst_405 {dimension_numbers = #tpu.dot_dimension_numbers<[1], [0], [0], [1], [0, 0, 1, 1], [], []>} : vector<288x32xf32>, vector<32x128xf32>, vector<288x128xf32> -> vector<288x128xf32>
    %c0_406 = arith.constant 0 : index
    %c0_407 = arith.constant 0 : index
    %290 = vector.load %arg13[%c0_406, %c0_407] : memref<288x128xf32, #tpu.memory_space<vmem>>, vector<288x128xf32>
    %291 = arith.addf %290, %289 : vector<288x128xf32>
    %c0_408 = arith.constant 0 : index
    %c0_409 = arith.constant 0 : index
    %292 = vector.load %arg13[%c0_408, %c0_409] : memref<288x128xf32, #tpu.memory_space<vmem>>, vector<288x128xf32>
    tpu.vector_store %arg13[%c0_408, %c0_409], %291 {strides = array<i32>} : memref<288x128xf32, #tpu.memory_space<vmem>>, vector<288x128xf32>,
    %c43_410 = arith.constant 43 : index
    %c0_411 = arith.constant 0 : index
    %293 = vector.load %arg12[%c43_410, %c0_411] : memref<336x128xf32, #tpu.memory_space<vmem>>, vector<288x32xf32>
    %c3_412 = arith.constant 3 : index
    %c8_413 = arith.constant 8 : index
    %c0_414 = arith.constant 0 : index
    %c0_415 = arith.constant 0 : index
    %294 = vector.load %arg3[%c3_412, %c8_413, %c0_414, %c0_415] : memref<5x9x32x128xf32, #tpu.memory_space<vmem>>, vector<1x1x32x128xf32>
    %295 = vector.shape_cast %294 : vector<1x1x32x128xf32> to vector<32x128xf32>
    %cst_416 = arith.constant dense<0.000000e+00> : vector<288x128xf32>
    %296 = tpu.matmul %293, %295, %cst_416 {dimension_numbers = #tpu.dot_dimension_numbers<[1], [0], [0], [1], [0, 0, 1, 1], [], []>} : vector<288x32xf32>, vector<32x128xf32>, vector<288x128xf32> -> vector<288x128xf32>
    %c0_417 = arith.constant 0 : index
    %c0_418 = arith.constant 0 : index
    %297 = vector.load %arg13[%c0_417, %c0_418] : memref<288x128xf32, #tpu.memory_space<vmem>>, vector<288x128xf32>
    %298 = arith.addf %297, %296 : vector<288x128xf32>
    %c0_419 = arith.constant 0 : index
    %c0_420 = arith.constant 0 : index
    %299 = vector.load %arg13[%c0_419, %c0_420] : memref<288x128xf32, #tpu.memory_space<vmem>>, vector<288x128xf32>
    tpu.vector_store %arg13[%c0_419, %c0_420], %298 {strides = array<i32>} : memref<288x128xf32, #tpu.memory_space<vmem>>, vector<288x128xf32>,
    %c0_421 = arith.constant 0 : index
    %c0_422 = arith.constant 0 : index
    %300 = vector.load %arg13[%c0_421, %c0_422] : memref<288x128xf32, #tpu.memory_space<vmem>>, vector<288x128xf32>
    %c3_423 = arith.constant 3 : index
    %c0_424 = arith.constant 0 : index
    %c0_425 = arith.constant 0 : index
    %301 = vector.load %arg4[%c3_423, %c0_424, %c0_425] : memref<5x1x128xf32, #tpu.memory_space<vmem>>, vector<1x1x128xf32>
    %302 = vector.shape_cast %301 : vector<1x1x128xf32> to vector<1x128xf32>
    %303 = vector.broadcast %302 : vector<1x128xf32> to vector<288x128xf32>
    %304 = arith.mulf %300, %303 : vector<288x128xf32>
    %c3_426 = arith.constant 3 : index
    %c0_427 = arith.constant 0 : index
    %c0_428 = arith.constant 0 : index
    %305 = vector.load %arg5[%c3_426, %c0_427, %c0_428] : memref<5x1x128xf32, #tpu.memory_space<vmem>>, vector<1x1x128xf32>
    %306 = vector.shape_cast %305 : vector<1x1x128xf32> to vector<1x128xf32>
    %307 = vector.broadcast %306 : vector<1x128xf32> to vector<288x128xf32>
    %308 = arith.addf %304, %307 : vector<288x128xf32>
    %cst_429 = arith.constant 0.000000e+00 : f32
    %309 = vector.broadcast %cst_429 : f32 to vector<288x128xf32>
    %310 = arith.maximumf %308, %309 : vector<288x128xf32>
    %311 = vector.broadcast %0 : vector<288x1xf32> to vector<288x128xf32>
    %312 = arith.mulf %310, %311 : vector<288x128xf32>
    %c24_430 = arith.constant 24 : index
    %c0_431 = arith.constant 0 : index
    %313 = vector.load %arg12[%c24_430, %c0_431] : memref<336x128xf32, #tpu.memory_space<vmem>>, vector<288x128xf32>
    tpu.vector_store %arg12[%c24_430, %c0_431], %312 {strides = array<i32>} : memref<336x128xf32, #tpu.memory_space<vmem>>, vector<288x128xf32>,
    %c5_432 = arith.constant 5 : index
    %c0_433 = arith.constant 0 : index
    %314 = vector.load %arg12[%c5_432, %c0_433] : memref<336x128xf32, #tpu.memory_space<vmem>>, vector<288x32xf32>
    %c4_434 = arith.constant 4 : index
    %c0_435 = arith.constant 0 : index
    %c0_436 = arith.constant 0 : index
    %c0_437 = arith.constant 0 : index
    %315 = vector.load %arg3[%c4_434, %c0_435, %c0_436, %c0_437] : memref<5x9x32x128xf32, #tpu.memory_space<vmem>>, vector<1x1x32x128xf32>
    %316 = vector.shape_cast %315 : vector<1x1x32x128xf32> to vector<32x128xf32>
    %cst_438 = arith.constant dense<0.000000e+00> : vector<288x128xf32>
    %317 = tpu.matmul %314, %316, %cst_438 {dimension_numbers = #tpu.dot_dimension_numbers<[1], [0], [0], [1], [0, 0, 1, 1], [], []>} : vector<288x32xf32>, vector<32x128xf32>, vector<288x128xf32> -> vector<288x128xf32>
    %c0_439 = arith.constant 0 : index
    %c0_440 = arith.constant 0 : index
    %318 = vector.load %arg13[%c0_439, %c0_440] : memref<288x128xf32, #tpu.memory_space<vmem>>, vector<288x128xf32>
    tpu.vector_store %arg13[%c0_439, %c0_440], %317 {strides = array<i32>} : memref<288x128xf32, #tpu.memory_space<vmem>>, vector<288x128xf32>,
    %c6_441 = arith.constant 6 : index
    %c0_442 = arith.constant 0 : index
    %319 = vector.load %arg12[%c6_441, %c0_442] : memref<336x128xf32, #tpu.memory_space<vmem>>, vector<288x32xf32>
    %c4_443 = arith.constant 4 : index
    %c1_444 = arith.constant 1 : index
    %c0_445 = arith.constant 0 : index
    %c0_446 = arith.constant 0 : index
    %320 = vector.load %arg3[%c4_443, %c1_444, %c0_445, %c0_446] : memref<5x9x32x128xf32, #tpu.memory_space<vmem>>, vector<1x1x32x128xf32>
    %321 = vector.shape_cast %320 : vector<1x1x32x128xf32> to vector<32x128xf32>
    %cst_447 = arith.constant dense<0.000000e+00> : vector<288x128xf32>
    %322 = tpu.matmul %319, %321, %cst_447 {dimension_numbers = #tpu.dot_dimension_numbers<[1], [0], [0], [1], [0, 0, 1, 1], [], []>} : vector<288x32xf32>, vector<32x128xf32>, vector<288x128xf32> -> vector<288x128xf32>
    %c0_448 = arith.constant 0 : index
    %c0_449 = arith.constant 0 : index
    %323 = vector.load %arg13[%c0_448, %c0_449] : memref<288x128xf32, #tpu.memory_space<vmem>>, vector<288x128xf32>
    %324 = arith.addf %323, %322 : vector<288x128xf32>
    %c0_450 = arith.constant 0 : index
    %c0_451 = arith.constant 0 : index
    %325 = vector.load %arg13[%c0_450, %c0_451] : memref<288x128xf32, #tpu.memory_space<vmem>>, vector<288x128xf32>
    tpu.vector_store %arg13[%c0_450, %c0_451], %324 {strides = array<i32>} : memref<288x128xf32, #tpu.memory_space<vmem>>, vector<288x128xf32>,
    %c7_452 = arith.constant 7 : index
    %c0_453 = arith.constant 0 : index
    %326 = vector.load %arg12[%c7_452, %c0_453] : memref<336x128xf32, #tpu.memory_space<vmem>>, vector<288x32xf32>
    %c4_454 = arith.constant 4 : index
    %c2_455 = arith.constant 2 : index
    %c0_456 = arith.constant 0 : index
    %c0_457 = arith.constant 0 : index
    %327 = vector.load %arg3[%c4_454, %c2_455, %c0_456, %c0_457] : memref<5x9x32x128xf32, #tpu.memory_space<vmem>>, vector<1x1x32x128xf32>
    %328 = vector.shape_cast %327 : vector<1x1x32x128xf32> to vector<32x128xf32>
    %cst_458 = arith.constant dense<0.000000e+00> : vector<288x128xf32>
    %329 = tpu.matmul %326, %328, %cst_458 {dimension_numbers = #tpu.dot_dimension_numbers<[1], [0], [0], [1], [0, 0, 1, 1], [], []>} : vector<288x32xf32>, vector<32x128xf32>, vector<288x128xf32> -> vector<288x128xf32>
    %c0_459 = arith.constant 0 : index
    %c0_460 = arith.constant 0 : index
    %330 = vector.load %arg13[%c0_459, %c0_460] : memref<288x128xf32, #tpu.memory_space<vmem>>, vector<288x128xf32>
    %331 = arith.addf %330, %329 : vector<288x128xf32>
    %c0_461 = arith.constant 0 : index
    %c0_462 = arith.constant 0 : index
    %332 = vector.load %arg13[%c0_461, %c0_462] : memref<288x128xf32, #tpu.memory_space<vmem>>, vector<288x128xf32>
    tpu.vector_store %arg13[%c0_461, %c0_462], %331 {strides = array<i32>} : memref<288x128xf32, #tpu.memory_space<vmem>>, vector<288x128xf32>,
    %c23_463 = arith.constant 23 : index
    %c0_464 = arith.constant 0 : index
    %333 = vector.load %arg12[%c23_463, %c0_464] : memref<336x128xf32, #tpu.memory_space<vmem>>, vector<288x32xf32>
    %c4_465 = arith.constant 4 : index
    %c3_466 = arith.constant 3 : index
    %c0_467 = arith.constant 0 : index
    %c0_468 = arith.constant 0 : index
    %334 = vector.load %arg3[%c4_465, %c3_466, %c0_467, %c0_468] : memref<5x9x32x128xf32, #tpu.memory_space<vmem>>, vector<1x1x32x128xf32>
    %335 = vector.shape_cast %334 : vector<1x1x32x128xf32> to vector<32x128xf32>
    %cst_469 = arith.constant dense<0.000000e+00> : vector<288x128xf32>
    %336 = tpu.matmul %333, %335, %cst_469 {dimension_numbers = #tpu.dot_dimension_numbers<[1], [0], [0], [1], [0, 0, 1, 1], [], []>} : vector<288x32xf32>, vector<32x128xf32>, vector<288x128xf32> -> vector<288x128xf32>
    %c0_470 = arith.constant 0 : index
    %c0_471 = arith.constant 0 : index
    %337 = vector.load %arg13[%c0_470, %c0_471] : memref<288x128xf32, #tpu.memory_space<vmem>>, vector<288x128xf32>
    %338 = arith.addf %337, %336 : vector<288x128xf32>
    %c0_472 = arith.constant 0 : index
    %c0_473 = arith.constant 0 : index
    %339 = vector.load %arg13[%c0_472, %c0_473] : memref<288x128xf32, #tpu.memory_space<vmem>>, vector<288x128xf32>
    tpu.vector_store %arg13[%c0_472, %c0_473], %338 {strides = array<i32>} : memref<288x128xf32, #tpu.memory_space<vmem>>, vector<288x128xf32>,
    %c24_474 = arith.constant 24 : index
    %c0_475 = arith.constant 0 : index
    %340 = vector.load %arg12[%c24_474, %c0_475] : memref<336x128xf32, #tpu.memory_space<vmem>>, vector<288x32xf32>
    %c4_476 = arith.constant 4 : index
    %c4_477 = arith.constant 4 : index
    %c0_478 = arith.constant 0 : index
    %c0_479 = arith.constant 0 : index
    %341 = vector.load %arg3[%c4_476, %c4_477, %c0_478, %c0_479] : memref<5x9x32x128xf32, #tpu.memory_space<vmem>>, vector<1x1x32x128xf32>
    %342 = vector.shape_cast %341 : vector<1x1x32x128xf32> to vector<32x128xf32>
    %cst_480 = arith.constant dense<0.000000e+00> : vector<288x128xf32>
    %343 = tpu.matmul %340, %342, %cst_480 {dimension_numbers = #tpu.dot_dimension_numbers<[1], [0], [0], [1], [0, 0, 1, 1], [], []>} : vector<288x32xf32>, vector<32x128xf32>, vector<288x128xf32> -> vector<288x128xf32>
    %c0_481 = arith.constant 0 : index
    %c0_482 = arith.constant 0 : index
    %344 = vector.load %arg13[%c0_481, %c0_482] : memref<288x128xf32, #tpu.memory_space<vmem>>, vector<288x128xf32>
    %345 = arith.addf %344, %343 : vector<288x128xf32>
    %c0_483 = arith.constant 0 : index
    %c0_484 = arith.constant 0 : index
    %346 = vector.load %arg13[%c0_483, %c0_484] : memref<288x128xf32, #tpu.memory_space<vmem>>, vector<288x128xf32>
    tpu.vector_store %arg13[%c0_483, %c0_484], %345 {strides = array<i32>} : memref<288x128xf32, #tpu.memory_space<vmem>>, vector<288x128xf32>,
    %c25_485 = arith.constant 25 : index
    %c0_486 = arith.constant 0 : index
    %347 = vector.load %arg12[%c25_485, %c0_486] : memref<336x128xf32, #tpu.memory_space<vmem>>, vector<288x32xf32>
    %c4_487 = arith.constant 4 : index
    %c5_488 = arith.constant 5 : index
    %c0_489 = arith.constant 0 : index
    %c0_490 = arith.constant 0 : index
    %348 = vector.load %arg3[%c4_487, %c5_488, %c0_489, %c0_490] : memref<5x9x32x128xf32, #tpu.memory_space<vmem>>, vector<1x1x32x128xf32>
    %349 = vector.shape_cast %348 : vector<1x1x32x128xf32> to vector<32x128xf32>
    %cst_491 = arith.constant dense<0.000000e+00> : vector<288x128xf32>
    %350 = tpu.matmul %347, %349, %cst_491 {dimension_numbers = #tpu.dot_dimension_numbers<[1], [0], [0], [1], [0, 0, 1, 1], [], []>} : vector<288x32xf32>, vector<32x128xf32>, vector<288x128xf32> -> vector<288x128xf32>
    %c0_492 = arith.constant 0 : index
    %c0_493 = arith.constant 0 : index
    %351 = vector.load %arg13[%c0_492, %c0_493] : memref<288x128xf32, #tpu.memory_space<vmem>>, vector<288x128xf32>
    %352 = arith.addf %351, %350 : vector<288x128xf32>
    %c0_494 = arith.constant 0 : index
    %c0_495 = arith.constant 0 : index
    %353 = vector.load %arg13[%c0_494, %c0_495] : memref<288x128xf32, #tpu.memory_space<vmem>>, vector<288x128xf32>
    tpu.vector_store %arg13[%c0_494, %c0_495], %352 {strides = array<i32>} : memref<288x128xf32, #tpu.memory_space<vmem>>, vector<288x128xf32>,
    %c41_496 = arith.constant 41 : index
    %c0_497 = arith.constant 0 : index
    %354 = vector.load %arg12[%c41_496, %c0_497] : memref<336x128xf32, #tpu.memory_space<vmem>>, vector<288x32xf32>
    %c4_498 = arith.constant 4 : index
    %c6_499 = arith.constant 6 : index
    %c0_500 = arith.constant 0 : index
    %c0_501 = arith.constant 0 : index
    %355 = vector.load %arg3[%c4_498, %c6_499, %c0_500, %c0_501] : memref<5x9x32x128xf32, #tpu.memory_space<vmem>>, vector<1x1x32x128xf32>
    %356 = vector.shape_cast %355 : vector<1x1x32x128xf32> to vector<32x128xf32>
    %cst_502 = arith.constant dense<0.000000e+00> : vector<288x128xf32>
    %357 = tpu.matmul %354, %356, %cst_502 {dimension_numbers = #tpu.dot_dimension_numbers<[1], [0], [0], [1], [0, 0, 1, 1], [], []>} : vector<288x32xf32>, vector<32x128xf32>, vector<288x128xf32> -> vector<288x128xf32>
    %c0_503 = arith.constant 0 : index
    %c0_504 = arith.constant 0 : index
    %358 = vector.load %arg13[%c0_503, %c0_504] : memref<288x128xf32, #tpu.memory_space<vmem>>, vector<288x128xf32>
    %359 = arith.addf %358, %357 : vector<288x128xf32>
    %c0_505 = arith.constant 0 : index
    %c0_506 = arith.constant 0 : index
    %360 = vector.load %arg13[%c0_505, %c0_506] : memref<288x128xf32, #tpu.memory_space<vmem>>, vector<288x128xf32>
    tpu.vector_store %arg13[%c0_505, %c0_506], %359 {strides = array<i32>} : memref<288x128xf32, #tpu.memory_space<vmem>>, vector<288x128xf32>,
    %c42_507 = arith.constant 42 : index
    %c0_508 = arith.constant 0 : index
    %361 = vector.load %arg12[%c42_507, %c0_508] : memref<336x128xf32, #tpu.memory_space<vmem>>, vector<288x32xf32>
    %c4_509 = arith.constant 4 : index
    %c7_510 = arith.constant 7 : index
    %c0_511 = arith.constant 0 : index
    %c0_512 = arith.constant 0 : index
    %362 = vector.load %arg3[%c4_509, %c7_510, %c0_511, %c0_512] : memref<5x9x32x128xf32, #tpu.memory_space<vmem>>, vector<1x1x32x128xf32>
    %363 = vector.shape_cast %362 : vector<1x1x32x128xf32> to vector<32x128xf32>
    %cst_513 = arith.constant dense<0.000000e+00> : vector<288x128xf32>
    %364 = tpu.matmul %361, %363, %cst_513 {dimension_numbers = #tpu.dot_dimension_numbers<[1], [0], [0], [1], [0, 0, 1, 1], [], []>} : vector<288x32xf32>, vector<32x128xf32>, vector<288x128xf32> -> vector<288x128xf32>
    %c0_514 = arith.constant 0 : index
    %c0_515 = arith.constant 0 : index
    %365 = vector.load %arg13[%c0_514, %c0_515] : memref<288x128xf32, #tpu.memory_space<vmem>>, vector<288x128xf32>
    %366 = arith.addf %365, %364 : vector<288x128xf32>
    %c0_516 = arith.constant 0 : index
    %c0_517 = arith.constant 0 : index
    %367 = vector.load %arg13[%c0_516, %c0_517] : memref<288x128xf32, #tpu.memory_space<vmem>>, vector<288x128xf32>
    tpu.vector_store %arg13[%c0_516, %c0_517], %366 {strides = array<i32>} : memref<288x128xf32, #tpu.memory_space<vmem>>, vector<288x128xf32>,
    %c43_518 = arith.constant 43 : index
    %c0_519 = arith.constant 0 : index
    %368 = vector.load %arg12[%c43_518, %c0_519] : memref<336x128xf32, #tpu.memory_space<vmem>>, vector<288x32xf32>
    %c4_520 = arith.constant 4 : index
    %c8_521 = arith.constant 8 : index
    %c0_522 = arith.constant 0 : index
    %c0_523 = arith.constant 0 : index
    %369 = vector.load %arg3[%c4_520, %c8_521, %c0_522, %c0_523] : memref<5x9x32x128xf32, #tpu.memory_space<vmem>>, vector<1x1x32x128xf32>
    %370 = vector.shape_cast %369 : vector<1x1x32x128xf32> to vector<32x128xf32>
    %cst_524 = arith.constant dense<0.000000e+00> : vector<288x128xf32>
    %371 = tpu.matmul %368, %370, %cst_524 {dimension_numbers = #tpu.dot_dimension_numbers<[1], [0], [0], [1], [0, 0, 1, 1], [], []>} : vector<288x32xf32>, vector<32x128xf32>, vector<288x128xf32> -> vector<288x128xf32>
    %c0_525 = arith.constant 0 : index
    %c0_526 = arith.constant 0 : index
    %372 = vector.load %arg13[%c0_525, %c0_526] : memref<288x128xf32, #tpu.memory_space<vmem>>, vector<288x128xf32>
    %373 = arith.addf %372, %371 : vector<288x128xf32>
    %c0_527 = arith.constant 0 : index
    %c0_528 = arith.constant 0 : index
    %374 = vector.load %arg13[%c0_527, %c0_528] : memref<288x128xf32, #tpu.memory_space<vmem>>, vector<288x128xf32>
    tpu.vector_store %arg13[%c0_527, %c0_528], %373 {strides = array<i32>} : memref<288x128xf32, #tpu.memory_space<vmem>>, vector<288x128xf32>,
    %c0_529 = arith.constant 0 : index
    %c0_530 = arith.constant 0 : index
    %375 = vector.load %arg13[%c0_529, %c0_530] : memref<288x128xf32, #tpu.memory_space<vmem>>, vector<288x128xf32>
    %c4_531 = arith.constant 4 : index
    %c0_532 = arith.constant 0 : index
    %c0_533 = arith.constant 0 : index
    %376 = vector.load %arg4[%c4_531, %c0_532, %c0_533] : memref<5x1x128xf32, #tpu.memory_space<vmem>>, vector<1x1x128xf32>
    %377 = vector.shape_cast %376 : vector<1x1x128xf32> to vector<1x128xf32>
    %378 = vector.broadcast %377 : vector<1x128xf32> to vector<288x128xf32>
    %379 = arith.mulf %375, %378 : vector<288x128xf32>
    %c4_534 = arith.constant 4 : index
    %c0_535 = arith.constant 0 : index
    %c0_536 = arith.constant 0 : index
    %380 = vector.load %arg5[%c4_534, %c0_535, %c0_536] : memref<5x1x128xf32, #tpu.memory_space<vmem>>, vector<1x1x128xf32>
    %381 = vector.shape_cast %380 : vector<1x1x128xf32> to vector<1x128xf32>
    %382 = vector.broadcast %381 : vector<1x128xf32> to vector<288x128xf32>
    %383 = arith.addf %379, %382 : vector<288x128xf32>
    %cst_537 = arith.constant 0.000000e+00 : f32
    %384 = vector.broadcast %cst_537 : f32 to vector<288x128xf32>
    %385 = arith.maximumf %383, %384 : vector<288x128xf32>
    %386 = vector.broadcast %0 : vector<288x1xf32> to vector<288x128xf32>
    %387 = arith.mulf %385, %386 : vector<288x128xf32>
    %cst_538 = arith.constant dense<0.000000e+00> : vector<128xf32>
    %388 = vector.multi_reduction <add>, %387, %cst_538 [0] : vector<288x128xf32> to vector<128xf32>
    %389 = vector.shape_cast %388 : vector<128xf32> to vector<1x128xf32>
    %cst_539 = arith.constant 3.906250e-03 : f32
    %390 = vector.broadcast %cst_539 : f32 to vector<1x128xf32>
    %391 = arith.mulf %389, %390 : vector<1x128xf32>
    %c0_540 = arith.constant 0 : index
    %c0_541 = arith.constant 0 : index
    %392 = vector.load %arg6[%c0_540, %c0_541] : memref<128x128xf32, #tpu.memory_space<vmem>>, vector<128x128xf32>
    %cst_542 = arith.constant dense<0.000000e+00> : vector<1x128xf32>
    %393 = tpu.matmul %391, %392, %cst_542 {dimension_numbers = #tpu.dot_dimension_numbers<[1], [0], [0], [1], [0, 0, 1, 1], [], []>} : vector<1x128xf32>, vector<128x128xf32>, vector<1x128xf32> -> vector<1x128xf32>
    %c0_543 = arith.constant 0 : index
    %c0_544 = arith.constant 0 : index
    %394 = vector.load %arg7[%c0_543, %c0_544] : memref<1x128xf32, #tpu.memory_space<vmem>>, vector<1x128xf32>
    %395 = arith.addf %393, %394 : vector<1x128xf32>
    %c0_545 = arith.constant 0 : index
    %c0_546 = arith.constant 0 : index
    %396 = vector.load %arg8[%c0_545, %c0_546] : memref<128x128xf32, #tpu.memory_space<vmem>>, vector<128x128xf32>
    %cst_547 = arith.constant dense<0.000000e+00> : vector<1x128xf32>
    %397 = tpu.matmul %395, %396, %cst_547 {dimension_numbers = #tpu.dot_dimension_numbers<[1], [0], [0], [1], [0, 0, 1, 1], [], []>} : vector<1x128xf32>, vector<128x128xf32>, vector<1x128xf32> -> vector<1x128xf32>
    %c0_548 = arith.constant 0 : index
    %c0_549 = arith.constant 0 : index
    %398 = vector.load %arg9[%c0_548, %c0_549] : memref<1x128xf32, #tpu.memory_space<vmem>>, vector<1x128xf32>
    %399 = arith.addf %397, %398 : vector<1x128xf32>
    %c0_550 = arith.constant 0 : index
    %c0_551 = arith.constant 0 : index
    %c0_552 = arith.constant 0 : index
    %400 = vector.load %arg10[%c0_550, %c0_551, %c0_552] : memref<1x1x128xf32, #tpu.memory_space<vmem>>, vector<1x1x128xf32>
    %401 = vector.shape_cast %400 : vector<1x1x128xf32> to vector<1x128xf32>
    %402 = vector.shape_cast %395 : vector<1x128xf32> to vector<1x1x128xf32>
    tpu.vector_store %arg10[%c0_550, %c0_551, %c0_552], %402 {strides = array<i32>} : memref<1x1x128xf32, #tpu.memory_space<vmem>>, vector<1x1x128xf32>,
    %c0_553 = arith.constant 0 : index
    %c0_554 = arith.constant 0 : index
    %c0_555 = arith.constant 0 : index
    %403 = vector.load %arg11[%c0_553, %c0_554, %c0_555] : memref<1x1x128xf32, #tpu.memory_space<vmem>>, vector<1x1x128xf32>
    %404 = vector.shape_cast %403 : vector<1x1x128xf32> to vector<1x128xf32>
    %405 = vector.shape_cast %399 : vector<1x128xf32> to vector<1x1x128xf32>
    tpu.vector_store %arg11[%c0_553, %c0_554, %c0_555], %405 {strides = array<i32>} : memref<1x1x128xf32, #tpu.memory_space<vmem>>, vector<1x1x128xf32>,
    return
  }
  func.func @transform_0(%arg0: i32) -> (i32, i32, i32) {
    %c0_i32 = arith.constant 0 : i32
    %c0_i32_0 = arith.constant 0 : i32
    %c0_i32_1 = arith.constant 0 : i32
    return %arg0, %c0_i32, %c0_i32_0 : i32, i32, i32
  }
  func.func @transform_1(%arg0: i32) -> (i32, i32) {
    %c0_i32 = arith.constant 0 : i32
    %c0_i32_0 = arith.constant 0 : i32
    %c0_i32_1 = arith.constant 0 : i32
    return %c0_i32, %c0_i32_0 : i32, i32
  }
  func.func @transform_2(%arg0: i32) -> (i32, i32, i32, i32) {
    %c0_i32 = arith.constant 0 : i32
    %c0_i32_0 = arith.constant 0 : i32
    %c0_i32_1 = arith.constant 0 : i32
    %c0_i32_2 = arith.constant 0 : i32
    %c0_i32_3 = arith.constant 0 : i32
    return %c0_i32, %c0_i32_0, %c0_i32_1, %c0_i32_2 : i32, i32, i32, i32
  }
  func.func @transform_3(%arg0: i32) -> (i32, i32, i32) {
    %c0_i32 = arith.constant 0 : i32
    %c0_i32_0 = arith.constant 0 : i32
    %c0_i32_1 = arith.constant 0 : i32
    %c0_i32_2 = arith.constant 0 : i32
    return %c0_i32, %c0_i32_0, %c0_i32_1 : i32, i32, i32
  }
  func.func @transform_4(%arg0: i32) -> (i32, i32, i32) {
    %c0_i32 = arith.constant 0 : i32
    %c0_i32_0 = arith.constant 0 : i32
    %c0_i32_1 = arith.constant 0 : i32
    %c0_i32_2 = arith.constant 0 : i32
    return %c0_i32, %c0_i32_0, %c0_i32_1 : i32, i32, i32
  }
  func.func @transform_5(%arg0: i32) -> (i32, i32) {
    %c0_i32 = arith.constant 0 : i32
    %c0_i32_0 = arith.constant 0 : i32
    %c0_i32_1 = arith.constant 0 : i32
    return %c0_i32, %c0_i32_0 : i32, i32
  }
  func.func @transform_6(%arg0: i32) -> (i32, i32) {
    %c0_i32 = arith.constant 0 : i32
    %c0_i32_0 = arith.constant 0 : i32
    %c0_i32_1 = arith.constant 0 : i32
    return %c0_i32, %c0_i32_0 : i32, i32
  }
  func.func @transform_7(%arg0: i32) -> (i32, i32) {
    %c0_i32 = arith.constant 0 : i32
    %c0_i32_0 = arith.constant 0 : i32
    %c0_i32_1 = arith.constant 0 : i32
    return %c0_i32, %c0_i32_0 : i32, i32
  }
  func.func @transform_8(%arg0: i32) -> (i32, i32) {
    %c0_i32 = arith.constant 0 : i32
    %c0_i32_0 = arith.constant 0 : i32
    %c0_i32_1 = arith.constant 0 : i32
    return %c0_i32, %c0_i32_0 : i32, i32
  }
  func.func @transform_9(%arg0: i32) -> (i32, i32, i32) {
    %c0_i32 = arith.constant 0 : i32
    %c0_i32_0 = arith.constant 0 : i32
    %c0_i32_1 = arith.constant 0 : i32
    return %arg0, %c0_i32, %c0_i32_0 : i32, i32, i32
  }
  func.func @transform_10(%arg0: i32) -> (i32, i32, i32) {
    %c0_i32 = arith.constant 0 : i32
    %c0_i32_0 = arith.constant 0 : i32
    %c0_i32_1 = arith.constant 0 : i32
    return %arg0, %c0_i32, %c0_i32_0 : i32, i32, i32
  }
}

</mosaic_0001>

<bundles_post_ra>
// kernel: new_model_forward.1
= control target key start
LH: loop header
LB: loop body
LE: loop exit
PB: predicated region body
PF: predicated region fallthrough
CT: control target
= control target key end

     0   :  { %s37699_s0 = inlined_call_operand.vmem [shape: f32[2,336,32], index: 0, kind: input, shape index: {}]   ;;  %s37700_s1 = inlined_call_operand.vmem [shape: f32[288,1], index: 1, kind: input, shape index: {}]   ;;  %s37701_s2 = inlined_call_operand.vmem [shape: f32[5,9,32,128], index: 2, kind: input, shape index: {}]   ;;  %s37702_s3 = inlined_call_operand.vmem [shape: f32[5,1,128], index: 3, kind: input, shape index: {}]   ;;  %s37703_s4 = inlined_call_operand.vmem [shape: f32[5,1,128], index: 4, kind: input, shape index: {}]   ;;  %s37704_s5 = inlined_call_operand.vmem [shape: f32[128,128], index: 5, kind: input, shape index: {}]   ;;  %s37705_s6 = inlined_call_operand.vmem [shape: f32[1,128], index: 6, kind: input, shape index: {}]   ;;  %s37706_s7 = inlined_call_operand.vmem [shape: f32[128,128], index: 7, kind: input, shape index: {}]   ;;  %s37707_s8 = inlined_call_operand.vmem [shape: f32[1,128], index: 8, kind: input, shape index: {}]   ;;  %s37708_s9 = inlined_call_operand.hbm [shape: f32[2,1,128], index: 9, kind: output, shape index: {0}]   ;;  %s37709_s10 = inlined_call_operand.hbm [shape: f32[2,1,128], index: 10, kind: output, shape index: {1}]  }
   0x1   :  { %37799 = sst [smem:[#allocation51_spill]] %s37699_s0 }
   0x2   :  { %16 = vsyncpa [#allocation5], 0 }
   0x3   :  { %18 = vsyncpa [#allocation5 + $0x1], 0 }
   0x4   :  { %19 = vsyncpa [#allocation7], 0 }
   0x5   :  { %21 = vsyncpa [#allocation7 + $0x1], 0  ;;  %s32850_s13 = smov 0   ;;  %s32852_s14 = smov 0  }
   0x6   :  { %s32854_s15 = smov 0   ;;  %s32856_s16 = smov 0  }
   0x7 LB: > { %s32871_s17 = sadd.s32 4294967295, %s32787_s16   ;;  %s24272_s18 = sadd.s32 4294967294, %s32787_s16   ;;  %s32787_s16 = sphi %s32856_s16, %s38019_s16   ;;  %s32783_s15 = sphi %s32854_s15, %s38018_s15   ;;  %s32779_s14 = sphi %s32852_s14, %s38017_s14   ;;  %s32775_s13 = sphi %s32850_s13, %s38016_s13  }
   0x8   : > { %s32875_s19 = sadd.s32 1, %s32787_s16   ;;  %s228_s20 = sadd.s32 1, %s32783_s15 }
   0x9   : > { %s225_s21 = ssub.s32 %s32787_s16, %s32875_s19  ;;  %p238_p0 = scmp.ne.s32.totalorder %s32783_s15, %s32779_s14 }
   0xa   : > { %p226_p1 = scmp.eq.s32.totalorder %s225_s21, 0  ;;  %p239_p2 = scmp.eq.s32.totalorder %s32871_s17, 1 }
   0xb   : > { %p244_p3 = scmp.ne.s32.totalorder %s32779_s14, %s32775_s13  ;;  %p245_p4 = scmp.eq.s32.totalorder %s24272_s18, 1 }
   0xc   : > { %s32886_s22 = scalar_select %p226_p1, %s32783_s15, %s228_s20  }
   0xd   : > { %p32888_p5 = por %p239_p2, %p238_p0  ;;  %p32892_p6 = por %p245_p4, %p244_p3 }
   0xe   : > { %p24275_p7 = scmp.ge.s32.totalorder %s32787_s16, 1  ;;  %p321_p8 = scmp.lt.s32.totalorder %s32787_s16, 3 }
  0x10   : > { %p322_p9 = pnand %p24275_p7, %p321_p8 }
  0x12   : > { %325 = sbr.rel (%p322_p9) target bundleno = 4268 (0x10ac), region = 56 }
  0x19   : > { %v445_v0 = vld [vmem:[%s37701_s2] sm:$0xff]  ;;  %v446_v1 = vld [vmem:[%s37701_s2 + $0x8] sm:$0xff]  ;;  %p362_p10 = scmp.lt.s32.totalorder %s32871_s17, 1  ;;  %v447_v5 = vld [vmem:[%s37701_s2 + $0x10] sm:$0xff]  ;;  %vm449_vm0 = vcmask 261120   ;;  %s37802_s0 = sld [smem:[#allocation51_spill]] }
  0x1a   : > { %v24433_v2 = vld [vmem:[%s37701_s2 + $0x80] sm:$0xff]  ;;  %v30789_v3 = vpack.c.bf16 %v446_v1, %v445_v0  ;;  %v24434_v4 = vld [vmem:[%s37701_s2 + $0x88] sm:$0xff]  ;;  %v448_v6 = vld [vmem:[%s37701_s2 + $0x18] sm:$0xff]  ;;  %vm32792_vm1 = vmmov 0   ;;  %s37615_s29 = sand.u32 1, %s32779_s14   ;;  %s37798_s20 = sshll.u32 %s32871_s17, 4 }
  0x1b   : > { %v32917_v7 = vpack.c.bf16 %v24434_v4, %v24433_v2  ;;  %v30793_v8 = vpack.c.bf16 %v448_v6, %v447_v5  ;;  %v24435_v9 = vld [vmem:[%s37701_s2 + $0x90] sm:$0xff]  ;;  %v24436_v10 = vld [vmem:[%s37701_s2 + $0x98] sm:$0xff]  ;;  %s363_s30 = scalar_select %p362_p10, %s32871_s17, 1  ;;  %v24473_v12 = vld [vmem:[%s37701_s2 + $0xa0] sm:$0xff] }
  0x1c   : > { %30790 = vmatprep.subr.bf16.mxu1 %v30789_v3  ;;  %v32926_v11 = vpack.c.bf16 %v24436_v10, %v24435_v9  ;;  %v24474_v13 = vld [vmem:[%s37701_s2 + $0xa8] sm:$0xff]  ;;  %v24313_v14 = vld [vmem:[%s37701_s2 + $0x20] sm:$0xff]  ;;  %v24475_v17 = vld [vmem:[%s37701_s2 + $0xb0] sm:$0xff]  ;;  %s355_s18 = scalar_lea.vmem [#allocation4], %s37615_s29  ;;  %s24160_s27 = scalar_lea.sflag [#allocation5], %s37615_s29 }
  0x1d   : > { %30822 = vmatprep.subr.bf16.mxu0 %v32917_v7  ;;  %30792 = vmatpush3.bf16.msra.mxu1 %v30789_v3  ;;  %s32641_s21 = smul.u32 336, %s363_s30  ;;  %v24314_v15 = vld [vmem:[%s37701_s2 + $0x28] sm:$0xff]  ;;  %v30829_v16 = vpack.c.bf16 %v24474_v13, %v24473_v12  ;;  %v24476_v21 = vld [vmem:[%s37701_s2 + $0xb8] sm:$0xff]  ;;  %v24315_v23 = vld [vmem:[%s37701_s2 + $0x30] sm:$0xff]  ;;  %s24176_s26 = sshll.u32 %s355_s18, 4  ;;  %s24177_s26 = int_to_ptr.vmem [resolvable:$true] %s24176_s26 }
  0x1e   : > { %30824 = vmatpush3.bf16.msra.mxu0 %v32917_v7  ;;  %30794 = vmatprep.subr.bf16.mxu1 %v30793_v8  ;;  %v30797_v18 = vpack.c.bf16 %v24314_v15, %v24313_v14  ;;  %v24316_v24 = vld [vmem:[%s37701_s2 + $0x38] sm:$0xff]  ;;  %v30833_v28 = vpack.c.bf16 %v24476_v21, %v24475_v17  ;;  %v24513_v29 = vld [vmem:[%s37701_s2 + $0xc0] sm:$0xff]  ;;  %v24514_v30 = vld [vmem:[%s37701_s2 + $0xc8] sm:$0xff]  ;;  %s32693_s28 = scalar_lea.vmem %s24177_s26, 16  ;;  %s32793_s11 = smov [#allocation4]  }
  0x1f   : > { %30826 = vmatprep.subr.bf16.mxu0 %v32926_v11  ;;  %s32946_s12 = scalar_lea.vmem %s37802_s0, %s32641_s21  ;;  %v30801_v31 = vpack.c.bf16 %v24316_v24, %v24315_v23  ;;  %v32983_v36 = vpack.c.bf16 %v24514_v30, %v24513_v29  ;;  %v24353_v1 = vld [vmem:[%s37701_s2 + $0x40] sm:$0xff]  ;;  %v24354_v5 = vld [vmem:[%s37701_s2 + $0x48] sm:$0xff]  ;;  %s37627_s21 = scalar_lea.hbm %s37708_s9, %s37798_s20 }
  0x20   : > { %v409_v19 = vld [vmem:[%s32946_s12 + $0x5] sm:$0xff]  ;;  %v2345_v20 = vld [vmem:[%s32946_s12 + $0x18] sm:$0xff]  ;;  %v410_v22 = vld [vmem:[%s32946_s12 + $0xd] sm:$0xff]  ;;  %p32694_p11 = scmp.ne.s32.totalorder %s24177_s26, %s32693_s28  ;;  %s32697_s30 = sshll.u32 %s32793_s11, 4  ;;  %s32698_s30 = int_to_ptr.vmem [resolvable:$false] %s32697_s30 }
  0x21   : > { %30796 = vmatpush3.bf16.msra.mxu1 %v30793_v8  ;;  %27937 = vmatprep.mubr.msk.f32.mxu1 %vm449_vm0, %v409_v19  ;;  %v2346_v25 = vld [vmem:[%s32946_s12 + $0x20] sm:$0xff]  ;;  %v411_v26 = vld [vmem:[%s32946_s12 + $0x15] sm:$0xff]  ;;  %v2347_v27 = vld [vmem:[%s32946_s12 + $0x28] sm:$0xff]  ;;  %v33056_v8 = vpack.c.bf16 %v24354_v5, %v24353_v1  ;;  %s32699_s0 = scalar_lea.vmem %s32698_s30, 32  ;;  %p32700_p0 = scmp.lt.s32.totalorder %s24177_s26, %s32698_s30 }
  0x22   : > { %30828 = vmatpush3.bf16.msra.mxu0 %v32926_v11  ;;  %28185 = vmatprep.mubr.msk.f32.mxu0 %vm449_vm0, %v2345_v20  ;;  %v412_v32 = vld [vmem:[%s32946_s12 + $0x1d] sm:$0xff]  ;;  %v2348_v33 = vld [vmem:[%s32946_s12 + $0x30] sm:$0xff]  ;;  %v413_v34 = vld [vmem:[%s32946_s12 + $0x25] sm:$0xff]  ;;  %p32695_p12 = pnand %p32694_p11, %p32888_p5  ;;  %p32701_p1 = scmp.lt.s32.totalorder %s32699_s0, %s32693_s28 }
  0x23   : > { %30830 = vmatprep.subr.bf16.mxu0 %v30829_v16  ;;  %30798 = vmatprep.subr.bf16.mxu1 %v30797_v18  ;;  %v2349_v35 = vld [vmem:[%s32946_s12 + $0x38] sm:$0xff]  ;;  %v414_v37 = vld [vmem:[%s32946_s12 + $0x2d] sm:$0xff]  ;;  %v2350_v38 = vld [vmem:[%s32946_s12 + $0x40] sm:$0xff] }
  0x24   : > { %27938 = vmatmul.mubr.msk.f32.vlgmr.msra.gmra.mrb[0].mxu1 %vm449_vm0, %v410_v22  ;;  %v415_v39 = vld [vmem:[%s32946_s12 + $0x35] sm:$0xff]  ;;  %v2351_v40 = vld [vmem:[%s32946_s12 + $0x48] sm:$0xff]  ;;  %v416_v41 = vld [vmem:[%s32946_s12 + $0x3d] sm:$0xff]  ;;  %p32696_p13 = pneg %p32695_p12  ;;  %p32702_p2 = por %p32701_p1, %p32700_p0 }
  0x25   : > { %28186 = vmatmul.mubr.msk.f32.vlgmr.msra.gmra.mrb[0].mxu0 %vm449_vm0, %v2346_v25  ;;  %27940 = vmatprep.mubr.msk.f32.mxu1 %vm449_vm0, %v411_v26  ;;  %v2352_v42 = vld [vmem:[%s32946_s12 + $0x50] sm:$0xff]  ;;  %v417_v43 = vld [vmem:[%s32946_s12 + $0x45] sm:$0xff]  ;;  %v2353_v44 = vld [vmem:[%s32946_s12 + $0x58] sm:$0xff] }
  0x26   : > { %30832 = vmatpush3.bf16.msra.mxu0 %v30829_v16  ;;  %28188 = vmatprep.mubr.msk.f32.mxu0 %vm449_vm0, %v2347_v27  ;;  %v418_v45 = vld [vmem:[%s32946_s12 + $0x4d] sm:$0xff]  ;;  %v2354_v46 = vld [vmem:[%s32946_s12 + $0x60] sm:$0xff]  ;;  %v419_v47 = vld [vmem:[%s32946_s12 + $0x55] sm:$0xff]  ;;  %p32703_p3 = pnand %p32702_p2, %p32696_p13 }
  0x27   : > { %30834 = vmatprep.subr.bf16.mxu0 %v30833_v28  ;;  %30800 = vmatpush3.bf16.msra.mxu1 %v30797_v18  ;;  %v2355_v48 = vld [vmem:[%s32946_s12 + $0x68] sm:$0xff]  ;;  %v420_v49 = vld [vmem:[%s32946_s12 + $0x5d] sm:$0xff]  ;;  %v2356_v50 = vld [vmem:[%s32946_s12 + $0x70] sm:$0xff] }
  0x28   : > { %27941 = vmatmul.mubr.msk.f32.gmra.mrb[2].mxu1 %vm449_vm0, %v412_v32  ;;  %30802 = vmatprep.subr.bf16.mxu1 %v30801_v31  ;;  %v421_v51 = vld [vmem:[%s32946_s12 + $0x65] sm:$0xff]  ;;  %v2357_v52 = vld [vmem:[%s32946_s12 + $0x78] sm:$0xff]  ;;  %v422_v53 = vld [vmem:[%s32946_s12 + $0x6d] sm:$0xff] }
  0x29   : > { %28189 = vmatmul.mubr.msk.f32.gmra.mrb[2].mxu0 %vm449_vm0, %v2348_v33  ;;  %27943 = vmatprep.mubr.msk.f32.mxu1 %vm449_vm0, %v413_v34  ;;  %v2358_v54 = vld [vmem:[%s32946_s12 + $0x80] sm:$0xff]  ;;  %v423_v55 = vld [vmem:[%s32946_s12 + $0x75] sm:$0xff]  ;;  %v2359_v56 = vld [vmem:[%s32946_s12 + $0x88] sm:$0xff] }
  0x2a   : > { %28191 = vmatprep.mubr.msk.f32.mxu0 %vm449_vm0, %v2349_v35  ;;  %30836 = vmatpush3.bf16.msra.mxu0 %v30833_v28  ;;  %v424_v57 = vld [vmem:[%s32946_s12 + $0x7d] sm:$0xff]  ;;  %v2360_v58 = vld [vmem:[%s32946_s12 + $0x90] sm:$0xff]  ;;  %v425_v59 = vld [vmem:[%s32946_s12 + $0x85] sm:$0xff] }
  0x2b   : > { %30838 = vmatprep.subr.bf16.mxu0 %v32983_v36  ;;  %30804 = vmatpush3.bf16.msra.mxu1 %v30801_v31  ;;  %v2361_v60 = vld [vmem:[%s32946_s12 + $0x98] sm:$0xff]  ;;  %v426_v61 = vld [vmem:[%s32946_s12 + $0x8d] sm:$0xff]  ;;  %v2362_v62 = vld [vmem:[%s32946_s12 + $0xa0] sm:$0xff] }
  0x2c   : > { %27944 = vmatmul.mubr.msk.f32.gmra.mrb[4].mxu1 %vm449_vm0, %v414_v37  ;;  %v427_v63 = vld [vmem:[%s32946_s12 + $0x95] sm:$0xff]  ;;  %v2363_v0 = vld [vmem:[%s32946_s12 + $0xa8] sm:$0xff]  ;;  %v428_v2 = vld [vmem:[%s32946_s12 + $0x9d] sm:$0xff]  ;;  %30806 = vmatprep.subr.bf16.mxu1 %v33056_v8 }
  0x2d   : > { %28192 = vmatmul.mubr.msk.f32.gmra.mrb[4].mxu0 %vm449_vm0, %v2350_v38  ;;  %27946 = vmatprep.mubr.msk.f32.mxu1 %vm449_vm0, %v415_v39  ;;  %v2364_v3 = vld [vmem:[%s32946_s12 + $0xb0] sm:$0xff]  ;;  %v429_v4 = vld [vmem:[%s32946_s12 + $0xa5] sm:$0xff]  ;;  %v2365_v6 = vld [vmem:[%s32946_s12 + $0xb8] sm:$0xff] }
  0x2e   : > { %28194 = vmatprep.mubr.msk.f32.mxu0 %vm449_vm0, %v2351_v40  ;;  %v430_v9 = vld [vmem:[%s32946_s12 + $0xad] sm:$0xff]  ;;  %v2366_v10 = vld [vmem:[%s32946_s12 + $0xc0] sm:$0xff]  ;;  %v431_v12 = vld [vmem:[%s32946_s12 + $0xb5] sm:$0xff] }
  0x2f   : > { %v2367_v13 = vld [vmem:[%s32946_s12 + $0xc8] sm:$0xff]  ;;  %v432_v14 = vld [vmem:[%s32946_s12 + $0xbd] sm:$0xff]  ;;  %v2368_v15 = vld [vmem:[%s32946_s12 + $0xd0] sm:$0xff] }
  0x30   : > { %27947 = vmatmul.mubr.msk.f32.gmra.mrb[6].mxu1 %vm449_vm0, %v416_v41  ;;  %v433_v16 = vld [vmem:[%s32946_s12 + $0xc5] sm:$0xff]  ;;  %v2369_v17 = vld [vmem:[%s32946_s12 + $0xd8] sm:$0xff]  ;;  %v434_v18 = vld [vmem:[%s32946_s12 + $0xcd] sm:$0xff] }
  0x31   : > { %28195 = vmatmul.mubr.msk.f32.gmra.mrb[6].mxu0 %vm449_vm0, %v2352_v42  ;;  %27949 = vmatprep.mubr.msk.f32.mxu1 %vm449_vm0, %v417_v43  ;;  %v2370_v19 = vld [vmem:[%s32946_s12 + $0xe0] sm:$0xff]  ;;  %v435_v20 = vld [vmem:[%s32946_s12 + $0xd5] sm:$0xff]  ;;  %v2371_v21 = vld [vmem:[%s32946_s12 + $0xe8] sm:$0xff] }
  0x32   : > { %28197 = vmatprep.mubr.msk.f32.mxu0 %vm449_vm0, %v2353_v44  ;;  %v436_v22 = vld [vmem:[%s32946_s12 + $0xdd] sm:$0xff]  ;;  %v2372_v23 = vld [vmem:[%s32946_s12 + $0xf0] sm:$0xff]  ;;  %v437_v24 = vld [vmem:[%s32946_s12 + $0xe5] sm:$0xff] }
  0x33   : > { %v2847_v25 = vld [vmem:[%s32946_s12 + $0x19] sm:$0xff]  ;;  %v24515_v26 = vld [vmem:[%s37701_s2 + $0xd0] sm:$0xff]  ;;  %v2848_v29 = vld [vmem:[%s32946_s12 + $0x21] sm:$0xff] }
  0x34   : > { %27950 = vmatmul.mubr.msk.f32.gmra.mrb[8].mxu1 %vm449_vm0, %v418_v45  ;;  %v24516_v27 = vld [vmem:[%s37701_s2 + $0xd8] sm:$0xff]  ;;  %v438_v28 = vld [vmem:[%s32946_s12 + $0xed] sm:$0xff]  ;;  %v24553_v33 = vld [vmem:[%s37701_s2 + $0xe0] sm:$0xff] }
  0x35   : > { %28198 = vmatmul.mubr.msk.f32.gmra.mrb[8].mxu0 %vm449_vm0, %v2354_v46  ;;  %27952 = vmatprep.mubr.msk.f32.mxu1 %vm449_vm0, %v419_v47  ;;  %v439_v30 = vld [vmem:[%s32946_s12 + $0xf5] sm:$0xff]  ;;  %v33105_v31 = vld [vmem:[%s32946_s12 + $0x29] sm:$0xff]  ;;  %v30841_v32 = vpack.c.bf16 %v24516_v27, %v24515_v26  ;;  %v440_v35 = vld [vmem:[%s32946_s12 + $0xfd] sm:$0xff] }
  0x36   : > { %28200 = vmatprep.mubr.msk.f32.mxu0 %vm449_vm0, %v2355_v48  ;;  %v24554_v34 = vld [vmem:[%s37701_s2 + $0xe8] sm:$0xff]  ;;  %v33121_v37 = vld [vmem:[%s32946_s12 + $0x31] sm:$0xff]  ;;  %v33125_v39 = vld [vmem:[%s32946_s12 + $0x39] sm:$0xff] }
  0x37   : > { %v441_v38 = vld [vmem:[%s32946_s12 + $0x105] sm:$0xff]  ;;  %v33127_v40 = vpack.c.bf16 %v24554_v34, %v24553_v33  ;;  %v443_v42 = vld [vmem:[%s32946_s12 + $0x115] sm:$0xff]  ;;  %v444_v44 = vld [vmem:[%s32946_s12 + $0x11d] sm:$0xff] }
  0x38   : > { %27953 = vmatmul.mubr.msk.f32.gmra.mrb[10].mxu1 %vm449_vm0, %v420_v49  ;;  %v33137_v41 = vld [vmem:[%s32946_s12 + $0x41] sm:$0xff]  ;;  %v33141_v43 = vld [vmem:[%s32946_s12 + $0x49] sm:$0xff]  ;;  %v33152_v45 = vld [vmem:[%s32946_s12 + $0x51] sm:$0xff] }
  0x39   : > { %28201 = vmatmul.mubr.msk.f32.gmra.mrb[10].mxu0 %vm449_vm0, %v2356_v50  ;;  %27955 = vmatprep.mubr.msk.f32.mxu1 %vm449_vm0, %v421_v51  ;;  %v839_v46 = vld [vmem:[%s32946_s12 + $0x6] sm:$0xff]  ;;  %v33156_v47 = vld [vmem:[%s32946_s12 + $0x59] sm:$0xff]  ;;  %v24355_v48 = vld [vmem:[%s37701_s2 + $0x50] sm:$0xff] }
  0x3a   : > { %28203 = vmatprep.mubr.msk.f32.mxu0 %vm449_vm0, %v2357_v52  ;;  %v24356_v49 = vld [vmem:[%s37701_s2 + $0x58] sm:$0xff]  ;;  %v840_v50 = vld [vmem:[%s32946_s12 + $0xe] sm:$0xff]  ;;  %v33172_v51 = vld [vmem:[%s32946_s12 + $0x61] sm:$0xff] }
  0x3b   : > { %v841_v52 = vld [vmem:[%s32946_s12 + $0x16] sm:$0xff]  ;;  %v33213_v1 = vld [vmem:[%s32946_s12 + $0x89] sm:$0xff]  ;;  %v33322_v34 = vld [vmem:[%s32946_s12 + $0x101] sm:$0xff] }
  0x3c   : > { %27956 = vmatmul.mubr.msk.f32.gmra.mrb[12].mxu1 %vm449_vm0, %v422_v53  ;;  %v33176_v53 = vld [vmem:[%s32946_s12 + $0x69] sm:$0xff]  ;;  %v33228_v5 = vld [vmem:[%s32946_s12 + $0x99] sm:$0xff] }
  0x3d   : > { %28204 = vmatmul.mubr.msk.f32.gmra.mrb[12].mxu0 %vm449_vm0, %v2358_v54  ;;  %27958 = vmatprep.mubr.msk.f32.mxu1 %vm449_vm0, %v423_v55  ;;  %v30809_v54 = vpack.c.bf16 %v24356_v49, %v24355_v48  ;;  %v24393_v55 = vld [vmem:[%s37701_s2 + $0x60] sm:$0xff]  ;;  %v857_v26 = vld [vmem:[%s32946_s12 + $0x96] sm:$0xff]  ;;  %v33298_v27 = vld [vmem:[%s32946_s12 + $0xe9] sm:$0xff] }
  0x3e   : > { %28206 = vmatprep.mubr.msk.f32.mxu0 %vm449_vm0, %v2359_v56  ;;  %v24394_v56 = vld [vmem:[%s37701_s2 + $0x68] sm:$0xff] }
  0x3f   : > { %v860_v33 = vld [vmem:[%s32946_s12 + $0xae] sm:$0xff]  ;;  %v33350_v49 = vld [vmem:[%s32946_s12 + $0x121] sm:$0xff] }
  0x40   : > { %27959 = vmatmul.mubr.msk.f32.gmra.mrb[14].mxu1 %vm449_vm0, %v424_v57  ;;  %v842_v57 = vld [vmem:[%s32946_s12 + $0x1e] sm:$0xff]  ;;  %v864_v48 = vld [vmem:[%s32946_s12 + $0xce] sm:$0xff] }
  0x41   : > { %28207 = vmatmul.mubr.msk.f32.gmra.mrb[14].mxu0 %vm449_vm0, %v2360_v58  ;;  %27961 = vmatprep.mubr.msk.f32.mxu1 %vm449_vm0, %v425_v59  ;;  %v33192_v58 = vld [vmem:[%s32946_s12 + $0x71] sm:$0xff]  ;;  %v843_v59 = vld [vmem:[%s32946_s12 + $0x26] sm:$0xff] }
  0x42   : > { %28209 = vmatprep.mubr.msk.f32.mxu0 %vm449_vm0, %v2361_v60  ;;  %v33197_v60 = vld [vmem:[%s32946_s12 + $0x79] sm:$0xff] }
  0x44   : > { %27962 = vmatmul.mubr.msk.f32.gmra.mrb[16].mxu1 %vm449_vm0, %v426_v61  ;;  %v33199_v61 = vpack.c.bf16 %v24394_v56, %v24393_v55  ;;  %v33364_v55 = vld [vmem:[%s32946_s12 + $0x131] sm:$0xff]  ;;  %v867_v56 = vld [vmem:[%s32946_s12 + $0xe6] sm:$0xff] }
  0x45   : > { %28210 = vmatmul.mubr.msk.f32.gmra.mrb[16].mxu0 %vm449_vm0, %v2362_v62  ;;  %27964 = vmatprep.mubr.msk.f32.mxu1 %vm449_vm0, %v427_v63  ;;  %v844_v62 = vld [vmem:[%s32946_s12 + $0x2e] sm:$0xff]  ;;  %v33209_v63 = vld [vmem:[%s32946_s12 + $0x81] sm:$0xff] }
  0x46   : > { %28212 = vmatprep.mubr.msk.f32.mxu0 %vm449_vm0, %v2363_v0  ;;  %v845_v0 = vld [vmem:[%s32946_s12 + $0x36] sm:$0xff] }
  0x48   : > { %27965 = vmatmul.mubr.msk.f32.gmra.mrb[18].mxu1 %vm449_vm0, %v428_v2  ;;  %v846_v2 = vld [vmem:[%s32946_s12 + $0x3e] sm:$0xff] }
  0x49   : > { %28213 = vmatmul.mubr.msk.f32.gmra.mrb[18].mxu0 %vm449_vm0, %v2364_v3  ;;  %27967 = vmatprep.mubr.msk.f32.mxu1 %vm449_vm0, %v429_v4  ;;  %v33224_v3 = vld [vmem:[%s32946_s12 + $0x91] sm:$0xff]  ;;  %v847_v4 = vld [vmem:[%s32946_s12 + $0x46] sm:$0xff] }
  0x4a   : > { %28215 = vmatprep.mubr.msk.f32.mxu0 %vm449_vm0, %v2365_v6  ;;  %v848_v6 = vld [vmem:[%s32946_s12 + $0x4e] sm:$0xff] }
  0x4c   : > { %27968 = vmatmul.mubr.msk.f32.gmra.mrb[20].mxu1 %vm449_vm0, %v430_v9  ;;  %v849_v9 = vld [vmem:[%s32946_s12 + $0x56] sm:$0xff] }
  0x4d   : > { %28216 = vmatmul.mubr.msk.f32.gmra.mrb[20].mxu0 %vm449_vm0, %v2366_v10  ;;  %27970 = vmatprep.mubr.msk.f32.mxu1 %vm449_vm0, %v431_v12  ;;  %v33242_v10 = vld [vmem:[%s32946_s12 + $0xa9] sm:$0xff]  ;;  %v850_v12 = vld [vmem:[%s32946_s12 + $0x5e] sm:$0xff] }
  0x4e   : > { %28218 = vmatprep.mubr.msk.f32.mxu0 %vm449_vm0, %v2367_v13  ;;  %v33252_v13 = vld [vmem:[%s32946_s12 + $0xb1] sm:$0xff] }
  0x50   : > { %27971 = vmatmul.mubr.msk.f32.gmra.mrb[22].mxu1 %vm449_vm0, %v432_v14  ;;  %v851_v14 = vld [vmem:[%s32946_s12 + $0x66] sm:$0xff] }
  0x51   : > { %28219 = vmatmul.mubr.msk.f32.gmra.mrb[22].mxu0 %vm449_vm0, %v2368_v15  ;;  %27973 = vmatprep.mubr.msk.f32.mxu1 %vm449_vm0, %v433_v16  ;;  %v33256_v15 = vld [vmem:[%s32946_s12 + $0xb9] sm:$0xff]  ;;  %v852_v16 = vld [vmem:[%s32946_s12 + $0x6e] sm:$0xff] }
  0x52   : > { %28221 = vmatprep.mubr.msk.f32.mxu0 %vm449_vm0, %v2369_v17  ;;  %v33266_v17 = vld [vmem:[%s32946_s12 + $0xc1] sm:$0xff] }
  0x54   : > { %27974 = vmatmul.mubr.msk.f32.gmra.mrb[24].mxu1 %vm449_vm0, %v434_v18  ;;  %v853_v18 = vld [vmem:[%s32946_s12 + $0x76] sm:$0xff] }
  0x55   : > { %28222 = vmatmul.mubr.msk.f32.gmra.mrb[24].mxu0 %vm449_vm0, %v2370_v19  ;;  %27976 = vmatprep.mubr.msk.f32.mxu1 %vm449_vm0, %v435_v20  ;;  %v33270_v19 = vld [vmem:[%s32946_s12 + $0xc9] sm:$0xff]  ;;  %v854_v20 = vld [vmem:[%s32946_s12 + $0x7e] sm:$0xff] }
  0x56   : > { %28224 = vmatprep.mubr.msk.f32.mxu0 %vm449_vm0, %v2371_v21  ;;  %v33280_v21 = vld [vmem:[%s32946_s12 + $0xd1] sm:$0xff] }
  0x58   : > { %27977 = vmatmul.mubr.msk.f32.gmra.mrb[26].mxu1 %vm449_vm0, %v436_v22  ;;  %v855_v22 = vld [vmem:[%s32946_s12 + $0x86] sm:$0xff] }
  0x59   : > { %28225 = vmatmul.mubr.msk.f32.gmra.mrb[26].mxu0 %vm449_vm0, %v2372_v23  ;;  %27979 = vmatprep.mubr.msk.f32.mxu1 %vm449_vm0, %v437_v24  ;;  %v33284_v23 = vld [vmem:[%s32946_s12 + $0xd9] sm:$0xff]  ;;  %v856_v24 = vld [vmem:[%s32946_s12 + $0x8e] sm:$0xff] }
  0x5a   : > { %28247 = vmatprep.mubr.msk.f32.mxu0 %vm449_vm0, %v2847_v25  ;;  %v33294_v25 = vld [vmem:[%s32946_s12 + $0xe1] sm:$0xff] }
  0x5c   : > { %27980 = vmatmul.mubr.msk.f32.gmra.mrb[28].mxu1 %vm449_vm0, %v438_v28  ;;  %v858_v28 = vld [vmem:[%s32946_s12 + $0x9e] sm:$0xff] }
  0x5d   : > { %28248 = vmatmul.mubr.msk.f32.vlgmr.msra.gmra.mrb[0].mxu0 %vm449_vm0, %v2848_v29  ;;  %27982 = vmatprep.mubr.msk.f32.mxu1 %vm449_vm0, %v439_v30  ;;  %v33308_v29 = vld [vmem:[%s32946_s12 + $0xf1] sm:$0xff]  ;;  %v859_v30 = vld [vmem:[%s32946_s12 + $0xa6] sm:$0xff] }
  0x5e   : > { %30840 = vmatpush3.bf16.msra.mxu0 %v32983_v36  ;;  %28250 = vmatprep.mubr.msk.f32.mxu0 %vm449_vm0, %v33105_v31  ;;  %v442_v36 = vld [vmem:[%s32946_s12 + $0x10d] sm:$0xff] }
  0x5f   : > { %30842 = vmatprep.subr.bf16.mxu0 %v30841_v32 }
  0x60   : > { %27983 = vmatmul.mubr.msk.f32.gmra.mrb[30].mxu1 %vm449_vm0, %v440_v35  ;;  %v861_v35 = vld [vmem:[%s32946_s12 + $0xb6] sm:$0xff] }
  0x61   : > { %28251 = vmatmul.mubr.msk.f32.gmra.mrb[2].mxu0 %vm449_vm0, %v33121_v37  ;;  %27985 = vmatprep.mubr.msk.f32.mxu1 %vm449_vm0, %v441_v38  ;;  %v33326_v38 = vld [vmem:[%s32946_s12 + $0x109] sm:$0xff] }
  0x62   : > { %28253 = vmatprep.mubr.msk.f32.mxu0 %vm449_vm0, %v33125_v39  ;;  %30844 = vmatpush3.bf16.msra.mxu0 %v30841_v32  ;;  %v33312_v32 = vld [vmem:[%s32946_s12 + $0xf9] sm:$0xff] }
  0x63   : > { %30846 = vmatprep.subr.bf16.mxu0 %v33127_v40 }
  0x64   : > { %27986 = vmatmul.mubr.msk.f32.gmra.mrb[32].mxu1 %vm449_vm0, %v442_v36  ;;  %v862_v36 = vld [vmem:[%s32946_s12 + $0xbe] sm:$0xff] }
  0x65   : > { %28254 = vmatmul.mubr.msk.f32.gmra.mrb[4].mxu0 %vm449_vm0, %v33137_v41  ;;  %27988 = vmatprep.mubr.msk.f32.mxu1 %vm449_vm0, %v443_v42  ;;  %v33336_v42 = vld [vmem:[%s32946_s12 + $0x111] sm:$0xff] }
  0x66   : > { %28256 = vmatprep.mubr.msk.f32.mxu0 %vm449_vm0, %v33141_v43 }
  0x68   : > { %27989 = vmatmul.mubr.msk.f32.gmra.mrb[34].mxu1 %vm449_vm0, %v444_v44  ;;  %v863_v44 = vld [vmem:[%s32946_s12 + $0xc6] sm:$0xff] }
  0x69   : > { %28257 = vmatmul.mubr.msk.f32.gmra.mrb[6].mxu0 %vm449_vm0, %v33152_v45  ;;  %27999 = vmatprep.mubr.msk.f32.mxu1 %vm449_vm0, %v839_v46  ;;  %v33340_v46 = vld [vmem:[%s32946_s12 + $0x119] sm:$0xff] }
  0x6a   : > { %28259 = vmatprep.mubr.msk.f32.mxu0 %vm449_vm0, %v33156_v47 }
  0x6c   : > { %28000 = vmatmul.mubr.msk.f32.vlgmr.msra.gmra.mrb[0].mxu1 %vm449_vm0, %v840_v50  ;;  %v865_v50 = vld [vmem:[%s32946_s12 + $0xd6] sm:$0xff] }
  0x6d   : > { %28260 = vmatmul.mubr.msk.f32.gmra.mrb[8].mxu0 %vm449_vm0, %v33172_v51  ;;  %28002 = vmatprep.mubr.msk.f32.mxu1 %vm449_vm0, %v841_v52  ;;  %v33354_v52 = vld [vmem:[%s32946_s12 + $0x129] sm:$0xff] }
  0x6e   : > { %28262 = vmatprep.mubr.msk.f32.mxu0 %vm449_vm0, %v33176_v53  ;;  %30808 = vmatpush3.bf16.msra.mxu1 %v33056_v8  ;;  %v33238_v8 = vld [vmem:[%s32946_s12 + $0xa1] sm:$0xff] }
  0x6f   : > { %30810 = vmatprep.subr.bf16.mxu1 %v30809_v54 }
  0x70   : > { %28003 = vmatmul.mubr.msk.f32.gmra.mrb[2].mxu1 %vm449_vm0, %v842_v57  ;;  %v24555_v57 = vld [vmem:[%s37701_s2 + $0xf0] sm:$0xff] }
  0x71   : > { %28263 = vmatmul.mubr.msk.f32.gmra.mrb[10].mxu0 %vm449_vm0, %v33192_v58  ;;  %28005 = vmatprep.mubr.msk.f32.mxu1 %vm449_vm0, %v843_v59  ;;  %v24556_v59 = vld [vmem:[%s37701_s2 + $0xf8] sm:$0xff] }
  0x72   : > { %28265 = vmatprep.mubr.msk.f32.mxu0 %vm449_vm0, %v33197_v60  ;;  %30812 = vmatpush3.bf16.msra.mxu1 %v30809_v54  ;;  %v866_v54 = vld [vmem:[%s32946_s12 + $0xde] sm:$0xff] }
  0x73   : > { %30814 = vmatprep.subr.bf16.mxu1 %v33199_v61 }
  0x74   : > { %28006 = vmatmul.mubr.msk.f32.gmra.mrb[4].mxu1 %vm449_vm0, %v844_v62  ;;  %v868_v62 = vld [vmem:[%s32946_s12 + $0xee] sm:$0xff] }
  0x75   : > { %28266 = vmatmul.mubr.msk.f32.gmra.mrb[12].mxu0 %vm449_vm0, %v33209_v63  ;;  %28008 = vmatprep.mubr.msk.f32.mxu1 %vm449_vm0, %v845_v0  ;;  %v869_v0 = vld [vmem:[%s32946_s12 + $0xf6] sm:$0xff] }
  0x76   : > { %28268 = vmatprep.mubr.msk.f32.mxu0 %vm449_vm0, %v33213_v1 }
  0x78   : > { %28009 = vmatmul.mubr.msk.f32.gmra.mrb[6].mxu1 %vm449_vm0, %v846_v2  ;;  %v30849_v2 = vpack.c.bf16 %v24556_v59, %v24555_v57  ;;  %v3384_v57 = vld [vmem:[%s32946_s12 + $0x141] sm:$0xff]  ;;  %v3851_v59 = vld [vmem:[%s32946_s12 + $0x2a] sm:$0xff] }
  0x79   : > { %28269 = vmatmul.mubr.msk.f32.gmra.mrb[14].mxu0 %vm449_vm0, %v33224_v3  ;;  %28011 = vmatprep.mubr.msk.f32.mxu1 %vm449_vm0, %v847_v4  ;;  %v24593_v4 = vld [vmem:[%s37701_s2 + $0x100] sm:$0xff] }
  0x7a   : > { %28271 = vmatprep.mubr.msk.f32.mxu0 %vm449_vm0, %v33228_v5 }
  0x7c   : > { %28012 = vmatmul.mubr.msk.f32.gmra.mrb[8].mxu1 %vm449_vm0, %v848_v6  ;;  %v24594_v6 = vld [vmem:[%s37701_s2 + $0x108] sm:$0xff] }
  0x7d   : > { %28272 = vmatmul.mubr.msk.f32.gmra.mrb[16].mxu0 %vm449_vm0, %v33238_v8  ;;  %28014 = vmatprep.mubr.msk.f32.mxu1 %vm449_vm0, %v849_v9  ;;  %v871_v9 = vld [vmem:[%s32946_s12 + $0x106] sm:$0xff] }
  0x7e   : > { %28274 = vmatprep.mubr.msk.f32.mxu0 %vm449_vm0, %v33242_v10 }
  0x80   : > { %28015 = vmatmul.mubr.msk.f32.gmra.mrb[10].mxu1 %vm449_vm0, %v850_v12  ;;  %v33396_v12 = vpack.c.bf16 %v24594_v6, %v24593_v4  ;;  %v382_v4 = vld [vmem:[%s37700_s1 + $0x78] sm:$0xff]  ;;  %v383_v6 = vld [vmem:[%s37700_s1 + $0x80] sm:$0xff] }
  0x81   : > { %28275 = vmatmul.mubr.msk.f32.gmra.mrb[18].mxu0 %vm449_vm0, %v33252_v13  ;;  %28017 = vmatprep.mubr.msk.f32.mxu1 %vm449_vm0, %v851_v14  ;;  %v24396_v14 = vld [vmem:[%s37701_s2 + $0x78] sm:$0xff] }
  0x82   : > { %28277 = vmatprep.mubr.msk.f32.mxu0 %vm449_vm0, %v33256_v15 }
  0x84   : > { %28018 = vmatmul.mubr.msk.f32.gmra.mrb[12].mxu1 %vm449_vm0, %v852_v16 }
  0x85   : > { %28278 = vmatmul.mubr.msk.f32.gmra.mrb[20].mxu0 %vm449_vm0, %v33266_v17  ;;  %28020 = vmatprep.mubr.msk.f32.mxu1 %vm449_vm0, %v853_v18  ;;  %v33442_v18 = vld [vmem:[%s32946_s12 + $0x27] sm:$0xff] }
  0x86   : > { %28280 = vmatprep.mubr.msk.f32.mxu0 %vm449_vm0, %v33270_v19 }
  0x88   : > { %28021 = vmatmul.mubr.msk.f32.gmra.mrb[14].mxu1 %vm449_vm0, %v854_v20  ;;  %v368_v20 = vld [vmem:[%s37700_s1 + $0x8] sm:$0xff] }
  0x89   : > { %28281 = vmatmul.mubr.msk.f32.gmra.mrb[22].mxu0 %vm449_vm0, %v33280_v21  ;;  %28023 = vmatprep.mubr.msk.f32.mxu1 %vm449_vm0, %v855_v22  ;;  %v33537_v22 = vld [vmem:[%s32946_s12 + $0x87] sm:$0xff] }
  0x8a   : > { %28283 = vmatprep.mubr.msk.f32.mxu0 %vm449_vm0, %v33284_v23 }
  0x8c   : > { %28024 = vmatmul.mubr.msk.f32.gmra.mrb[16].mxu1 %vm449_vm0, %v856_v24  ;;  %v371_v24 = vld [vmem:[%s37700_s1 + $0x20] sm:$0xff] }
  0x8d   : > { %28284 = vmatmul.mubr.msk.f32.gmra.mrb[24].mxu0 %vm449_vm0, %v33294_v25  ;;  %28026 = vmatprep.mubr.msk.f32.mxu1 %vm449_vm0, %v857_v26  ;;  %v33557_v26 = vld [vmem:[%s32946_s12 + $0x97] sm:$0xff] }
  0x8e   : > { %28286 = vmatprep.mubr.msk.f32.mxu0 %vm449_vm0, %v33298_v27 }
  0x90   : > { %28027 = vmatmul.mubr.msk.f32.gmra.mrb[18].mxu1 %vm449_vm0, %v858_v28  ;;  %v373_v28 = vld [vmem:[%s37700_s1 + $0x30] sm:$0xff] }
  0x91   : > { %28287 = vmatmul.mubr.msk.f32.gmra.mrb[26].mxu0 %vm449_vm0, %v33308_v29  ;;  %28029 = vmatprep.mubr.msk.f32.mxu1 %vm449_vm0, %v859_v30  ;;  %v33577_v30 = vld [vmem:[%s32946_s12 + $0xa7] sm:$0xff] }
  0x92   : > { %28289 = vmatprep.mubr.msk.f32.mxu0 %vm449_vm0, %v33312_v32 }
  0x94   : > { %28030 = vmatmul.mubr.msk.f32.gmra.mrb[20].mxu1 %vm449_vm0, %v860_v33  ;;  %v375_v33 = vld [vmem:[%s37700_s1 + $0x40] sm:$0xff] }
  0x95   : > { %28290 = vmatmul.mubr.msk.f32.gmra.mrb[28].mxu0 %vm449_vm0, %v33322_v34  ;;  %28032 = vmatprep.mubr.msk.f32.mxu1 %vm449_vm0, %v861_v35  ;;  %v33597_v35 = vld [vmem:[%s32946_s12 + $0xb7] sm:$0xff] }
  0x96   : > { %28292 = vmatprep.mubr.msk.f32.mxu0 %vm449_vm0, %v33326_v38 }
  0x98   : > { %28033 = vmatmul.mubr.msk.f32.gmra.mrb[22].mxu1 %vm449_vm0, %v862_v36  ;;  %v377_v36 = vld [vmem:[%s37700_s1 + $0x50] sm:$0xff] }
  0x99   : > { %28293 = vmatmul.mubr.msk.f32.gmra.mrb[30].mxu0 %vm449_vm0, %v33336_v42  ;;  %28035 = vmatprep.mubr.msk.f32.mxu1 %vm449_vm0, %v863_v44  ;;  %v33617_v44 = vld [vmem:[%s32946_s12 + $0xc7] sm:$0xff] }
  0x9a   : > { %28295 = vmatprep.mubr.msk.f32.mxu0 %vm449_vm0, %v33340_v46 }
  0x9c   : > { %28036 = vmatmul.mubr.msk.f32.gmra.mrb[24].mxu1 %vm449_vm0, %v864_v48  ;;  %v379_v48 = vld [vmem:[%s37700_s1 + $0x60] sm:$0xff] }
  0x9d   : > { %28296 = vmatmul.mubr.msk.f32.gmra.mrb[32].mxu0 %vm449_vm0, %v33350_v49  ;;  %28038 = vmatprep.mubr.msk.f32.mxu1 %vm449_vm0, %v865_v50  ;;  %v3383_v50 = vld [vmem:[%s32946_s12 + $0x139] sm:$0xff] }
  0x9e   : > { %28298 = vmatprep.mubr.msk.f32.mxu0 %vm449_vm0, %v33354_v52 }
  0xa0   : > { %28039 = vmatmul.mubr.msk.f32.gmra.mrb[26].mxu1 %vm449_vm0, %v866_v54  ;;  %v33647_v54 = vld [vmem:[%s32946_s12 + $0xdf] sm:$0xff] }
  0xa1   : > { %28299 = vmatmul.mubr.msk.f32.gmra.mrb[34].mxu0 %vm449_vm0, %v33364_v55  ;;  %28041 = vmatprep.mubr.msk.f32.mxu1 %vm449_vm0, %v867_v56  ;;  %v381_v56 = vld [vmem:[%s37700_s1 + $0x70] sm:$0xff] }
  0xa2   : > { %28309 = vmatprep.mubr.msk.f32.mxu0 %vm449_vm0, %v33105_v31  ;;  %v870_v31 = vld [vmem:[%s32946_s12 + $0xfe] sm:$0xff] }
  0xa4   : > { %28042 = vmatmul.mubr.msk.f32.gmra.mrb[28].mxu1 %vm449_vm0, %v868_v62  ;;  %v24595_v62 = vld [vmem:[%s37701_s2 + $0x110] sm:$0xff] }
  0xa5   : > { %28310 = vmatmul.mubr.msk.f32.vlgmr.msra.gmra.mrb[0].mxu0 %vm449_vm0, %v33121_v37  ;;  %28044 = vmatprep.mubr.msk.f32.mxu1 %vm449_vm0, %v869_v0  ;;  %v872_v37 = vld [vmem:[%s32946_s12 + $0x10e] sm:$0xff]  ;;  %v24596_v0 = vld [vmem:[%s37701_s2 + $0x118] sm:$0xff] }
  0xa6   : > { %30848 = vmatpush3.bf16.msra.mxu0 %v33127_v40  ;;  %28312 = vmatprep.mubr.msk.f32.mxu0 %vm449_vm0, %v33125_v39  ;;  %v873_v40 = vld [vmem:[%s32946_s12 + $0x116] sm:$0xff]  ;;  %v874_v39 = vld [vmem:[%s32946_s12 + $0x11e] sm:$0xff] }
  0xa7   : > { %30850 = vmatprep.subr.bf16.mxu0 %v30849_v2 }
  0xa8   : > { %28045 = vmatmul.mubr.msk.f32.gmra.mrb[30].mxu1 %vm449_vm0, %v870_v31  ;;  %v3852_v31 = vld [vmem:[%s32946_s12 + $0x32] sm:$0xff] }
  0xa9   : > { %28313 = vmatmul.mubr.msk.f32.gmra.mrb[2].mxu0 %vm449_vm0, %v33137_v41  ;;  %28047 = vmatprep.mubr.msk.f32.mxu1 %vm449_vm0, %v871_v9  ;;  %v1341_v41 = vld [vmem:[%s32946_s12 + $0x7] sm:$0xff]  ;;  %v33684_v9 = vld [vmem:[%s32946_s12 + $0xf7] sm:$0xff] }
  0xaa   : > { %28315 = vmatprep.mubr.msk.f32.mxu0 %vm449_vm0, %v33141_v43  ;;  %30852 = vmatpush3.bf16.msra.mxu0 %v30849_v2  ;;  %v24395_v43 = vld [vmem:[%s37701_s2 + $0x70] sm:$0xff] }
  0xab   : > { %30854 = vmatprep.subr.bf16.mxu0 %v33396_v12  ;;  %v30817_v16 = vpack.c.bf16 %v24396_v14, %v24395_v43  ;;  %v33673_v2 = vld [vmem:[%s32946_s12 + $0xef] sm:$0xff]  ;;  %v3854_v14 = vld [vmem:[%s32946_s12 + $0x42] sm:$0xff] }
  0xac   : > { %28048 = vmatmul.mubr.msk.f32.gmra.mrb[32].mxu1 %vm449_vm0, %v872_v37  ;;  %v3853_v37 = vld [vmem:[%s32946_s12 + $0x3a] sm:$0xff]  ;;  %v385_v43 = vld [vmem:[%s37700_s1 + $0x90] sm:$0xff] }
  0xad   : > { %28316 = vmatmul.mubr.msk.f32.gmra.mrb[4].mxu0 %vm449_vm0, %v33152_v45  ;;  %28050 = vmatprep.mubr.msk.f32.mxu1 %vm449_vm0, %v873_v40  ;;  %v1342_v45 = vld [vmem:[%s32946_s12 + $0xf] sm:$0xff]  ;;  %v30857_v40 = vpack.c.bf16 %v24596_v0, %v24595_v62 }
  0xae   : > { %28318 = vmatprep.mubr.msk.f32.mxu0 %vm449_vm0, %v33156_v47  ;;  %v33429_v47 = vld [vmem:[%s32946_s12 + $0x17] sm:$0xff]  ;;  %v400_v0 = vld [vmem:[%s37700_s1 + $0x108] sm:$0xff] }
  0xaf   : > { %v3868_v62 = vld [vmem:[%s32946_s12 + $0xb2] sm:$0xff] }
  0xb0   : > { %28051 = vmatmul.mubr.msk.f32.gmra.mrb[34].mxu1 %vm449_vm0, %v874_v39  ;;  %v33693_v39 = vld [vmem:[%s32946_s12 + $0xff] sm:$0xff] }
  0xb1   : > { %28319 = vmatmul.mubr.msk.f32.gmra.mrb[6].mxu0 %vm449_vm0, %v33172_v51  ;;  %28061 = vmatprep.mubr.msk.f32.mxu1 %vm449_vm0, %v1341_v41  ;;  %v33437_v51 = vld [vmem:[%s32946_s12 + $0x1f] sm:$0xff]  ;;  %v384_v41 = vld [vmem:[%s37700_s1 + $0x88] sm:$0xff] }
  0xb2   : > { %28321 = vmatprep.mubr.msk.f32.mxu0 %vm449_vm0, %v33176_v53  ;;  %v33452_v53 = vld [vmem:[%s32946_s12 + $0x2f] sm:$0xff] }
  0xb4   : > { %28062 = vmatmul.mubr.msk.f32.vlgmr.msra.gmra.mrb[0].mxu1 %vm449_vm0, %v1342_v45  ;;  %v33705_v45 = vld [vmem:[%s32946_s12 + $0x107] sm:$0xff] }
  0xb5   : > { %28322 = vmatmul.mubr.msk.f32.gmra.mrb[8].mxu0 %vm449_vm0, %v33192_v58  ;;  %28064 = vmatprep.mubr.msk.f32.mxu1 %vm449_vm0, %v33429_v47  ;;  %v33457_v58 = vld [vmem:[%s32946_s12 + $0x37] sm:$0xff] }
  0xb6   : > { %28324 = vmatprep.mubr.msk.f32.mxu0 %vm449_vm0, %v33197_v60  ;;  %30816 = vmatpush3.bf16.msra.mxu1 %v33199_v61  ;;  %v33467_v60 = vld [vmem:[%s32946_s12 + $0x3f] sm:$0xff]  ;;  %v33472_v61 = vld [vmem:[%s32946_s12 + $0x47] sm:$0xff] }
  0xb7   : > { %30818 = vmatprep.subr.bf16.mxu1 %v30817_v16 }
  0xb8   : > { %28065 = vmatmul.mubr.msk.f32.gmra.mrb[2].mxu1 %vm449_vm0, %v33437_v51 }
  0xb9   : > { %28325 = vmatmul.mubr.msk.f32.gmra.mrb[10].mxu0 %vm449_vm0, %v33209_v63  ;;  %28067 = vmatprep.mubr.msk.f32.mxu1 %vm449_vm0, %v33442_v18  ;;  %v33481_v63 = vld [vmem:[%s32946_s12 + $0x4f] sm:$0xff] }
  0xba   : > { %28327 = vmatprep.mubr.msk.f32.mxu0 %vm449_vm0, %v33213_v1  ;;  %30820 = vmatpush3.bf16.msra.mxu1 %v30817_v16  ;;  %v33486_v1 = vld [vmem:[%s32946_s12 + $0x57] sm:$0xff]  ;;  %v3855_v16 = vld [vmem:[%s32946_s12 + $0x4a] sm:$0xff] }
  0xbb   : > { %31197 = vmatprep.subr.bf16.mxu1 %v32917_v7 }
  0xbc   : > { %28068 = vmatmul.mubr.msk.f32.gmra.mrb[4].mxu1 %vm449_vm0, %v33452_v53 }
  0xbd   : > { %28328 = vmatmul.mubr.msk.f32.gmra.mrb[12].mxu0 %vm449_vm0, %v33224_v3  ;;  %28070 = vmatprep.mubr.msk.f32.mxu1 %vm449_vm0, %v33457_v58  ;;  %v33495_v3 = vld [vmem:[%s32946_s12 + $0x5f] sm:$0xff] }
  0xbe   : > { %28330 = vmatprep.mubr.msk.f32.mxu0 %vm449_vm0, %v33228_v5  ;;  %v33500_v5 = vld [vmem:[%s32946_s12 + $0x67] sm:$0xff] }
  0xc0   : > { %28071 = vmatmul.mubr.msk.f32.gmra.mrb[6].mxu1 %vm449_vm0, %v33467_v60 }
  0xc1   : > { %28331 = vmatmul.mubr.msk.f32.gmra.mrb[14].mxu0 %vm449_vm0, %v33238_v8  ;;  %28073 = vmatprep.mubr.msk.f32.mxu1 %vm449_vm0, %v33472_v61  ;;  %v33509_v8 = vld [vmem:[%s32946_s12 + $0x6f] sm:$0xff] }
  0xc2   : > { %28333 = vmatprep.mubr.msk.f32.mxu0 %vm449_vm0, %v33242_v10  ;;  %v367_v10 = vld [vmem:[%s37700_s1] sm:$0xff] }
  0xc4   : > { %28074 = vmatmul.mubr.msk.f32.gmra.mrb[8].mxu1 %vm449_vm0, %v33481_v63 }
  0xc5   : > { %28334 = vmatmul.mubr.msk.f32.gmra.mrb[16].mxu0 %vm449_vm0, %v33252_v13  ;;  %28076 = vmatprep.mubr.msk.f32.mxu1 %vm449_vm0, %v33486_v1  ;;  %v33517_v13 = vld [vmem:[%s32946_s12 + $0x77] sm:$0xff] }
  0xc6   : > { %28336 = vmatprep.mubr.msk.f32.mxu0 %vm449_vm0, %v33256_v15  ;;  %v32789_v15 = vmov 0  }
  0xc7   : > { %32690 = vset.pattern.permute.xlu0 %v32789_v15  ;;  %32691 = vset.pattern.permute.xlu1 %v32789_v15  ;;  %v387_v15 = vld [vmem:[%s37700_s1 + $0xa0] sm:$0xff] }
  0xc8   : > { %28077 = vmatmul.mubr.msk.f32.gmra.mrb[10].mxu1 %vm449_vm0, %v33495_v3  ;;  %5015 = vperm.xlu0 %32690, %v367_v10   ;;  %v386_v10 = vld [vmem:[%s37700_s1 + $0x98] sm:$0xff] }
  0xc9   : > { %28337 = vmatmul.mubr.msk.f32.gmra.mrb[18].mxu0 %vm449_vm0, %v33266_v17  ;;  %28079 = vmatprep.mubr.msk.f32.mxu1 %vm449_vm0, %v33500_v5  ;;  %v33526_v17 = vld [vmem:[%s32946_s12 + $0x7f] sm:$0xff] }
  0xca   : > { %28339 = vmatprep.mubr.msk.f32.mxu0 %vm449_vm0, %v33270_v19  ;;  %v369_v19 = vld [vmem:[%s37700_s1 + $0x10] sm:$0xff] }
  0xcb   : > { %5025 = vperm.xlu1 %32691, %v369_v19   ;;  %v3856_v19 = vld [vmem:[%s32946_s12 + $0x52] sm:$0xff] }
  0xcc   : > { %28080 = vmatmul.mubr.msk.f32.gmra.mrb[12].mxu1 %vm449_vm0, %v33509_v8  ;;  %5020 = vperm.xlu0 %32690, %v368_v20   ;;  %v33725_v20 = vld [vmem:[%s32946_s12 + $0x117] sm:$0xff] }
  0xcd   : > { %28340 = vmatmul.mubr.msk.f32.gmra.mrb[20].mxu0 %vm449_vm0, %v33280_v21  ;;  %28082 = vmatprep.mubr.msk.f32.mxu1 %vm449_vm0, %v33517_v13  ;;  %v33546_v21 = vld [vmem:[%s32946_s12 + $0x8f] sm:$0xff] }
  0xce   : > { %28342 = vmatprep.mubr.msk.f32.mxu0 %vm449_vm0, %v33284_v23  ;;  %v370_v23 = vld [vmem:[%s37700_s1 + $0x18] sm:$0xff] }
  0xcf   : > { %5030 = vperm.xlu1 %32691, %v370_v23   ;;  %v3857_v23 = vld [vmem:[%s32946_s12 + $0x5a] sm:$0xff] }
  0xd0   : > { %28083 = vmatmul.mubr.msk.f32.gmra.mrb[14].mxu1 %vm449_vm0, %v33526_v17  ;;  %5035 = vperm.xlu0 %32690, %v371_v24   ;;  %v33734_v24 = vld [vmem:[%s32946_s12 + $0x11f] sm:$0xff] }
  0xd1   : > { %28343 = vmatmul.mubr.msk.f32.gmra.mrb[22].mxu0 %vm449_vm0, %v33294_v25  ;;  %28085 = vmatprep.mubr.msk.f32.mxu1 %vm449_vm0, %v33537_v22  ;;  %v33566_v25 = vld [vmem:[%s32946_s12 + $0x9f] sm:$0xff] }
  0xd2   : > { %28345 = vmatprep.mubr.msk.f32.mxu0 %vm449_vm0, %v33298_v27  ;;  %v372_v27 = vld [vmem:[%s37700_s1 + $0x28] sm:$0xff] }
  0xd3   : > { %5040 = vperm.xlu1 %32691, %v372_v27   ;;  %v388_v27 = vld [vmem:[%s37700_s1 + $0xa8] sm:$0xff] }
  0xd4   : > { %28086 = vmatmul.mubr.msk.f32.gmra.mrb[16].mxu1 %vm449_vm0, %v33546_v21  ;;  %5045 = vperm.xlu0 %32690, %v373_v28   ;;  %v389_v28 = vld [vmem:[%s37700_s1 + $0xb0] sm:$0xff] }
  0xd5   : > { %28346 = vmatmul.mubr.msk.f32.gmra.mrb[24].mxu0 %vm449_vm0, %v33308_v29  ;;  %28088 = vmatprep.mubr.msk.f32.mxu1 %vm449_vm0, %v33557_v26  ;;  %v33586_v29 = vld [vmem:[%s32946_s12 + $0xaf] sm:$0xff] }
  0xd6   : > { %28348 = vmatprep.mubr.msk.f32.mxu0 %vm449_vm0, %v33312_v32  ;;  %v374_v32 = vld [vmem:[%s37700_s1 + $0x38] sm:$0xff] }
  0xd7   : > { %5050 = vperm.xlu1 %32691, %v374_v32   ;;  %v3858_v32 = vld [vmem:[%s32946_s12 + $0x62] sm:$0xff] }
  0xd8   : > { %28089 = vmatmul.mubr.msk.f32.gmra.mrb[18].mxu1 %vm449_vm0, %v33566_v25  ;;  %5055 = vperm.xlu0 %32690, %v375_v33   ;;  %v3859_v33 = vld [vmem:[%s32946_s12 + $0x6a] sm:$0xff] }
  0xd9   : > { %28349 = vmatmul.mubr.msk.f32.gmra.mrb[26].mxu0 %vm449_vm0, %v33322_v34  ;;  %28091 = vmatprep.mubr.msk.f32.mxu1 %vm449_vm0, %v33577_v30  ;;  %v33606_v34 = vld [vmem:[%s32946_s12 + $0xbf] sm:$0xff] }
  0xda   : > { %28351 = vmatprep.mubr.msk.f32.mxu0 %vm449_vm0, %v33326_v38  ;;  %v376_v38 = vld [vmem:[%s37700_s1 + $0x48] sm:$0xff] }
  0xdb   : > { %5060 = vperm.xlu1 %32691, %v376_v38   ;;  %v390_v38 = vld [vmem:[%s37700_s1 + $0xb8] sm:$0xff] }
  0xdc   : > { %28092 = vmatmul.mubr.msk.f32.gmra.mrb[20].mxu1 %vm449_vm0, %v33586_v29  ;;  %5065 = vperm.xlu0 %32690, %v377_v36   ;;  %v391_v36 = vld [vmem:[%s37700_s1 + $0xc0] sm:$0xff] }
  0xdd   : > { %28352 = vmatmul.mubr.msk.f32.gmra.mrb[28].mxu0 %vm449_vm0, %v33336_v42  ;;  %28094 = vmatprep.mubr.msk.f32.mxu1 %vm449_vm0, %v33597_v35  ;;  %v33626_v42 = vld [vmem:[%s32946_s12 + $0xcf] sm:$0xff] }
  0xde   : > { %28354 = vmatprep.mubr.msk.f32.mxu0 %vm449_vm0, %v33340_v46  ;;  %v378_v46 = vld [vmem:[%s37700_s1 + $0x58] sm:$0xff] }
  0xdf   : > { %5070 = vperm.xlu1 %32691, %v378_v46   ;;  %v3860_v46 = vld [vmem:[%s32946_s12 + $0x72] sm:$0xff] }
  0xe0   : > { %28095 = vmatmul.mubr.msk.f32.gmra.mrb[22].mxu1 %vm449_vm0, %v33606_v34  ;;  %5075 = vperm.xlu0 %32690, %v379_v48   ;;  %v3861_v48 = vld [vmem:[%s32946_s12 + $0x7a] sm:$0xff] }
  0xe1   : > { %28355 = vmatmul.mubr.msk.f32.gmra.mrb[30].mxu0 %vm449_vm0, %v33350_v49  ;;  %28097 = vmatprep.mubr.msk.f32.mxu1 %vm449_vm0, %v33617_v44  ;;  %v33637_v49 = vld [vmem:[%s32946_s12 + $0xd7] sm:$0xff] }
  0xe2   : > { %28357 = vmatprep.mubr.msk.f32.mxu0 %vm449_vm0, %v33354_v52  ;;  %v380_v52 = vld [vmem:[%s37700_s1 + $0x68] sm:$0xff] }
  0xe3   : > { %5080 = vperm.xlu1 %32691, %v380_v52   ;;  %v3862_v52 = vld [vmem:[%s32946_s12 + $0x82] sm:$0xff] }
  0xe4   : > { %28098 = vmatmul.mubr.msk.f32.gmra.mrb[24].mxu1 %vm449_vm0, %v33626_v42  ;;  %5085 = vperm.xlu0 %32690, %v381_v56   ;;  %v3864_v56 = vld [vmem:[%s32946_s12 + $0x92] sm:$0xff] }
  0xe5   : > { %28358 = vmatmul.mubr.msk.f32.gmra.mrb[32].mxu0 %vm449_vm0, %v33364_v55  ;;  %28100 = vmatprep.mubr.msk.f32.mxu1 %vm449_vm0, %v33637_v49  ;;  %v33658_v55 = vld [vmem:[%s32946_s12 + $0xe7] sm:$0xff] }
  0xe6   : > { %28360 = vmatprep.mubr.msk.f32.mxu0 %vm449_vm0, %v3383_v50  ;;  %v393_v50 = vld [vmem:[%s37700_s1 + $0xd0] sm:$0xff] }
  0xe7   : > { %5090 = vperm.xlu1 %32691, %v382_v4   ;;  %v3870_v4 = vld [vmem:[%s32946_s12 + $0xc2] sm:$0xff] }
  0xe8   : > { %28101 = vmatmul.mubr.msk.f32.gmra.mrb[26].mxu1 %vm449_vm0, %v33647_v54  ;;  %5095 = vperm.xlu0 %32690, %v383_v6   ;;  %v402_v6 = vld [vmem:[%s37700_s1 + $0x118] sm:$0xff] }
  0xe9   : > { %28361 = vmatmul.mubr.msk.f32.gmra.mrb[34].mxu0 %vm449_vm0, %v3384_v57  ;;  %28103 = vmatprep.mubr.msk.f32.mxu1 %vm449_vm0, %v33658_v55  ;;  %v3866_v57 = vld [vmem:[%s32946_s12 + $0xa2] sm:$0xff] }
  0xea   : > { %28371 = vmatprep.mubr.msk.f32.mxu0 %vm449_vm0, %v3851_v59  ;;  %v398_v59 = vld [vmem:[%s37700_s1 + $0xf8] sm:$0xff] }
  0xeb   : > { %5100 = vperm.xlu1 %32691, %v384_v41   ;;  %v1878_v41 = vld [vmem:[%s32946_s12 + $0x12f] sm:$0xff] }
  0xec   : > { %28104 = vmatmul.mubr.msk.f32.gmra.mrb[28].mxu1 %vm449_vm0, %v33673_v2  ;;  %5105 = vperm.xlu0 %32690, %v385_v43   ;;  %v4360_v43 = vld [vmem:[%s32946_s12 + $0x63] sm:$0xff] }
  0xed   : > { %28372 = vmatmul.mubr.msk.f32.vlgmr.msra.gmra.mrb[0].mxu0 %vm449_vm0, %v3852_v31  ;;  %28106 = vmatprep.mubr.msk.f32.mxu1 %vm449_vm0, %v33684_v9  ;;  %v3873_v31 = vld [vmem:[%s32946_s12 + $0xda] sm:$0xff] }
  0xee   : > { %30856 = vmatpush3.bf16.msra.mxu0 %v33396_v12  ;;  %28374 = vmatprep.mubr.msk.f32.mxu0 %vm449_vm0, %v3853_v37  ;;  %v33714_v12 = vld [vmem:[%s32946_s12 + $0x10f] sm:$0xff]  ;;  %v3877_v37 = vld [vmem:[%s32946_s12 + $0xfa] sm:$0xff] }
  0xef   : > { %30858 = vmatprep.subr.bf16.mxu0 %v30857_v40  ;;  %5110 = vperm.xlu1 %32691, %v386_v10   ;;  %v2375_v10 = vld [vmem:[%s32946_s12 + $0x108] sm:$0xff] }
  0xf0   : > { %28107 = vmatmul.mubr.msk.f32.gmra.mrb[30].mxu1 %vm449_vm0, %v33693_v39  ;;  %5115 = vperm.xlu0 %32690, %v387_v15   ;;  %v4363_v15 = vld [vmem:[%s32946_s12 + $0x7b] sm:$0xff] }
  0xf1   : > { %28375 = vmatmul.mubr.msk.f32.gmra.mrb[2].mxu0 %vm449_vm0, %v3854_v14  ;;  %28109 = vmatprep.mubr.msk.f32.mxu1 %vm449_vm0, %v33705_v45  ;;  %v2373_v14 = vld [vmem:[%s32946_s12 + $0xf8] sm:$0xff] }
  0xf2   : > { %28377 = vmatprep.mubr.msk.f32.mxu0 %vm449_vm0, %v3855_v16  ;;  %30860 = vmatpush3.bf16.msra.mxu0 %v30857_v40  ;;  %v1877_v40 = vld [vmem:[%s32946_s12 + $0x127] sm:$0xff] }
  0xf3   : > { %5120 = vperm.xlu1 %32691, %v388_v27   ;;  %v2374_v16 = vld [vmem:[%s32946_s12 + $0x100] sm:$0xff] }
  0xf4   : > { %28110 = vmatmul.mubr.msk.f32.gmra.mrb[32].mxu1 %vm449_vm0, %v33714_v12  ;;  %5125 = vperm.xlu0 %32690, %v389_v28   ;;  %v2378_v27 = vld [vmem:[%s32946_s12 + $0x120] sm:$0xff]  ;;  %v4366_v28 = vld [vmem:[%s32946_s12 + $0x93] sm:$0xff] }
  0xf5   : > { %28378 = vmatmul.mubr.msk.f32.gmra.mrb[4].mxu0 %vm449_vm0, %v3856_v19  ;;  %28112 = vmatprep.mubr.msk.f32.mxu1 %vm449_vm0, %v33725_v20  ;;  %v2376_v19 = vld [vmem:[%s32946_s12 + $0x110] sm:$0xff] }
  0xf6   : > { %28380 = vmatprep.mubr.msk.f32.mxu0 %vm449_vm0, %v3857_v23  ;;  %v2377_v23 = vld [vmem:[%s32946_s12 + $0x118] sm:$0xff] }
  0xf7   : > { %5130 = vperm.xlu1 %32691, %v390_v38   ;;  %v2380_v38 = vld [vmem:[%s32946_s12 + $0x130] sm:$0xff] }
  0xf8   : > { %28113 = vmatmul.mubr.msk.f32.gmra.mrb[34].mxu1 %vm449_vm0, %v33734_v24  ;;  %5135 = vperm.xlu0 %32690, %v391_v36   ;;  %v4368_v36 = vld [vmem:[%s32946_s12 + $0xa3] sm:$0xff] }
  0xf9   : > { %28381 = vmatmul.mubr.msk.f32.gmra.mrb[6].mxu0 %vm449_vm0, %v3858_v32  ;;  %28123 = vmatprep.mubr.msk.f32.mxu1 %vm449_vm0, %v33429_v47  ;;  %v392_v47 = vld [vmem:[%s37700_s1 + $0xc8] sm:$0xff] }
  0xfa   : > { %28383 = vmatprep.mubr.msk.f32.mxu0 %vm449_vm0, %v3859_v33  ;;  %v2379_v32 = vld [vmem:[%s32946_s12 + $0x128] sm:$0xff]  ;;  %v4367_v33 = vld [vmem:[%s32946_s12 + $0x9b] sm:$0xff] }
  0xfb   : > { %5140 = vperm.xlu1 %32691, %v392_v47   ;;  %v4371_v47 = vld [vmem:[%s32946_s12 + $0xbb] sm:$0xff] }
  0xfc   : > { %28124 = vmatmul.mubr.msk.f32.vlgmr.msra.gmra.mrb[0].mxu1 %vm449_vm0, %v33437_v51  ;;  %v3863_v51 = vld [vmem:[%s32946_s12 + $0x8a] sm:$0xff]  ;;  %5145 = vperm.xlu0 %32690, %v393_v50  }
  0xfd   : > { %28384 = vmatmul.mubr.msk.f32.gmra.mrb[8].mxu0 %vm449_vm0, %v3860_v46  ;;  %28126 = vmatprep.mubr.msk.f32.mxu1 %vm449_vm0, %v33442_v18  ;;  %v394_v18 = vld [vmem:[%s37700_s1 + $0xd8] sm:$0xff]  ;;  %v4369_v46 = vld [vmem:[%s32946_s12 + $0xab] sm:$0xff]  ;;  %v4372_v50 = vld [vmem:[%s32946_s12 + $0xc3] sm:$0xff] }
  0xfe   : > { %28386 = vmatprep.mubr.msk.f32.mxu0 %vm449_vm0, %v3861_v48  ;;  %31199 = vmatpush3.bf16.msra.mxu1 %v32917_v7  ;;  %v395_v7 = vld [vmem:[%s37700_s1 + $0xe0] sm:$0xff]  ;;  %v4370_v48 = vld [vmem:[%s32946_s12 + $0xb3] sm:$0xff] }
  0xff   : > { %31198 = vmatprep.subr.bf16.mxu1 %v32926_v11  ;;  %5150 = vperm.xlu1 %32691, %v394_v18   ;;  %v4375_v18 = vld [vmem:[%s32946_s12 + $0xdb] sm:$0xff] }
 0x100   : > { %28127 = vmatmul.mubr.msk.f32.gmra.mrb[2].mxu1 %vm449_vm0, %v33452_v53  ;;  %v3865_v53 = vld [vmem:[%s32946_s12 + $0x9a] sm:$0xff]  ;;  %5155 = vperm.xlu0 %32690, %v395_v7   ;;  %v4376_v7 = vld [vmem:[%s32946_s12 + $0xe3] sm:$0xff] }
 0x101   : > { %28387 = vmatmul.mubr.msk.f32.gmra.mrb[10].mxu0 %vm449_vm0, %v3862_v52  ;;  %28129 = vmatprep.mubr.msk.f32.mxu1 %vm449_vm0, %v33457_v58  ;;  %v396_v58 = vld [vmem:[%s37700_s1 + $0xe8] sm:$0xff] }
 0x102   : > { %28389 = vmatprep.mubr.msk.f32.mxu0 %vm449_vm0, %v3863_v51  ;;  %31200 = vmatpush3.bf16.msra.mxu1 %v32926_v11  ;;  %v397_v11 = vld [vmem:[%s37700_s1 + $0xf0] sm:$0xff] }
 0x103   : > { %5160 = vperm.xlu1 %32691, %v396_v58   ;;  %v4373_v52 = vld [vmem:[%s32946_s12 + $0xcb] sm:$0xff]  ;;  %v4374_v51 = vld [vmem:[%s32946_s12 + $0xd3] sm:$0xff]  ;;  %v4379_v58 = vld [vmem:[%s32946_s12 + $0xfb] sm:$0xff] }
 0x104   : > { %28130 = vmatmul.mubr.msk.f32.gmra.mrb[4].mxu1 %vm449_vm0, %v33467_v60  ;;  %v3867_v60 = vld [vmem:[%s32946_s12 + $0xaa] sm:$0xff]  ;;  %5165 = vperm.xlu0 %32690, %v397_v11  }
 0x105   : > { %28390 = vmatmul.mubr.msk.f32.gmra.mrb[12].mxu0 %vm449_vm0, %v3864_v56  ;;  %28132 = vmatprep.mubr.msk.f32.mxu1 %vm449_vm0, %v33472_v61  ;;  %v399_v61 = vld [vmem:[%s37700_s1 + $0x100] sm:$0xff]  ;;  %v4377_v56 = vld [vmem:[%s32946_s12 + $0xeb] sm:$0xff] }
 0x106   : > { %28392 = vmatprep.mubr.msk.f32.mxu0 %vm449_vm0, %v3865_v53  ;;  %v4378_v53 = vld [vmem:[%s32946_s12 + $0xf3] sm:$0xff]  ;;  %v4380_v11 = vld [vmem:[%s32946_s12 + $0x103] sm:$0xff] }
 0x107   : > { %5170 = vperm.xlu1 %32691, %v398_v59   ;;  %v4383_v59 = vld [vmem:[%s32946_s12 + $0x11b] sm:$0xff] }
 0x108   : > { %28133 = vmatmul.mubr.msk.f32.gmra.mrb[6].mxu1 %vm449_vm0, %v33481_v63  ;;  %v3869_v63 = vld [vmem:[%s32946_s12 + $0xba] sm:$0xff]  ;;  %5175 = vperm.xlu0 %32690, %v399_v61   ;;  %v4384_v61 = vld [vmem:[%s32946_s12 + $0x123] sm:$0xff] }
 0x109   : > { %28393 = vmatmul.mubr.msk.f32.gmra.mrb[14].mxu0 %vm449_vm0, %v3866_v57  ;;  %28135 = vmatprep.mubr.msk.f32.mxu1 %vm449_vm0, %v33486_v1  ;;  %v401_v1 = vld [vmem:[%s37700_s1 + $0x110] sm:$0xff] }
 0x10a   : > { %28395 = vmatprep.mubr.msk.f32.mxu0 %vm449_vm0, %v3867_v60  ;;  %v4381_v57 = vld [vmem:[%s32946_s12 + $0x10b] sm:$0xff]  ;;  %v4382_v60 = vld [vmem:[%s32946_s12 + $0x113] sm:$0xff] }
 0x10b   : > { %5180 = vperm.xlu1 %32691, %v400_v0   ;;  %v4387_v0 = vld [vmem:[%s32946_s12 + $0x13b] sm:$0xff] }
 0x10c   : > { %28136 = vmatmul.mubr.msk.f32.gmra.mrb[8].mxu1 %vm449_vm0, %v33495_v3  ;;  %v3871_v3 = vld [vmem:[%s32946_s12 + $0xca] sm:$0xff]  ;;  %5185 = vperm.xlu0 %32690, %v401_v1  }
 0x10d   : > { %28396 = vmatmul.mubr.msk.f32.gmra.mrb[16].mxu0 %vm449_vm0, %v3868_v62  ;;  %28138 = vmatprep.mubr.msk.f32.mxu1 %vm449_vm0, %v33500_v5  ;;  %v3872_v5 = vld [vmem:[%s32946_s12 + $0xd2] sm:$0xff]  ;;  %v4388_v1 = vld [vmem:[%s32946_s12 + $0x143] sm:$0xff] }
 0x10e   : > { %28398 = vmatprep.mubr.msk.f32.mxu0 %vm449_vm0, %v3869_v63  ;;  %v4385_v62 = vld [vmem:[%s32946_s12 + $0x12b] sm:$0xff]  ;;  %v4386_v63 = vld [vmem:[%s32946_s12 + $0x133] sm:$0xff] }
 0x10f   : > { %5190 = vperm.xlu1 %32691, %v402_v6  }
 0x110   : > { %28139 = vmatmul.mubr.msk.f32.gmra.mrb[10].mxu1 %vm449_vm0, %v33509_v8  ;;  %v3874_v8 = vld [vmem:[%s32946_s12 + $0xe2] sm:$0xff] }
 0x111   : > { %28399 = vmatmul.mubr.msk.f32.gmra.mrb[18].mxu0 %vm449_vm0, %v3870_v4  ;;  %28141 = vmatprep.mubr.msk.f32.mxu1 %vm449_vm0, %v33517_v13  ;;  %v3875_v13 = vld [vmem:[%s32946_s12 + $0xea] sm:$0xff]  ;;  %v24635_v4 = vld [vmem:[%s37701_s2 + $0x120] sm:$0xff] }
 0x112   : > { %28401 = vmatprep.mubr.msk.f32.mxu0 %vm449_vm0, %v3871_v3  ;;  %v24636_v3 = vld [vmem:[%s37701_s2 + $0x128] sm:$0xff] }
 0x113   : > { %v30861_v6 = vpack.c.bf16 %v24636_v3, %v24635_v4 }
 0x114   : > { %28142 = vmatmul.mubr.msk.f32.gmra.mrb[12].mxu1 %vm449_vm0, %v33526_v17  ;;  %v3876_v17 = vld [vmem:[%s32946_s12 + $0xf2] sm:$0xff] }
 0x115   : > { %28402 = vmatmul.mubr.msk.f32.gmra.mrb[20].mxu0 %vm449_vm0, %v3872_v5  ;;  %28144 = vmatprep.mubr.msk.f32.mxu1 %vm449_vm0, %v33537_v22  ;;  %v3878_v22 = vld [vmem:[%s32946_s12 + $0x102] sm:$0xff]  ;;  %v32790_v5 = vmov 0.0  }
 0x116   : > { %28404 = vmatprep.mubr.msk.f32.mxu0 %vm449_vm0, %v3873_v31  ;;  %403 = vst [vmem:[#allocation2] sm:$0xff] %v32790_v5  ;;  %404 = vst [vmem:[#allocation2 + $0x8] sm:$0xff] %v32790_v5  ;;  %30862 = vmatprep.subr.bf16.mxu1 %v30861_v6  ;;  %v24637_v31 = vld [vmem:[%s37701_s2 + $0x130] sm:$0xff] }
 0x117   : > { %405 = vst [vmem:[#allocation2 + $0x10] sm:$0xff] %v32790_v5  ;;  %406 = vst [vmem:[#allocation2 + $0x138] sm:$0xff] %v32790_v5 }
 0x118   : > { %28145 = vmatmul.mubr.msk.f32.gmra.mrb[14].mxu1 %vm449_vm0, %v33546_v21  ;;  %v3879_v21 = vld [vmem:[%s32946_s12 + $0x10a] sm:$0xff]  ;;  %407 = vst [vmem:[#allocation2 + $0x140] sm:$0xff] %v32790_v5  ;;  %408 = vst [vmem:[#allocation2 + $0x148] sm:$0xff] %v32790_v5 }
 0x119   : > { %28405 = vmatmul.mubr.msk.f32.gmra.mrb[22].mxu0 %vm449_vm0, %v3874_v8  ;;  %28147 = vmatprep.mubr.msk.f32.mxu1 %vm449_vm0, %v33557_v26  ;;  %v3880_v26 = vld [vmem:[%s32946_s12 + $0x112] sm:$0xff] }
 0x11a   : > { %28407 = vmatprep.mubr.msk.f32.mxu0 %vm449_vm0, %v3875_v13  ;;  %v24638_v8 = vld [vmem:[%s37701_s2 + $0x138] sm:$0xff] }
 0x11b   : > { %v30865_v13 = vpack.c.bf16 %v24638_v8, %v24637_v31 }
 0x11c   : > { %28148 = vmatmul.mubr.msk.f32.gmra.mrb[16].mxu1 %vm449_vm0, %v33566_v25  ;;  %v3881_v25 = vld [vmem:[%s32946_s12 + $0x11a] sm:$0xff] }
 0x11d   : > { %28408 = vmatmul.mubr.msk.f32.gmra.mrb[24].mxu0 %vm449_vm0, %v3876_v17  ;;  %28150 = vmatprep.mubr.msk.f32.mxu1 %vm449_vm0, %v33577_v30  ;;  %v3882_v30 = vld [vmem:[%s32946_s12 + $0x122] sm:$0xff] }
 0x11e   : > { %28410 = vmatprep.mubr.msk.f32.mxu0 %vm449_vm0, %v3877_v37  ;;  %v5265_v17 = vld [vmem:[#allocation2 + $0x5] sm:$0xff]  ;;  %v5266_v37 = vld [vmem:[#allocation2 + $0xd] sm:$0xff] }
 0x120   : > { %28151 = vmatmul.mubr.msk.f32.gmra.mrb[18].mxu1 %vm449_vm0, %v33586_v29  ;;  %v3883_v29 = vld [vmem:[%s32946_s12 + $0x12a] sm:$0xff] }
 0x121   : > { %28411 = vmatmul.mubr.msk.f32.gmra.mrb[26].mxu0 %vm449_vm0, %v3878_v22  ;;  %28153 = vmatprep.mubr.msk.f32.mxu1 %vm449_vm0, %v33597_v35  ;;  %v3884_v35 = vld [vmem:[%s32946_s12 + $0x132] sm:$0xff]  ;;  %v24675_v22 = vld [vmem:[%s37701_s2 + $0x140] sm:$0xff] }
 0x122   : > { %28413 = vmatprep.mubr.msk.f32.mxu0 %vm449_vm0, %v3879_v21  ;;  %v24676_v21 = vld [vmem:[%s37701_s2 + $0x148] sm:$0xff] }
 0x124   : > { %28154 = vmatmul.mubr.msk.f32.gmra.mrb[20].mxu1 %vm449_vm0, %v33606_v34  ;;  %v3885_v34 = vld [vmem:[%s32946_s12 + $0x13a] sm:$0xff] }
 0x125   : > { %28414 = vmatmul.mubr.msk.f32.gmra.mrb[28].mxu0 %vm449_vm0, %v3880_v26  ;;  %28156 = vmatprep.mubr.msk.f32.mxu1 %vm449_vm0, %v33617_v44  ;;  %v3886_v44 = vld [vmem:[%s32946_s12 + $0x142] sm:$0xff]  ;;  %v30869_v26 = vpack.c.bf16 %v24676_v21, %v24675_v22 }
 0x126   : > { %28416 = vmatprep.mubr.msk.f32.mxu0 %vm449_vm0, %v3881_v25  ;;  %v24677_v25 = vld [vmem:[%s37701_s2 + $0x150] sm:$0xff] }
 0x128   : > { %28157 = vmatmul.mubr.msk.f32.gmra.mrb[22].mxu1 %vm449_vm0, %v33626_v42  ;;  %v4353_v42 = vld [vmem:[%s32946_s12 + $0x2b] sm:$0xff] }
 0x129   : > { %28417 = vmatmul.mubr.msk.f32.gmra.mrb[30].mxu0 %vm449_vm0, %v3882_v30  ;;  %28159 = vmatprep.mubr.msk.f32.mxu1 %vm449_vm0, %v33637_v49  ;;  %v4354_v49 = vld [vmem:[%s32946_s12 + $0x33] sm:$0xff] }
 0x12a   : > { %28419 = vmatprep.mubr.msk.f32.mxu0 %vm449_vm0, %v3883_v29  ;;  %v24678_v30 = vld [vmem:[%s37701_s2 + $0x158] sm:$0xff] }
 0x12b   : > { %v30873_v29 = vpack.c.bf16 %v24678_v30, %v24677_v25 }
 0x12c   : > { %28160 = vmatmul.mubr.msk.f32.gmra.mrb[24].mxu1 %vm449_vm0, %v33647_v54  ;;  %v4355_v54 = vld [vmem:[%s32946_s12 + $0x3b] sm:$0xff] }
 0x12d   : > { %28420 = vmatmul.mubr.msk.f32.gmra.mrb[32].mxu0 %vm449_vm0, %v3884_v35  ;;  %28162 = vmatprep.mubr.msk.f32.mxu1 %vm449_vm0, %v33658_v55  ;;  %v4356_v55 = vld [vmem:[%s32946_s12 + $0x43] sm:$0xff] }
 0x12e   : > { %28422 = vmatprep.mubr.msk.f32.mxu0 %vm449_vm0, %v3885_v34 }
 0x130   : > { %28163 = vmatmul.mubr.msk.f32.gmra.mrb[26].mxu1 %vm449_vm0, %v33673_v2  ;;  %v4357_v2 = vld [vmem:[%s32946_s12 + $0x4b] sm:$0xff] }
 0x131   : > { %28423 = vmatmul.mubr.msk.f32.gmra.mrb[34].mxu0 %vm449_vm0, %v3886_v44  ;;  %28165 = vmatprep.mubr.msk.f32.mxu1 %vm449_vm0, %v33684_v9  ;;  %v4358_v9 = vld [vmem:[%s32946_s12 + $0x53] sm:$0xff] }
 0x132   : > { %28433 = vmatprep.mubr.msk.f32.mxu0 %vm449_vm0, %v4353_v42 }
 0x134   : > { %28166 = vmatmul.mubr.msk.f32.gmra.mrb[28].mxu1 %vm449_vm0, %v33693_v39  ;;  %v4359_v39 = vld [vmem:[%s32946_s12 + $0x5b] sm:$0xff] }
 0x135   : > { %28434 = vmatmul.mubr.msk.f32.vlgmr.msra.gmra.mrb[0].mxu0 %vm449_vm0, %v4354_v49  ;;  %28168 = vmatprep.mubr.msk.f32.mxu1 %vm449_vm0, %v33705_v45  ;;  %v4361_v45 = vld [vmem:[%s32946_s12 + $0x6b] sm:$0xff] }
 0x136   : > { %28436 = vmatprep.mubr.msk.f32.mxu0 %vm449_vm0, %v4355_v54 }
 0x138   : > { %28169 = vmatmul.mubr.msk.f32.gmra.mrb[30].mxu1 %vm449_vm0, %v33714_v12  ;;  %v4362_v12 = vld [vmem:[%s32946_s12 + $0x73] sm:$0xff] }
 0x139   : > { %28437 = vmatmul.mubr.msk.f32.gmra.mrb[2].mxu0 %vm449_vm0, %v4356_v55  ;;  %28171 = vmatprep.mubr.msk.f32.mxu1 %vm449_vm0, %v33725_v20  ;;  %v4364_v20 = vld [vmem:[%s32946_s12 + $0x83] sm:$0xff] }
 0x13a   : > { %28439 = vmatprep.mubr.msk.f32.mxu0 %vm449_vm0, %v4357_v2 }
 0x13c   : > { %28172 = vmatmul.mubr.msk.f32.gmra.mrb[32].mxu1 %vm449_vm0, %v33734_v24  ;;  %v4365_v24 = vld [vmem:[%s32946_s12 + $0x8b] sm:$0xff] }
 0x13d   : > { %28440 = vmatmul.mubr.msk.f32.gmra.mrb[4].mxu0 %vm449_vm0, %v4358_v9  ;;  %28174 = vmatprep.mubr.msk.f32.mxu1 %vm449_vm0, %v1877_v40 }
 0x13e   : > { %28442 = vmatprep.mubr.msk.f32.mxu0 %vm449_vm0, %v4359_v39  ;;  %v24715_v39 = vld [vmem:[%s37701_s2 + $0x160] sm:$0xff] }
 0x140   : > { %28175 = vmatmul.mubr.msk.f32.gmra.mrb[34].mxu1 %vm449_vm0, %v1878_v41  ;;  %v24716_v41 = vld [vmem:[%s37701_s2 + $0x168] sm:$0xff] }
 0x141   : > { %28443 = vmatmul.mubr.msk.f32.gmra.mrb[6].mxu0 %vm449_vm0, %v4360_v43  ;;  %28227 = vmatprep.mubr.msk.f32.mxu1 %vm449_vm0, %v2373_v14  ;;  %v34047_v43 = vpack.c.bf16 %v24716_v41, %v24715_v39 }
 0x142   : > { %28445 = vmatprep.mubr.msk.f32.mxu0 %vm449_vm0, %v4361_v45 }
 0x144   : > { %28228 = vmatmul.mubr.msk.f32.vlgmr.msra.gmra.mrb[28].mxu1 %vm449_vm0, %v2374_v16 }
 0x145   : > { %28446 = vmatmul.mubr.msk.f32.gmra.mrb[8].mxu0 %vm449_vm0, %v4362_v12  ;;  %28230 = vmatprep.mubr.msk.f32.mxu1 %vm449_vm0, %v2375_v10 }
 0x146   : > { %28448 = vmatprep.mubr.msk.f32.mxu0 %vm449_vm0, %v4363_v15  ;;  %30864 = vmatpush3.bf16.msra.mxu1 %v30861_v6 }
 0x147   : > { %30866 = vmatprep.subr.bf16.mxu1 %v30865_v13 }
 0x148   : > { %28231 = vmatmul.mubr.msk.f32.gmra.mrb[30].mxu1 %vm449_vm0, %v2376_v19 }
 0x149   : > { %28449 = vmatmul.mubr.msk.f32.gmra.mrb[10].mxu0 %vm449_vm0, %v4364_v20  ;;  %28233 = vmatprep.mubr.msk.f32.mxu1 %vm449_vm0, %v2377_v23  ;;  %v34064_v20 = vpop.permute.xlu0 %5015 }
 0x14a   : > { %28451 = vmatprep.mubr.msk.f32.mxu0 %vm449_vm0, %v4365_v24  ;;  %30868 = vmatpush3.bf16.msra.mxu1 %v30865_v13  ;;  %v34062_v19 = vpop.permute.xlu1 %5025  ;;  %37804 = vst [vmem:[#allocation11_spill] sm:$0xff] %v34064_v20 }
 0x14b   : > { %30870 = vmatprep.subr.bf16.mxu1 %v30869_v26  ;;  %37803 = vst [vmem:[#allocation10_spill] sm:$0xff] %v34062_v19 }
 0x14c   : > { %28234 = vmatmul.mubr.msk.f32.gmra.mrb[32].mxu1 %vm449_vm0, %v2378_v27 }
 0x14d   : > { %28452 = vmatmul.mubr.msk.f32.gmra.mrb[12].mxu0 %vm449_vm0, %v4366_v28  ;;  %28236 = vmatprep.mubr.msk.f32.mxu1 %vm449_vm0, %v2379_v32 }
 0x14e   : > { %28454 = vmatprep.mubr.msk.f32.mxu0 %vm449_vm0, %v4367_v33  ;;  %v34070_v27 = vpop.permute.xlu1 %5030  ;;  %v34076_v33 = vpop.permute.xlu0 %5020 }
 0x14f   : > { %37805 = vst [vmem:[#allocation12_spill] sm:$0xff] %v34070_v27  ;;  %37806 = vst [vmem:[#allocation13_spill] sm:$0xff] %v34076_v33 }
 0x150   : > { %28237 = vmatmul.mubr.msk.f32.gmra.mrb[34].mxu1 %vm449_vm0, %v2380_v38 }
 0x151   : > { %28455 = vmatmul.mubr.msk.f32.gmra.mrb[14].mxu0 %vm449_vm0, %v4368_v36  ;;  %28495 = vmatprep.mubr.msk.f32.mxu1 %vm449_vm0, %v5265_v17 }
 0x152   : > { %28457 = vmatprep.mubr.msk.f32.mxu0 %vm449_vm0, %v4369_v46  ;;  %v34082_v46 = vpop.permute.xlu1 %5040 }
 0x153   : > { %37807 = vst [vmem:[#allocation14_spill] sm:$0xff] %v34082_v46 }
 0x154   : > { %28496 = vmatmul.mubr.msk.f32.vlgmr.msra.gmra.mrb[36].mxu1 %vm449_vm0, %v5266_v37 }
 0x155   : > { %28458 = vmatmul.mubr.msk.f32.gmra.mrb[16].mxu0 %vm449_vm0, %v4370_v48  ;;  %30872 = vmatpush3.bf16.msra.mxu1 %v30869_v26  ;;  %v34084_v48 = vpop.permute.xlu0 %5035 }
 0x156   : > { %28460 = vmatprep.mubr.msk.f32.mxu0 %vm449_vm0, %v4371_v47  ;;  %30874 = vmatprep.subr.bf16.mxu1 %v30873_v29  ;;  %37808 = vst [vmem:[#allocation15_spill] sm:$0xff] %v34084_v48 }
 0x159   : > { %28461 = vmatmul.mubr.msk.f32.gmra.mrb[18].mxu0 %vm449_vm0, %v4372_v50  ;;  %30876 = vmatpush3.bf16.msra.mxu1 %v30873_v29 }
 0x15a   : > { %28463 = vmatprep.mubr.msk.f32.mxu0 %vm449_vm0, %v4373_v52  ;;  %30878 = vmatprep.subr.bf16.mxu1 %v34047_v43  ;;  %v34090_v52 = vpop.permute.xlu1 %5050 }
 0x15b   : > { %37809 = vst [vmem:[#allocation16_spill] sm:$0xff] %v34090_v52 }
 0x15d   : > { %28464 = vmatmul.mubr.msk.f32.gmra.mrb[20].mxu0 %vm449_vm0, %v4374_v51 }
 0x15e   : > { %28466 = vmatprep.mubr.msk.f32.mxu0 %vm449_vm0, %v4375_v18 }
 0x161   : > { %28467 = vmatmul.mubr.msk.f32.gmra.mrb[22].mxu0 %vm449_vm0, %v4376_v7  ;;  %v34096_v7 = vpop.permute.xlu0 %5045 }
 0x162   : > { %28469 = vmatprep.mubr.msk.f32.mxu0 %vm449_vm0, %v4377_v56  ;;  %37810 = vst [vmem:[#allocation17_spill] sm:$0xff] %v34096_v7 }
 0x165   : > { %28470 = vmatmul.mubr.msk.f32.gmra.mrb[24].mxu0 %vm449_vm0, %v4378_v53 }
 0x166   : > { %28472 = vmatprep.mubr.msk.f32.mxu0 %vm449_vm0, %v4379_v58  ;;  %v34102_v58 = vpop.permute.xlu1 %5060 }
 0x167   : > { %37811 = vst [vmem:[#allocation18_spill] sm:$0xff] %v34102_v58 }
 0x169   : > { %28473 = vmatmul.mubr.msk.f32.gmra.mrb[26].mxu0 %vm449_vm0, %v4380_v11  ;;  %v34104_v11 = vpop.permute.xlu0 %5055 }
 0x16a   : > { %28475 = vmatprep.mubr.msk.f32.mxu0 %vm449_vm0, %v4381_v57  ;;  %37812 = vst [vmem:[#allocation19_spill] sm:$0xff] %v34104_v11 }
 0x16d   : > { %28476 = vmatmul.mubr.msk.f32.gmra.mrb[28].mxu0 %vm449_vm0, %v4382_v60  ;;  %v34109_v60 = vld [vmem:[%s37702_s3] ss:$0 sm:$0xff]  ;;  %v34120_v6 = vpop.permute.xlu0 %5065 }
 0x16e   : > { %28478 = vmatprep.mubr.msk.f32.mxu0 %vm449_vm0, %v4383_v59  ;;  %37814 = vst [vmem:[#allocation21_spill] sm:$0xff] %v34120_v6 }
 0x171   : > { %28479 = vmatmul.mubr.msk.f32.gmra.mrb[30].mxu0 %vm449_vm0, %v4384_v61 }
 0x172   : > { %28481 = vmatprep.mubr.msk.f32.mxu0 %vm449_vm0, %v4385_v62  ;;  %v34114_v62 = vld [vmem:[%s37703_s4] ss:$0 sm:$0xff] }
 0x175   : > { %28482 = vmatmul.mubr.msk.f32.gmra.mrb[32].mxu0 %vm449_vm0, %v4386_v63 }
 0x176   : > { %28484 = vmatprep.mubr.msk.f32.mxu0 %vm449_vm0, %v4387_v0  ;;  %v34116_v0 = vpop.permute.xlu1 %5070 }
 0x177   : > { %37813 = vst [vmem:[#allocation20_spill] sm:$0xff] %v34116_v0 }
 0x179   : > { %28485 = vmatmul.mubr.msk.f32.gmra.mrb[34].mxu0 %vm449_vm0, %v4388_v1 }
 0x17a   : > { %v34126_v30 = vpop.permute.xlu1 %5080 }
 0x17b   : > { %37815 = vst [vmem:[#allocation22_spill] sm:$0xff] %v34126_v30 }
 0x1cf   : > { %v28125_v35 = vpop.f32.mrb[0].mxu1 }
 0x1d0   : > { %v2058_v34 = vpop.f32.mrb[1].mxu1 }
 0x1d3   : > { %v28128_v44 = vpop.f32.mrb[2].mxu1 }
 0x1d4   : > { %v2068_v42 = vpop.f32.mrb[3].mxu1 }
 0x1d7   : > { %v28131_v49 = vpop.f32.mrb[4].mxu1 }
 0x1d8   : > { %v34031_v54 = vpop.f32.mrb[5].mxu1 }
 0x1db   : > { %v34033_v55 = vpop.f32.mrb[6].mxu1 }
 0x1dc   : > { %v34035_v2 = vpop.f32.mrb[7].mxu1 }
 0x1df   : > { %v34037_v9 = vpop.f32.mrb[8].mxu1 }
 0x1e0   : > { %v34039_v40 = vpop.f32.mrb[9].mxu1 }
 0x1e3   : > { %v34049_v14 = vpop.f32.mrb[10].mxu1 }
 0x1e4   : > { %v34051_v45 = vpop.f32.mrb[11].mxu1 }
 0x1e7   : > { %v34054_v16 = vpop.f32.mrb[12].mxu1 }
 0x1e8   : > { %v34056_v12 = vpop.f32.mrb[13].mxu1 }
 0x1eb   : > { %v34058_v10 = vpop.f32.mrb[14].mxu1 }
 0x1ec   : > { %v34060_v15 = vpop.f32.mrb[15].mxu1 }
 0x1ef   : > { %v34066_v23 = vpop.f32.mrb[16].mxu1 }
 0x1f0   : > { %v34068_v24 = vpop.f32.mrb[17].mxu1 }
 0x1f3   : > { %v34072_v28 = vpop.f32.mrb[18].mxu1 }
 0x1f4   : > { %v34074_v32 = vpop.f32.mrb[19].mxu1 }
 0x1f7   : > { %v34078_v38 = vpop.f32.mrb[20].mxu1 }
 0x1f8   : > { %v34080_v36 = vpop.f32.mrb[21].mxu1 }
 0x1fb   : > { %v34086_v47 = vpop.f32.mrb[22].mxu1 }
 0x1fc   : > { %v34088_v50 = vpop.f32.mrb[23].mxu1 }
 0x1ff   : > { %v34092_v51 = vpop.f32.mrb[24].mxu1 }
 0x200   : > { %v34094_v18 = vpop.f32.mrb[25].mxu1 }
 0x203   : > { %v34098_v56 = vpop.f32.mrb[26].mxu1 }
 0x204   : > { %v34100_v53 = vpop.f32.mrb[27].mxu1 }
 0x208   : > { %v28435_v57 = vpop.f32.mrb[0].mxu0 }
 0x209   : > { %v31201_v59 = vadd.f32 %v28435_v57, %v28125_v35  ;;  %v4568_v61 = vpop.f32.mrb[1].mxu0  ;;  %v34133_v57 = vpop.permute.xlu0 %5075 }
 0x20a   : > { %v31202_v63 = vadd.f32 %v4568_v61, %v2058_v34  ;;  %37816 = vst [vmem:[#allocation23_spill] sm:$0xff] %v34133_v57 }
 0x20b   : > { %v4899_v1 = vmul.f32 %v31201_v59, %v34109_v60 }
 0x20c   : > { %v4898_v4 = vmul.f32 %v31202_v63, %v34109_v60  ;;  %v28438_v3 = vpop.f32.mrb[2].mxu0 }
 0x20d   : > { %v4942_v5 = vadd.f32 %v34114_v62, %v4899_v1  ;;  %v31203_v31 = vadd.f32 %v28438_v3, %v28128_v44  ;;  %v4578_v8 = vpop.f32.mrb[3].mxu0 }
 0x20e   : > { %v4941_v13 = vadd.f32 %v34114_v62, %v4898_v4  ;;  %v31204_v17 = vadd.f32 %v4578_v8, %v2068_v42 }
 0x20f   : > { %v4978_v37 = vmax.f32 %v4942_v5, 0.0  ;;  %v4901_v22 = vmul.f32 %v31203_v31, %v34109_v60 }
 0x210   : > { %v4977_v21 = vmax.f32 %v4941_v13, 0.0  ;;  %v4900_v26 = vmul.f32 %v31204_v17, %v34109_v60  ;;  %v28441_v25 = vpop.f32.mrb[4].mxu0  ;;  %v34143_v17 = vpop.permute.xlu1 %5090 }
 0x211   : > { %v5194_v29 = vmul.f32 %v34076_v33, %v4978_v37  ;;  %v4944_v35 = vadd.f32 %v34114_v62, %v4901_v22  ;;  %v31205_v34 = vadd.f32 %v28441_v25, %v28131_v49  ;;  %v4588_v39 = vpop.f32.mrb[5].mxu0  ;;  %37817 = vst [vmem:[#allocation24_spill] sm:$0xff] %v34143_v17  ;;  %v24836_v33 = vld [vmem:[%s37701_s2 + $0x1c8] sm:$0xff] }
 0x212   : > { %v5193_v44 = vmul.f32 %v34064_v20, %v4977_v21  ;;  %v4943_v41 = vadd.f32 %v34114_v62, %v4900_v26  ;;  %v31206_v42 = vadd.f32 %v4588_v39, %v34031_v54  ;;  %v24835_v20 = vld [vmem:[%s37701_s2 + $0x1c0] sm:$0xff] }
 0x213   : > { %5230 = vst [vmem:[#allocation2 + $0x20] sm:$0xff] %v5194_v29  ;;  %v4980_v59 = vmax.f32 %v4944_v35, 0.0  ;;  %v4903_v61 = vmul.f32 %v31205_v34, %v34109_v60  ;;  %v34151_v35 = vpop.permute.xlu0 %5085 }
 0x214   : > { %5229 = vst [vmem:[#allocation2 + $0x18] sm:$0xff] %v5193_v44  ;;  %v4979_v63 = vmax.f32 %v4943_v41, 0.0  ;;  %v4902_v1 = vmul.f32 %v31206_v42, %v34109_v60  ;;  %v28444_v4 = vpop.f32.mrb[6].mxu0  ;;  %37818 = vst [vmem:[#allocation25_spill] sm:$0xff] %v34151_v35 }
 0x215   : > { %v5196_v49 = vmul.f32 %v34070_v27, %v4980_v59  ;;  %v4946_v3 = vadd.f32 %v34114_v62, %v4903_v61  ;;  %v31207_v5 = vadd.f32 %v28444_v4, %v34033_v55  ;;  %v4598_v31 = vpop.f32.mrb[7].mxu0 }
 0x216   : > { %v5195_v54 = vmul.f32 %v34062_v19, %v4979_v63  ;;  %v4945_v8 = vadd.f32 %v34114_v62, %v4902_v1  ;;  %v31208_v13 = vadd.f32 %v4598_v31, %v34035_v2  ;;  %v24798_v19 = vld [vmem:[%s37701_s2 + $0x1b8] sm:$0xff] }
 0x217   : > { %5232 = vst [vmem:[#allocation2 + $0x30] sm:$0xff] %v5196_v49  ;;  %v4982_v37 = vmax.f32 %v4946_v3, 0.0  ;;  %v4905_v22 = vmul.f32 %v31207_v5, %v34109_v60  ;;  %v34146_v21 = vpop.f32.mrb[28].mxu1 }
 0x218   : > { %5231 = vst [vmem:[#allocation2 + $0x28] sm:$0xff] %v5195_v54  ;;  %v4981_v26 = vmax.f32 %v4945_v8, 0.0  ;;  %v4904_v25 = vmul.f32 %v31208_v13, %v34109_v60  ;;  %v28447_v55 = vpop.f32.mrb[8].mxu0  ;;  %v34149_v29 = vpop.f32.mrb[29].mxu1 }
 0x219   : > { %v5198_v34 = vmul.f32 %v34082_v46, %v4982_v37  ;;  %v4948_v2 = vadd.f32 %v34114_v62, %v4905_v22  ;;  %v31209_v39 = vadd.f32 %v28447_v55, %v34037_v9  ;;  %v4608_v44 = vpop.f32.mrb[9].mxu0  ;;  %v34166_v54 = vpop.permute.xlu1 %5100  ;;  %v24797_v46 = vld [vmem:[%s37701_s2 + $0x1b0] sm:$0xff] }
 0x21a   : > { %v5197_v41 = vmul.f32 %v34084_v48, %v4981_v26  ;;  %v4947_v42 = vadd.f32 %v34114_v62, %v4904_v25  ;;  %v31210_v59 = vadd.f32 %v4608_v44, %v34039_v40  ;;  %37819 = vst [vmem:[#allocation26_spill] sm:$0xff] %v34166_v54  ;;  %v34175_v55 = vpop.permute.xlu0 %5095  ;;  %v30897_v27 = vpack.c.bf16 %v24798_v19, %v24797_v46 }
 0x21b   : > { %5234 = vst [vmem:[#allocation2 + $0x40] sm:$0xff] %v5198_v34  ;;  %v4984_v61 = vmax.f32 %v4948_v2, 0.0  ;;  %v4907_v63 = vmul.f32 %v31209_v39, %v34109_v60  ;;  %v34160_v1 = vpop.f32.mrb[30].mxu1  ;;  %v5267_v4 = vld [vmem:[#allocation2 + $0x15] sm:$0xff]  ;;  %v5268_v49 = vld [vmem:[#allocation2 + $0x1d] sm:$0xff]  ;;  %37820 = vst [vmem:[#allocation27_spill] sm:$0xff] %v34175_v55 }
 0x21c   : > { %5233 = vst [vmem:[#allocation2 + $0x38] sm:$0xff] %v5197_v41  ;;  %v4983_v3 = vmax.f32 %v4947_v42, 0.0  ;;  %v4906_v5 = vmul.f32 %v31210_v59, %v34109_v60  ;;  %v28450_v9 = vpop.f32.mrb[10].mxu0  ;;  %28498 = vmatprep.mubr.msk.f32.mxu1 %vm449_vm0, %v5267_v4  ;;  %v34164_v31 = vpop.f32.mrb[31].mxu1  ;;  %v7201_v46 = vld [vmem:[#allocation2 + $0x18] sm:$0xff] }
 0x21d   : > { %v5200_v40 = vmul.f32 %v34090_v52, %v4984_v61  ;;  %v4950_v8 = vadd.f32 %v34114_v62, %v4907_v63  ;;  %v31211_v13 = vadd.f32 %v28450_v9, %v34049_v14  ;;  %v4618_v37 = vpop.f32.mrb[11].mxu0  ;;  %28499 = vmatmul.mubr.msk.f32.gmra.mrb[38].mxu1 %vm449_vm0, %v5268_v49 }
 0x21e   : > { %v5199_v22 = vmul.f32 %v34096_v7, %v4983_v3  ;;  %v4949_v26 = vadd.f32 %v34114_v62, %v4906_v5  ;;  %v31212_v25 = vadd.f32 %v4618_v37, %v34051_v45 }
 0x21f   : > { %5236 = vst [vmem:[#allocation2 + $0x50] sm:$0xff] %v5200_v40  ;;  %v4986_v34 = vmax.f32 %v4950_v8, 0.0  ;;  %v4909_v2 = vmul.f32 %v31211_v13, %v34109_v60  ;;  %v34178_v39 = vpop.f32.mrb[32].mxu1  ;;  %v5269_v44 = vld [vmem:[#allocation2 + $0x25] sm:$0xff]  ;;  %v5270_v41 = vld [vmem:[#allocation2 + $0x2d] sm:$0xff]  ;;  %v34191_v40 = vpop.permute.xlu1 %5110 }
 0x220   : > { %5235 = vst [vmem:[#allocation2 + $0x48] sm:$0xff] %v5199_v22  ;;  %v4985_v14 = vmax.f32 %v4949_v26, 0.0  ;;  %v4908_v42 = vmul.f32 %v31212_v25, %v34109_v60  ;;  %v28453_v59 = vpop.f32.mrb[12].mxu0  ;;  %28501 = vmatprep.mubr.msk.f32.mxu1 %vm449_vm0, %v5269_v44  ;;  %v34182_v61 = vpop.f32.mrb[33].mxu1  ;;  %37821 = vst [vmem:[#allocation28_spill] sm:$0xff] %v34191_v40 }
 0x221   : > { %v5202_v45 = vmul.f32 %v34102_v58, %v4986_v34  ;;  %v4952_v63 = vadd.f32 %v34114_v62, %v4909_v2  ;;  %v31213_v4 = vadd.f32 %v28453_v59, %v34054_v16  ;;  %v4628_v49 = vpop.f32.mrb[13].mxu0  ;;  %28502 = vmatmul.mubr.msk.f32.gmra.mrb[40].mxu1 %vm449_vm0, %v5270_v41 }
 0x222   : > { %v5201_v3 = vmul.f32 %v34104_v11, %v4985_v14  ;;  %v4951_v5 = vadd.f32 %v34114_v62, %v4908_v42  ;;  %v31214_v9 = vadd.f32 %v4628_v49, %v34056_v12  ;;  %v34200_v12 = vpop.permute.xlu0 %5105 }
 0x223   : > { %5238 = vst [vmem:[#allocation2 + $0x60] sm:$0xff] %v5202_v45  ;;  %v4988_v8 = vmax.f32 %v4952_v63, 0.0  ;;  %v4911_v13 = vmul.f32 %v31213_v4, %v34109_v60  ;;  %v34194_v37 = vpop.f32.mrb[34].mxu1  ;;  %v5271_v22 = vld [vmem:[#allocation2 + $0x35] sm:$0xff]  ;;  %v5272_v26 = vld [vmem:[#allocation2 + $0x3d] sm:$0xff]  ;;  %37822 = vst [vmem:[#allocation29_spill] sm:$0xff] %v34200_v12 }
 0x224   : > { %5237 = vst [vmem:[#allocation2 + $0x58] sm:$0xff] %v5201_v3  ;;  %v4987_v16 = vmax.f32 %v4951_v5, 0.0  ;;  %v4910_v25 = vmul.f32 %v31214_v9, %v34109_v60  ;;  %v28456_v34 = vpop.f32.mrb[14].mxu0  ;;  %28504 = vmatprep.mubr.msk.f32.mxu1 %vm449_vm0, %v5271_v22  ;;  %v34198_v2 = vpop.f32.mrb[35].mxu1 }
 0x225   : > { %v5204_v44 = vmul.f32 %v34116_v0, %v4988_v8  ;;  %v4954_v41 = vadd.f32 %v34114_v62, %v4911_v13  ;;  %v31215_v14 = vadd.f32 %v28456_v34, %v34058_v10  ;;  %v4638_v42 = vpop.f32.mrb[15].mxu0  ;;  %28505 = vmatmul.mubr.msk.f32.gmra.mrb[42].mxu1 %vm449_vm0, %v5272_v26 }
 0x226   : > { %v5203_v59 = vmul.f32 %v34120_v6, %v4987_v16  ;;  %v4953_v45 = vadd.f32 %v34114_v62, %v4910_v25  ;;  %v31216_v63 = vadd.f32 %v4638_v42, %v34060_v15  ;;  %v34218_v16 = vpop.permute.xlu1 %5120 }
 0x227   : > { %5240 = vst [vmem:[#allocation2 + $0x70] sm:$0xff] %v5204_v44  ;;  %v4990_v4 = vmax.f32 %v4954_v41, 0.0  ;;  %v4913_v49 = vmul.f32 %v31215_v14, %v34109_v60  ;;  %v5273_v3 = vld [vmem:[#allocation2 + $0x45] sm:$0xff]  ;;  %v5274_v5 = vld [vmem:[#allocation2 + $0x4d] sm:$0xff]  ;;  %37823 = vst [vmem:[#allocation30_spill] sm:$0xff] %v34218_v16  ;;  %v34225_v41 = vpop.permute.xlu0 %5115 }
 0x228   : > { %5239 = vst [vmem:[#allocation2 + $0x68] sm:$0xff] %v5203_v59  ;;  %v4989_v9 = vmax.f32 %v4953_v45, 0.0  ;;  %v4912_v8 = vmul.f32 %v31216_v63, %v34109_v60  ;;  %v28459_v10 = vpop.f32.mrb[16].mxu0  ;;  %28507 = vmatprep.mubr.msk.f32.mxu1 %vm449_vm0, %v5273_v3  ;;  %37824 = vst [vmem:[#allocation31_spill] sm:$0xff] %v34225_v41 }
 0x229   : > { %v34213_v13 = vmul.f32 %v34126_v30, %v4990_v4  ;;  %v4956_v22 = vadd.f32 %v34114_v62, %v4913_v49  ;;  %v31217_v15 = vadd.f32 %v28459_v10, %v34066_v23  ;;  %v4648_v26 = vpop.f32.mrb[17].mxu0  ;;  %28508 = vmatmul.mubr.msk.f32.gmra.mrb[44].mxu1 %vm449_vm0, %v5274_v5 }
 0x22a   : > { %v34221_v25 = vmul.f32 %v34133_v57, %v4989_v9  ;;  %v4955_v34 = vadd.f32 %v34114_v62, %v4912_v8  ;;  %v31218_v44 = vadd.f32 %v4648_v26, %v34068_v24 }
 0x22b   : > { %5242 = vst [vmem:[#allocation2 + $0x80] sm:$0xff] %v34213_v13  ;;  %v4992_v14 = vmax.f32 %v4956_v22, 0.0  ;;  %v4915_v42 = vmul.f32 %v31217_v15, %v34109_v60  ;;  %v5275_v23 = vld [vmem:[#allocation2 + $0x55] sm:$0xff]  ;;  %v5276_v59 = vld [vmem:[#allocation2 + $0x5d] sm:$0xff] }
 0x22c   : > { %5241 = vst [vmem:[#allocation2 + $0x78] sm:$0xff] %v34221_v25  ;;  %v4991_v45 = vmax.f32 %v4955_v34, 0.0  ;;  %v4914_v63 = vmul.f32 %v31218_v44, %v34109_v60  ;;  %v28462_v4 = vpop.f32.mrb[18].mxu0  ;;  %28510 = vmatprep.mubr.msk.f32.mxu1 %vm449_vm0, %v5275_v23  ;;  %v34245_v44 = vpop.permute.xlu1 %5130 }
 0x22d   : > { %v34233_v49 = vmul.f32 %v34143_v17, %v4992_v14  ;;  %v4958_v24 = vadd.f32 %v34114_v62, %v4915_v42  ;;  %v31219_v3 = vadd.f32 %v28462_v4, %v34072_v28  ;;  %v4658_v5 = vpop.f32.mrb[19].mxu0  ;;  %28511 = vmatmul.mubr.msk.f32.gmra.mrb[46].mxu1 %vm449_vm0, %v5276_v59  ;;  %37825 = vst [vmem:[#allocation32_spill] sm:$0xff] %v34245_v44  ;;  %v34250_v23 = vpop.permute.xlu0 %5125 }
 0x22e   : > { %v34239_v9 = vmul.f32 %v34151_v35, %v4991_v45  ;;  %v4957_v8 = vadd.f32 %v34114_v62, %v4914_v63  ;;  %v31220_v10 = vadd.f32 %v4658_v5, %v34074_v32  ;;  %37826 = vst [vmem:[#allocation33_spill] sm:$0xff] %v34250_v23 }
 0x22f   : > { %5244 = vst [vmem:[#allocation2 + $0x90] sm:$0xff] %v34233_v49  ;;  %v4994_v22 = vmax.f32 %v4958_v24, 0.0  ;;  %v4917_v15 = vmul.f32 %v31219_v3, %v34109_v60  ;;  %v5277_v26 = vld [vmem:[#allocation2 + $0x65] sm:$0xff]  ;;  %v5278_v34 = vld [vmem:[#allocation2 + $0x6d] sm:$0xff] }
 0x230   : > { %5243 = vst [vmem:[#allocation2 + $0x88] sm:$0xff] %v34239_v9  ;;  %v4993_v28 = vmax.f32 %v4957_v8, 0.0  ;;  %v4916_v14 = vmul.f32 %v31220_v10, %v34109_v60  ;;  %v28465_v42 = vpop.f32.mrb[20].mxu0  ;;  %28513 = vmatprep.mubr.msk.f32.mxu1 %vm449_vm0, %v5277_v26 }
 0x231   : > { %v34253_v32 = vmul.f32 %v34166_v54, %v4994_v22  ;;  %v4960_v59 = vadd.f32 %v34114_v62, %v4917_v15  ;;  %v31221_v45 = vadd.f32 %v28465_v42, %v34078_v38  ;;  %v4668_v63 = vpop.f32.mrb[21].mxu0  ;;  %28514 = vmatmul.mubr.msk.f32.gmra.mrb[48].mxu1 %vm449_vm0, %v5278_v34  ;;  %v34274_v42 = vpop.permute.xlu1 %5140 }
 0x232   : > { %v34259_v4 = vmul.f32 %v34175_v55, %v4993_v28  ;;  %v4959_v24 = vadd.f32 %v34114_v62, %v4916_v14  ;;  %v31222_v3 = vadd.f32 %v4668_v63, %v34080_v36  ;;  %37827 = vst [vmem:[#allocation34_spill] sm:$0xff] %v34274_v42 }
 0x233   : > { %5246 = vst [vmem:[#allocation2 + $0xa0] sm:$0xff] %v34253_v32  ;;  %v4996_v5 = vmax.f32 %v4960_v59, 0.0  ;;  %v4919_v8 = vmul.f32 %v31221_v45, %v34109_v60  ;;  %v5279_v10 = vld [vmem:[#allocation2 + $0x75] sm:$0xff]  ;;  %v5280_v22 = vld [vmem:[#allocation2 + $0x7d] sm:$0xff] }
 0x234   : > { %5245 = vst [vmem:[#allocation2 + $0x98] sm:$0xff] %v34259_v4  ;;  %v4995_v38 = vmax.f32 %v4959_v24, 0.0  ;;  %v4918_v15 = vmul.f32 %v31222_v3, %v34109_v60  ;;  %v28468_v26 = vpop.f32.mrb[22].mxu0  ;;  %28516 = vmatprep.mubr.msk.f32.mxu1 %vm449_vm0, %v5279_v10  ;;  %v34281_v24 = vpop.permute.xlu0 %5135 }
 0x235   : > { %v34269_v34 = vmul.f32 %v34191_v40, %v4996_v5  ;;  %v4962_v36 = vadd.f32 %v34114_v62, %v4919_v8  ;;  %v31223_v28 = vadd.f32 %v28468_v26, %v34086_v47  ;;  %v4678_v14 = vpop.f32.mrb[23].mxu0  ;;  %28517 = vmatmul.mubr.msk.f32.gmra.mrb[50].mxu1 %vm449_vm0, %v5280_v22  ;;  %37828 = vst [vmem:[#allocation35_spill] sm:$0xff] %v34281_v24 }
 0x236   : > { %v34277_v59 = vmul.f32 %v34200_v12, %v4995_v38  ;;  %v4961_v45 = vadd.f32 %v34114_v62, %v4918_v15  ;;  %v31224_v63 = vadd.f32 %v4678_v14, %v34088_v50 }
 0x237   : > { %5248 = vst [vmem:[#allocation2 + $0xb0] sm:$0xff] %v34269_v34  ;;  %v4998_v3 = vmax.f32 %v4962_v36, 0.0  ;;  %v4921_v5 = vmul.f32 %v31223_v28, %v34109_v60  ;;  %v5281_v47 = vld [vmem:[#allocation2 + $0x85] sm:$0xff]  ;;  %v5282_v8 = vld [vmem:[#allocation2 + $0x8d] sm:$0xff] }
 0x238   : > { %5247 = vst [vmem:[#allocation2 + $0xa8] sm:$0xff] %v34277_v59  ;;  %v4997_v10 = vmax.f32 %v4961_v45, 0.0  ;;  %v4920_v22 = vmul.f32 %v31224_v63, %v34109_v60  ;;  %v28471_v38 = vpop.f32.mrb[24].mxu0  ;;  %28519 = vmatprep.mubr.msk.f32.mxu1 %vm449_vm0, %v5281_v47 }
 0x239   : > { %v34289_v15 = vmul.f32 %v34218_v16, %v4998_v3  ;;  %v4964_v50 = vadd.f32 %v34114_v62, %v4921_v5  ;;  %v31225_v26 = vadd.f32 %v28471_v38, %v34092_v51  ;;  %v4688_v36 = vpop.f32.mrb[25].mxu0  ;;  %28520 = vmatmul.mubr.msk.f32.gmra.mrb[52].mxu1 %vm449_vm0, %v5282_v8  ;;  %v34301_v5 = vpop.permute.xlu1 %5150 }
 0x23a   : > { %v34295_v28 = vmul.f32 %v34225_v41, %v4997_v10  ;;  %v4963_v14 = vadd.f32 %v34114_v62, %v4920_v22  ;;  %v31226_v45 = vadd.f32 %v4688_v36, %v34094_v18  ;;  %37829 = vst [vmem:[#allocation36_spill] sm:$0xff] %v34301_v5  ;;  %v34306_v22 = vpop.permute.xlu0 %5145 }
 0x23b   : > { %5250 = vst [vmem:[#allocation2 + $0xc0] sm:$0xff] %v34289_v15  ;;  %v5000_v63 = vmax.f32 %v4964_v50, 0.0  ;;  %v4923_v3 = vmul.f32 %v31225_v26, %v34109_v60  ;;  %v5283_v47 = vld [vmem:[#allocation2 + $0x95] sm:$0xff]  ;;  %v5284_v16 = vld [vmem:[#allocation2 + $0x9d] sm:$0xff]  ;;  %37830 = vst [vmem:[#allocation37_spill] sm:$0xff] %v34306_v22 }
 0x23c   : > { %5249 = vst [vmem:[#allocation2 + $0xb8] sm:$0xff] %v34295_v28  ;;  %v4999_v51 = vmax.f32 %v4963_v14, 0.0  ;;  %v4922_v8 = vmul.f32 %v31226_v45, %v34109_v60  ;;  %v28474_v10 = vpop.f32.mrb[26].mxu0  ;;  %28522 = vmatprep.mubr.msk.f32.mxu1 %vm449_vm0, %v5283_v47 }
 0x23d   : > { %v34309_v18 = vmul.f32 %v34245_v44, %v5000_v63  ;;  %v4966_v38 = vadd.f32 %v34114_v62, %v4923_v3  ;;  %v31227_v50 = vadd.f32 %v28474_v10, %v34098_v56  ;;  %v4698_v26 = vpop.f32.mrb[27].mxu0  ;;  %28523 = vmatmul.mubr.msk.f32.gmra.mrb[54].mxu1 %vm449_vm0, %v5284_v16 }
 0x23e   : > { %v34315_v36 = vmul.f32 %v34250_v23, %v4999_v51  ;;  %v4965_v14 = vadd.f32 %v34114_v62, %v4922_v8  ;;  %v31228_v45 = vadd.f32 %v4698_v26, %v34100_v53 }
 0x23f   : > { %5252 = vst [vmem:[#allocation2 + $0xd0] sm:$0xff] %v34309_v18  ;;  %v5002_v47 = vmax.f32 %v4966_v38, 0.0  ;;  %v4925_v63 = vmul.f32 %v31227_v50, %v34109_v60  ;;  %v5285_v44 = vld [vmem:[#allocation2 + $0xa5] sm:$0xff]  ;;  %v5286_v41 = vld [vmem:[#allocation2 + $0xad] sm:$0xff]  ;;  %v34330_v38 = vpop.permute.xlu1 %5160 }
 0x240   : > { %5251 = vst [vmem:[#allocation2 + $0xc8] sm:$0xff] %v34315_v36  ;;  %v5001_v56 = vmax.f32 %v4965_v14, 0.0  ;;  %v4924_v3 = vmul.f32 %v31228_v45, %v34109_v60  ;;  %v28477_v16 = vpop.f32.mrb[28].mxu0  ;;  %28525 = vmatprep.mubr.msk.f32.mxu1 %vm449_vm0, %v5285_v44  ;;  %37831 = vst [vmem:[#allocation38_spill] sm:$0xff] %v34330_v38  ;;  %v34337_v44 = vpop.permute.xlu0 %5155  ;;  %v6217_v23 = vld [vmem:[#allocation2 + $0xa7] sm:$0xff]  ;;  %v6218_v12 = vld [vmem:[#allocation2 + $0xaf] sm:$0xff] }
 0x241   : > { %v34325_v51 = vmul.f32 %v34274_v42, %v5002_v47  ;;  %v4968_v53 = vadd.f32 %v34114_v62, %v4925_v63  ;;  %v31229_v8 = vadd.f32 %v28477_v16, %v34146_v21  ;;  %v4708_v10 = vpop.f32.mrb[29].mxu0  ;;  %28526 = vmatmul.mubr.msk.f32.gmra.mrb[56].mxu1 %vm449_vm0, %v5286_v41  ;;  %37832 = vst [vmem:[#allocation39_spill] sm:$0xff] %v34337_v44  ;;  %v6216_v42 = vld [vmem:[#allocation2 + $0x9f] sm:$0xff] }
 0x242   : > { %v34333_v50 = vmul.f32 %v34281_v24, %v5001_v56  ;;  %v4967_v26 = vadd.f32 %v34114_v62, %v4924_v3  ;;  %v31230_v14 = vadd.f32 %v4708_v10, %v34149_v29 }
 0x243   : > { %5254 = vst [vmem:[#allocation2 + $0xe0] sm:$0xff] %v34325_v51  ;;  %v5004_v45 = vmax.f32 %v4968_v53, 0.0  ;;  %v4927_v47 = vmul.f32 %v31229_v8, %v34109_v60  ;;  %v5287_v21 = vld [vmem:[#allocation2 + $0xb5] sm:$0xff]  ;;  %v5288_v63 = vld [vmem:[#allocation2 + $0xbd] sm:$0xff] }
 0x244   : > { %5253 = vst [vmem:[#allocation2 + $0xd8] sm:$0xff] %v34333_v50  ;;  %v5003_v41 = vmax.f32 %v4967_v26, 0.0  ;;  %v4926_v16 = vmul.f32 %v31230_v14, %v34109_v60  ;;  %v28480_v56 = vpop.f32.mrb[30].mxu0  ;;  %28528 = vmatprep.mubr.msk.f32.mxu1 %vm449_vm0, %v5287_v21  ;;  %v6219_v40 = vld [vmem:[#allocation2 + $0xb7] sm:$0xff]  ;;  %v6220_v55 = vld [vmem:[#allocation2 + $0xbf] sm:$0xff] }
 0x245   : > { %v34345_v3 = vmul.f32 %v34301_v5, %v5004_v45  ;;  %v4970_v29 = vadd.f32 %v34114_v62, %v4927_v47  ;;  %v31231_v10 = vadd.f32 %v28480_v56, %v34160_v1  ;;  %v4718_v53 = vpop.f32.mrb[31].mxu0  ;;  %28529 = vmatmul.mubr.msk.f32.gmra.mrb[58].mxu1 %vm449_vm0, %v5288_v63  ;;  %v34357_v47 = vpop.permute.xlu1 %5170 }
 0x246   : > { %v34351_v8 = vmul.f32 %v34306_v22, %v5003_v41  ;;  %v4969_v26 = vadd.f32 %v34114_v62, %v4926_v16  ;;  %v31232_v14 = vadd.f32 %v4718_v53, %v34164_v31  ;;  %37833 = vst [vmem:[#allocation40_spill] sm:$0xff] %v34357_v47  ;;  %v34362_v16 = vpop.permute.xlu0 %5165 }
 0x247   : > { %5256 = vst [vmem:[#allocation2 + $0xf0] sm:$0xff] %v34345_v3  ;;  %v5006_v21 = vmax.f32 %v4970_v29, 0.0  ;;  %v4929_v45 = vmul.f32 %v31231_v10, %v34109_v60  ;;  %v5289_v5 = vld [vmem:[#allocation2 + $0xc5] sm:$0xff]  ;;  %v5290_v24 = vld [vmem:[#allocation2 + $0xcd] sm:$0xff]  ;;  %37834 = vst [vmem:[#allocation41_spill] sm:$0xff] %v34362_v16 }
 0x248   : > { %5255 = vst [vmem:[#allocation2 + $0xe8] sm:$0xff] %v34351_v8  ;;  %v5005_v1 = vmax.f32 %v4969_v26, 0.0  ;;  %v4928_v63 = vmul.f32 %v31232_v14, %v34109_v60  ;;  %v28483_v41 = vpop.f32.mrb[32].mxu0  ;;  %28531 = vmatprep.mubr.msk.f32.mxu1 %vm449_vm0, %v5289_v5  ;;  %v6221_v54 = vld [vmem:[#allocation2 + $0xc7] sm:$0xff]  ;;  %v6222_v35 = vld [vmem:[#allocation2 + $0xcf] sm:$0xff] }
 0x249   : > { %v34365_v31 = vmul.f32 %v34330_v38, %v5006_v21  ;;  %v4972_v56 = vadd.f32 %v34114_v62, %v4929_v45  ;;  %v31233_v29 = vadd.f32 %v28483_v41, %v34178_v39  ;;  %v4728_v10 = vpop.f32.mrb[33].mxu0  ;;  %28532 = vmatmul.mubr.msk.f32.gmra.mrb[60].mxu1 %vm449_vm0, %v5290_v24 }
 0x24a   : > { %v34371_v53 = vmul.f32 %v34337_v44, %v5005_v1  ;;  %v4971_v26 = vadd.f32 %v34114_v62, %v4928_v63  ;;  %v31234_v14 = vadd.f32 %v4728_v10, %v34182_v61  ;;  %v6215_v44 = vld [vmem:[#allocation2 + $0x97] sm:$0xff] }
 0x24b   : > { %5258 = vst [vmem:[#allocation2 + $0x100] sm:$0xff] %v34365_v31  ;;  %v5008_v5 = vmax.f32 %v4972_v56, 0.0  ;;  %v4931_v21 = vmul.f32 %v31233_v29, %v34109_v60  ;;  %v5291_v38 = vld [vmem:[#allocation2 + $0xd5] sm:$0xff]  ;;  %v5292_v22 = vld [vmem:[#allocation2 + $0xdd] sm:$0xff]  ;;  %v34386_v56 = vpop.permute.xlu1 %5180 }
 0x24c   : > { %5257 = vst [vmem:[#allocation2 + $0xf8] sm:$0xff] %v34371_v53  ;;  %v5007_v39 = vmax.f32 %v4971_v26, 0.0  ;;  %v4930_v45 = vmul.f32 %v31234_v14, %v34109_v60  ;;  %v28486_v24 = vpop.f32.mrb[34].mxu0  ;;  %28534 = vmatprep.mubr.msk.f32.mxu1 %vm449_vm0, %v5291_v38  ;;  %37835 = vst [vmem:[#allocation42_spill] sm:$0xff] %v34386_v56  ;;  %v34393_v38 = vpop.permute.xlu0 %5175  ;;  %v6223_v17 = vld [vmem:[#allocation2 + $0xd7] sm:$0xff]  ;;  %v6224_v57 = vld [vmem:[#allocation2 + $0xdf] sm:$0xff] }
 0x24d   : > { %v34381_v1 = vmul.f32 %v34357_v47, %v5008_v5  ;;  %v4974_v61 = vadd.f32 %v34114_v62, %v4931_v21  ;;  %v31235_v63 = vadd.f32 %v28486_v24, %v34194_v37  ;;  %v4738_v41 = vpop.f32.mrb[35].mxu0  ;;  %28535 = vmatmul.mubr.msk.f32.gmra.mrb[62].mxu1 %vm449_vm0, %v5292_v22  ;;  %37836 = vst [vmem:[#allocation43_spill] sm:$0xff] %v34393_v38  ;;  %v34559_v47 = vld [vmem:[#allocation2 + $0x8f] sm:$0xff] }
 0x24e   : > { %v34389_v29 = vmul.f32 %v34362_v16, %v5007_v39  ;;  %v4973_v10 = vadd.f32 %v34114_v62, %v4930_v45  ;;  %v31236_v26 = vadd.f32 %v4738_v41, %v34198_v2  ;;  %v34555_v16 = vld [vmem:[#allocation2 + $0x87] sm:$0xff] }
 0x24f   : > { %5260 = vst [vmem:[#allocation2 + $0x110] sm:$0xff] %v34381_v1  ;;  %v5010_v14 = vmax.f32 %v4974_v61, 0.0  ;;  %v4933_v5 = vmul.f32 %v31235_v63, %v34109_v60  ;;  %v5293_v37 = vld [vmem:[#allocation2 + $0xe5] sm:$0xff]  ;;  %v5294_v21 = vld [vmem:[#allocation2 + $0xed] sm:$0xff] }
 0x250   : > { %5259 = vst [vmem:[#allocation2 + $0x108] sm:$0xff] %v34389_v29  ;;  %v5009_v22 = vmax.f32 %v4973_v10, 0.0  ;;  %v4932_v24 = vmul.f32 %v31236_v26, %v34109_v60  ;;  %28537 = vmatprep.mubr.msk.f32.mxu1 %vm449_vm0, %v5293_v37  ;;  %v34410_v60 = vpop.permute.xlu1 %5190  ;;  %v6225_v30 = vld [vmem:[#allocation2 + $0xe7] sm:$0xff]  ;;  %v6226_v6 = vld [vmem:[#allocation2 + $0xef] sm:$0xff] }
 0x251   : > { %v34401_v39 = vmul.f32 %v34386_v56, %v5010_v14  ;;  %v4976_v2 = vadd.f32 %v34114_v62, %v4933_v5  ;;  %28538 = vmatmul.mubr.msk.f32.gmra.mrb[64].mxu1 %vm449_vm0, %v5294_v21  ;;  %37837 = vst [vmem:[#allocation44_spill] sm:$0xff] %v34410_v60  ;;  %v34414_v14 = vpop.permute.xlu0 %5185  ;;  %v34551_v56 = vld [vmem:[#allocation2 + $0x7f] sm:$0xff] }
 0x252   : > { %v34406_v45 = vmul.f32 %v34393_v38, %v5009_v22  ;;  %v4975_v61 = vadd.f32 %v34114_v62, %v4932_v24  ;;  %37838 = vst [vmem:[#allocation45_spill] sm:$0xff] %v34414_v14  ;;  %v34547_v38 = vld [vmem:[#allocation2 + $0x77] sm:$0xff] }
 0x253   : > { %5262 = vst [vmem:[#allocation2 + $0x120] sm:$0xff] %v34401_v39  ;;  %v5012_v63 = vmax.f32 %v4976_v2, 0.0  ;;  %v5295_v41 = vld [vmem:[#allocation2 + $0xf5] sm:$0xff]  ;;  %v5296_v10 = vld [vmem:[#allocation2 + $0xfd] sm:$0xff]  ;;  %v5695_v2 = vld [vmem:[#allocation2 + $0x6] sm:$0xff] }
 0x254   : > { %5261 = vst [vmem:[#allocation2 + $0x118] sm:$0xff] %v34406_v45  ;;  %v5011_v26 = vmax.f32 %v4975_v61, 0.0  ;;  %28540 = vmatprep.mubr.msk.f32.mxu1 %vm449_vm0, %v5295_v41  ;;  %v24717_v61 = vld [vmem:[%s37701_s2 + $0x170] sm:$0xff]  ;;  %v6228_v11 = vld [vmem:[#allocation2 + $0xff] sm:$0xff] }
 0x255   : > { %v34417_v5 = vmul.f32 %v34410_v60, %v5012_v63  ;;  %28541 = vmatmul.mubr.msk.f32.gmra.mrb[66].mxu1 %vm449_vm0, %v5296_v10  ;;  %v24718_v63 = vld [vmem:[%s37701_s2 + $0x178] sm:$0xff]  ;;  %v5696_v41 = vld [vmem:[#allocation2 + $0xe] sm:$0xff] }
 0x256   : > { %v34421_v62 = vmul.f32 %v34414_v14, %v5011_v26  ;;  %v30881_v10 = vpack.c.bf16 %v24718_v63, %v24717_v61  ;;  %v24755_v26 = vld [vmem:[%s37701_s2 + $0x180] sm:$0xff]  ;;  %v5700_v61 = vld [vmem:[#allocation2 + $0x2e] sm:$0xff]  ;;  %v5701_v63 = vld [vmem:[#allocation2 + $0x36] sm:$0xff] }
 0x257   : > { %37839 = vst [vmem:[#allocation46_spill] sm:$0xff] %v34417_v5  ;;  %5264 = vst [vmem:[#allocation2 + $0x130] sm:$0xff] %v34417_v5  ;;  %v5297_v37 = vld [vmem:[#allocation2 + $0x105] sm:$0xff]  ;;  %v5298_v21 = vld [vmem:[#allocation2 + $0x10d] sm:$0xff]  ;;  %v30901_v5 = vpack.c.bf16 %v24836_v33, %v24835_v20 }
 0x258   : > { %5263 = vst [vmem:[#allocation2 + $0x128] sm:$0xff] %v34421_v62  ;;  %28543 = vmatprep.mubr.msk.f32.mxu1 %vm449_vm0, %v5297_v37  ;;  %v24756_v37 = vld [vmem:[%s37701_s2 + $0x188] sm:$0xff]  ;;  %v6227_v0 = vld [vmem:[#allocation2 + $0xf7] sm:$0xff] }
 0x259   : > { %28544 = vmatmul.mubr.msk.f32.gmra.mrb[68].mxu1 %vm449_vm0, %v5298_v21  ;;  %v5697_v21 = vld [vmem:[#allocation2 + $0x16] sm:$0xff]  ;;  %v34539_v14 = vld [vmem:[#allocation2 + $0x67] sm:$0xff] }
 0x25a   : > { %v34543_v60 = vld [vmem:[#allocation2 + $0x6f] sm:$0xff]  ;;  %v6229_v58 = vld [vmem:[#allocation2 + $0x107] sm:$0xff]  ;;  %v24838_v33 = vld [vmem:[%s37701_s2 + $0x1d8] sm:$0xff] }
 0x25b   : > { %v5299_v22 = vld [vmem:[#allocation2 + $0x115] sm:$0xff]  ;;  %v5300_v24 = vld [vmem:[#allocation2 + $0x11d] sm:$0xff] }
 0x25c   : > { %28546 = vmatprep.mubr.msk.f32.mxu1 %vm449_vm0, %v5299_v22  ;;  %v34445_v22 = vpack.c.bf16 %v24756_v37, %v24755_v26  ;;  %v5704_v26 = vld [vmem:[#allocation2 + $0x4e] sm:$0xff]  ;;  %v5705_v37 = vld [vmem:[#allocation2 + $0x56] sm:$0xff]  ;;  %v6232_v48 = vld [vmem:[#allocation2 + $0x11f] sm:$0xff] }
 0x25d   : > { %28547 = vmatmul.mubr.msk.f32.gmra.mrb[70].mxu1 %vm449_vm0, %v5300_v24  ;;  %v5698_v24 = vld [vmem:[#allocation2 + $0x1e] sm:$0xff]  ;;  %v6230_v7 = vld [vmem:[#allocation2 + $0x10f] sm:$0xff] }
 0x25e   : > { %28557 = vmatprep.mubr.msk.f32.mxu1 %vm449_vm0, %v5695_v2  ;;  %v5699_v2 = vld [vmem:[#allocation2 + $0x26] sm:$0xff]  ;;  %v6231_v52 = vld [vmem:[#allocation2 + $0x117] sm:$0xff] }
 0x25f   : > { %v6733_v19 = vld [vmem:[#allocation2 + $0x127] sm:$0xff]  ;;  %v6734_v20 = vld [vmem:[#allocation2 + $0x12f] sm:$0xff] }
 0x261   : > { %28558 = vmatmul.mubr.msk.f32.vlgmr.msra.gmra.mrb[36].mxu1 %vm449_vm0, %v5696_v41  ;;  %v5702_v41 = vld [vmem:[#allocation2 + $0x3e] sm:$0xff] }
 0x262   : > { %28560 = vmatprep.mubr.msk.f32.mxu1 %vm449_vm0, %v5697_v21  ;;  %30880 = vmatpush3.bf16.msra.mxu1 %v34047_v43  ;;  %v5703_v43 = vld [vmem:[#allocation2 + $0x46] sm:$0xff] }
 0x263   : > { %30882 = vmatprep.subr.bf16.mxu1 %v30881_v10  ;;  %v5707_v21 = vld [vmem:[#allocation2 + $0x66] sm:$0xff] }
 0x265   : > { %28561 = vmatmul.mubr.msk.f32.gmra.mrb[38].mxu1 %vm449_vm0, %v5698_v24  ;;  %v5708_v24 = vld [vmem:[#allocation2 + $0x6e] sm:$0xff] }
 0x266   : > { %28563 = vmatprep.mubr.msk.f32.mxu1 %vm449_vm0, %v5699_v2  ;;  %30884 = vmatpush3.bf16.msra.mxu1 %v30881_v10  ;;  %v5706_v10 = vld [vmem:[#allocation2 + $0x5e] sm:$0xff]  ;;  %v5709_v2 = vld [vmem:[#allocation2 + $0x76] sm:$0xff] }
 0x267   : > { %30886 = vmatprep.subr.bf16.mxu1 %v34445_v22 }
 0x269   : > { %28564 = vmatmul.mubr.msk.f32.gmra.mrb[40].mxu1 %vm449_vm0, %v5700_v61  ;;  %v5710_v61 = vld [vmem:[#allocation2 + $0x7e] sm:$0xff] }
 0x26a   : > { %28566 = vmatprep.mubr.msk.f32.mxu1 %vm449_vm0, %v5701_v63  ;;  %v5711_v63 = vld [vmem:[#allocation2 + $0x86] sm:$0xff] }
 0x26d   : > { %28567 = vmatmul.mubr.msk.f32.gmra.mrb[42].mxu1 %vm449_vm0, %v5702_v41  ;;  %v5712_v41 = vld [vmem:[#allocation2 + $0x8e] sm:$0xff] }
 0x26e   : > { %28569 = vmatprep.mubr.msk.f32.mxu1 %vm449_vm0, %v5703_v43  ;;  %v5713_v43 = vld [vmem:[#allocation2 + $0x96] sm:$0xff] }
 0x271   : > { %28570 = vmatmul.mubr.msk.f32.gmra.mrb[44].mxu1 %vm449_vm0, %v5704_v26  ;;  %v5714_v26 = vld [vmem:[#allocation2 + $0x9e] sm:$0xff] }
 0x272   : > { %28572 = vmatprep.mubr.msk.f32.mxu1 %vm449_vm0, %v5705_v37  ;;  %v5715_v37 = vld [vmem:[#allocation2 + $0xa6] sm:$0xff] }
 0x275   : > { %28573 = vmatmul.mubr.msk.f32.gmra.mrb[46].mxu1 %vm449_vm0, %v5706_v10  ;;  %v5716_v10 = vld [vmem:[#allocation2 + $0xae] sm:$0xff] }
 0x276   : > { %28575 = vmatprep.mubr.msk.f32.mxu1 %vm449_vm0, %v5707_v21  ;;  %v5717_v21 = vld [vmem:[#allocation2 + $0xb6] sm:$0xff] }
 0x279   : > { %28576 = vmatmul.mubr.msk.f32.gmra.mrb[48].mxu1 %vm449_vm0, %v5708_v24  ;;  %v5718_v24 = vld [vmem:[#allocation2 + $0xbe] sm:$0xff] }
 0x27a   : > { %28578 = vmatprep.mubr.msk.f32.mxu1 %vm449_vm0, %v5709_v2  ;;  %v5719_v2 = vld [vmem:[#allocation2 + $0xc6] sm:$0xff] }
 0x27d   : > { %28579 = vmatmul.mubr.msk.f32.gmra.mrb[50].mxu1 %vm449_vm0, %v5710_v61  ;;  %v5720_v61 = vld [vmem:[#allocation2 + $0xce] sm:$0xff] }
 0x27e   : > { %28581 = vmatprep.mubr.msk.f32.mxu1 %vm449_vm0, %v5711_v63  ;;  %v5721_v63 = vld [vmem:[#allocation2 + $0xd6] sm:$0xff] }
 0x281   : > { %28582 = vmatmul.mubr.msk.f32.gmra.mrb[52].mxu1 %vm449_vm0, %v5712_v41  ;;  %v5722_v41 = vld [vmem:[#allocation2 + $0xde] sm:$0xff] }
 0x282   : > { %28584 = vmatprep.mubr.msk.f32.mxu1 %vm449_vm0, %v5713_v43  ;;  %v5723_v43 = vld [vmem:[#allocation2 + $0xe6] sm:$0xff] }
 0x285   : > { %28585 = vmatmul.mubr.msk.f32.gmra.mrb[54].mxu1 %vm449_vm0, %v5714_v26  ;;  %v5724_v26 = vld [vmem:[#allocation2 + $0xee] sm:$0xff] }
 0x286   : > { %28587 = vmatprep.mubr.msk.f32.mxu1 %vm449_vm0, %v5715_v37  ;;  %v5725_v37 = vld [vmem:[#allocation2 + $0xf6] sm:$0xff] }
 0x289   : > { %28588 = vmatmul.mubr.msk.f32.gmra.mrb[56].mxu1 %vm449_vm0, %v5716_v10  ;;  %v5726_v10 = vld [vmem:[#allocation2 + $0xfe] sm:$0xff] }
 0x28a   : > { %28590 = vmatprep.mubr.msk.f32.mxu1 %vm449_vm0, %v5717_v21  ;;  %v5727_v21 = vld [vmem:[#allocation2 + $0x106] sm:$0xff] }
 0x28d   : > { %28591 = vmatmul.mubr.msk.f32.gmra.mrb[58].mxu1 %vm449_vm0, %v5718_v24  ;;  %v5728_v24 = vld [vmem:[#allocation2 + $0x10e] sm:$0xff] }
 0x28e   : > { %28593 = vmatprep.mubr.msk.f32.mxu1 %vm449_vm0, %v5719_v2  ;;  %v5729_v2 = vld [vmem:[#allocation2 + $0x116] sm:$0xff] }
 0x291   : > { %28594 = vmatmul.mubr.msk.f32.gmra.mrb[60].mxu1 %vm449_vm0, %v5720_v61  ;;  %v6197_v61 = vld [vmem:[#allocation2 + $0x7] sm:$0xff] }
 0x292   : > { %28596 = vmatprep.mubr.msk.f32.mxu1 %vm449_vm0, %v5721_v63  ;;  %v5730_v63 = vld [vmem:[#allocation2 + $0x11e] sm:$0xff] }
 0x295   : > { %28597 = vmatmul.mubr.msk.f32.gmra.mrb[62].mxu1 %vm449_vm0, %v5722_v41  ;;  %v24757_v41 = vld [vmem:[%s37701_s2 + $0x190] sm:$0xff] }
 0x296   : > { %28599 = vmatprep.mubr.msk.f32.mxu1 %vm449_vm0, %v5723_v43  ;;  %v24758_v43 = vld [vmem:[%s37701_s2 + $0x198] sm:$0xff] }
 0x299   : > { %28600 = vmatmul.mubr.msk.f32.gmra.mrb[64].mxu1 %vm449_vm0, %v5724_v26  ;;  %v6198_v26 = vld [vmem:[#allocation2 + $0xf] sm:$0xff] }
 0x29a   : > { %28602 = vmatprep.mubr.msk.f32.mxu1 %vm449_vm0, %v5725_v37  ;;  %v30889_v37 = vpack.c.bf16 %v24758_v43, %v24757_v41  ;;  %v34511_v41 = vld [vmem:[#allocation2 + $0x2f] sm:$0xff]  ;;  %v34519_v43 = vld [vmem:[#allocation2 + $0x3f] sm:$0xff] }
 0x29d   : > { %28603 = vmatmul.mubr.msk.f32.gmra.mrb[66].mxu1 %vm449_vm0, %v5726_v10  ;;  %v24795_v10 = vld [vmem:[%s37701_s2 + $0x1a0] sm:$0xff] }
 0x29e   : > { %28605 = vmatprep.mubr.msk.f32.mxu1 %vm449_vm0, %v5727_v21  ;;  %v24796_v21 = vld [vmem:[%s37701_s2 + $0x1a8] sm:$0xff] }
 0x2a1   : > { %28606 = vmatmul.mubr.msk.f32.gmra.mrb[68].mxu1 %vm449_vm0, %v5728_v24  ;;  %v34495_v24 = vld [vmem:[#allocation2 + $0x17] sm:$0xff] }
 0x2a2   : > { %28608 = vmatprep.mubr.msk.f32.mxu1 %vm449_vm0, %v5729_v2  ;;  %v34500_v2 = vpack.c.bf16 %v24796_v21, %v24795_v10  ;;  %v34531_v10 = vld [vmem:[#allocation2 + $0x57] sm:$0xff]  ;;  %v34535_v21 = vld [vmem:[#allocation2 + $0x5f] sm:$0xff] }
 0x2a5   : > { %28609 = vmatmul.mubr.msk.f32.gmra.mrb[70].mxu1 %vm449_vm0, %v5730_v63  ;;  %v34506_v63 = vld [vmem:[#allocation2 + $0x27] sm:$0xff] }
 0x2a6   : > { %28619 = vmatprep.mubr.msk.f32.mxu1 %vm449_vm0, %v6197_v61  ;;  %v34502_v61 = vld [vmem:[#allocation2 + $0x1f] sm:$0xff] }
 0x2a9   : > { %28620 = vmatmul.mubr.msk.f32.vlgmr.msra.gmra.mrb[36].mxu1 %vm449_vm0, %v6198_v26  ;;  %v34523_v26 = vld [vmem:[#allocation2 + $0x47] sm:$0xff] }
 0x2aa   : > { %28622 = vmatprep.mubr.msk.f32.mxu1 %vm449_vm0, %v34495_v24  ;;  %30888 = vmatpush3.bf16.msra.mxu1 %v34445_v22  ;;  %v34515_v22 = vld [vmem:[#allocation2 + $0x37] sm:$0xff] }
 0x2ab   : > { %30890 = vmatprep.subr.bf16.mxu1 %v30889_v37 }
 0x2ad   : > { %28623 = vmatmul.mubr.msk.f32.gmra.mrb[38].mxu1 %vm449_vm0, %v34502_v61 }
 0x2ae   : > { %28625 = vmatprep.mubr.msk.f32.mxu1 %vm449_vm0, %v34506_v63  ;;  %30892 = vmatpush3.bf16.msra.mxu1 %v30889_v37  ;;  %v34527_v37 = vld [vmem:[#allocation2 + $0x4f] sm:$0xff] }
 0x2af   : > { %30894 = vmatprep.subr.bf16.mxu1 %v34500_v2 }
 0x2b1   : > { %28626 = vmatmul.mubr.msk.f32.gmra.mrb[40].mxu1 %vm449_vm0, %v34511_v41 }
 0x2b2   : > { %28628 = vmatprep.mubr.msk.f32.mxu1 %vm449_vm0, %v34515_v22 }
 0x2b5   : > { %28629 = vmatmul.mubr.msk.f32.gmra.mrb[42].mxu1 %vm449_vm0, %v34519_v43 }
 0x2b6   : > { %28631 = vmatprep.mubr.msk.f32.mxu1 %vm449_vm0, %v34523_v26 }
 0x2b9   : > { %28632 = vmatmul.mubr.msk.f32.gmra.mrb[44].mxu1 %vm449_vm0, %v34527_v37 }
 0x2ba   : > { %28634 = vmatprep.mubr.msk.f32.mxu1 %vm449_vm0, %v34531_v10 }
 0x2bd   : > { %28635 = vmatmul.mubr.msk.f32.gmra.mrb[46].mxu1 %vm449_vm0, %v34535_v21 }
 0x2be   : > { %28637 = vmatprep.mubr.msk.f32.mxu1 %vm449_vm0, %v34539_v14 }
 0x2c1   : > { %28638 = vmatmul.mubr.msk.f32.gmra.mrb[48].mxu1 %vm449_vm0, %v34543_v60 }
 0x2c2   : > { %28640 = vmatprep.mubr.msk.f32.mxu1 %vm449_vm0, %v34547_v38 }
 0x2c5   : > { %28641 = vmatmul.mubr.msk.f32.gmra.mrb[50].mxu1 %vm449_vm0, %v34551_v56 }
 0x2c6   : > { %28643 = vmatprep.mubr.msk.f32.mxu1 %vm449_vm0, %v34555_v16 }
 0x2c9   : > { %28644 = vmatmul.mubr.msk.f32.gmra.mrb[52].mxu1 %vm449_vm0, %v34559_v47 }
 0x2ca   : > { %28646 = vmatprep.mubr.msk.f32.mxu1 %vm449_vm0, %v6215_v44 }
 0x2cd   : > { %28647 = vmatmul.mubr.msk.f32.gmra.mrb[54].mxu1 %vm449_vm0, %v6216_v42 }
 0x2ce   : > { %28649 = vmatprep.mubr.msk.f32.mxu1 %vm449_vm0, %v6217_v23 }
 0x2d1   : > { %28650 = vmatmul.mubr.msk.f32.gmra.mrb[56].mxu1 %vm449_vm0, %v6218_v12 }
 0x2d2   : > { %28652 = vmatprep.mubr.msk.f32.mxu1 %vm449_vm0, %v6219_v40 }
 0x2d5   : > { %28653 = vmatmul.mubr.msk.f32.gmra.mrb[58].mxu1 %vm449_vm0, %v6220_v55 }
 0x2d6   : > { %28655 = vmatprep.mubr.msk.f32.mxu1 %vm449_vm0, %v6221_v54 }
 0x2d9   : > { %28656 = vmatmul.mubr.msk.f32.gmra.mrb[60].mxu1 %vm449_vm0, %v6222_v35 }
 0x2da   : > { %28658 = vmatprep.mubr.msk.f32.mxu1 %vm449_vm0, %v6223_v17 }
 0x2dd   : > { %28659 = vmatmul.mubr.msk.f32.gmra.mrb[62].mxu1 %vm449_vm0, %v6224_v57 }
 0x2de   : > { %28661 = vmatprep.mubr.msk.f32.mxu1 %vm449_vm0, %v6225_v30 }
 0x2e1   : > { %28662 = vmatmul.mubr.msk.f32.gmra.mrb[64].mxu1 %vm449_vm0, %v6226_v6 }
 0x2e2   : > { %28664 = vmatprep.mubr.msk.f32.mxu1 %vm449_vm0, %v6227_v0 }
 0x2e5   : > { %28665 = vmatmul.mubr.msk.f32.gmra.mrb[66].mxu1 %vm449_vm0, %v6228_v11 }
 0x2e6   : > { %28667 = vmatprep.mubr.msk.f32.mxu1 %vm449_vm0, %v6229_v58 }
 0x2e9   : > { %28668 = vmatmul.mubr.msk.f32.gmra.mrb[68].mxu1 %vm449_vm0, %v6230_v7 }
 0x2ea   : > { %28670 = vmatprep.mubr.msk.f32.mxu1 %vm449_vm0, %v6231_v52 }
 0x2ed   : > { %28671 = vmatmul.mubr.msk.f32.gmra.mrb[70].mxu1 %vm449_vm0, %v6232_v48 }
 0x2ee   : > { %28681 = vmatprep.mubr.msk.f32.mxu1 %vm449_vm0, %v34495_v24  ;;  %v7729_v24 = vld [vmem:[#allocation2 + $0xe9] sm:$0xff] }
 0x2f1   : > { %28682 = vmatmul.mubr.msk.f32.vlgmr.msra.gmra.mrb[36].mxu1 %vm449_vm0, %v34502_v61  ;;  %v7731_v61 = vld [vmem:[#allocation2 + $0xf9] sm:$0xff] }
 0x2f2   : > { %28684 = vmatprep.mubr.msk.f32.mxu1 %vm449_vm0, %v34506_v63  ;;  %30896 = vmatpush3.bf16.msra.mxu1 %v34500_v2  ;;  %v7730_v2 = vld [vmem:[#allocation2 + $0xf1] sm:$0xff]  ;;  %v7732_v63 = vld [vmem:[#allocation2 + $0x101] sm:$0xff] }
 0x2f3   : > { %30898 = vmatprep.subr.bf16.mxu1 %v30897_v27 }
 0x2f5   : > { %28685 = vmatmul.mubr.msk.f32.gmra.mrb[38].mxu1 %vm449_vm0, %v34511_v41  ;;  %v7733_v41 = vld [vmem:[#allocation2 + $0x109] sm:$0xff] }
 0x2f6   : > { %28687 = vmatprep.mubr.msk.f32.mxu1 %vm449_vm0, %v34515_v22  ;;  %30900 = vmatpush3.bf16.msra.mxu1 %v30897_v27  ;;  %v24837_v27 = vld [vmem:[%s37701_s2 + $0x1d0] sm:$0xff] }
 0x2f7   : > { %30902 = vmatprep.subr.bf16.mxu1 %v30901_v5  ;;  %v7734_v22 = vld [vmem:[#allocation2 + $0x111] sm:$0xff] }
 0x2f9   : > { %28688 = vmatmul.mubr.msk.f32.gmra.mrb[40].mxu1 %vm449_vm0, %v34519_v43  ;;  %v7735_v43 = vld [vmem:[#allocation2 + $0x119] sm:$0xff] }
 0x2fa   : > { %28690 = vmatprep.mubr.msk.f32.mxu1 %vm449_vm0, %v34523_v26  ;;  %v7736_v26 = vld [vmem:[#allocation2 + $0x121] sm:$0xff] }
 0x2fd   : > { %28691 = vmatmul.mubr.msk.f32.gmra.mrb[42].mxu1 %vm449_vm0, %v34527_v37  ;;  %v7737_v37 = vld [vmem:[#allocation2 + $0x129] sm:$0xff] }
 0x2fe   : > { %28693 = vmatprep.mubr.msk.f32.mxu1 %vm449_vm0, %v34531_v10  ;;  %v7738_v10 = vld [vmem:[#allocation2 + $0x131] sm:$0xff] }
 0x301   : > { %28694 = vmatmul.mubr.msk.f32.gmra.mrb[44].mxu1 %vm449_vm0, %v34535_v21  ;;  %v24917_v21 = vld [vmem:[%s37701_s2 + $0x210] sm:$0xff] }
 0x302   : > { %28696 = vmatprep.mubr.msk.f32.mxu1 %vm449_vm0, %v34539_v14  ;;  %v7726_v14 = vld [vmem:[#allocation2 + $0xd1] sm:$0xff] }
 0x305   : > { %28697 = vmatmul.mubr.msk.f32.gmra.mrb[46].mxu1 %vm449_vm0, %v34543_v60  ;;  %v7725_v60 = vld [vmem:[#allocation2 + $0xc9] sm:$0xff] }
 0x306   : > { %28699 = vmatprep.mubr.msk.f32.mxu1 %vm449_vm0, %v34547_v38  ;;  %v7722_v38 = vld [vmem:[#allocation2 + $0xb1] sm:$0xff] }
 0x309   : > { %28700 = vmatmul.mubr.msk.f32.gmra.mrb[48].mxu1 %vm449_vm0, %v34551_v56  ;;  %v34795_v56 = vld [vmem:[#allocation2 + $0xa1] sm:$0xff] }
 0x30a   : > { %28702 = vmatprep.mubr.msk.f32.mxu1 %vm449_vm0, %v34555_v16  ;;  %v34779_v16 = vld [vmem:[#allocation2 + $0x81] sm:$0xff] }
 0x30d   : > { %28703 = vmatmul.mubr.msk.f32.gmra.mrb[50].mxu1 %vm449_vm0, %v34559_v47  ;;  %v34775_v47 = vld [vmem:[#allocation2 + $0x79] sm:$0xff] }
 0x30e   : > { %28705 = vmatprep.mubr.msk.f32.mxu1 %vm449_vm0, %v6215_v44  ;;  %v34763_v44 = vld [vmem:[#allocation2 + $0x61] sm:$0xff] }
 0x311   : > { %28706 = vmatmul.mubr.msk.f32.gmra.mrb[52].mxu1 %vm449_vm0, %v6216_v42  ;;  %v34732_v42 = vld [vmem:[#allocation2 + $0x29] sm:$0xff] }
 0x312   : > { %28708 = vmatprep.mubr.msk.f32.mxu1 %vm449_vm0, %v6217_v23 }
 0x315   : > { %28709 = vmatmul.mubr.msk.f32.gmra.mrb[54].mxu1 %vm449_vm0, %v6218_v12  ;;  %v7212_v12 = vld [vmem:[#allocation2 + $0x70] sm:$0xff] }
 0x316   : > { %28711 = vmatprep.mubr.msk.f32.mxu1 %vm449_vm0, %v6219_v40  ;;  %v7211_v40 = vld [vmem:[#allocation2 + $0x68] sm:$0xff] }
 0x319   : > { %28712 = vmatmul.mubr.msk.f32.gmra.mrb[56].mxu1 %vm449_vm0, %v6220_v55  ;;  %v7210_v55 = vld [vmem:[#allocation2 + $0x60] sm:$0xff] }
 0x31a   : > { %28714 = vmatprep.mubr.msk.f32.mxu1 %vm449_vm0, %v6221_v54  ;;  %v7209_v54 = vld [vmem:[#allocation2 + $0x58] sm:$0xff] }
 0x31d   : > { %28715 = vmatmul.mubr.msk.f32.gmra.mrb[58].mxu1 %vm449_vm0, %v6222_v35  ;;  %v7208_v35 = vld [vmem:[#allocation2 + $0x50] sm:$0xff] }
 0x31e   : > { %28717 = vmatprep.mubr.msk.f32.mxu1 %vm449_vm0, %v6223_v17  ;;  %v7207_v17 = vld [vmem:[#allocation2 + $0x48] sm:$0xff] }
 0x321   : > { %28718 = vmatmul.mubr.msk.f32.gmra.mrb[60].mxu1 %vm449_vm0, %v6224_v57  ;;  %v7206_v57 = vld [vmem:[#allocation2 + $0x40] sm:$0xff] }
 0x322   : > { %28720 = vmatprep.mubr.msk.f32.mxu1 %vm449_vm0, %v6225_v30  ;;  %v7205_v30 = vld [vmem:[#allocation2 + $0x38] sm:$0xff] }
 0x325   : > { %28721 = vmatmul.mubr.msk.f32.gmra.mrb[62].mxu1 %vm449_vm0, %v6226_v6  ;;  %v7204_v6 = vld [vmem:[#allocation2 + $0x30] sm:$0xff] }
 0x326   : > { %28723 = vmatprep.mubr.msk.f32.mxu1 %vm449_vm0, %v6227_v0 }
 0x329   : > { %28724 = vmatmul.mubr.msk.f32.gmra.mrb[64].mxu1 %vm449_vm0, %v6228_v11  ;;  %v7203_v11 = vld [vmem:[#allocation2 + $0x28] sm:$0xff] }
 0x32a   : > { %28726 = vmatprep.mubr.msk.f32.mxu1 %vm449_vm0, %v6229_v58  ;;  %v24876_v58 = vld [vmem:[%s37701_s2 + $0x1e8] sm:$0xff] }
 0x32d   : > { %28727 = vmatmul.mubr.msk.f32.gmra.mrb[66].mxu1 %vm449_vm0, %v6230_v7  ;;  %v7202_v7 = vld [vmem:[#allocation2 + $0x20] sm:$0xff] }
 0x32e   : > { %28729 = vmatprep.mubr.msk.f32.mxu1 %vm449_vm0, %v6231_v52  ;;  %v30905_v52 = vpack.c.bf16 %v24838_v33, %v24837_v27  ;;  %v24955_v27 = vld [vmem:[%s37701_s2 + $0x220] sm:$0xff]  ;;  %v24956_v33 = vld [vmem:[%s37701_s2 + $0x228] sm:$0xff] }
 0x331   : > { %28730 = vmatmul.mubr.msk.f32.gmra.mrb[68].mxu1 %vm449_vm0, %v6232_v48  ;;  %v24875_v48 = vld [vmem:[%s37701_s2 + $0x1e0] sm:$0xff] }
 0x332   : > { %28732 = vmatprep.mubr.msk.f32.mxu1 %vm449_vm0, %v6733_v19  ;;  %v30909_v0 = vpack.c.bf16 %v24876_v58, %v24875_v48  ;;  %v24918_v19 = vld [vmem:[%s37701_s2 + $0x218] sm:$0xff]  ;;  %v24957_v48 = vld [vmem:[%s37701_s2 + $0x230] sm:$0xff] }
 0x333   : > { %v24958_v58 = vld [vmem:[%s37701_s2 + $0x238] sm:$0xff] }
 0x335   : > { %28733 = vmatmul.mubr.msk.f32.gmra.mrb[70].mxu1 %vm449_vm0, %v6734_v20  ;;  %v30921_v20 = vpack.c.bf16 %v24918_v19, %v24917_v21  ;;  %v9220_v21 = vld [vmem:[#allocation2 + $0x83] sm:$0xff]  ;;  %v9221_v19 = vld [vmem:[#allocation2 + $0x8b] sm:$0xff] }
 0x336   : > { %28743 = vmatprep.mubr.msk.f32.mxu1 %vm449_vm0, %v7201_v46  ;;  %v30925_v46 = vpack.c.bf16 %v24956_v33, %v24955_v27  ;;  %v9223_v27 = vld [vmem:[#allocation2 + $0x9b] sm:$0xff]  ;;  %v9224_v33 = vld [vmem:[#allocation2 + $0xa3] sm:$0xff] }
 0x339   : > { %28744 = vmatmul.mubr.msk.f32.vlgmr.msra.gmra.mrb[36].mxu1 %vm449_vm0, %v7202_v7  ;;  %v8240_v7 = vld [vmem:[#allocation2 + $0x141] sm:$0xff] }
 0x33a   : > { %28746 = vmatprep.mubr.msk.f32.mxu1 %vm449_vm0, %v7203_v11  ;;  %30904 = vmatpush3.bf16.msra.mxu1 %v30901_v5  ;;  %v7727_v5 = vld [vmem:[#allocation2 + $0xd9] sm:$0xff]  ;;  %v8707_v11 = vld [vmem:[#allocation2 + $0x2a] sm:$0xff] }
 0x33b   : > { %30906 = vmatprep.subr.bf16.mxu1 %v30905_v52 }
 0x33d   : > { %28747 = vmatmul.mubr.msk.f32.gmra.mrb[38].mxu1 %vm449_vm0, %v7204_v6  ;;  %v8708_v6 = vld [vmem:[#allocation2 + $0x32] sm:$0xff] }
 0x33e   : > { %28749 = vmatprep.mubr.msk.f32.mxu1 %vm449_vm0, %v7205_v30  ;;  %30908 = vmatpush3.bf16.msra.mxu1 %v30905_v52  ;;  %v8239_v52 = vld [vmem:[#allocation2 + $0x139] sm:$0xff] }
 0x33f   : > { %30910 = vmatprep.subr.bf16.mxu1 %v30909_v0  ;;  %v8709_v30 = vld [vmem:[#allocation2 + $0x3a] sm:$0xff] }
 0x341   : > { %28750 = vmatmul.mubr.msk.f32.gmra.mrb[40].mxu1 %vm449_vm0, %v7206_v57  ;;  %v8710_v57 = vld [vmem:[#allocation2 + $0x42] sm:$0xff] }
 0x342   : > { %28752 = vmatprep.mubr.msk.f32.mxu1 %vm449_vm0, %v7207_v17  ;;  %v8711_v17 = vld [vmem:[#allocation2 + $0x4a] sm:$0xff] }
 0x345   : > { %28753 = vmatmul.mubr.msk.f32.gmra.mrb[42].mxu1 %vm449_vm0, %v7208_v35  ;;  %v8712_v35 = vld [vmem:[#allocation2 + $0x52] sm:$0xff] }
 0x346   : > { %28755 = vmatprep.mubr.msk.f32.mxu1 %vm449_vm0, %v7209_v54  ;;  %v8713_v54 = vld [vmem:[#allocation2 + $0x5a] sm:$0xff] }
 0x349   : > { %28756 = vmatmul.mubr.msk.f32.gmra.mrb[44].mxu1 %vm449_vm0, %v7210_v55  ;;  %v8714_v55 = vld [vmem:[#allocation2 + $0x62] sm:$0xff] }
 0x34a   : > { %28758 = vmatprep.mubr.msk.f32.mxu1 %vm449_vm0, %v7211_v40  ;;  %v8715_v40 = vld [vmem:[#allocation2 + $0x6a] sm:$0xff] }
 0x34d   : > { %28759 = vmatmul.mubr.msk.f32.gmra.mrb[46].mxu1 %vm449_vm0, %v7212_v12  ;;  %v24999_v12 = vld [vmem:[%s37701_s2 + $0x240] sm:$0xff] }
 0x34e   : > { %28761 = vmatprep.mubr.msk.f32.mxu1 %vm449_vm0, %v34221_v25  ;;  %v24878_v25 = vld [vmem:[%s37701_s2 + $0x1f8] sm:$0xff] }
 0x351   : > { %28762 = vmatmul.mubr.msk.f32.gmra.mrb[48].mxu1 %vm449_vm0, %v34213_v13  ;;  %v24877_v13 = vld [vmem:[%s37701_s2 + $0x1f0] sm:$0xff] }
 0x352   : > { %28764 = vmatprep.mubr.msk.f32.mxu1 %vm449_vm0, %v34239_v9  ;;  %v7703_v9 = vld [vmem:[#allocation2 + $0x19] sm:$0xff]  ;;  %v30913_v23 = vpack.c.bf16 %v24878_v25, %v24877_v13  ;;  %v25000_v13 = vld [vmem:[%s37701_s2 + $0x248] sm:$0xff]  ;;  %v25001_v25 = vld [vmem:[%s37701_s2 + $0x250] sm:$0xff] }
 0x355   : > { %28765 = vmatmul.mubr.msk.f32.gmra.mrb[50].mxu1 %vm449_vm0, %v34233_v49  ;;  %v37840_v49 = vld [vmem:[#allocation46_spill] sm:$0xff] }
 0x356   : > { %28767 = vmatprep.mubr.msk.f32.mxu1 %vm449_vm0, %v34259_v4  ;;  %v24915_v4 = vld [vmem:[%s37701_s2 + $0x200] sm:$0xff] }
 0x359   : > { %28768 = vmatmul.mubr.msk.f32.gmra.mrb[52].mxu1 %vm449_vm0, %v34253_v32  ;;  %v7704_v32 = vld [vmem:[#allocation2 + $0x21] sm:$0xff] }
 0x35a   : > { %28770 = vmatprep.mubr.msk.f32.mxu1 %vm449_vm0, %v34277_v59 }
 0x35d   : > { %28771 = vmatmul.mubr.msk.f32.gmra.mrb[54].mxu1 %vm449_vm0, %v34269_v34  ;;  %v24916_v34 = vld [vmem:[%s37701_s2 + $0x208] sm:$0xff] }
 0x35e   : > { %28773 = vmatprep.mubr.msk.f32.mxu1 %vm449_vm0, %v34295_v28  ;;  %v34736_v59 = vpack.c.bf16 %v24916_v34, %v24915_v4  ;;  %v34742_v28 = vld [vmem:[#allocation2 + $0x39] sm:$0xff]  ;;  %v8718_v34 = vld [vmem:[#allocation2 + $0x82] sm:$0xff] }
 0x35f   : > { %v8717_v4 = vld [vmem:[#allocation2 + $0x7a] sm:$0xff] }
 0x361   : > { %28774 = vmatmul.mubr.msk.f32.gmra.mrb[56].mxu1 %vm449_vm0, %v34289_v15  ;;  %v34738_v15 = vld [vmem:[#allocation2 + $0x31] sm:$0xff] }
 0x362   : > { %28776 = vmatprep.mubr.msk.f32.mxu1 %vm449_vm0, %v34315_v36  ;;  %v34751_v36 = vld [vmem:[#allocation2 + $0x49] sm:$0xff] }
 0x365   : > { %28777 = vmatmul.mubr.msk.f32.gmra.mrb[58].mxu1 %vm449_vm0, %v34309_v18  ;;  %v34747_v18 = vld [vmem:[#allocation2 + $0x41] sm:$0xff] }
 0x366   : > { %28779 = vmatprep.mubr.msk.f32.mxu1 %vm449_vm0, %v34333_v50  ;;  %v34759_v50 = vld [vmem:[#allocation2 + $0x59] sm:$0xff] }
 0x369   : > { %28780 = vmatmul.mubr.msk.f32.gmra.mrb[60].mxu1 %vm449_vm0, %v34325_v51  ;;  %v34755_v51 = vld [vmem:[#allocation2 + $0x51] sm:$0xff] }
 0x36a   : > { %28782 = vmatprep.mubr.msk.f32.mxu1 %vm449_vm0, %v34351_v8  ;;  %v34771_v8 = vld [vmem:[#allocation2 + $0x71] sm:$0xff] }
 0x36d   : > { %28783 = vmatmul.mubr.msk.f32.gmra.mrb[62].mxu1 %vm449_vm0, %v34345_v3  ;;  %v34767_v3 = vld [vmem:[#allocation2 + $0x69] sm:$0xff] }
 0x36e   : > { %28785 = vmatprep.mubr.msk.f32.mxu1 %vm449_vm0, %v34371_v53  ;;  %v34787_v53 = vld [vmem:[#allocation2 + $0x91] sm:$0xff] }
 0x371   : > { %28786 = vmatmul.mubr.msk.f32.gmra.mrb[64].mxu1 %vm449_vm0, %v34365_v31  ;;  %v34783_v31 = vld [vmem:[#allocation2 + $0x89] sm:$0xff] }
 0x372   : > { %28788 = vmatprep.mubr.msk.f32.mxu1 %vm449_vm0, %v34389_v29  ;;  %v7721_v29 = vld [vmem:[#allocation2 + $0xa9] sm:$0xff] }
 0x375   : > { %28789 = vmatmul.mubr.msk.f32.gmra.mrb[66].mxu1 %vm449_vm0, %v34381_v1  ;;  %v34791_v1 = vld [vmem:[#allocation2 + $0x99] sm:$0xff] }
 0x376   : > { %28791 = vmatprep.mubr.msk.f32.mxu1 %vm449_vm0, %v34406_v45  ;;  %v7724_v45 = vld [vmem:[#allocation2 + $0xc1] sm:$0xff] }
 0x379   : > { %28792 = vmatmul.mubr.msk.f32.gmra.mrb[68].mxu1 %vm449_vm0, %v34401_v39  ;;  %v7723_v39 = vld [vmem:[#allocation2 + $0xb9] sm:$0xff] }
 0x37a   : > { %28794 = vmatprep.mubr.msk.f32.mxu1 %vm449_vm0, %v34421_v62  ;;  %v7728_v62 = vld [vmem:[#allocation2 + $0xe1] sm:$0xff] }
 0x37d   : > { %28795 = vmatmul.mubr.msk.f32.gmra.mrb[70].mxu1 %vm449_vm0, %v37840_v49  ;;  %v30933_v49 = vpack.c.bf16 %v25000_v13, %v24999_v12  ;;  %v9240_v12 = vld [vmem:[#allocation2 + $0x123] sm:$0xff]  ;;  %v9241_v13 = vld [vmem:[#allocation2 + $0x12b] sm:$0xff] }
 0x37e   : > { %28805 = vmatprep.mubr.msk.f32.mxu1 %vm449_vm0, %v7703_v9  ;;  %v25002_v9 = vld [vmem:[%s37701_s2 + $0x258] sm:$0xff] }
 0x37f   : > { %30934 = vmatprep.subr.bf16.mxu0 %v30933_v49 }
 0x380   : > { %30936 = vmatpush3.bf16.msra.mxu0 %v30933_v49  ;;  %v9242_v49 = vld [vmem:[#allocation2 + $0x133] sm:$0xff] }
 0x381   : > { %28806 = vmatmul.mubr.msk.f32.vlgmr.msra.gmra.mrb[36].mxu1 %vm449_vm0, %v7704_v32  ;;  %v8716_v32 = vld [vmem:[#allocation2 + $0x72] sm:$0xff] }
 0x382   : > { %28808 = vmatprep.mubr.msk.f32.mxu1 %vm449_vm0, %v34732_v42  ;;  %30912 = vmatpush3.bf16.msra.mxu1 %v30909_v0  ;;  %v30929_v0 = vpack.c.bf16 %v24958_v58, %v24957_v48  ;;  %v9228_v48 = vld [vmem:[#allocation2 + $0xc3] sm:$0xff]  ;;  %v9229_v58 = vld [vmem:[#allocation2 + $0xcb] sm:$0xff] }
 0x383   : > { %30914 = vmatprep.subr.bf16.mxu1 %v30913_v23 }
 0x385   : > { %28809 = vmatmul.mubr.msk.f32.gmra.mrb[38].mxu1 %vm449_vm0, %v34738_v15 }
 0x386   : > { %28811 = vmatprep.mubr.msk.f32.mxu1 %vm449_vm0, %v34742_v28  ;;  %30916 = vmatpush3.bf16.msra.mxu1 %v30913_v23  ;;  %v30937_v23 = vpack.c.bf16 %v25002_v9, %v25001_v25  ;;  %v9243_v25 = vld [vmem:[#allocation2 + $0x13b] sm:$0xff]  ;;  %v9244_v9 = vld [vmem:[#allocation2 + $0x143] sm:$0xff] }
 0x387   : > { %30918 = vmatprep.subr.bf16.mxu1 %v34736_v59 }
 0x388   : > { %30938 = vmatprep.subr.bf16.mxu0 %v30937_v23 }
 0x389   : > { %28812 = vmatmul.mubr.msk.f32.gmra.mrb[40].mxu1 %vm449_vm0, %v34747_v18  ;;  %30940 = vmatpush3.bf16.msra.mxu0 %v30937_v23  ;;  %v9943_v23 = vld [vmem:[#allocation2 + $0x5] sm:$0xff] }
 0x38a   : > { %28814 = vmatprep.mubr.msk.f32.mxu1 %vm449_vm0, %v34751_v36  ;;  %29053 = vmatprep.mubr.msk.f32.mxu0 %vm449_vm0, %v9943_v23 }
 0x38d   : > { %28815 = vmatmul.mubr.msk.f32.gmra.mrb[42].mxu1 %vm449_vm0, %v34755_v51 }
 0x38e   : > { %28817 = vmatprep.mubr.msk.f32.mxu1 %vm449_vm0, %v34759_v50 }
 0x391   : > { %28818 = vmatmul.mubr.msk.f32.gmra.mrb[44].mxu1 %vm449_vm0, %v34763_v44 }
 0x392   : > { %28820 = vmatprep.mubr.msk.f32.mxu1 %vm449_vm0, %v34767_v3 }
 0x395   : > { %28821 = vmatmul.mubr.msk.f32.gmra.mrb[46].mxu1 %vm449_vm0, %v34771_v8 }
 0x396   : > { %28823 = vmatprep.mubr.msk.f32.mxu1 %vm449_vm0, %v34775_v47 }
 0x399   : > { %28824 = vmatmul.mubr.msk.f32.gmra.mrb[48].mxu1 %vm449_vm0, %v34779_v16 }
 0x39a   : > { %28826 = vmatprep.mubr.msk.f32.mxu1 %vm449_vm0, %v34783_v31 }
 0x39d   : > { %28827 = vmatmul.mubr.msk.f32.gmra.mrb[50].mxu1 %vm449_vm0, %v34787_v53 }
 0x39e   : > { %28829 = vmatprep.mubr.msk.f32.mxu1 %vm449_vm0, %v34791_v1 }
 0x3a1   : > { %28830 = vmatmul.mubr.msk.f32.gmra.mrb[52].mxu1 %vm449_vm0, %v34795_v56 }
 0x3a2   : > { %28832 = vmatprep.mubr.msk.f32.mxu1 %vm449_vm0, %v7721_v29 }
 0x3a5   : > { %28833 = vmatmul.mubr.msk.f32.gmra.mrb[54].mxu1 %vm449_vm0, %v7722_v38 }
 0x3a6   : > { %28835 = vmatprep.mubr.msk.f32.mxu1 %vm449_vm0, %v7723_v39 }
 0x3a9   : > { %28836 = vmatmul.mubr.msk.f32.gmra.mrb[56].mxu1 %vm449_vm0, %v7724_v45 }
 0x3aa   : > { %28838 = vmatprep.mubr.msk.f32.mxu1 %vm449_vm0, %v7725_v60 }
 0x3ad   : > { %28839 = vmatmul.mubr.msk.f32.gmra.mrb[58].mxu1 %vm449_vm0, %v7726_v14 }
 0x3ae   : > { %28841 = vmatprep.mubr.msk.f32.mxu1 %vm449_vm0, %v7727_v5 }
 0x3b1   : > { %28842 = vmatmul.mubr.msk.f32.gmra.mrb[60].mxu1 %vm449_vm0, %v7728_v62 }
 0x3b2   : > { %28844 = vmatprep.mubr.msk.f32.mxu1 %vm449_vm0, %v7729_v24 }
 0x3b5   : > { %28845 = vmatmul.mubr.msk.f32.gmra.mrb[62].mxu1 %vm449_vm0, %v7730_v2 }
 0x3b6   : > { %28847 = vmatprep.mubr.msk.f32.mxu1 %vm449_vm0, %v7731_v61 }
 0x3b9   : > { %28848 = vmatmul.mubr.msk.f32.gmra.mrb[64].mxu1 %vm449_vm0, %v7732_v63 }
 0x3ba   : > { %28850 = vmatprep.mubr.msk.f32.mxu1 %vm449_vm0, %v7733_v41 }
 0x3bd   : > { %28851 = vmatmul.mubr.msk.f32.gmra.mrb[66].mxu1 %vm449_vm0, %v7734_v22 }
 0x3be   : > { %28853 = vmatprep.mubr.msk.f32.mxu1 %vm449_vm0, %v7735_v43 }
 0x3c1   : > { %28854 = vmatmul.mubr.msk.f32.gmra.mrb[68].mxu1 %vm449_vm0, %v7736_v26 }
 0x3c2   : > { %28856 = vmatprep.mubr.msk.f32.mxu1 %vm449_vm0, %v7737_v37 }
 0x3c5   : > { %28857 = vmatmul.mubr.msk.f32.gmra.mrb[70].mxu1 %vm449_vm0, %v7738_v10 }
 0x3c6   : > { %28867 = vmatprep.mubr.msk.f32.mxu1 %vm449_vm0, %v34732_v42  ;;  %v8719_v42 = vld [vmem:[#allocation2 + $0x8a] sm:$0xff] }
 0x3c9   : > { %28868 = vmatmul.mubr.msk.f32.vlgmr.msra.gmra.mrb[36].mxu1 %vm449_vm0, %v34738_v15  ;;  %v8721_v15 = vld [vmem:[#allocation2 + $0x9a] sm:$0xff] }
 0x3ca   : > { %28870 = vmatprep.mubr.msk.f32.mxu1 %vm449_vm0, %v34742_v28  ;;  %30920 = vmatpush3.bf16.msra.mxu1 %v34736_v59  ;;  %v8720_v59 = vld [vmem:[#allocation2 + $0x92] sm:$0xff]  ;;  %v8722_v28 = vld [vmem:[#allocation2 + $0xa2] sm:$0xff] }
 0x3cb   : > { %30922 = vmatprep.subr.bf16.mxu1 %v30921_v20 }
 0x3cd   : > { %28871 = vmatmul.mubr.msk.f32.gmra.mrb[38].mxu1 %vm449_vm0, %v34747_v18  ;;  %v8723_v18 = vld [vmem:[#allocation2 + $0xaa] sm:$0xff] }
 0x3ce   : > { %28873 = vmatprep.mubr.msk.f32.mxu1 %vm449_vm0, %v34751_v36  ;;  %30924 = vmatpush3.bf16.msra.mxu1 %v30921_v20  ;;  %v8724_v36 = vld [vmem:[#allocation2 + $0xb2] sm:$0xff] }
 0x3cf   : > { %30926 = vmatprep.subr.bf16.mxu1 %v30925_v46  ;;  %v9222_v20 = vld [vmem:[#allocation2 + $0x93] sm:$0xff] }
 0x3d1   : > { %28874 = vmatmul.mubr.msk.f32.gmra.mrb[40].mxu1 %vm449_vm0, %v34755_v51  ;;  %v8725_v51 = vld [vmem:[#allocation2 + $0xba] sm:$0xff] }
 0x3d2   : > { %28876 = vmatprep.mubr.msk.f32.mxu1 %vm449_vm0, %v34759_v50  ;;  %v8726_v50 = vld [vmem:[#allocation2 + $0xc2] sm:$0xff] }
 0x3d5   : > { %28877 = vmatmul.mubr.msk.f32.gmra.mrb[42].mxu1 %vm449_vm0, %v34763_v44  ;;  %v8727_v44 = vld [vmem:[#allocation2 + $0xca] sm:$0xff] }
 0x3d6   : > { %28879 = vmatprep.mubr.msk.f32.mxu1 %vm449_vm0, %v34767_v3  ;;  %v8728_v3 = vld [vmem:[#allocation2 + $0xd2] sm:$0xff] }
 0x3d9   : > { %28880 = vmatmul.mubr.msk.f32.gmra.mrb[44].mxu1 %vm449_vm0, %v34771_v8  ;;  %v8729_v8 = vld [vmem:[#allocation2 + $0xda] sm:$0xff] }
 0x3da   : > { %28882 = vmatprep.mubr.msk.f32.mxu1 %vm449_vm0, %v34775_v47  ;;  %v8730_v47 = vld [vmem:[#allocation2 + $0xe2] sm:$0xff] }
 0x3dd   : > { %28883 = vmatmul.mubr.msk.f32.gmra.mrb[46].mxu1 %vm449_vm0, %v34779_v16  ;;  %v8731_v16 = vld [vmem:[#allocation2 + $0xea] sm:$0xff] }
 0x3de   : > { %28885 = vmatprep.mubr.msk.f32.mxu1 %vm449_vm0, %v34783_v31  ;;  %v8732_v31 = vld [vmem:[#allocation2 + $0xf2] sm:$0xff] }
 0x3e1   : > { %28886 = vmatmul.mubr.msk.f32.gmra.mrb[48].mxu1 %vm449_vm0, %v34787_v53  ;;  %v8733_v53 = vld [vmem:[#allocation2 + $0xfa] sm:$0xff] }
 0x3e2   : > { %28888 = vmatprep.mubr.msk.f32.mxu1 %vm449_vm0, %v34791_v1  ;;  %v8734_v1 = vld [vmem:[#allocation2 + $0x102] sm:$0xff] }
 0x3e5   : > { %28889 = vmatmul.mubr.msk.f32.gmra.mrb[50].mxu1 %vm449_vm0, %v34795_v56  ;;  %v8735_v56 = vld [vmem:[#allocation2 + $0x10a] sm:$0xff] }
 0x3e6   : > { %28891 = vmatprep.mubr.msk.f32.mxu1 %vm449_vm0, %v7721_v29  ;;  %v8736_v29 = vld [vmem:[#allocation2 + $0x112] sm:$0xff] }
 0x3e9   : > { %28892 = vmatmul.mubr.msk.f32.gmra.mrb[52].mxu1 %vm449_vm0, %v7722_v38  ;;  %v8737_v38 = vld [vmem:[#allocation2 + $0x11a] sm:$0xff] }
 0x3ea   : > { %28894 = vmatprep.mubr.msk.f32.mxu1 %vm449_vm0, %v7723_v39  ;;  %v8738_v39 = vld [vmem:[#allocation2 + $0x122] sm:$0xff] }
 0x3ed   : > { %28895 = vmatmul.mubr.msk.f32.gmra.mrb[54].mxu1 %vm449_vm0, %v7724_v45  ;;  %v8739_v45 = vld [vmem:[#allocation2 + $0x12a] sm:$0xff] }
 0x3ee   : > { %28897 = vmatprep.mubr.msk.f32.mxu1 %vm449_vm0, %v7725_v60  ;;  %v8741_v60 = vld [vmem:[#allocation2 + $0x13a] sm:$0xff] }
 0x3f1   : > { %28898 = vmatmul.mubr.msk.f32.gmra.mrb[56].mxu1 %vm449_vm0, %v7726_v14  ;;  %v8740_v14 = vld [vmem:[#allocation2 + $0x132] sm:$0xff] }
 0x3f2   : > { %28900 = vmatprep.mubr.msk.f32.mxu1 %vm449_vm0, %v7727_v5  ;;  %v8742_v5 = vld [vmem:[#allocation2 + $0x142] sm:$0xff] }
 0x3f5   : > { %28901 = vmatmul.mubr.msk.f32.gmra.mrb[58].mxu1 %vm449_vm0, %v7728_v62  ;;  %v9209_v62 = vld [vmem:[#allocation2 + $0x2b] sm:$0xff] }
 0x3f6   : > { %28903 = vmatprep.mubr.msk.f32.mxu1 %vm449_vm0, %v7729_v24  ;;  %v9210_v24 = vld [vmem:[#allocation2 + $0x33] sm:$0xff] }
 0x3f9   : > { %28904 = vmatmul.mubr.msk.f32.gmra.mrb[60].mxu1 %vm449_vm0, %v7730_v2  ;;  %v9211_v2 = vld [vmem:[#allocation2 + $0x3b] sm:$0xff] }
 0x3fa   : > { %28906 = vmatprep.mubr.msk.f32.mxu1 %vm449_vm0, %v7731_v61  ;;  %v9212_v61 = vld [vmem:[#allocation2 + $0x43] sm:$0xff] }
 0x3fd   : > { %28907 = vmatmul.mubr.msk.f32.gmra.mrb[62].mxu1 %vm449_vm0, %v7732_v63  ;;  %v9213_v63 = vld [vmem:[#allocation2 + $0x4b] sm:$0xff] }
 0x3fe   : > { %28909 = vmatprep.mubr.msk.f32.mxu1 %vm449_vm0, %v7733_v41  ;;  %v9214_v41 = vld [vmem:[#allocation2 + $0x53] sm:$0xff] }
 0x401   : > { %28910 = vmatmul.mubr.msk.f32.gmra.mrb[64].mxu1 %vm449_vm0, %v7734_v22  ;;  %v9215_v22 = vld [vmem:[#allocation2 + $0x5b] sm:$0xff] }
 0x402   : > { %28912 = vmatprep.mubr.msk.f32.mxu1 %vm449_vm0, %v7735_v43  ;;  %v9216_v43 = vld [vmem:[#allocation2 + $0x63] sm:$0xff] }
 0x405   : > { %28913 = vmatmul.mubr.msk.f32.gmra.mrb[66].mxu1 %vm449_vm0, %v7736_v26  ;;  %v9217_v26 = vld [vmem:[#allocation2 + $0x6b] sm:$0xff] }
 0x406   : > { %28915 = vmatprep.mubr.msk.f32.mxu1 %vm449_vm0, %v7737_v37  ;;  %v9218_v37 = vld [vmem:[#allocation2 + $0x73] sm:$0xff] }
 0x409   : > { %28916 = vmatmul.mubr.msk.f32.gmra.mrb[68].mxu1 %vm449_vm0, %v7738_v10  ;;  %v9219_v10 = vld [vmem:[#allocation2 + $0x7b] sm:$0xff] }
 0x40a   : > { %28918 = vmatprep.mubr.msk.f32.mxu1 %vm449_vm0, %v8239_v52  ;;  %v9226_v52 = vld [vmem:[#allocation2 + $0xb3] sm:$0xff] }
 0x40d   : > { %28919 = vmatmul.mubr.msk.f32.gmra.mrb[70].mxu1 %vm449_vm0, %v8240_v7  ;;  %v9227_v7 = vld [vmem:[#allocation2 + $0xbb] sm:$0xff] }
 0x40e   : > { %28929 = vmatprep.mubr.msk.f32.mxu1 %vm449_vm0, %v8707_v11  ;;  %v9230_v11 = vld [vmem:[#allocation2 + $0xd3] sm:$0xff] }
 0x411   : > { %28930 = vmatmul.mubr.msk.f32.vlgmr.msra.gmra.mrb[36].mxu1 %vm449_vm0, %v8708_v6  ;;  %v9232_v6 = vld [vmem:[#allocation2 + $0xe3] sm:$0xff] }
 0x412   : > { %28932 = vmatprep.mubr.msk.f32.mxu1 %vm449_vm0, %v8709_v30  ;;  %30928 = vmatpush3.bf16.msra.mxu1 %v30925_v46  ;;  %v9225_v46 = vld [vmem:[#allocation2 + $0xab] sm:$0xff] }
 0x413   : > { %30930 = vmatprep.subr.bf16.mxu1 %v30929_v0  ;;  %v9233_v30 = vld [vmem:[#allocation2 + $0xeb] sm:$0xff] }
 0x415   : > { %28933 = vmatmul.mubr.msk.f32.gmra.mrb[38].mxu1 %vm449_vm0, %v8710_v57  ;;  %v9234_v57 = vld [vmem:[#allocation2 + $0xf3] sm:$0xff] }
 0x416   : > { %28935 = vmatprep.mubr.msk.f32.mxu1 %vm449_vm0, %v8711_v17  ;;  %30932 = vmatpush3.bf16.msra.mxu1 %v30929_v0  ;;  %v9231_v0 = vld [vmem:[#allocation2 + $0xdb] sm:$0xff] }
 0x417   : > { %v9235_v17 = vld [vmem:[#allocation2 + $0xfb] sm:$0xff] }
 0x419   : > { %28936 = vmatmul.mubr.msk.f32.gmra.mrb[40].mxu1 %vm449_vm0, %v8712_v35  ;;  %v9236_v35 = vld [vmem:[#allocation2 + $0x103] sm:$0xff] }
 0x41a   : > { %28938 = vmatprep.mubr.msk.f32.mxu1 %vm449_vm0, %v8713_v54  ;;  %v9237_v54 = vld [vmem:[#allocation2 + $0x10b] sm:$0xff] }
 0x41d   : > { %28939 = vmatmul.mubr.msk.f32.gmra.mrb[42].mxu1 %vm449_vm0, %v8714_v55  ;;  %v9238_v55 = vld [vmem:[#allocation2 + $0x113] sm:$0xff] }
 0x41e   : > { %28941 = vmatprep.mubr.msk.f32.mxu1 %vm449_vm0, %v8715_v40  ;;  %v9239_v40 = vld [vmem:[#allocation2 + $0x11b] sm:$0xff] }
 0x421   : > { %28942 = vmatmul.mubr.msk.f32.gmra.mrb[44].mxu1 %vm449_vm0, %v8716_v32  ;;  %v9944_v32 = vld [vmem:[#allocation2 + $0xd] sm:$0xff] }
 0x422   : > { %28944 = vmatprep.mubr.msk.f32.mxu1 %vm449_vm0, %v8717_v4  ;;  %v25039_v4 = vld [vmem:[%s37701_s2 + $0x260] sm:$0xff]  ;;  %29054 = vmatmul.mubr.msk.f32.vlgmr.msra.gmra.mrb[36].mxu0 %vm449_vm0, %v9944_v32 }
 0x425   : > { %28945 = vmatmul.mubr.msk.f32.gmra.mrb[46].mxu1 %vm449_vm0, %v8718_v34  ;;  %v25040_v34 = vld [vmem:[%s37701_s2 + $0x268] sm:$0xff] }
 0x426   : > { %28947 = vmatprep.mubr.msk.f32.mxu1 %vm449_vm0, %v8719_v42  ;;  %v30941_v42 = vpack.c.bf16 %v25040_v34, %v25039_v4  ;;  %v37848_v4 = vld [vmem:[#allocation17_spill] sm:$0xff] }
 0x428   : > { %30942 = vmatprep.subr.bf16.mxu0 %v30941_v42 }
 0x429   : > { %28948 = vmatmul.mubr.msk.f32.gmra.mrb[48].mxu1 %vm449_vm0, %v8720_v59  ;;  %30944 = vmatpush3.bf16.msra.mxu0 %v30941_v42  ;;  %v25041_v59 = vld [vmem:[%s37701_s2 + $0x270] sm:$0xff] }
 0x42a   : > { %28950 = vmatprep.mubr.msk.f32.mxu1 %vm449_vm0, %v8721_v15  ;;  %v25042_v15 = vld [vmem:[%s37701_s2 + $0x278] sm:$0xff] }
 0x42d   : > { %28951 = vmatmul.mubr.msk.f32.gmra.mrb[50].mxu1 %vm449_vm0, %v8722_v28  ;;  %v30945_v28 = vpack.c.bf16 %v25042_v15, %v25041_v59 }
 0x42e   : > { %28953 = vmatprep.mubr.msk.f32.mxu1 %vm449_vm0, %v8723_v18  ;;  %v25079_v18 = vld [vmem:[%s37701_s2 + $0x280] sm:$0xff] }
 0x42f   : > { %30946 = vmatprep.subr.bf16.mxu0 %v30945_v28 }
 0x430   : > { %30948 = vmatpush3.bf16.msra.mxu0 %v30945_v28 }
 0x431   : > { %28954 = vmatmul.mubr.msk.f32.gmra.mrb[52].mxu1 %vm449_vm0, %v8724_v36  ;;  %v25080_v36 = vld [vmem:[%s37701_s2 + $0x288] sm:$0xff] }
 0x432   : > { %28956 = vmatprep.mubr.msk.f32.mxu1 %vm449_vm0, %v8725_v51  ;;  %v34992_v51 = vpack.c.bf16 %v25080_v36, %v25079_v18 }
 0x434   : > { %30950 = vmatprep.subr.bf16.mxu0 %v34992_v51 }
 0x435   : > { %28957 = vmatmul.mubr.msk.f32.gmra.mrb[54].mxu1 %vm449_vm0, %v8726_v50  ;;  %v34998_v50 = vld [vmem:[%s37702_s3 + $0x1] ss:$0 sm:$0xff] }
 0x436   : > { %28959 = vmatprep.mubr.msk.f32.mxu1 %vm449_vm0, %v8727_v44 }
 0x439   : > { %28960 = vmatmul.mubr.msk.f32.gmra.mrb[56].mxu1 %vm449_vm0, %v8728_v3  ;;  %v35003_v3 = vld [vmem:[%s37703_s4 + $0x1] ss:$0 sm:$0xff] }
 0x43a   : > { %28962 = vmatprep.mubr.msk.f32.mxu1 %vm449_vm0, %v8729_v8 }
 0x43d   : > { %28963 = vmatmul.mubr.msk.f32.gmra.mrb[58].mxu1 %vm449_vm0, %v8730_v47 }
 0x43e   : > { %28965 = vmatprep.mubr.msk.f32.mxu1 %vm449_vm0, %v8731_v16 }
 0x441   : > { %28966 = vmatmul.mubr.msk.f32.gmra.mrb[60].mxu1 %vm449_vm0, %v8732_v31 }
 0x442   : > { %28968 = vmatprep.mubr.msk.f32.mxu1 %vm449_vm0, %v8733_v53 }
 0x445   : > { %28969 = vmatmul.mubr.msk.f32.gmra.mrb[62].mxu1 %vm449_vm0, %v8734_v1 }
 0x446   : > { %28971 = vmatprep.mubr.msk.f32.mxu1 %vm449_vm0, %v8735_v56 }
 0x449   : > { %28972 = vmatmul.mubr.msk.f32.gmra.mrb[64].mxu1 %vm449_vm0, %v8736_v29 }
 0x44a   : > { %28974 = vmatprep.mubr.msk.f32.mxu1 %vm449_vm0, %v8737_v38 }
 0x44d   : > { %28975 = vmatmul.mubr.msk.f32.gmra.mrb[66].mxu1 %vm449_vm0, %v8738_v39 }
 0x44e   : > { %28977 = vmatprep.mubr.msk.f32.mxu1 %vm449_vm0, %v8739_v45 }
 0x451   : > { %28978 = vmatmul.mubr.msk.f32.gmra.mrb[68].mxu1 %vm449_vm0, %v8740_v14 }
 0x452   : > { %28980 = vmatprep.mubr.msk.f32.mxu1 %vm449_vm0, %v8741_v60  ;;  %v37841_v60 = vld [vmem:[#allocation13_spill] sm:$0xff] }
 0x455   : > { %28981 = vmatmul.mubr.msk.f32.gmra.mrb[70].mxu1 %vm449_vm0, %v8742_v5 }
 0x456   : > { %28991 = vmatprep.mubr.msk.f32.mxu1 %vm449_vm0, %v9209_v62  ;;  %v37842_v62 = vld [vmem:[#allocation11_spill] sm:$0xff] }
 0x459   : > { %28992 = vmatmul.mubr.msk.f32.vlgmr.msra.gmra.mrb[36].mxu1 %vm449_vm0, %v9210_v24 }
 0x45a   : > { %28994 = vmatprep.mubr.msk.f32.mxu1 %vm449_vm0, %v9211_v2 }
 0x45d   : > { %28995 = vmatmul.mubr.msk.f32.gmra.mrb[38].mxu1 %vm449_vm0, %v9212_v61 }
 0x45e   : > { %28997 = vmatprep.mubr.msk.f32.mxu1 %vm449_vm0, %v9213_v63 }
 0x461   : > { %28998 = vmatmul.mubr.msk.f32.gmra.mrb[40].mxu1 %vm449_vm0, %v9214_v41 }
 0x462   : > { %29000 = vmatprep.mubr.msk.f32.mxu1 %vm449_vm0, %v9215_v22 }
 0x465   : > { %29001 = vmatmul.mubr.msk.f32.gmra.mrb[42].mxu1 %vm449_vm0, %v9216_v43 }
 0x466   : > { %29003 = vmatprep.mubr.msk.f32.mxu1 %vm449_vm0, %v9217_v26 }
 0x469   : > { %29004 = vmatmul.mubr.msk.f32.gmra.mrb[44].mxu1 %vm449_vm0, %v9218_v37  ;;  %v37843_v37 = vld [vmem:[#allocation12_spill] sm:$0xff] }
 0x46a   : > { %29006 = vmatprep.mubr.msk.f32.mxu1 %vm449_vm0, %v9219_v10 }
 0x46d   : > { %29007 = vmatmul.mubr.msk.f32.gmra.mrb[46].mxu1 %vm449_vm0, %v9220_v21 }
 0x46e   : > { %29009 = vmatprep.mubr.msk.f32.mxu1 %vm449_vm0, %v9221_v19  ;;  %v37844_v19 = vld [vmem:[#allocation10_spill] sm:$0xff] }
 0x471   : > { %29010 = vmatmul.mubr.msk.f32.gmra.mrb[48].mxu1 %vm449_vm0, %v9222_v20 }
 0x472   : > { %29012 = vmatprep.mubr.msk.f32.mxu1 %vm449_vm0, %v9223_v27 }
 0x475   : > { %29013 = vmatmul.mubr.msk.f32.gmra.mrb[50].mxu1 %vm449_vm0, %v9224_v33 }
 0x476   : > { %29015 = vmatprep.mubr.msk.f32.mxu1 %vm449_vm0, %v9225_v46 }
 0x479   : > { %29016 = vmatmul.mubr.msk.f32.gmra.mrb[52].mxu1 %vm449_vm0, %v9226_v52 }
 0x47a   : > { %29018 = vmatprep.mubr.msk.f32.mxu1 %vm449_vm0, %v9227_v7 }
 0x47d   : > { %29019 = vmatmul.mubr.msk.f32.gmra.mrb[54].mxu1 %vm449_vm0, %v9228_v48 }
 0x47e   : > { %29021 = vmatprep.mubr.msk.f32.mxu1 %vm449_vm0, %v9229_v58 }
 0x481   : > { %29022 = vmatmul.mubr.msk.f32.gmra.mrb[56].mxu1 %vm449_vm0, %v9230_v11  ;;  %v37845_v11 = vld [vmem:[#allocation14_spill] sm:$0xff] }
 0x482   : > { %29024 = vmatprep.mubr.msk.f32.mxu1 %vm449_vm0, %v9231_v0 }
 0x485   : > { %29025 = vmatmul.mubr.msk.f32.gmra.mrb[58].mxu1 %vm449_vm0, %v9232_v6 }
 0x486   : > { %29027 = vmatprep.mubr.msk.f32.mxu1 %vm449_vm0, %v9233_v30  ;;  %v37846_v30 = vld [vmem:[#allocation15_spill] sm:$0xff] }
 0x489   : > { %29028 = vmatmul.mubr.msk.f32.gmra.mrb[60].mxu1 %vm449_vm0, %v9234_v57 }
 0x48a   : > { %29030 = vmatprep.mubr.msk.f32.mxu1 %vm449_vm0, %v9235_v17 }
 0x48d   : > { %29031 = vmatmul.mubr.msk.f32.gmra.mrb[62].mxu1 %vm449_vm0, %v9236_v35 }
 0x48e   : > { %29033 = vmatprep.mubr.msk.f32.mxu1 %vm449_vm0, %v9237_v54 }
 0x491   : > { %29034 = vmatmul.mubr.msk.f32.gmra.mrb[64].mxu1 %vm449_vm0, %v9238_v55 }
 0x492   : > { %29036 = vmatprep.mubr.msk.f32.mxu1 %vm449_vm0, %v9239_v40 }
 0x495   : > { %29037 = vmatmul.mubr.msk.f32.gmra.mrb[66].mxu1 %vm449_vm0, %v9240_v12 }
 0x496   : > { %29039 = vmatprep.mubr.msk.f32.mxu1 %vm449_vm0, %v9241_v13 }
 0x499   : > { %29040 = vmatmul.mubr.msk.f32.gmra.mrb[68].mxu1 %vm449_vm0, %v9242_v49 }
 0x49a   : > { %29042 = vmatprep.mubr.msk.f32.mxu1 %vm449_vm0, %v9243_v25 }
 0x49d   : > { %29043 = vmatmul.mubr.msk.f32.gmra.mrb[70].mxu1 %vm449_vm0, %v9244_v9  ;;  %v37847_v9 = vld [vmem:[#allocation16_spill] sm:$0xff] }
 0x52c   : > { %v28993_v44 = vpop.f32.mrb[36].mxu1 }
 0x52d   : > { %v9756_v8 = vmul.f32 %v28993_v44, %v34998_v50  ;;  %v9424_v47 = vpop.f32.mrb[37].mxu1 }
 0x52e   : > { %v9755_v16 = vmul.f32 %v34998_v50, %v9424_v47 }
 0x52f   : > { %v9800_v31 = vadd.f32 %v35003_v3, %v9756_v8 }
 0x530   : > { %v9799_v53 = vadd.f32 %v35003_v3, %v9755_v16  ;;  %v28996_v1 = vpop.f32.mrb[38].mxu1  ;;  %v37849_v16 = vld [vmem:[#allocation18_spill] sm:$0xff] }
 0x531   : > { %v9836_v56 = vmax.f32 %v9800_v31, 0.0  ;;  %v9758_v29 = vmul.f32 %v28996_v1, %v34998_v50  ;;  %v9434_v38 = vpop.f32.mrb[39].mxu1  ;;  %v37850_v1 = vld [vmem:[#allocation19_spill] sm:$0xff] }
 0x532   : > { %v9835_v39 = vmax.f32 %v9799_v53, 0.0  ;;  %v9757_v45 = vmul.f32 %v34998_v50, %v9434_v38 }
 0x533   : > { %v9872_v14 = vmul.f32 %v9836_v56, %v37841_v60  ;;  %v9802_v5 = vadd.f32 %v35003_v3, %v9758_v29  ;;  %v25161_v60 = vld [vmem:[%s37701_s2 + $0x2d0] sm:$0xff] }
 0x534   : > { %v9871_v24 = vmul.f32 %v9835_v39, %v37842_v62  ;;  %v9801_v2 = vadd.f32 %v35003_v3, %v9757_v45  ;;  %v28999_v61 = vpop.f32.mrb[40].mxu1 }
 0x535   : > { %9908 = vst [vmem:[#allocation2 + $0x20] sm:$0xff] %v9872_v14  ;;  %v9838_v63 = vmax.f32 %v9802_v5, 0.0  ;;  %v9760_v41 = vmul.f32 %v28999_v61, %v34998_v50  ;;  %v9444_v22 = vpop.f32.mrb[41].mxu1 }
 0x536   : > { %9907 = vst [vmem:[#allocation2 + $0x18] sm:$0xff] %v9871_v24  ;;  %v9837_v43 = vmax.f32 %v9801_v2, 0.0  ;;  %v9759_v26 = vmul.f32 %v34998_v50, %v9444_v22 }
 0x537   : > { %v9874_v10 = vmul.f32 %v9838_v63, %v37843_v37  ;;  %v9804_v21 = vadd.f32 %v35003_v3, %v9760_v41  ;;  %v37851_v63 = vld [vmem:[#allocation20_spill] sm:$0xff] }
 0x538   : > { %v9873_v20 = vmul.f32 %v9837_v43, %v37844_v19  ;;  %v9803_v27 = vadd.f32 %v35003_v3, %v9759_v26  ;;  %v29002_v33 = vpop.f32.mrb[42].mxu1  ;;  %v37852_v43 = vld [vmem:[#allocation21_spill] sm:$0xff] }
 0x539   : > { %9910 = vst [vmem:[#allocation2 + $0x30] sm:$0xff] %v9874_v10  ;;  %v9840_v46 = vmax.f32 %v9804_v21, 0.0  ;;  %v9762_v52 = vmul.f32 %v29002_v33, %v34998_v50  ;;  %v9454_v7 = vpop.f32.mrb[43].mxu1 }
 0x53a   : > { %9909 = vst [vmem:[#allocation2 + $0x28] sm:$0xff] %v9873_v20  ;;  %v9839_v48 = vmax.f32 %v9803_v27, 0.0  ;;  %v9761_v58 = vmul.f32 %v34998_v50, %v9454_v7 }
 0x53b   : > { %v9876_v0 = vmul.f32 %v9840_v46, %v37845_v11  ;;  %v9806_v6 = vadd.f32 %v35003_v3, %v9762_v52 }
 0x53c   : > { %v9875_v57 = vmul.f32 %v9839_v48, %v37846_v30  ;;  %v9805_v17 = vadd.f32 %v35003_v3, %v9761_v58  ;;  %v29005_v35 = vpop.f32.mrb[44].mxu1  ;;  %v37853_v58 = vld [vmem:[#allocation22_spill] sm:$0xff] }
 0x53d   : > { %9912 = vst [vmem:[#allocation2 + $0x40] sm:$0xff] %v9876_v0  ;;  %v9842_v54 = vmax.f32 %v9806_v6, 0.0  ;;  %v9764_v55 = vmul.f32 %v29005_v35, %v34998_v50  ;;  %v9464_v40 = vpop.f32.mrb[45].mxu1  ;;  %v9945_v12 = vld [vmem:[#allocation2 + $0x15] sm:$0xff]  ;;  %v9946_v13 = vld [vmem:[#allocation2 + $0x1d] sm:$0xff] }
 0x53e   : > { %9911 = vst [vmem:[#allocation2 + $0x38] sm:$0xff] %v9875_v57  ;;  %v9841_v25 = vmax.f32 %v9805_v17, 0.0  ;;  %v9763_v49 = vmul.f32 %v34998_v50, %v9464_v40  ;;  %29056 = vmatprep.mubr.msk.f32.mxu0 %vm449_vm0, %v9945_v12  ;;  %v37854_v57 = vld [vmem:[#allocation23_spill] sm:$0xff] }
 0x53f   : > { %v9878_v23 = vmul.f32 %v9842_v54, %v37847_v9  ;;  %v9808_v32 = vadd.f32 %v35003_v3, %v9764_v55  ;;  %29057 = vmatmul.mubr.msk.f32.gmra.mrb[38].mxu0 %vm449_vm0, %v9946_v13 }
 0x540   : > { %v9877_v34 = vmul.f32 %v9841_v25, %v37848_v4  ;;  %v9807_v42 = vadd.f32 %v35003_v3, %v9763_v49  ;;  %v29008_v59 = vpop.f32.mrb[46].mxu1 }
 0x541   : > { %9914 = vst [vmem:[#allocation2 + $0x50] sm:$0xff] %v9878_v23  ;;  %v9844_v15 = vmax.f32 %v9808_v32, 0.0  ;;  %v9766_v28 = vmul.f32 %v29008_v59, %v34998_v50  ;;  %v9474_v18 = vpop.f32.mrb[47].mxu1  ;;  %v9947_v36 = vld [vmem:[#allocation2 + $0x25] sm:$0xff]  ;;  %v9948_v44 = vld [vmem:[#allocation2 + $0x2d] sm:$0xff] }
 0x542   : > { %9913 = vst [vmem:[#allocation2 + $0x48] sm:$0xff] %v9877_v34  ;;  %v9843_v8 = vmax.f32 %v9807_v42, 0.0  ;;  %v9765_v47 = vmul.f32 %v34998_v50, %v9474_v18  ;;  %29059 = vmatprep.mubr.msk.f32.mxu0 %vm449_vm0, %v9947_v36  ;;  %v37855_v32 = vld [vmem:[#allocation24_spill] sm:$0xff]  ;;  %v37856_v59 = vld [vmem:[#allocation25_spill] sm:$0xff] }
 0x543   : > { %v35039_v31 = vmul.f32 %v9844_v15, %v37849_v16  ;;  %v9810_v53 = vadd.f32 %v35003_v3, %v9766_v28  ;;  %29060 = vmatmul.mubr.msk.f32.gmra.mrb[40].mxu0 %vm449_vm0, %v9948_v44 }
 0x544   : > { %v35044_v56 = vmul.f32 %v9843_v8, %v37850_v1  ;;  %v9809_v29 = vadd.f32 %v35003_v3, %v9765_v47  ;;  %v29011_v38 = vpop.f32.mrb[48].mxu1 }
 0x545   : > { %9916 = vst [vmem:[#allocation2 + $0x60] sm:$0xff] %v35039_v31  ;;  %v9846_v39 = vmax.f32 %v9810_v53, 0.0  ;;  %v9768_v45 = vmul.f32 %v29011_v38, %v34998_v50  ;;  %v9484_v14 = vpop.f32.mrb[49].mxu1  ;;  %v9949_v5 = vld [vmem:[#allocation2 + $0x35] sm:$0xff]  ;;  %v9950_v24 = vld [vmem:[#allocation2 + $0x3d] sm:$0xff] }
 0x546   : > { %9915 = vst [vmem:[#allocation2 + $0x58] sm:$0xff] %v35044_v56  ;;  %v9845_v2 = vmax.f32 %v9809_v29, 0.0  ;;  %v9767_v61 = vmul.f32 %v34998_v50, %v9484_v14  ;;  %29062 = vmatprep.mubr.msk.f32.mxu0 %vm449_vm0, %v9949_v5  ;;  %v37858_v5 = vld [vmem:[#allocation27_spill] sm:$0xff] }
 0x547   : > { %v35053_v41 = vmul.f32 %v9846_v39, %v37851_v63  ;;  %v9812_v22 = vadd.f32 %v35003_v3, %v9768_v45  ;;  %29063 = vmatmul.mubr.msk.f32.gmra.mrb[42].mxu0 %vm449_vm0, %v9950_v24  ;;  %v37857_v39 = vld [vmem:[#allocation26_spill] sm:$0xff] }
 0x548   : > { %v35058_v26 = vmul.f32 %v9845_v2, %v37852_v43  ;;  %v9811_v10 = vadd.f32 %v35003_v3, %v9767_v61  ;;  %v29014_v21 = vpop.f32.mrb[50].mxu1 }
 0x549   : > { %9918 = vst [vmem:[#allocation2 + $0x70] sm:$0xff] %v35053_v41  ;;  %v9848_v20 = vmax.f32 %v9812_v22, 0.0  ;;  %v9770_v27 = vmul.f32 %v29014_v21, %v34998_v50  ;;  %v9494_v33 = vpop.f32.mrb[51].mxu1  ;;  %v9951_v46 = vld [vmem:[#allocation2 + $0x45] sm:$0xff]  ;;  %v9952_v52 = vld [vmem:[#allocation2 + $0x4d] sm:$0xff] }
 0x54a   : > { %9917 = vst [vmem:[#allocation2 + $0x68] sm:$0xff] %v35058_v26  ;;  %v9847_v7 = vmax.f32 %v9811_v10, 0.0  ;;  %v9769_v48 = vmul.f32 %v34998_v50, %v9494_v33  ;;  %29065 = vmatprep.mubr.msk.f32.mxu0 %vm449_vm0, %v9951_v46 }
 0x54b   : > { %v35067_v0 = vmul.f32 %v9848_v20, %v37853_v58  ;;  %v9814_v6 = vadd.f32 %v35003_v3, %v9770_v27  ;;  %29066 = vmatmul.mubr.msk.f32.gmra.mrb[44].mxu0 %vm449_vm0, %v9952_v52  ;;  %v37859_v52 = vld [vmem:[#allocation28_spill] sm:$0xff] }
 0x54c   : > { %v35072_v17 = vmul.f32 %v9847_v7, %v37854_v57  ;;  %v9813_v35 = vadd.f32 %v35003_v3, %v9769_v48  ;;  %v29017_v54 = vpop.f32.mrb[52].mxu1 }
 0x54d   : > { %9920 = vst [vmem:[#allocation2 + $0x80] sm:$0xff] %v35067_v0  ;;  %v9850_v55 = vmax.f32 %v9814_v6, 0.0  ;;  %v9772_v40 = vmul.f32 %v29017_v54, %v34998_v50  ;;  %v9504_v12 = vpop.f32.mrb[53].mxu1  ;;  %v9953_v13 = vld [vmem:[#allocation2 + $0x55] sm:$0xff]  ;;  %v9954_v25 = vld [vmem:[#allocation2 + $0x5d] sm:$0xff]  ;;  %v37860_v6 = vld [vmem:[#allocation29_spill] sm:$0xff] }
 0x54e   : > { %9919 = vst [vmem:[#allocation2 + $0x78] sm:$0xff] %v35072_v17  ;;  %v9849_v49 = vmax.f32 %v9813_v35, 0.0  ;;  %v9771_v23 = vmul.f32 %v34998_v50, %v9504_v12  ;;  %29068 = vmatprep.mubr.msk.f32.mxu0 %vm449_vm0, %v9953_v13 }
 0x54f   : > { %v35081_v34 = vmul.f32 %v9850_v55, %v37855_v32  ;;  %v9816_v42 = vadd.f32 %v35003_v3, %v9772_v40  ;;  %29069 = vmatmul.mubr.msk.f32.gmra.mrb[46].mxu0 %vm449_vm0, %v9954_v25 }
 0x550   : > { %v35086_v15 = vmul.f32 %v9849_v49, %v37856_v59  ;;  %v9815_v28 = vadd.f32 %v35003_v3, %v9771_v23  ;;  %v29020_v18 = vpop.f32.mrb[54].mxu1 }
 0x551   : > { %9922 = vst [vmem:[#allocation2 + $0x90] sm:$0xff] %v35081_v34  ;;  %v9852_v36 = vmax.f32 %v9816_v42, 0.0  ;;  %v9774_v44 = vmul.f32 %v29020_v18, %v34998_v50  ;;  %v9514_v8 = vpop.f32.mrb[55].mxu1  ;;  %v9955_v47 = vld [vmem:[#allocation2 + $0x65] sm:$0xff]  ;;  %v9956_v53 = vld [vmem:[#allocation2 + $0x6d] sm:$0xff] }
 0x552   : > { %9921 = vst [vmem:[#allocation2 + $0x88] sm:$0xff] %v35086_v15  ;;  %v9851_v29 = vmax.f32 %v9815_v28, 0.0  ;;  %v9773_v38 = vmul.f32 %v34998_v50, %v9514_v8  ;;  %29071 = vmatprep.mubr.msk.f32.mxu0 %vm449_vm0, %v9955_v47  ;;  %v37861_v28 = vld [vmem:[#allocation30_spill] sm:$0xff] }
 0x553   : > { %v35095_v45 = vmul.f32 %v9852_v36, %v37857_v39  ;;  %v9818_v14 = vadd.f32 %v35003_v3, %v9774_v44  ;;  %29072 = vmatmul.mubr.msk.f32.gmra.mrb[48].mxu0 %vm449_vm0, %v9956_v53  ;;  %v37862_v44 = vld [vmem:[#allocation31_spill] sm:$0xff] }
 0x554   : > { %v35100_v24 = vmul.f32 %v9851_v29, %v37858_v5  ;;  %v9817_v2 = vadd.f32 %v35003_v3, %v9773_v38  ;;  %v29023_v61 = vpop.f32.mrb[56].mxu1 }
 0x555   : > { %9924 = vst [vmem:[#allocation2 + $0xa0] sm:$0xff] %v35095_v45  ;;  %v9854_v22 = vmax.f32 %v9818_v14, 0.0  ;;  %v9776_v10 = vmul.f32 %v29023_v61, %v34998_v50  ;;  %v9524_v21 = vpop.f32.mrb[57].mxu1  ;;  %v9957_v20 = vld [vmem:[#allocation2 + $0x75] sm:$0xff]  ;;  %v9958_v27 = vld [vmem:[#allocation2 + $0x7d] sm:$0xff] }
 0x556   : > { %9923 = vst [vmem:[#allocation2 + $0x98] sm:$0xff] %v35100_v24  ;;  %v9853_v33 = vmax.f32 %v9817_v2, 0.0  ;;  %v9775_v46 = vmul.f32 %v34998_v50, %v9524_v21  ;;  %29074 = vmatprep.mubr.msk.f32.mxu0 %vm449_vm0, %v9957_v20  ;;  %v37863_v21 = vld [vmem:[#allocation32_spill] sm:$0xff] }
 0x557   : > { %v35109_v7 = vmul.f32 %v9854_v22, %v37859_v52  ;;  %v9820_v48 = vadd.f32 %v35003_v3, %v9776_v10  ;;  %29075 = vmatmul.mubr.msk.f32.gmra.mrb[50].mxu0 %vm449_vm0, %v9958_v27 }
 0x558   : > { %v35114_v35 = vmul.f32 %v9853_v33, %v37860_v6  ;;  %v9819_v54 = vadd.f32 %v35003_v3, %v9775_v46  ;;  %v29026_v55 = vpop.f32.mrb[58].mxu1  ;;  %v37864_v33 = vld [vmem:[#allocation33_spill] sm:$0xff] }
 0x559   : > { %9926 = vst [vmem:[#allocation2 + $0xb0] sm:$0xff] %v35109_v7  ;;  %v9856_v40 = vmax.f32 %v9820_v48, 0.0  ;;  %v9778_v12 = vmul.f32 %v29026_v55, %v34998_v50  ;;  %v9534_v13 = vpop.f32.mrb[59].mxu1  ;;  %v9959_v25 = vld [vmem:[#allocation2 + $0x85] sm:$0xff]  ;;  %v9960_v49 = vld [vmem:[#allocation2 + $0x8d] sm:$0xff] }
 0x55a   : > { %9925 = vst [vmem:[#allocation2 + $0xa8] sm:$0xff] %v35114_v35  ;;  %v9855_v23 = vmax.f32 %v9819_v54, 0.0  ;;  %v9777_v42 = vmul.f32 %v34998_v50, %v9534_v13  ;;  %29077 = vmatprep.mubr.msk.f32.mxu0 %vm449_vm0, %v9959_v25  ;;  %v35361_v6 = vld [vmem:[#allocation2 + $0x8f] sm:$0xff] }
 0x55b   : > { %v35123_v18 = vmul.f32 %v9856_v40, %v37861_v28  ;;  %v9822_v36 = vadd.f32 %v35003_v3, %v9778_v12  ;;  %29078 = vmatmul.mubr.msk.f32.gmra.mrb[52].mxu0 %vm449_vm0, %v9960_v49  ;;  %v35357_v28 = vld [vmem:[#allocation2 + $0x87] sm:$0xff] }
 0x55c   : > { %v35128_v8 = vmul.f32 %v9855_v23, %v37862_v44  ;;  %v9821_v47 = vadd.f32 %v35003_v3, %v9777_v42  ;;  %v29029_v53 = vpop.f32.mrb[60].mxu1  ;;  %v37865_v42 = vld [vmem:[#allocation34_spill] sm:$0xff] }
 0x55d   : > { %9928 = vst [vmem:[#allocation2 + $0xc0] sm:$0xff] %v35123_v18  ;;  %v9858_v29 = vmax.f32 %v9822_v36, 0.0  ;;  %v9780_v38 = vmul.f32 %v29029_v53, %v34998_v50  ;;  %v9544_v14 = vpop.f32.mrb[61].mxu1  ;;  %v9961_v2 = vld [vmem:[#allocation2 + $0x95] sm:$0xff]  ;;  %v9962_v61 = vld [vmem:[#allocation2 + $0x9d] sm:$0xff] }
 0x55e   : > { %9927 = vst [vmem:[#allocation2 + $0xb8] sm:$0xff] %v35128_v8  ;;  %v9857_v22 = vmax.f32 %v9821_v47, 0.0  ;;  %v9779_v10 = vmul.f32 %v34998_v50, %v9544_v14  ;;  %29080 = vmatprep.mubr.msk.f32.mxu0 %vm449_vm0, %v9961_v2  ;;  %v37866_v53 = vld [vmem:[#allocation35_spill] sm:$0xff] }
 0x55f   : > { %v35137_v20 = vmul.f32 %v9858_v29, %v37863_v21  ;;  %v9824_v27 = vadd.f32 %v35003_v3, %v9780_v38  ;;  %29081 = vmatmul.mubr.msk.f32.gmra.mrb[54].mxu0 %vm449_vm0, %v9962_v61  ;;  %v10893_v52 = vld [vmem:[#allocation2 + $0x97] sm:$0xff]  ;;  %v10894_v5 = vld [vmem:[#allocation2 + $0x9f] sm:$0xff] }
 0x560   : > { %v35142_v46 = vmul.f32 %v9857_v22, %v37864_v33  ;;  %v9823_v48 = vadd.f32 %v35003_v3, %v9779_v10  ;;  %v29032_v54 = vpop.f32.mrb[62].mxu1 }
 0x561   : > { %9930 = vst [vmem:[#allocation2 + $0xd0] sm:$0xff] %v35137_v20  ;;  %v9860_v55 = vmax.f32 %v9824_v27, 0.0  ;;  %v9782_v40 = vmul.f32 %v29032_v54, %v34998_v50  ;;  %v9554_v12 = vpop.f32.mrb[63].mxu1  ;;  %v9963_v13 = vld [vmem:[#allocation2 + $0xa5] sm:$0xff]  ;;  %v9964_v25 = vld [vmem:[#allocation2 + $0xad] sm:$0xff] }
 0x562   : > { %9929 = vst [vmem:[#allocation2 + $0xc8] sm:$0xff] %v35142_v46  ;;  %v9859_v49 = vmax.f32 %v9823_v48, 0.0  ;;  %v9781_v23 = vmul.f32 %v34998_v50, %v9554_v12  ;;  %29083 = vmatprep.mubr.msk.f32.mxu0 %vm449_vm0, %v9963_v13  ;;  %v37868_v13 = vld [vmem:[#allocation37_spill] sm:$0xff] }
 0x563   : > { %v35151_v36 = vmul.f32 %v9860_v55, %v37865_v42  ;;  %v9826_v47 = vadd.f32 %v35003_v3, %v9782_v40  ;;  %29084 = vmatmul.mubr.msk.f32.gmra.mrb[56].mxu0 %vm449_vm0, %v9964_v25  ;;  %v37867_v55 = vld [vmem:[#allocation36_spill] sm:$0xff]  ;;  %v10896_v59 = vld [vmem:[#allocation2 + $0xaf] sm:$0xff] }
 0x564   : > { %v35156_v29 = vmul.f32 %v9859_v49, %v37866_v53  ;;  %v9825_v38 = vadd.f32 %v35003_v3, %v9781_v23  ;;  %v29035_v14 = vpop.f32.mrb[64].mxu1  ;;  %v10895_v39 = vld [vmem:[#allocation2 + $0xa7] sm:$0xff] }
 0x565   : > { %9932 = vst [vmem:[#allocation2 + $0xe0] sm:$0xff] %v35151_v36  ;;  %v9862_v2 = vmax.f32 %v9826_v47, 0.0  ;;  %v9784_v61 = vmul.f32 %v29035_v14, %v34998_v50  ;;  %v9564_v22 = vpop.f32.mrb[65].mxu1  ;;  %v9965_v10 = vld [vmem:[#allocation2 + $0xb5] sm:$0xff]  ;;  %v9966_v27 = vld [vmem:[#allocation2 + $0xbd] sm:$0xff] }
 0x566   : > { %9931 = vst [vmem:[#allocation2 + $0xd8] sm:$0xff] %v35156_v29  ;;  %v9861_v48 = vmax.f32 %v9825_v38, 0.0  ;;  %v9783_v54 = vmul.f32 %v34998_v50, %v9564_v22  ;;  %29086 = vmatprep.mubr.msk.f32.mxu0 %vm449_vm0, %v9965_v10  ;;  %v10897_v32 = vld [vmem:[#allocation2 + $0xb7] sm:$0xff]  ;;  %v10898_v57 = vld [vmem:[#allocation2 + $0xbf] sm:$0xff] }
 0x567   : > { %v35165_v40 = vmul.f32 %v9862_v2, %v37867_v55  ;;  %v9828_v12 = vadd.f32 %v35003_v3, %v9784_v61  ;;  %29087 = vmatmul.mubr.msk.f32.gmra.mrb[58].mxu0 %vm449_vm0, %v9966_v27  ;;  %v37869_v27 = vld [vmem:[#allocation38_spill] sm:$0xff] }
 0x568   : > { %v35170_v25 = vmul.f32 %v9861_v48, %v37868_v13  ;;  %v9827_v49 = vadd.f32 %v35003_v3, %v9783_v54  ;;  %v29038_v23 = vpop.f32.mrb[66].mxu1 }
 0x569   : > { %9934 = vst [vmem:[#allocation2 + $0xf0] sm:$0xff] %v35165_v40  ;;  %v9864_v47 = vmax.f32 %v9828_v12, 0.0  ;;  %v9786_v38 = vmul.f32 %v29038_v23, %v34998_v50  ;;  %v9574_v14 = vpop.f32.mrb[67].mxu1  ;;  %v9967_v22 = vld [vmem:[#allocation2 + $0xc5] sm:$0xff]  ;;  %v9968_v10 = vld [vmem:[#allocation2 + $0xcd] sm:$0xff]  ;;  %v37870_v12 = vld [vmem:[#allocation39_spill] sm:$0xff] }
 0x56a   : > { %9933 = vst [vmem:[#allocation2 + $0xe8] sm:$0xff] %v35170_v25  ;;  %v9863_v2 = vmax.f32 %v9827_v49, 0.0  ;;  %v9785_v61 = vmul.f32 %v34998_v50, %v9574_v14  ;;  %29089 = vmatprep.mubr.msk.f32.mxu0 %vm449_vm0, %v9967_v22  ;;  %v10899_v58 = vld [vmem:[#allocation2 + $0xc7] sm:$0xff]  ;;  %v10900_v43 = vld [vmem:[#allocation2 + $0xcf] sm:$0xff] }
 0x56b   : > { %v35179_v48 = vmul.f32 %v9864_v47, %v37869_v27  ;;  %v9830_v54 = vadd.f32 %v35003_v3, %v9786_v38  ;;  %29090 = vmatmul.mubr.msk.f32.gmra.mrb[60].mxu0 %vm449_vm0, %v9968_v10  ;;  %v37871_v10 = vld [vmem:[#allocation40_spill] sm:$0xff] }
 0x56c   : > { %v35184_v13 = vmul.f32 %v9863_v2, %v37870_v12  ;;  %v9829_v23 = vadd.f32 %v35003_v3, %v9785_v61  ;;  %v29041_v55 = vpop.f32.mrb[68].mxu1 }
 0x56d   : > { %9936 = vst [vmem:[#allocation2 + $0x100] sm:$0xff] %v35179_v48  ;;  %v9866_v49 = vmax.f32 %v9830_v54, 0.0  ;;  %v9788_v14 = vmul.f32 %v29041_v55, %v34998_v50  ;;  %v9584_v53 = vpop.f32.mrb[69].mxu1  ;;  %v9969_v22 = vld [vmem:[#allocation2 + $0xd5] sm:$0xff]  ;;  %v9970_v42 = vld [vmem:[#allocation2 + $0xdd] sm:$0xff]  ;;  %v37873_v54 = vld [vmem:[#allocation41_spill] sm:$0xff] }
 0x56e   : > { %9935 = vst [vmem:[#allocation2 + $0xf8] sm:$0xff] %v35184_v13  ;;  %v9865_v47 = vmax.f32 %v9829_v23, 0.0  ;;  %v9787_v38 = vmul.f32 %v34998_v50, %v9584_v53  ;;  %29092 = vmatprep.mubr.msk.f32.mxu0 %vm449_vm0, %v9969_v22  ;;  %v10901_v63 = vld [vmem:[#allocation2 + $0xd7] sm:$0xff]  ;;  %v10902_v1 = vld [vmem:[#allocation2 + $0xdf] sm:$0xff] }
 0x56f   : > { %v35193_v2 = vmul.f32 %v9866_v49, %v37871_v10  ;;  %v9832_v61 = vadd.f32 %v35003_v3, %v9788_v14  ;;  %29093 = vmatmul.mubr.msk.f32.gmra.mrb[62].mxu0 %vm449_vm0, %v9970_v42  ;;  %v37874_v42 = vld [vmem:[#allocation42_spill] sm:$0xff] }
 0x570   : > { %v35198_v12 = vmul.f32 %v9865_v47, %v37873_v54  ;;  %v9831_v55 = vadd.f32 %v35003_v3, %v9787_v38  ;;  %v29044_v27 = vpop.f32.mrb[70].mxu1 }
 0x571   : > { %37872 = vst [vmem:[#allocation46_spill] sm:$0xff] %v35193_v2  ;;  %9938 = vst [vmem:[#allocation2 + $0x110] sm:$0xff] %v35193_v2  ;;  %v9868_v23 = vmax.f32 %v9832_v61, 0.0  ;;  %v9790_v53 = vmul.f32 %v29044_v27, %v34998_v50  ;;  %v9594_v33 = vpop.f32.mrb[71].mxu1  ;;  %v9971_v22 = vld [vmem:[#allocation2 + $0xe5] sm:$0xff]  ;;  %v9972_v21 = vld [vmem:[#allocation2 + $0xed] sm:$0xff] }
 0x572   : > { %9937 = vst [vmem:[#allocation2 + $0x108] sm:$0xff] %v35198_v12  ;;  %v9867_v49 = vmax.f32 %v9831_v55, 0.0  ;;  %v9789_v14 = vmul.f32 %v34998_v50, %v9594_v33  ;;  %29095 = vmatprep.mubr.msk.f32.mxu0 %vm449_vm0, %v9971_v22  ;;  %v37876_v61 = vld [vmem:[#allocation43_spill] sm:$0xff]  ;;  %v37878_v33 = vld [vmem:[#allocation44_spill] sm:$0xff]  ;;  %v10904_v4 = vld [vmem:[#allocation2 + $0xef] sm:$0xff] }
 0x573   : > { %v35207_v47 = vmul.f32 %v9868_v23, %v37874_v42  ;;  %v9834_v38 = vadd.f32 %v35003_v3, %v9790_v53  ;;  %29096 = vmatmul.mubr.msk.f32.gmra.mrb[64].mxu0 %vm449_vm0, %v9972_v21  ;;  %v37880_v21 = vld [vmem:[#allocation45_spill] sm:$0xff]  ;;  %v35353_v42 = vld [vmem:[#allocation2 + $0x7f] sm:$0xff] }
 0x574   : > { %v35212_v54 = vmul.f32 %v9867_v49, %v37876_v61  ;;  %v9833_v27 = vadd.f32 %v35003_v3, %v9789_v14  ;;  %v35349_v61 = vld [vmem:[#allocation2 + $0x77] sm:$0xff]  ;;  %v10903_v16 = vld [vmem:[#allocation2 + $0xe7] sm:$0xff] }
 0x575   : > { %37875 = vst [vmem:[#allocation47_spill] sm:$0xff] %v35207_v47  ;;  %9940 = vst [vmem:[#allocation2 + $0x120] sm:$0xff] %v35207_v47  ;;  %v9870_v10 = vmax.f32 %v9834_v38, 0.0  ;;  %v9973_v55 = vld [vmem:[#allocation2 + $0xf5] sm:$0xff]  ;;  %v9974_v44 = vld [vmem:[#allocation2 + $0xfd] sm:$0xff] }
 0x576   : > { %37877 = vst [vmem:[#allocation48_spill] sm:$0xff] %v35212_v54  ;;  %9939 = vst [vmem:[#allocation2 + $0x118] sm:$0xff] %v35212_v54  ;;  %v9869_v50 = vmax.f32 %v9833_v27, 0.0  ;;  %29098 = vmatprep.mubr.msk.f32.mxu0 %vm449_vm0, %v9973_v55  ;;  %v10373_v38 = vld [vmem:[#allocation2 + $0x6] sm:$0xff]  ;;  %v10374_v27 = vld [vmem:[#allocation2 + $0xe] sm:$0xff] }
 0x577   : > { %v35219_v23 = vmul.f32 %v9870_v10, %v37878_v33  ;;  %29099 = vmatmul.mubr.msk.f32.gmra.mrb[66].mxu0 %vm449_vm0, %v9974_v44  ;;  %v25081_v44 = vld [vmem:[%s37701_s2 + $0x290] sm:$0xff]  ;;  %v25082_v10 = vld [vmem:[%s37701_s2 + $0x298] sm:$0xff]  ;;  %v25199_v47 = vld [vmem:[%s37701_s2 + $0x2e0] sm:$0xff] }
 0x578   : > { %v35223_v53 = vmul.f32 %v9869_v50, %v37880_v21  ;;  %v30953_v55 = vpack.c.bf16 %v25082_v10, %v25081_v44  ;;  %v25119_v50 = vld [vmem:[%s37701_s2 + $0x2a0] sm:$0xff]  ;;  %v10378_v44 = vld [vmem:[#allocation2 + $0x2e] sm:$0xff]  ;;  %v10379_v10 = vld [vmem:[#allocation2 + $0x36] sm:$0xff] }
 0x579   : > { %37879 = vst [vmem:[#allocation49_spill] sm:$0xff] %v35219_v23  ;;  %9942 = vst [vmem:[#allocation2 + $0x130] sm:$0xff] %v35219_v23  ;;  %v9975_v3 = vld [vmem:[#allocation2 + $0x105] sm:$0xff]  ;;  %v9976_v22 = vld [vmem:[#allocation2 + $0x10d] sm:$0xff] }
 0x57a   : > { %37881 = vst [vmem:[#allocation50_spill] sm:$0xff] %v35223_v53  ;;  %9941 = vst [vmem:[#allocation2 + $0x128] sm:$0xff] %v35223_v53  ;;  %29101 = vmatprep.mubr.msk.f32.mxu0 %vm449_vm0, %v9975_v3  ;;  %v25120_v3 = vld [vmem:[%s37701_s2 + $0x2a8] sm:$0xff]  ;;  %v10905_v9 = vld [vmem:[#allocation2 + $0xf7] sm:$0xff] }
 0x57b   : > { %29102 = vmatmul.mubr.msk.f32.gmra.mrb[68].mxu0 %vm449_vm0, %v9976_v22  ;;  %v10375_v22 = vld [vmem:[#allocation2 + $0x16] sm:$0xff]  ;;  %v35341_v21 = vld [vmem:[#allocation2 + $0x67] sm:$0xff]  ;;  %v10906_v30 = vld [vmem:[#allocation2 + $0xff] sm:$0xff] }
 0x57c   : > { %v35345_v33 = vld [vmem:[#allocation2 + $0x6f] sm:$0xff]  ;;  %v10907_v11 = vld [vmem:[#allocation2 + $0x107] sm:$0xff]  ;;  %v25162_v23 = vld [vmem:[%s37701_s2 + $0x2d8] sm:$0xff] }
 0x57d   : > { %v9977_v49 = vld [vmem:[#allocation2 + $0x115] sm:$0xff]  ;;  %v9978_v14 = vld [vmem:[#allocation2 + $0x11d] sm:$0xff]  ;;  %v30969_v53 = vpack.c.bf16 %v25162_v23, %v25161_v60  ;;  %v25200_v54 = vld [vmem:[%s37701_s2 + $0x2e8] sm:$0xff] }
 0x57e   : > { %29104 = vmatprep.mubr.msk.f32.mxu0 %vm449_vm0, %v9977_v49  ;;  %v35247_v49 = vpack.c.bf16 %v25120_v3, %v25119_v50  ;;  %v10382_v50 = vld [vmem:[#allocation2 + $0x4e] sm:$0xff]  ;;  %v10383_v3 = vld [vmem:[#allocation2 + $0x56] sm:$0xff]  ;;  %v10910_v62 = vld [vmem:[#allocation2 + $0x11f] sm:$0xff]  ;;  %v30973_v2 = vpack.c.bf16 %v25200_v54, %v25199_v47 }
 0x57f   : > { %29105 = vmatmul.mubr.msk.f32.gmra.mrb[70].mxu0 %vm449_vm0, %v9978_v14  ;;  %v10376_v14 = vld [vmem:[#allocation2 + $0x1e] sm:$0xff]  ;;  %v10908_v19 = vld [vmem:[#allocation2 + $0x10f] sm:$0xff] }
 0x580   : > { %29115 = vmatprep.mubr.msk.f32.mxu0 %vm449_vm0, %v10373_v38  ;;  %v10377_v38 = vld [vmem:[#allocation2 + $0x26] sm:$0xff]  ;;  %v10909_v37 = vld [vmem:[#allocation2 + $0x117] sm:$0xff] }
 0x581   : > { %v11411_v60 = vld [vmem:[#allocation2 + $0x127] sm:$0xff]  ;;  %v12401_v47 = vld [vmem:[#allocation2 + $0xb9] sm:$0xff]  ;;  %v12404_v23 = vld [vmem:[#allocation2 + $0xd1] sm:$0xff] }
 0x582   : > { %v12399_v54 = vld [vmem:[#allocation2 + $0xa9] sm:$0xff] }
 0x583   : > { %29116 = vmatmul.mubr.msk.f32.vlgmr.msra.gmra.mrb[36].mxu0 %vm449_vm0, %v10374_v27  ;;  %v10380_v27 = vld [vmem:[#allocation2 + $0x3e] sm:$0xff] }
 0x584   : > { %29118 = vmatprep.mubr.msk.f32.mxu0 %vm449_vm0, %v10375_v22  ;;  %30952 = vmatpush3.bf16.msra.mxu0 %v34992_v51  ;;  %v10381_v51 = vld [vmem:[#allocation2 + $0x46] sm:$0xff] }
 0x585   : > { %30954 = vmatprep.subr.bf16.mxu0 %v30953_v55  ;;  %v10385_v22 = vld [vmem:[#allocation2 + $0x66] sm:$0xff] }
 0x587   : > { %29119 = vmatmul.mubr.msk.f32.gmra.mrb[38].mxu0 %vm449_vm0, %v10376_v14  ;;  %v10386_v14 = vld [vmem:[#allocation2 + $0x6e] sm:$0xff] }
 0x588   : > { %29121 = vmatprep.mubr.msk.f32.mxu0 %vm449_vm0, %v10377_v38  ;;  %30956 = vmatpush3.bf16.msra.mxu0 %v30953_v55  ;;  %v10384_v55 = vld [vmem:[#allocation2 + $0x5e] sm:$0xff]  ;;  %v10387_v38 = vld [vmem:[#allocation2 + $0x76] sm:$0xff] }
 0x589   : > { %30958 = vmatprep.subr.bf16.mxu0 %v35247_v49 }
 0x58b   : > { %29122 = vmatmul.mubr.msk.f32.gmra.mrb[40].mxu0 %vm449_vm0, %v10378_v44  ;;  %v10388_v44 = vld [vmem:[#allocation2 + $0x7e] sm:$0xff] }
 0x58c   : > { %29124 = vmatprep.mubr.msk.f32.mxu0 %vm449_vm0, %v10379_v10  ;;  %v10389_v10 = vld [vmem:[#allocation2 + $0x86] sm:$0xff] }
 0x58f   : > { %29125 = vmatmul.mubr.msk.f32.gmra.mrb[42].mxu0 %vm449_vm0, %v10380_v27  ;;  %v10390_v27 = vld [vmem:[#allocation2 + $0x8e] sm:$0xff] }
 0x590   : > { %29127 = vmatprep.mubr.msk.f32.mxu0 %vm449_vm0, %v10381_v51  ;;  %v10391_v51 = vld [vmem:[#allocation2 + $0x96] sm:$0xff] }
 0x593   : > { %29128 = vmatmul.mubr.msk.f32.gmra.mrb[44].mxu0 %vm449_vm0, %v10382_v50  ;;  %v10392_v50 = vld [vmem:[#allocation2 + $0x9e] sm:$0xff] }
 0x594   : > { %29130 = vmatprep.mubr.msk.f32.mxu0 %vm449_vm0, %v10383_v3  ;;  %v10393_v3 = vld [vmem:[#allocation2 + $0xa6] sm:$0xff] }
 0x597   : > { %29131 = vmatmul.mubr.msk.f32.gmra.mrb[46].mxu0 %vm449_vm0, %v10384_v55  ;;  %v10394_v55 = vld [vmem:[#allocation2 + $0xae] sm:$0xff] }
 0x598   : > { %29133 = vmatprep.mubr.msk.f32.mxu0 %vm449_vm0, %v10385_v22  ;;  %v10395_v22 = vld [vmem:[#allocation2 + $0xb6] sm:$0xff] }
 0x59b   : > { %29134 = vmatmul.mubr.msk.f32.gmra.mrb[48].mxu0 %vm449_vm0, %v10386_v14  ;;  %v10396_v14 = vld [vmem:[#allocation2 + $0xbe] sm:$0xff] }
 0x59c   : > { %29136 = vmatprep.mubr.msk.f32.mxu0 %vm449_vm0, %v10387_v38  ;;  %v10397_v38 = vld [vmem:[#allocation2 + $0xc6] sm:$0xff] }
 0x59f   : > { %29137 = vmatmul.mubr.msk.f32.gmra.mrb[50].mxu0 %vm449_vm0, %v10388_v44  ;;  %v10398_v44 = vld [vmem:[#allocation2 + $0xce] sm:$0xff] }
 0x5a0   : > { %29139 = vmatprep.mubr.msk.f32.mxu0 %vm449_vm0, %v10389_v10  ;;  %v10399_v10 = vld [vmem:[#allocation2 + $0xd6] sm:$0xff] }
 0x5a3   : > { %29140 = vmatmul.mubr.msk.f32.gmra.mrb[52].mxu0 %vm449_vm0, %v10390_v27  ;;  %v10400_v27 = vld [vmem:[#allocation2 + $0xde] sm:$0xff] }
 0x5a4   : > { %29142 = vmatprep.mubr.msk.f32.mxu0 %vm449_vm0, %v10391_v51  ;;  %v10401_v51 = vld [vmem:[#allocation2 + $0xe6] sm:$0xff] }
 0x5a7   : > { %29143 = vmatmul.mubr.msk.f32.gmra.mrb[54].mxu0 %vm449_vm0, %v10392_v50  ;;  %v10402_v50 = vld [vmem:[#allocation2 + $0xee] sm:$0xff] }
 0x5a8   : > { %29145 = vmatprep.mubr.msk.f32.mxu0 %vm449_vm0, %v10393_v3  ;;  %v10403_v3 = vld [vmem:[#allocation2 + $0xf6] sm:$0xff] }
 0x5ab   : > { %29146 = vmatmul.mubr.msk.f32.gmra.mrb[56].mxu0 %vm449_vm0, %v10394_v55  ;;  %v10404_v55 = vld [vmem:[#allocation2 + $0xfe] sm:$0xff] }
 0x5ac   : > { %29148 = vmatprep.mubr.msk.f32.mxu0 %vm449_vm0, %v10395_v22  ;;  %v10405_v22 = vld [vmem:[#allocation2 + $0x106] sm:$0xff] }
 0x5af   : > { %29149 = vmatmul.mubr.msk.f32.gmra.mrb[58].mxu0 %vm449_vm0, %v10396_v14  ;;  %v10406_v14 = vld [vmem:[#allocation2 + $0x10e] sm:$0xff] }
 0x5b0   : > { %29151 = vmatprep.mubr.msk.f32.mxu0 %vm449_vm0, %v10397_v38  ;;  %v10407_v38 = vld [vmem:[#allocation2 + $0x116] sm:$0xff] }
 0x5b3   : > { %29152 = vmatmul.mubr.msk.f32.gmra.mrb[60].mxu0 %vm449_vm0, %v10398_v44  ;;  %v10875_v44 = vld [vmem:[#allocation2 + $0x7] sm:$0xff] }
 0x5b4   : > { %29154 = vmatprep.mubr.msk.f32.mxu0 %vm449_vm0, %v10399_v10  ;;  %v10408_v10 = vld [vmem:[#allocation2 + $0x11e] sm:$0xff] }
 0x5b7   : > { %29155 = vmatmul.mubr.msk.f32.gmra.mrb[62].mxu0 %vm449_vm0, %v10400_v27  ;;  %v25121_v27 = vld [vmem:[%s37701_s2 + $0x2b0] sm:$0xff] }
 0x5b8   : > { %29157 = vmatprep.mubr.msk.f32.mxu0 %vm449_vm0, %v10401_v51  ;;  %v25122_v51 = vld [vmem:[%s37701_s2 + $0x2b8] sm:$0xff] }
 0x5bb   : > { %29158 = vmatmul.mubr.msk.f32.gmra.mrb[64].mxu0 %vm449_vm0, %v10402_v50  ;;  %v10876_v50 = vld [vmem:[#allocation2 + $0xf] sm:$0xff] }
 0x5bc   : > { %29160 = vmatprep.mubr.msk.f32.mxu0 %vm449_vm0, %v10403_v3  ;;  %v30961_v3 = vpack.c.bf16 %v25122_v51, %v25121_v27  ;;  %v35313_v27 = vld [vmem:[#allocation2 + $0x2f] sm:$0xff]  ;;  %v35321_v51 = vld [vmem:[#allocation2 + $0x3f] sm:$0xff] }
 0x5bf   : > { %29161 = vmatmul.mubr.msk.f32.gmra.mrb[66].mxu0 %vm449_vm0, %v10404_v55  ;;  %v25159_v55 = vld [vmem:[%s37701_s2 + $0x2c0] sm:$0xff] }
 0x5c0   : > { %29163 = vmatprep.mubr.msk.f32.mxu0 %vm449_vm0, %v10405_v22  ;;  %v25160_v22 = vld [vmem:[%s37701_s2 + $0x2c8] sm:$0xff] }
 0x5c3   : > { %29164 = vmatmul.mubr.msk.f32.gmra.mrb[68].mxu0 %vm449_vm0, %v10406_v14  ;;  %v35297_v14 = vld [vmem:[#allocation2 + $0x17] sm:$0xff] }
 0x5c4   : > { %29166 = vmatprep.mubr.msk.f32.mxu0 %vm449_vm0, %v10407_v38  ;;  %v35302_v38 = vpack.c.bf16 %v25160_v22, %v25159_v55  ;;  %v35333_v55 = vld [vmem:[#allocation2 + $0x57] sm:$0xff]  ;;  %v35337_v22 = vld [vmem:[#allocation2 + $0x5f] sm:$0xff] }
 0x5c7   : > { %29167 = vmatmul.mubr.msk.f32.gmra.mrb[70].mxu0 %vm449_vm0, %v10408_v10  ;;  %v35308_v10 = vld [vmem:[#allocation2 + $0x27] sm:$0xff] }
 0x5c8   : > { %29177 = vmatprep.mubr.msk.f32.mxu0 %vm449_vm0, %v10875_v44  ;;  %v35304_v44 = vld [vmem:[#allocation2 + $0x1f] sm:$0xff] }
 0x5cb   : > { %29178 = vmatmul.mubr.msk.f32.vlgmr.msra.gmra.mrb[36].mxu0 %vm449_vm0, %v10876_v50  ;;  %v35325_v50 = vld [vmem:[#allocation2 + $0x47] sm:$0xff] }
 0x5cc   : > { %29180 = vmatprep.mubr.msk.f32.mxu0 %vm449_vm0, %v35297_v14  ;;  %30960 = vmatpush3.bf16.msra.mxu0 %v35247_v49  ;;  %v35317_v49 = vld [vmem:[#allocation2 + $0x37] sm:$0xff] }
 0x5cd   : > { %30962 = vmatprep.subr.bf16.mxu0 %v30961_v3 }
 0x5cf   : > { %29181 = vmatmul.mubr.msk.f32.gmra.mrb[38].mxu0 %vm449_vm0, %v35304_v44 }
 0x5d0   : > { %29183 = vmatprep.mubr.msk.f32.mxu0 %vm449_vm0, %v35308_v10  ;;  %30964 = vmatpush3.bf16.msra.mxu0 %v30961_v3  ;;  %v35329_v3 = vld [vmem:[#allocation2 + $0x4f] sm:$0xff] }
 0x5d1   : > { %30966 = vmatprep.subr.bf16.mxu0 %v35302_v38 }
 0x5d3   : > { %29184 = vmatmul.mubr.msk.f32.gmra.mrb[40].mxu0 %vm449_vm0, %v35313_v27 }
 0x5d4   : > { %29186 = vmatprep.mubr.msk.f32.mxu0 %vm449_vm0, %v35317_v49 }
 0x5d7   : > { %29187 = vmatmul.mubr.msk.f32.gmra.mrb[42].mxu0 %vm449_vm0, %v35321_v51 }
 0x5d8   : > { %29189 = vmatprep.mubr.msk.f32.mxu0 %vm449_vm0, %v35325_v50 }
 0x5db   : > { %29190 = vmatmul.mubr.msk.f32.gmra.mrb[44].mxu0 %vm449_vm0, %v35329_v3 }
 0x5dc   : > { %29192 = vmatprep.mubr.msk.f32.mxu0 %vm449_vm0, %v35333_v55 }
 0x5df   : > { %29193 = vmatmul.mubr.msk.f32.gmra.mrb[46].mxu0 %vm449_vm0, %v35337_v22 }
 0x5e0   : > { %29195 = vmatprep.mubr.msk.f32.mxu0 %vm449_vm0, %v35341_v21 }
 0x5e3   : > { %29196 = vmatmul.mubr.msk.f32.gmra.mrb[48].mxu0 %vm449_vm0, %v35345_v33 }
 0x5e4   : > { %29198 = vmatprep.mubr.msk.f32.mxu0 %vm449_vm0, %v35349_v61 }
 0x5e7   : > { %29199 = vmatmul.mubr.msk.f32.gmra.mrb[50].mxu0 %vm449_vm0, %v35353_v42 }
 0x5e8   : > { %29201 = vmatprep.mubr.msk.f32.mxu0 %vm449_vm0, %v35357_v28 }
 0x5eb   : > { %29202 = vmatmul.mubr.msk.f32.gmra.mrb[52].mxu0 %vm449_vm0, %v35361_v6 }
 0x5ec   : > { %29204 = vmatprep.mubr.msk.f32.mxu0 %vm449_vm0, %v10893_v52 }
 0x5ef   : > { %29205 = vmatmul.mubr.msk.f32.gmra.mrb[54].mxu0 %vm449_vm0, %v10894_v5 }
 0x5f0   : > { %29207 = vmatprep.mubr.msk.f32.mxu0 %vm449_vm0, %v10895_v39 }
 0x5f3   : > { %29208 = vmatmul.mubr.msk.f32.gmra.mrb[56].mxu0 %vm449_vm0, %v10896_v59 }
 0x5f4   : > { %29210 = vmatprep.mubr.msk.f32.mxu0 %vm449_vm0, %v10897_v32 }
 0x5f7   : > { %29211 = vmatmul.mubr.msk.f32.gmra.mrb[58].mxu0 %vm449_vm0, %v10898_v57 }
 0x5f8   : > { %29213 = vmatprep.mubr.msk.f32.mxu0 %vm449_vm0, %v10899_v58 }
 0x5fb   : > { %29214 = vmatmul.mubr.msk.f32.gmra.mrb[60].mxu0 %vm449_vm0, %v10900_v43 }
 0x5fc   : > { %29216 = vmatprep.mubr.msk.f32.mxu0 %vm449_vm0, %v10901_v63 }
 0x5ff   : > { %29217 = vmatmul.mubr.msk.f32.gmra.mrb[62].mxu0 %vm449_vm0, %v10902_v1 }
 0x600   : > { %29219 = vmatprep.mubr.msk.f32.mxu0 %vm449_vm0, %v10903_v16 }
 0x603   : > { %29220 = vmatmul.mubr.msk.f32.gmra.mrb[64].mxu0 %vm449_vm0, %v10904_v4 }
 0x604   : > { %29222 = vmatprep.mubr.msk.f32.mxu0 %vm449_vm0, %v10905_v9 }
 0x607   : > { %29223 = vmatmul.mubr.msk.f32.gmra.mrb[66].mxu0 %vm449_vm0, %v10906_v30 }
 0x608   : > { %29225 = vmatprep.mubr.msk.f32.mxu0 %vm449_vm0, %v10907_v11 }
 0x60b   : > { %29226 = vmatmul.mubr.msk.f32.gmra.mrb[68].mxu0 %vm449_vm0, %v10908_v19 }
 0x60c   : > { %29228 = vmatprep.mubr.msk.f32.mxu0 %vm449_vm0, %v10909_v37 }
 0x60f   : > { %29229 = vmatmul.mubr.msk.f32.gmra.mrb[70].mxu0 %vm449_vm0, %v10910_v62 }
 0x610   : > { %29239 = vmatprep.mubr.msk.f32.mxu0 %vm449_vm0, %v35297_v14  ;;  %v12407_v14 = vld [vmem:[#allocation2 + $0xe9] sm:$0xff] }
 0x613   : > { %29240 = vmatmul.mubr.msk.f32.vlgmr.msra.gmra.mrb[36].mxu0 %vm449_vm0, %v35304_v44  ;;  %v12409_v44 = vld [vmem:[#allocation2 + $0xf9] sm:$0xff] }
 0x614   : > { %29242 = vmatprep.mubr.msk.f32.mxu0 %vm449_vm0, %v35308_v10  ;;  %30968 = vmatpush3.bf16.msra.mxu0 %v35302_v38  ;;  %v12408_v38 = vld [vmem:[#allocation2 + $0xf1] sm:$0xff]  ;;  %v12410_v10 = vld [vmem:[#allocation2 + $0x101] sm:$0xff] }
 0x615   : > { %30970 = vmatprep.subr.bf16.mxu0 %v30969_v53 }
 0x617   : > { %29243 = vmatmul.mubr.msk.f32.gmra.mrb[38].mxu0 %vm449_vm0, %v35313_v27  ;;  %v12411_v27 = vld [vmem:[#allocation2 + $0x109] sm:$0xff] }
 0x618   : > { %29245 = vmatprep.mubr.msk.f32.mxu0 %vm449_vm0, %v35317_v49  ;;  %30972 = vmatpush3.bf16.msra.mxu0 %v30969_v53  ;;  %v12406_v53 = vld [vmem:[#allocation2 + $0xe1] sm:$0xff]  ;;  %v12412_v49 = vld [vmem:[#allocation2 + $0x111] sm:$0xff] }
 0x619   : > { %30974 = vmatprep.subr.bf16.mxu0 %v30973_v2 }
 0x61b   : > { %29246 = vmatmul.mubr.msk.f32.gmra.mrb[40].mxu0 %vm449_vm0, %v35321_v51  ;;  %v12413_v51 = vld [vmem:[#allocation2 + $0x119] sm:$0xff] }
 0x61c   : > { %29248 = vmatprep.mubr.msk.f32.mxu0 %vm449_vm0, %v35325_v50  ;;  %v12414_v50 = vld [vmem:[#allocation2 + $0x121] sm:$0xff] }
 0x61f   : > { %29249 = vmatmul.mubr.msk.f32.gmra.mrb[42].mxu0 %vm449_vm0, %v35329_v3  ;;  %v12415_v3 = vld [vmem:[#allocation2 + $0x129] sm:$0xff] }
 0x620   : > { %29251 = vmatprep.mubr.msk.f32.mxu0 %vm449_vm0, %v35333_v55  ;;  %v12416_v55 = vld [vmem:[#allocation2 + $0x131] sm:$0xff] }
 0x623   : > { %29252 = vmatmul.mubr.msk.f32.gmra.mrb[44].mxu0 %vm449_vm0, %v35337_v22  ;;  %v25281_v22 = vld [vmem:[%s37701_s2 + $0x330] sm:$0xff] }
 0x624   : > { %29254 = vmatprep.mubr.msk.f32.mxu0 %vm449_vm0, %v35341_v21  ;;  %v12405_v21 = vld [vmem:[#allocation2 + $0xd9] sm:$0xff] }
 0x627   : > { %29255 = vmatmul.mubr.msk.f32.gmra.mrb[46].mxu0 %vm449_vm0, %v35345_v33  ;;  %v12403_v33 = vld [vmem:[#allocation2 + $0xc9] sm:$0xff] }
 0x628   : > { %29257 = vmatprep.mubr.msk.f32.mxu0 %vm449_vm0, %v35349_v61  ;;  %v12402_v61 = vld [vmem:[#allocation2 + $0xc1] sm:$0xff] }
 0x62b   : > { %29258 = vmatmul.mubr.msk.f32.gmra.mrb[48].mxu0 %vm449_vm0, %v35353_v42  ;;  %v12400_v42 = vld [vmem:[#allocation2 + $0xb1] sm:$0xff] }
 0x62c   : > { %29260 = vmatprep.mubr.msk.f32.mxu0 %vm449_vm0, %v35357_v28  ;;  %v35553_v28 = vld [vmem:[#allocation2 + $0x41] sm:$0xff] }
 0x62f   : > { %29261 = vmatmul.mubr.msk.f32.gmra.mrb[50].mxu0 %vm449_vm0, %v35361_v6  ;;  %v35544_v6 = vld [vmem:[#allocation2 + $0x31] sm:$0xff] }
 0x630   : > { %29263 = vmatprep.mubr.msk.f32.mxu0 %vm449_vm0, %v10893_v52  ;;  %v35538_v52 = vld [vmem:[#allocation2 + $0x29] sm:$0xff] }
 0x633   : > { %29264 = vmatmul.mubr.msk.f32.gmra.mrb[52].mxu0 %vm449_vm0, %v10894_v5  ;;  %v25279_v5 = vld [vmem:[%s37701_s2 + $0x320] sm:$0xff] }
 0x634   : > { %29266 = vmatprep.mubr.msk.f32.mxu0 %vm449_vm0, %v10895_v39 }
 0x637   : > { %29267 = vmatmul.mubr.msk.f32.gmra.mrb[54].mxu0 %vm449_vm0, %v10896_v59  ;;  %v11886_v59 = vld [vmem:[#allocation2 + $0x50] sm:$0xff] }
 0x638   : > { %29269 = vmatprep.mubr.msk.f32.mxu0 %vm449_vm0, %v10897_v32  ;;  %v11885_v32 = vld [vmem:[#allocation2 + $0x48] sm:$0xff] }
 0x63b   : > { %29270 = vmatmul.mubr.msk.f32.gmra.mrb[56].mxu0 %vm449_vm0, %v10898_v57  ;;  %v11884_v57 = vld [vmem:[#allocation2 + $0x40] sm:$0xff] }
 0x63c   : > { %29272 = vmatprep.mubr.msk.f32.mxu0 %vm449_vm0, %v10899_v58  ;;  %v11883_v58 = vld [vmem:[#allocation2 + $0x38] sm:$0xff] }
 0x63f   : > { %29273 = vmatmul.mubr.msk.f32.gmra.mrb[58].mxu0 %vm449_vm0, %v10900_v43  ;;  %v11882_v43 = vld [vmem:[#allocation2 + $0x30] sm:$0xff] }
 0x640   : > { %29275 = vmatprep.mubr.msk.f32.mxu0 %vm449_vm0, %v10901_v63 }
 0x643   : > { %29276 = vmatmul.mubr.msk.f32.gmra.mrb[60].mxu0 %vm449_vm0, %v10902_v1  ;;  %v11412_v1 = vld [vmem:[#allocation2 + $0x12f] sm:$0xff] }
 0x644   : > { %29278 = vmatprep.mubr.msk.f32.mxu0 %vm449_vm0, %v10903_v16  ;;  %v11881_v16 = vld [vmem:[#allocation2 + $0x28] sm:$0xff] }
 0x647   : > { %29279 = vmatmul.mubr.msk.f32.gmra.mrb[62].mxu0 %vm449_vm0, %v10904_v4  ;;  %v25201_v4 = vld [vmem:[%s37701_s2 + $0x2f0] sm:$0xff] }
 0x648   : > { %29281 = vmatprep.mubr.msk.f32.mxu0 %vm449_vm0, %v10905_v9  ;;  %v25240_v9 = vld [vmem:[%s37701_s2 + $0x308] sm:$0xff] }
 0x64b   : > { %29282 = vmatmul.mubr.msk.f32.gmra.mrb[64].mxu0 %vm449_vm0, %v10906_v30  ;;  %v25202_v30 = vld [vmem:[%s37701_s2 + $0x2f8] sm:$0xff] }
 0x64c   : > { %29284 = vmatprep.mubr.msk.f32.mxu0 %vm449_vm0, %v10907_v11  ;;  %v11879_v11 = vld [vmem:[#allocation2 + $0x18] sm:$0xff] }
 0x64f   : > { %29285 = vmatmul.mubr.msk.f32.gmra.mrb[66].mxu0 %vm449_vm0, %v10908_v19  ;;  %v11880_v19 = vld [vmem:[#allocation2 + $0x20] sm:$0xff] }
 0x650   : > { %29287 = vmatprep.mubr.msk.f32.mxu0 %vm449_vm0, %v10909_v37  ;;  %v30977_v37 = vpack.c.bf16 %v25202_v30, %v25201_v4  ;;  %v25319_v4 = vld [vmem:[%s37701_s2 + $0x340] sm:$0xff]  ;;  %v25320_v30 = vld [vmem:[%s37701_s2 + $0x348] sm:$0xff] }
 0x653   : > { %29288 = vmatmul.mubr.msk.f32.gmra.mrb[68].mxu0 %vm449_vm0, %v10910_v62  ;;  %v25239_v62 = vld [vmem:[%s37701_s2 + $0x300] sm:$0xff] }
 0x654   : > { %29290 = vmatprep.mubr.msk.f32.mxu0 %vm449_vm0, %v11411_v60  ;;  %v30981_v63 = vpack.c.bf16 %v25240_v9, %v25239_v62  ;;  %v25282_v60 = vld [vmem:[%s37701_s2 + $0x338] sm:$0xff]  ;;  %v25321_v62 = vld [vmem:[%s37701_s2 + $0x350] sm:$0xff] }
 0x655   : > { %v25322_v9 = vld [vmem:[%s37701_s2 + $0x358] sm:$0xff] }
 0x657   : > { %29291 = vmatmul.mubr.msk.f32.gmra.mrb[70].mxu0 %vm449_vm0, %v11412_v1  ;;  %v30993_v1 = vpack.c.bf16 %v25282_v60, %v25281_v22  ;;  %v13898_v22 = vld [vmem:[#allocation2 + $0x83] sm:$0xff]  ;;  %v13899_v60 = vld [vmem:[#allocation2 + $0x8b] sm:$0xff] }
 0x658   : > { %29301 = vmatprep.mubr.msk.f32.mxu0 %vm449_vm0, %v11879_v11  ;;  %v30997_v11 = vpack.c.bf16 %v25320_v30, %v25319_v4  ;;  %v13901_v4 = vld [vmem:[#allocation2 + $0x9b] sm:$0xff]  ;;  %v13902_v30 = vld [vmem:[#allocation2 + $0xa3] sm:$0xff] }
 0x65b   : > { %29302 = vmatmul.mubr.msk.f32.vlgmr.msra.gmra.mrb[36].mxu0 %vm449_vm0, %v11880_v19  ;;  %v12918_v19 = vld [vmem:[#allocation2 + $0x141] sm:$0xff] }
 0x65c   : > { %29304 = vmatprep.mubr.msk.f32.mxu0 %vm449_vm0, %v11881_v16  ;;  %30976 = vmatpush3.bf16.msra.mxu0 %v30973_v2  ;;  %v35601_v2 = vld [vmem:[#allocation2 + $0xa1] sm:$0xff]  ;;  %v13385_v16 = vld [vmem:[#allocation2 + $0x2a] sm:$0xff] }
 0x65d   : > { %30978 = vmatprep.subr.bf16.mxu0 %v30977_v37 }
 0x65f   : > { %29305 = vmatmul.mubr.msk.f32.gmra.mrb[38].mxu0 %vm449_vm0, %v11882_v43  ;;  %v13386_v43 = vld [vmem:[#allocation2 + $0x32] sm:$0xff] }
 0x660   : > { %29307 = vmatprep.mubr.msk.f32.mxu0 %vm449_vm0, %v11883_v58  ;;  %30980 = vmatpush3.bf16.msra.mxu0 %v30977_v37  ;;  %v12917_v37 = vld [vmem:[#allocation2 + $0x139] sm:$0xff] }
 0x661   : > { %30982 = vmatprep.subr.bf16.mxu0 %v30981_v63  ;;  %v13387_v58 = vld [vmem:[#allocation2 + $0x3a] sm:$0xff] }
 0x663   : > { %29308 = vmatmul.mubr.msk.f32.gmra.mrb[40].mxu0 %vm449_vm0, %v11884_v57  ;;  %v13388_v57 = vld [vmem:[#allocation2 + $0x42] sm:$0xff] }
 0x664   : > { %29310 = vmatprep.mubr.msk.f32.mxu0 %vm449_vm0, %v11885_v32  ;;  %v13389_v32 = vld [vmem:[#allocation2 + $0x4a] sm:$0xff] }
 0x667   : > { %29311 = vmatmul.mubr.msk.f32.gmra.mrb[42].mxu0 %vm449_vm0, %v11886_v59  ;;  %v13390_v59 = vld [vmem:[#allocation2 + $0x52] sm:$0xff] }
 0x668   : > { %29313 = vmatprep.mubr.msk.f32.mxu0 %vm449_vm0, %v35044_v56  ;;  %v37883_v56 = vld [vmem:[#allocation48_spill] sm:$0xff] }
 0x66b   : > { %29314 = vmatmul.mubr.msk.f32.gmra.mrb[44].mxu0 %vm449_vm0, %v35039_v31  ;;  %v37882_v31 = vld [vmem:[#allocation46_spill] sm:$0xff] }
 0x66c   : > { %29316 = vmatprep.mubr.msk.f32.mxu0 %vm449_vm0, %v35058_v26  ;;  %v37885_v26 = vld [vmem:[#allocation50_spill] sm:$0xff] }
 0x66f   : > { %29317 = vmatmul.mubr.msk.f32.gmra.mrb[46].mxu0 %vm449_vm0, %v35053_v41  ;;  %v37884_v41 = vld [vmem:[#allocation47_spill] sm:$0xff] }
 0x670   : > { %29319 = vmatprep.mubr.msk.f32.mxu0 %vm449_vm0, %v35072_v17  ;;  %v25242_v17 = vld [vmem:[%s37701_s2 + $0x318] sm:$0xff] }
 0x673   : > { %29320 = vmatmul.mubr.msk.f32.gmra.mrb[48].mxu0 %vm449_vm0, %v35067_v0  ;;  %v25241_v0 = vld [vmem:[%s37701_s2 + $0x310] sm:$0xff] }
 0x674   : > { %29322 = vmatprep.mubr.msk.f32.mxu0 %vm449_vm0, %v35086_v15  ;;  %v12381_v15 = vld [vmem:[#allocation2 + $0x19] sm:$0xff]  ;;  %v30985_v39 = vpack.c.bf16 %v25242_v17, %v25241_v0  ;;  %v25364_v0 = vld [vmem:[%s37701_s2 + $0x368] sm:$0xff]  ;;  %v25365_v17 = vld [vmem:[%s37701_s2 + $0x370] sm:$0xff] }
 0x677   : > { %29323 = vmatmul.mubr.msk.f32.gmra.mrb[50].mxu0 %vm449_vm0, %v35081_v34  ;;  %v37886_v34 = vld [vmem:[#allocation49_spill] sm:$0xff] }
 0x678   : > { %29325 = vmatprep.mubr.msk.f32.mxu0 %vm449_vm0, %v35100_v24  ;;  %v25280_v24 = vld [vmem:[%s37701_s2 + $0x328] sm:$0xff] }
 0x67b   : > { %29326 = vmatmul.mubr.msk.f32.gmra.mrb[52].mxu0 %vm449_vm0, %v35095_v45  ;;  %v12382_v45 = vld [vmem:[#allocation2 + $0x21] sm:$0xff] }
 0x67c   : > { %29328 = vmatprep.mubr.msk.f32.mxu0 %vm449_vm0, %v35114_v35  ;;  %v35548_v35 = vld [vmem:[#allocation2 + $0x39] sm:$0xff] }
 0x67f   : > { %29329 = vmatmul.mubr.msk.f32.gmra.mrb[54].mxu0 %vm449_vm0, %v35109_v7  ;;  %v35542_v7 = vpack.c.bf16 %v25280_v24, %v25279_v5  ;;  %v13395_v5 = vld [vmem:[#allocation2 + $0x7a] sm:$0xff]  ;;  %v13396_v24 = vld [vmem:[#allocation2 + $0x82] sm:$0xff] }
 0x680   : > { %29331 = vmatprep.mubr.msk.f32.mxu0 %vm449_vm0, %v35128_v8  ;;  %v35561_v8 = vld [vmem:[#allocation2 + $0x51] sm:$0xff] }
 0x683   : > { %29332 = vmatmul.mubr.msk.f32.gmra.mrb[56].mxu0 %vm449_vm0, %v35123_v18  ;;  %v35557_v18 = vld [vmem:[#allocation2 + $0x49] sm:$0xff] }
 0x684   : > { %29334 = vmatprep.mubr.msk.f32.mxu0 %vm449_vm0, %v35142_v46  ;;  %v35569_v46 = vld [vmem:[#allocation2 + $0x61] sm:$0xff] }
 0x687   : > { %29335 = vmatmul.mubr.msk.f32.gmra.mrb[58].mxu0 %vm449_vm0, %v35137_v20  ;;  %v35565_v20 = vld [vmem:[#allocation2 + $0x59] sm:$0xff] }
 0x688   : > { %29337 = vmatprep.mubr.msk.f32.mxu0 %vm449_vm0, %v35156_v29  ;;  %v35577_v29 = vld [vmem:[#allocation2 + $0x71] sm:$0xff] }
 0x68b   : > { %29338 = vmatmul.mubr.msk.f32.gmra.mrb[60].mxu0 %vm449_vm0, %v35151_v36  ;;  %v35573_v36 = vld [vmem:[#allocation2 + $0x69] sm:$0xff] }
 0x68c   : > { %29340 = vmatprep.mubr.msk.f32.mxu0 %vm449_vm0, %v35170_v25  ;;  %v35589_v25 = vld [vmem:[#allocation2 + $0x89] sm:$0xff] }
 0x68f   : > { %29341 = vmatmul.mubr.msk.f32.gmra.mrb[62].mxu0 %vm449_vm0, %v35165_v40  ;;  %v35581_v40 = vld [vmem:[#allocation2 + $0x79] sm:$0xff] }
 0x690   : > { %29343 = vmatprep.mubr.msk.f32.mxu0 %vm449_vm0, %v35184_v13  ;;  %v35585_v13 = vld [vmem:[#allocation2 + $0x81] sm:$0xff] }
 0x693   : > { %29344 = vmatmul.mubr.msk.f32.gmra.mrb[64].mxu0 %vm449_vm0, %v35179_v48  ;;  %v35593_v48 = vld [vmem:[#allocation2 + $0x91] sm:$0xff] }
 0x694   : > { %29346 = vmatprep.mubr.msk.f32.mxu0 %vm449_vm0, %v35198_v12  ;;  %v35597_v12 = vld [vmem:[#allocation2 + $0x99] sm:$0xff] }
 0x697   : > { %29347 = vmatmul.mubr.msk.f32.gmra.mrb[66].mxu0 %vm449_vm0, %v37882_v31  ;;  %v13391_v31 = vld [vmem:[#allocation2 + $0x5a] sm:$0xff] }
 0x698   : > { %29349 = vmatprep.mubr.msk.f32.mxu0 %vm449_vm0, %v37883_v56  ;;  %v13392_v56 = vld [vmem:[#allocation2 + $0x62] sm:$0xff] }
 0x69b   : > { %29350 = vmatmul.mubr.msk.f32.gmra.mrb[68].mxu0 %vm449_vm0, %v37884_v41  ;;  %v13393_v41 = vld [vmem:[#allocation2 + $0x6a] sm:$0xff] }
 0x69c   : > { %29352 = vmatprep.mubr.msk.f32.mxu0 %vm449_vm0, %v37885_v26  ;;  %v25363_v26 = vld [vmem:[%s37701_s2 + $0x360] sm:$0xff] }
 0x69f   : > { %29353 = vmatmul.mubr.msk.f32.gmra.mrb[70].mxu0 %vm449_vm0, %v37886_v34  ;;  %v31005_v34 = vpack.c.bf16 %v25364_v0, %v25363_v26  ;;  %v13918_v26 = vld [vmem:[#allocation2 + $0x123] sm:$0xff]  ;;  %v13919_v0 = vld [vmem:[#allocation2 + $0x12b] sm:$0xff] }
 0x6a0   : > { %29363 = vmatprep.mubr.msk.f32.mxu0 %vm449_vm0, %v12381_v15  ;;  %v25366_v15 = vld [vmem:[%s37701_s2 + $0x378] sm:$0xff] }
 0x6a1   : > { %31006 = vmatprep.subr.bf16.mxu1 %v31005_v34 }
 0x6a2   : > { %31008 = vmatpush3.bf16.msra.mxu1 %v31005_v34  ;;  %v13920_v34 = vld [vmem:[#allocation2 + $0x133] sm:$0xff] }
 0x6a3   : > { %29364 = vmatmul.mubr.msk.f32.vlgmr.msra.gmra.mrb[36].mxu0 %vm449_vm0, %v12382_v45  ;;  %v13394_v45 = vld [vmem:[#allocation2 + $0x72] sm:$0xff] }
 0x6a4   : > { %29366 = vmatprep.mubr.msk.f32.mxu0 %vm449_vm0, %v35538_v52  ;;  %30984 = vmatpush3.bf16.msra.mxu0 %v30981_v63  ;;  %v31001_v63 = vpack.c.bf16 %v25322_v9, %v25321_v62  ;;  %v13906_v62 = vld [vmem:[#allocation2 + $0xc3] sm:$0xff]  ;;  %v13907_v9 = vld [vmem:[#allocation2 + $0xcb] sm:$0xff] }
 0x6a5   : > { %30986 = vmatprep.subr.bf16.mxu0 %v30985_v39 }
 0x6a7   : > { %29367 = vmatmul.mubr.msk.f32.gmra.mrb[38].mxu0 %vm449_vm0, %v35544_v6 }
 0x6a8   : > { %29369 = vmatprep.mubr.msk.f32.mxu0 %vm449_vm0, %v35548_v35  ;;  %30988 = vmatpush3.bf16.msra.mxu0 %v30985_v39  ;;  %v31009_v39 = vpack.c.bf16 %v25366_v15, %v25365_v17  ;;  %v13921_v17 = vld [vmem:[#allocation2 + $0x13b] sm:$0xff]  ;;  %v13922_v15 = vld [vmem:[#allocation2 + $0x143] sm:$0xff] }
 0x6a9   : > { %30990 = vmatprep.subr.bf16.mxu0 %v35542_v7 }
 0x6aa   : > { %31010 = vmatprep.subr.bf16.mxu1 %v31009_v39 }
 0x6ab   : > { %29370 = vmatmul.mubr.msk.f32.gmra.mrb[40].mxu0 %vm449_vm0, %v35553_v28  ;;  %31012 = vmatpush3.bf16.msra.mxu1 %v31009_v39  ;;  %v14621_v39 = vld [vmem:[#allocation2 + $0x5] sm:$0xff] }
 0x6ac   : > { %29372 = vmatprep.mubr.msk.f32.mxu0 %vm449_vm0, %v35557_v18  ;;  %29611 = vmatprep.mubr.msk.f32.mxu1 %vm449_vm0, %v14621_v39 }
 0x6af   : > { %29373 = vmatmul.mubr.msk.f32.gmra.mrb[42].mxu0 %vm449_vm0, %v35561_v8 }
 0x6b0   : > { %29375 = vmatprep.mubr.msk.f32.mxu0 %vm449_vm0, %v35565_v20 }
 0x6b3   : > { %29376 = vmatmul.mubr.msk.f32.gmra.mrb[44].mxu0 %vm449_vm0, %v35569_v46 }
 0x6b4   : > { %29378 = vmatprep.mubr.msk.f32.mxu0 %vm449_vm0, %v35573_v36 }
 0x6b7   : > { %29379 = vmatmul.mubr.msk.f32.gmra.mrb[46].mxu0 %vm449_vm0, %v35577_v29 }
 0x6b8   : > { %29381 = vmatprep.mubr.msk.f32.mxu0 %vm449_vm0, %v35581_v40 }
 0x6bb   : > { %29382 = vmatmul.mubr.msk.f32.gmra.mrb[48].mxu0 %vm449_vm0, %v35585_v13 }
 0x6bc   : > { %29384 = vmatprep.mubr.msk.f32.mxu0 %vm449_vm0, %v35589_v25 }
 0x6bf   : > { %29385 = vmatmul.mubr.msk.f32.gmra.mrb[50].mxu0 %vm449_vm0, %v35593_v48 }
 0x6c0   : > { %29387 = vmatprep.mubr.msk.f32.mxu0 %vm449_vm0, %v35597_v12 }
 0x6c3   : > { %29388 = vmatmul.mubr.msk.f32.gmra.mrb[52].mxu0 %vm449_vm0, %v35601_v2 }
 0x6c4   : > { %29390 = vmatprep.mubr.msk.f32.mxu0 %vm449_vm0, %v12399_v54 }
 0x6c7   : > { %29391 = vmatmul.mubr.msk.f32.gmra.mrb[54].mxu0 %vm449_vm0, %v12400_v42 }
 0x6c8   : > { %29393 = vmatprep.mubr.msk.f32.mxu0 %vm449_vm0, %v12401_v47 }
 0x6cb   : > { %29394 = vmatmul.mubr.msk.f32.gmra.mrb[56].mxu0 %vm449_vm0, %v12402_v61 }
 0x6cc   : > { %29396 = vmatprep.mubr.msk.f32.mxu0 %vm449_vm0, %v12403_v33 }
 0x6cf   : > { %29397 = vmatmul.mubr.msk.f32.gmra.mrb[58].mxu0 %vm449_vm0, %v12404_v23 }
 0x6d0   : > { %29399 = vmatprep.mubr.msk.f32.mxu0 %vm449_vm0, %v12405_v21 }
 0x6d3   : > { %29400 = vmatmul.mubr.msk.f32.gmra.mrb[60].mxu0 %vm449_vm0, %v12406_v53 }
 0x6d4   : > { %29402 = vmatprep.mubr.msk.f32.mxu0 %vm449_vm0, %v12407_v14 }
 0x6d7   : > { %29403 = vmatmul.mubr.msk.f32.gmra.mrb[62].mxu0 %vm449_vm0, %v12408_v38 }
 0x6d8   : > { %29405 = vmatprep.mubr.msk.f32.mxu0 %vm449_vm0, %v12409_v44 }
 0x6db   : > { %29406 = vmatmul.mubr.msk.f32.gmra.mrb[64].mxu0 %vm449_vm0, %v12410_v10 }
 0x6dc   : > { %29408 = vmatprep.mubr.msk.f32.mxu0 %vm449_vm0, %v12411_v27 }
 0x6df   : > { %29409 = vmatmul.mubr.msk.f32.gmra.mrb[66].mxu0 %vm449_vm0, %v12412_v49 }
 0x6e0   : > { %29411 = vmatprep.mubr.msk.f32.mxu0 %vm449_vm0, %v12413_v51 }
 0x6e3   : > { %29412 = vmatmul.mubr.msk.f32.gmra.mrb[68].mxu0 %vm449_vm0, %v12414_v50 }
 0x6e4   : > { %29414 = vmatprep.mubr.msk.f32.mxu0 %vm449_vm0, %v12415_v3 }
 0x6e7   : > { %29415 = vmatmul.mubr.msk.f32.gmra.mrb[70].mxu0 %vm449_vm0, %v12416_v55 }
 0x6e8   : > { %29425 = vmatprep.mubr.msk.f32.mxu0 %vm449_vm0, %v35538_v52  ;;  %v13397_v52 = vld [vmem:[#allocation2 + $0x8a] sm:$0xff] }
 0x6eb   : > { %29426 = vmatmul.mubr.msk.f32.vlgmr.msra.gmra.mrb[36].mxu0 %vm449_vm0, %v35544_v6  ;;  %v13399_v6 = vld [vmem:[#allocation2 + $0x9a] sm:$0xff] }
 0x6ec   : > { %29428 = vmatprep.mubr.msk.f32.mxu0 %vm449_vm0, %v35548_v35  ;;  %30992 = vmatpush3.bf16.msra.mxu0 %v35542_v7  ;;  %v13398_v7 = vld [vmem:[#allocation2 + $0x92] sm:$0xff]  ;;  %v13400_v35 = vld [vmem:[#allocation2 + $0xa2] sm:$0xff] }
 0x6ed   : > { %30994 = vmatprep.subr.bf16.mxu0 %v30993_v1 }
 0x6ef   : > { %29429 = vmatmul.mubr.msk.f32.gmra.mrb[38].mxu0 %vm449_vm0, %v35553_v28  ;;  %v13401_v28 = vld [vmem:[#allocation2 + $0xaa] sm:$0xff] }
 0x6f0   : > { %29431 = vmatprep.mubr.msk.f32.mxu0 %vm449_vm0, %v35557_v18  ;;  %30996 = vmatpush3.bf16.msra.mxu0 %v30993_v1  ;;  %v13402_v18 = vld [vmem:[#allocation2 + $0xb2] sm:$0xff] }
 0x6f1   : > { %30998 = vmatprep.subr.bf16.mxu0 %v30997_v11  ;;  %v13900_v1 = vld [vmem:[#allocation2 + $0x93] sm:$0xff] }
 0x6f3   : > { %29432 = vmatmul.mubr.msk.f32.gmra.mrb[40].mxu0 %vm449_vm0, %v35561_v8  ;;  %v13403_v8 = vld [vmem:[#allocation2 + $0xba] sm:$0xff] }
 0x6f4   : > { %29434 = vmatprep.mubr.msk.f32.mxu0 %vm449_vm0, %v35565_v20  ;;  %v13404_v20 = vld [vmem:[#allocation2 + $0xc2] sm:$0xff] }
 0x6f7   : > { %29435 = vmatmul.mubr.msk.f32.gmra.mrb[42].mxu0 %vm449_vm0, %v35569_v46  ;;  %v13405_v46 = vld [vmem:[#allocation2 + $0xca] sm:$0xff] }
 0x6f8   : > { %29437 = vmatprep.mubr.msk.f32.mxu0 %vm449_vm0, %v35573_v36  ;;  %v13406_v36 = vld [vmem:[#allocation2 + $0xd2] sm:$0xff] }
 0x6fb   : > { %29438 = vmatmul.mubr.msk.f32.gmra.mrb[44].mxu0 %vm449_vm0, %v35577_v29  ;;  %v13407_v29 = vld [vmem:[#allocation2 + $0xda] sm:$0xff] }
 0x6fc   : > { %29440 = vmatprep.mubr.msk.f32.mxu0 %vm449_vm0, %v35581_v40  ;;  %v13408_v40 = vld [vmem:[#allocation2 + $0xe2] sm:$0xff] }
 0x6ff   : > { %29441 = vmatmul.mubr.msk.f32.gmra.mrb[46].mxu0 %vm449_vm0, %v35585_v13  ;;  %v13409_v13 = vld [vmem:[#allocation2 + $0xea] sm:$0xff] }
 0x700   : > { %29443 = vmatprep.mubr.msk.f32.mxu0 %vm449_vm0, %v35589_v25  ;;  %v13410_v25 = vld [vmem:[#allocation2 + $0xf2] sm:$0xff] }
 0x703   : > { %29444 = vmatmul.mubr.msk.f32.gmra.mrb[48].mxu0 %vm449_vm0, %v35593_v48  ;;  %v13411_v48 = vld [vmem:[#allocation2 + $0xfa] sm:$0xff] }
 0x704   : > { %29446 = vmatprep.mubr.msk.f32.mxu0 %vm449_vm0, %v35597_v12  ;;  %v13412_v12 = vld [vmem:[#allocation2 + $0x102] sm:$0xff] }
 0x707   : > { %29447 = vmatmul.mubr.msk.f32.gmra.mrb[50].mxu0 %vm449_vm0, %v35601_v2  ;;  %v13413_v2 = vld [vmem:[#allocation2 + $0x10a] sm:$0xff] }
 0x708   : > { %29449 = vmatprep.mubr.msk.f32.mxu0 %vm449_vm0, %v12399_v54  ;;  %v13414_v54 = vld [vmem:[#allocation2 + $0x112] sm:$0xff] }
 0x70b   : > { %29450 = vmatmul.mubr.msk.f32.gmra.mrb[52].mxu0 %vm449_vm0, %v12400_v42  ;;  %v13415_v42 = vld [vmem:[#allocation2 + $0x11a] sm:$0xff] }
 0x70c   : > { %29452 = vmatprep.mubr.msk.f32.mxu0 %vm449_vm0, %v12401_v47  ;;  %v13416_v47 = vld [vmem:[#allocation2 + $0x122] sm:$0xff] }
 0x70f   : > { %29453 = vmatmul.mubr.msk.f32.gmra.mrb[54].mxu0 %vm449_vm0, %v12402_v61  ;;  %v13417_v61 = vld [vmem:[#allocation2 + $0x12a] sm:$0xff] }
 0x710   : > { %29455 = vmatprep.mubr.msk.f32.mxu0 %vm449_vm0, %v12403_v33  ;;  %v13419_v33 = vld [vmem:[#allocation2 + $0x13a] sm:$0xff] }
 0x713   : > { %29456 = vmatmul.mubr.msk.f32.gmra.mrb[56].mxu0 %vm449_vm0, %v12404_v23  ;;  %v13418_v23 = vld [vmem:[#allocation2 + $0x132] sm:$0xff] }
 0x714   : > { %29458 = vmatprep.mubr.msk.f32.mxu0 %vm449_vm0, %v12405_v21  ;;  %v13420_v21 = vld [vmem:[#allocation2 + $0x142] sm:$0xff] }
 0x717   : > { %29459 = vmatmul.mubr.msk.f32.gmra.mrb[58].mxu0 %vm449_vm0, %v12406_v53  ;;  %v13887_v53 = vld [vmem:[#allocation2 + $0x2b] sm:$0xff] }
 0x718   : > { %29461 = vmatprep.mubr.msk.f32.mxu0 %vm449_vm0, %v12407_v14  ;;  %v13888_v14 = vld [vmem:[#allocation2 + $0x33] sm:$0xff] }
 0x71b   : > { %29462 = vmatmul.mubr.msk.f32.gmra.mrb[60].mxu0 %vm449_vm0, %v12408_v38  ;;  %v13889_v38 = vld [vmem:[#allocation2 + $0x3b] sm:$0xff] }
 0x71c   : > { %29464 = vmatprep.mubr.msk.f32.mxu0 %vm449_vm0, %v12409_v44  ;;  %v13890_v44 = vld [vmem:[#allocation2 + $0x43] sm:$0xff] }
 0x71f   : > { %29465 = vmatmul.mubr.msk.f32.gmra.mrb[62].mxu0 %vm449_vm0, %v12410_v10  ;;  %v13891_v10 = vld [vmem:[#allocation2 + $0x4b] sm:$0xff] }
 0x720   : > { %29467 = vmatprep.mubr.msk.f32.mxu0 %vm449_vm0, %v12411_v27  ;;  %v13892_v27 = vld [vmem:[#allocation2 + $0x53] sm:$0xff] }
 0x723   : > { %29468 = vmatmul.mubr.msk.f32.gmra.mrb[64].mxu0 %vm449_vm0, %v12412_v49  ;;  %v13893_v49 = vld [vmem:[#allocation2 + $0x5b] sm:$0xff] }
 0x724   : > { %29470 = vmatprep.mubr.msk.f32.mxu0 %vm449_vm0, %v12413_v51  ;;  %v13894_v51 = vld [vmem:[#allocation2 + $0x63] sm:$0xff] }
 0x727   : > { %29471 = vmatmul.mubr.msk.f32.gmra.mrb[66].mxu0 %vm449_vm0, %v12414_v50  ;;  %v13895_v50 = vld [vmem:[#allocation2 + $0x6b] sm:$0xff] }
 0x728   : > { %29473 = vmatprep.mubr.msk.f32.mxu0 %vm449_vm0, %v12415_v3  ;;  %v13896_v3 = vld [vmem:[#allocation2 + $0x73] sm:$0xff] }
 0x72b   : > { %29474 = vmatmul.mubr.msk.f32.gmra.mrb[68].mxu0 %vm449_vm0, %v12416_v55  ;;  %v13897_v55 = vld [vmem:[#allocation2 + $0x7b] sm:$0xff] }
 0x72c   : > { %29476 = vmatprep.mubr.msk.f32.mxu0 %vm449_vm0, %v12917_v37  ;;  %v13904_v37 = vld [vmem:[#allocation2 + $0xb3] sm:$0xff] }
 0x72f   : > { %29477 = vmatmul.mubr.msk.f32.gmra.mrb[70].mxu0 %vm449_vm0, %v12918_v19  ;;  %v13905_v19 = vld [vmem:[#allocation2 + $0xbb] sm:$0xff] }
 0x730   : > { %29487 = vmatprep.mubr.msk.f32.mxu0 %vm449_vm0, %v13385_v16  ;;  %v13908_v16 = vld [vmem:[#allocation2 + $0xd3] sm:$0xff] }
 0x733   : > { %29488 = vmatmul.mubr.msk.f32.vlgmr.msra.gmra.mrb[36].mxu0 %vm449_vm0, %v13386_v43  ;;  %v13910_v43 = vld [vmem:[#allocation2 + $0xe3] sm:$0xff] }
 0x734   : > { %29490 = vmatprep.mubr.msk.f32.mxu0 %vm449_vm0, %v13387_v58  ;;  %31000 = vmatpush3.bf16.msra.mxu0 %v30997_v11  ;;  %v13903_v11 = vld [vmem:[#allocation2 + $0xab] sm:$0xff] }
 0x735   : > { %31002 = vmatprep.subr.bf16.mxu0 %v31001_v63  ;;  %v13911_v58 = vld [vmem:[#allocation2 + $0xeb] sm:$0xff] }
 0x737   : > { %29491 = vmatmul.mubr.msk.f32.gmra.mrb[38].mxu0 %vm449_vm0, %v13388_v57  ;;  %v13912_v57 = vld [vmem:[#allocation2 + $0xf3] sm:$0xff] }
 0x738   : > { %29493 = vmatprep.mubr.msk.f32.mxu0 %vm449_vm0, %v13389_v32  ;;  %31004 = vmatpush3.bf16.msra.mxu0 %v31001_v63  ;;  %v13909_v63 = vld [vmem:[#allocation2 + $0xdb] sm:$0xff] }
 0x739   : > { %v13913_v32 = vld [vmem:[#allocation2 + $0xfb] sm:$0xff] }
 0x73b   : > { %29494 = vmatmul.mubr.msk.f32.gmra.mrb[40].mxu0 %vm449_vm0, %v13390_v59  ;;  %v13914_v59 = vld [vmem:[#allocation2 + $0x103] sm:$0xff] }
 0x73c   : > { %29496 = vmatprep.mubr.msk.f32.mxu0 %vm449_vm0, %v13391_v31  ;;  %v13915_v31 = vld [vmem:[#allocation2 + $0x10b] sm:$0xff] }
 0x73f   : > { %29497 = vmatmul.mubr.msk.f32.gmra.mrb[42].mxu0 %vm449_vm0, %v13392_v56  ;;  %v13916_v56 = vld [vmem:[#allocation2 + $0x113] sm:$0xff] }
 0x740   : > { %29499 = vmatprep.mubr.msk.f32.mxu0 %vm449_vm0, %v13393_v41  ;;  %v13917_v41 = vld [vmem:[#allocation2 + $0x11b] sm:$0xff] }
 0x743   : > { %29500 = vmatmul.mubr.msk.f32.gmra.mrb[44].mxu0 %vm449_vm0, %v13394_v45  ;;  %v14622_v45 = vld [vmem:[#allocation2 + $0xd] sm:$0xff] }
 0x744   : > { %29502 = vmatprep.mubr.msk.f32.mxu0 %vm449_vm0, %v13395_v5  ;;  %v25403_v5 = vld [vmem:[%s37701_s2 + $0x380] sm:$0xff]  ;;  %29612 = vmatmul.mubr.msk.f32.vlgmr.msra.gmra.mrb[72].mxu1 %vm449_vm0, %v14622_v45 }
 0x747   : > { %29503 = vmatmul.mubr.msk.f32.gmra.mrb[46].mxu0 %vm449_vm0, %v13396_v24  ;;  %v25404_v24 = vld [vmem:[%s37701_s2 + $0x388] sm:$0xff] }
 0x748   : > { %29505 = vmatprep.mubr.msk.f32.mxu0 %vm449_vm0, %v13397_v52  ;;  %v31013_v52 = vpack.c.bf16 %v25404_v24, %v25403_v5  ;;  %v37894_v5 = vld [vmem:[#allocation17_spill] sm:$0xff] }
 0x74a   : > { %31014 = vmatprep.subr.bf16.mxu1 %v31013_v52 }
 0x74b   : > { %29506 = vmatmul.mubr.msk.f32.gmra.mrb[48].mxu0 %vm449_vm0, %v13398_v7  ;;  %31016 = vmatpush3.bf16.msra.mxu1 %v31013_v52  ;;  %v25405_v7 = vld [vmem:[%s37701_s2 + $0x390] sm:$0xff] }
 0x74c   : > { %29508 = vmatprep.mubr.msk.f32.mxu0 %vm449_vm0, %v13399_v6  ;;  %v25406_v6 = vld [vmem:[%s37701_s2 + $0x398] sm:$0xff] }
 0x74f   : > { %29509 = vmatmul.mubr.msk.f32.gmra.mrb[50].mxu0 %vm449_vm0, %v13400_v35  ;;  %v31017_v35 = vpack.c.bf16 %v25406_v6, %v25405_v7 }
 0x750   : > { %29511 = vmatprep.mubr.msk.f32.mxu0 %vm449_vm0, %v13401_v28  ;;  %v25443_v28 = vld [vmem:[%s37701_s2 + $0x3a0] sm:$0xff] }
 0x751   : > { %31018 = vmatprep.subr.bf16.mxu1 %v31017_v35 }
 0x752   : > { %31020 = vmatpush3.bf16.msra.mxu1 %v31017_v35 }
 0x753   : > { %29512 = vmatmul.mubr.msk.f32.gmra.mrb[52].mxu0 %vm449_vm0, %v13402_v18  ;;  %v25444_v18 = vld [vmem:[%s37701_s2 + $0x3a8] sm:$0xff] }
 0x754   : > { %29514 = vmatprep.mubr.msk.f32.mxu0 %vm449_vm0, %v13403_v8  ;;  %v35798_v8 = vpack.c.bf16 %v25444_v18, %v25443_v28 }
 0x756   : > { %31022 = vmatprep.subr.bf16.mxu1 %v35798_v8 }
 0x757   : > { %29515 = vmatmul.mubr.msk.f32.gmra.mrb[54].mxu0 %vm449_vm0, %v13404_v20  ;;  %v35804_v20 = vld [vmem:[%s37702_s3 + $0x2] ss:$0 sm:$0xff] }
 0x758   : > { %29517 = vmatprep.mubr.msk.f32.mxu0 %vm449_vm0, %v13405_v46 }
 0x75b   : > { %29518 = vmatmul.mubr.msk.f32.gmra.mrb[56].mxu0 %vm449_vm0, %v13406_v36  ;;  %v35809_v36 = vld [vmem:[%s37703_s4 + $0x2] ss:$0 sm:$0xff] }
 0x75c   : > { %29520 = vmatprep.mubr.msk.f32.mxu0 %vm449_vm0, %v13407_v29 }
 0x75f   : > { %29521 = vmatmul.mubr.msk.f32.gmra.mrb[58].mxu0 %vm449_vm0, %v13408_v40 }
 0x760   : > { %29523 = vmatprep.mubr.msk.f32.mxu0 %vm449_vm0, %v13409_v13 }
 0x763   : > { %29524 = vmatmul.mubr.msk.f32.gmra.mrb[60].mxu0 %vm449_vm0, %v13410_v25 }
 0x764   : > { %29526 = vmatprep.mubr.msk.f32.mxu0 %vm449_vm0, %v13411_v48 }
 0x767   : > { %29527 = vmatmul.mubr.msk.f32.gmra.mrb[62].mxu0 %vm449_vm0, %v13412_v12 }
 0x768   : > { %29529 = vmatprep.mubr.msk.f32.mxu0 %vm449_vm0, %v13413_v2 }
 0x76b   : > { %29530 = vmatmul.mubr.msk.f32.gmra.mrb[64].mxu0 %vm449_vm0, %v13414_v54 }
 0x76c   : > { %29532 = vmatprep.mubr.msk.f32.mxu0 %vm449_vm0, %v13415_v42 }
 0x76f   : > { %29533 = vmatmul.mubr.msk.f32.gmra.mrb[66].mxu0 %vm449_vm0, %v13416_v47 }
 0x770   : > { %29535 = vmatprep.mubr.msk.f32.mxu0 %vm449_vm0, %v13417_v61 }
 0x773   : > { %29536 = vmatmul.mubr.msk.f32.gmra.mrb[68].mxu0 %vm449_vm0, %v13418_v23 }
 0x774   : > { %29538 = vmatprep.mubr.msk.f32.mxu0 %vm449_vm0, %v13419_v33  ;;  %v37887_v33 = vld [vmem:[#allocation13_spill] sm:$0xff] }
 0x777   : > { %29539 = vmatmul.mubr.msk.f32.gmra.mrb[70].mxu0 %vm449_vm0, %v13420_v21 }
 0x778   : > { %29549 = vmatprep.mubr.msk.f32.mxu0 %vm449_vm0, %v13887_v53  ;;  %v37888_v53 = vld [vmem:[#allocation11_spill] sm:$0xff] }
 0x77b   : > { %29550 = vmatmul.mubr.msk.f32.vlgmr.msra.gmra.mrb[36].mxu0 %vm449_vm0, %v13888_v14 }
 0x77c   : > { %29552 = vmatprep.mubr.msk.f32.mxu0 %vm449_vm0, %v13889_v38 }
 0x77f   : > { %29553 = vmatmul.mubr.msk.f32.gmra.mrb[38].mxu0 %vm449_vm0, %v13890_v44 }
 0x780   : > { %29555 = vmatprep.mubr.msk.f32.mxu0 %vm449_vm0, %v13891_v10 }
 0x783   : > { %29556 = vmatmul.mubr.msk.f32.gmra.mrb[40].mxu0 %vm449_vm0, %v13892_v27 }
 0x784   : > { %29558 = vmatprep.mubr.msk.f32.mxu0 %vm449_vm0, %v13893_v49 }
 0x787   : > { %29559 = vmatmul.mubr.msk.f32.gmra.mrb[42].mxu0 %vm449_vm0, %v13894_v51 }
 0x788   : > { %29561 = vmatprep.mubr.msk.f32.mxu0 %vm449_vm0, %v13895_v50 }
 0x78b   : > { %29562 = vmatmul.mubr.msk.f32.gmra.mrb[44].mxu0 %vm449_vm0, %v13896_v3  ;;  %v37889_v3 = vld [vmem:[#allocation12_spill] sm:$0xff] }
 0x78c   : > { %29564 = vmatprep.mubr.msk.f32.mxu0 %vm449_vm0, %v13897_v55 }
 0x78f   : > { %29565 = vmatmul.mubr.msk.f32.gmra.mrb[46].mxu0 %vm449_vm0, %v13898_v22 }
 0x790   : > { %29567 = vmatprep.mubr.msk.f32.mxu0 %vm449_vm0, %v13899_v60  ;;  %v37890_v60 = vld [vmem:[#allocation10_spill] sm:$0xff] }
 0x793   : > { %29568 = vmatmul.mubr.msk.f32.gmra.mrb[48].mxu0 %vm449_vm0, %v13900_v1 }
 0x794   : > { %29570 = vmatprep.mubr.msk.f32.mxu0 %vm449_vm0, %v13901_v4 }
 0x797   : > { %29571 = vmatmul.mubr.msk.f32.gmra.mrb[50].mxu0 %vm449_vm0, %v13902_v30 }
 0x798   : > { %29573 = vmatprep.mubr.msk.f32.mxu0 %vm449_vm0, %v13903_v11 }
 0x79b   : > { %29574 = vmatmul.mubr.msk.f32.gmra.mrb[52].mxu0 %vm449_vm0, %v13904_v37 }
 0x79c   : > { %29576 = vmatprep.mubr.msk.f32.mxu0 %vm449_vm0, %v13905_v19 }
 0x79f   : > { %29577 = vmatmul.mubr.msk.f32.gmra.mrb[54].mxu0 %vm449_vm0, %v13906_v62 }
 0x7a0   : > { %29579 = vmatprep.mubr.msk.f32.mxu0 %vm449_vm0, %v13907_v9 }
 0x7a3   : > { %29580 = vmatmul.mubr.msk.f32.gmra.mrb[56].mxu0 %vm449_vm0, %v13908_v16  ;;  %v37891_v16 = vld [vmem:[#allocation14_spill] sm:$0xff] }
 0x7a4   : > { %29582 = vmatprep.mubr.msk.f32.mxu0 %vm449_vm0, %v13909_v63 }
 0x7a7   : > { %29583 = vmatmul.mubr.msk.f32.gmra.mrb[58].mxu0 %vm449_vm0, %v13910_v43 }
 0x7a8   : > { %29585 = vmatprep.mubr.msk.f32.mxu0 %vm449_vm0, %v13911_v58  ;;  %v37892_v58 = vld [vmem:[#allocation15_spill] sm:$0xff] }
 0x7ab   : > { %29586 = vmatmul.mubr.msk.f32.gmra.mrb[60].mxu0 %vm449_vm0, %v13912_v57 }
 0x7ac   : > { %29588 = vmatprep.mubr.msk.f32.mxu0 %vm449_vm0, %v13913_v32 }
 0x7af   : > { %29589 = vmatmul.mubr.msk.f32.gmra.mrb[62].mxu0 %vm449_vm0, %v13914_v59 }
 0x7b0   : > { %29591 = vmatprep.mubr.msk.f32.mxu0 %vm449_vm0, %v13915_v31 }
 0x7b3   : > { %29592 = vmatmul.mubr.msk.f32.gmra.mrb[64].mxu0 %vm449_vm0, %v13916_v56 }
 0x7b4   : > { %29594 = vmatprep.mubr.msk.f32.mxu0 %vm449_vm0, %v13917_v41 }
 0x7b7   : > { %29595 = vmatmul.mubr.msk.f32.gmra.mrb[66].mxu0 %vm449_vm0, %v13918_v26 }
 0x7b8   : > { %29597 = vmatprep.mubr.msk.f32.mxu0 %vm449_vm0, %v13919_v0 }
 0x7bb   : > { %29598 = vmatmul.mubr.msk.f32.gmra.mrb[68].mxu0 %vm449_vm0, %v13920_v34 }
 0x7bc   : > { %29600 = vmatprep.mubr.msk.f32.mxu0 %vm449_vm0, %v13921_v17 }
 0x7bf   : > { %29601 = vmatmul.mubr.msk.f32.gmra.mrb[70].mxu0 %vm449_vm0, %v13922_v15  ;;  %v37893_v15 = vld [vmem:[#allocation16_spill] sm:$0xff] }
 0x84e   : > { %v29551_v46 = vpop.f32.mrb[36].mxu0 }
 0x84f   : > { %v14434_v29 = vmul.f32 %v29551_v46, %v35804_v20  ;;  %v14102_v40 = vpop.f32.mrb[37].mxu0 }
 0x850   : > { %v14433_v13 = vmul.f32 %v35804_v20, %v14102_v40 }
 0x851   : > { %v14478_v25 = vadd.f32 %v35809_v36, %v14434_v29 }
 0x852   : > { %v14477_v48 = vadd.f32 %v35809_v36, %v14433_v13  ;;  %v29554_v12 = vpop.f32.mrb[38].mxu0  ;;  %v37895_v13 = vld [vmem:[#allocation18_spill] sm:$0xff] }
 0x853   : > { %v14514_v2 = vmax.f32 %v14478_v25, 0.0  ;;  %v14436_v54 = vmul.f32 %v29554_v12, %v35804_v20  ;;  %v14112_v42 = vpop.f32.mrb[39].mxu0  ;;  %v37896_v12 = vld [vmem:[#allocation19_spill] sm:$0xff] }
 0x854   : > { %v14513_v47 = vmax.f32 %v14477_v48, 0.0  ;;  %v14435_v61 = vmul.f32 %v35804_v20, %v14112_v42 }
 0x855   : > { %v14550_v23 = vmul.f32 %v14514_v2, %v37887_v33  ;;  %v14480_v21 = vadd.f32 %v35809_v36, %v14436_v54  ;;  %v25525_v33 = vld [vmem:[%s37701_s2 + $0x3f0] sm:$0xff] }
 0x856   : > { %v14549_v14 = vmul.f32 %v14513_v47, %v37888_v53  ;;  %v14479_v38 = vadd.f32 %v35809_v36, %v14435_v61  ;;  %v29557_v44 = vpop.f32.mrb[40].mxu0 }
 0x857   : > { %14586 = vst [vmem:[#allocation2 + $0x20] sm:$0xff] %v14550_v23  ;;  %v14516_v10 = vmax.f32 %v14480_v21, 0.0  ;;  %v14438_v27 = vmul.f32 %v29557_v44, %v35804_v20  ;;  %v14122_v49 = vpop.f32.mrb[41].mxu0 }
 0x858   : > { %14585 = vst [vmem:[#allocation2 + $0x18] sm:$0xff] %v14549_v14  ;;  %v14515_v51 = vmax.f32 %v14479_v38, 0.0  ;;  %v14437_v50 = vmul.f32 %v35804_v20, %v14122_v49 }
 0x859   : > { %v14552_v55 = vmul.f32 %v14516_v10, %v37889_v3  ;;  %v14482_v22 = vadd.f32 %v35809_v36, %v14438_v27  ;;  %v37897_v10 = vld [vmem:[#allocation20_spill] sm:$0xff] }
 0x85a   : > { %v14551_v1 = vmul.f32 %v14515_v51, %v37890_v60  ;;  %v14481_v4 = vadd.f32 %v35809_v36, %v14437_v50  ;;  %v29560_v30 = vpop.f32.mrb[42].mxu0  ;;  %v37898_v51 = vld [vmem:[#allocation21_spill] sm:$0xff] }
 0x85b   : > { %14588 = vst [vmem:[#allocation2 + $0x30] sm:$0xff] %v14552_v55  ;;  %v14518_v11 = vmax.f32 %v14482_v22, 0.0  ;;  %v14440_v37 = vmul.f32 %v29560_v30, %v35804_v20  ;;  %v14132_v19 = vpop.f32.mrb[43].mxu0 }
 0x85c   : > { %14587 = vst [vmem:[#allocation2 + $0x28] sm:$0xff] %v14551_v1  ;;  %v14517_v62 = vmax.f32 %v14481_v4, 0.0  ;;  %v14439_v9 = vmul.f32 %v35804_v20, %v14132_v19 }
 0x85d   : > { %v14554_v63 = vmul.f32 %v14518_v11, %v37891_v16  ;;  %v14484_v43 = vadd.f32 %v35809_v36, %v14440_v37 }
 0x85e   : > { %v14553_v57 = vmul.f32 %v14517_v62, %v37892_v58  ;;  %v14483_v32 = vadd.f32 %v35809_v36, %v14439_v9  ;;  %v29563_v59 = vpop.f32.mrb[44].mxu0  ;;  %v37899_v9 = vld [vmem:[#allocation22_spill] sm:$0xff] }
 0x85f   : > { %14590 = vst [vmem:[#allocation2 + $0x40] sm:$0xff] %v14554_v63  ;;  %v14520_v31 = vmax.f32 %v14484_v43, 0.0  ;;  %v14442_v56 = vmul.f32 %v29563_v59, %v35804_v20  ;;  %v14142_v41 = vpop.f32.mrb[45].mxu0  ;;  %v14623_v26 = vld [vmem:[#allocation2 + $0x15] sm:$0xff]  ;;  %v14624_v0 = vld [vmem:[#allocation2 + $0x1d] sm:$0xff] }
 0x860   : > { %14589 = vst [vmem:[#allocation2 + $0x38] sm:$0xff] %v14553_v57  ;;  %v14519_v17 = vmax.f32 %v14483_v32, 0.0  ;;  %v14441_v34 = vmul.f32 %v35804_v20, %v14142_v41  ;;  %29614 = vmatprep.mubr.msk.f32.mxu1 %vm449_vm0, %v14623_v26  ;;  %v37900_v57 = vld [vmem:[#allocation23_spill] sm:$0xff] }
 0x861   : > { %v14556_v39 = vmul.f32 %v14520_v31, %v37893_v15  ;;  %v14486_v45 = vadd.f32 %v35809_v36, %v14442_v56  ;;  %29615 = vmatmul.mubr.msk.f32.gmra.mrb[74].mxu1 %vm449_vm0, %v14624_v0 }
 0x862   : > { %v14555_v24 = vmul.f32 %v14519_v17, %v37894_v5  ;;  %v14485_v52 = vadd.f32 %v35809_v36, %v14441_v34  ;;  %v29566_v7 = vpop.f32.mrb[46].mxu0 }
 0x863   : > { %14592 = vst [vmem:[#allocation2 + $0x50] sm:$0xff] %v14556_v39  ;;  %v14522_v6 = vmax.f32 %v14486_v45, 0.0  ;;  %v14444_v35 = vmul.f32 %v29566_v7, %v35804_v20  ;;  %v14152_v28 = vpop.f32.mrb[47].mxu0  ;;  %v14625_v18 = vld [vmem:[#allocation2 + $0x25] sm:$0xff]  ;;  %v14626_v46 = vld [vmem:[#allocation2 + $0x2d] sm:$0xff] }
 0x864   : > { %14591 = vst [vmem:[#allocation2 + $0x48] sm:$0xff] %v14555_v24  ;;  %v14521_v29 = vmax.f32 %v14485_v52, 0.0  ;;  %v14443_v40 = vmul.f32 %v35804_v20, %v14152_v28  ;;  %29617 = vmatprep.mubr.msk.f32.mxu1 %vm449_vm0, %v14625_v18  ;;  %v37901_v45 = vld [vmem:[#allocation24_spill] sm:$0xff]  ;;  %v37902_v7 = vld [vmem:[#allocation25_spill] sm:$0xff] }
 0x865   : > { %v35845_v25 = vmul.f32 %v14522_v6, %v37895_v13  ;;  %v14488_v48 = vadd.f32 %v35809_v36, %v14444_v35  ;;  %29618 = vmatmul.mubr.msk.f32.gmra.mrb[76].mxu1 %vm449_vm0, %v14626_v46 }
 0x866   : > { %v35850_v2 = vmul.f32 %v14521_v29, %v37896_v12  ;;  %v14487_v54 = vadd.f32 %v35809_v36, %v14443_v40  ;;  %v29569_v42 = vpop.f32.mrb[48].mxu0 }
 0x867   : > { %14594 = vst [vmem:[#allocation2 + $0x60] sm:$0xff] %v35845_v25  ;;  %v14524_v47 = vmax.f32 %v14488_v48, 0.0  ;;  %v14446_v61 = vmul.f32 %v29569_v42, %v35804_v20  ;;  %v14162_v23 = vpop.f32.mrb[49].mxu0  ;;  %v14627_v21 = vld [vmem:[#allocation2 + $0x35] sm:$0xff]  ;;  %v14628_v14 = vld [vmem:[#allocation2 + $0x3d] sm:$0xff] }
 0x868   : > { %14593 = vst [vmem:[#allocation2 + $0x58] sm:$0xff] %v35850_v2  ;;  %v14523_v38 = vmax.f32 %v14487_v54, 0.0  ;;  %v14445_v44 = vmul.f32 %v35804_v20, %v14162_v23  ;;  %29620 = vmatprep.mubr.msk.f32.mxu1 %vm449_vm0, %v14627_v21  ;;  %v37904_v21 = vld [vmem:[#allocation27_spill] sm:$0xff] }
 0x869   : > { %v35859_v27 = vmul.f32 %v14524_v47, %v37897_v10  ;;  %v14490_v49 = vadd.f32 %v35809_v36, %v14446_v61  ;;  %29621 = vmatmul.mubr.msk.f32.gmra.mrb[78].mxu1 %vm449_vm0, %v14628_v14  ;;  %v37903_v47 = vld [vmem:[#allocation26_spill] sm:$0xff] }
 0x86a   : > { %v35864_v50 = vmul.f32 %v14523_v38, %v37898_v51  ;;  %v14489_v55 = vadd.f32 %v35809_v36, %v14445_v44  ;;  %v29572_v22 = vpop.f32.mrb[50].mxu0 }
 0x86b   : > { %14596 = vst [vmem:[#allocation2 + $0x70] sm:$0xff] %v35859_v27  ;;  %v14526_v1 = vmax.f32 %v14490_v49, 0.0  ;;  %v14448_v4 = vmul.f32 %v29572_v22, %v35804_v20  ;;  %v14172_v30 = vpop.f32.mrb[51].mxu0  ;;  %v14629_v11 = vld [vmem:[#allocation2 + $0x45] sm:$0xff]  ;;  %v14630_v37 = vld [vmem:[#allocation2 + $0x4d] sm:$0xff] }
 0x86c   : > { %14595 = vst [vmem:[#allocation2 + $0x68] sm:$0xff] %v35864_v50  ;;  %v14525_v19 = vmax.f32 %v14489_v55, 0.0  ;;  %v14447_v62 = vmul.f32 %v35804_v20, %v14172_v30  ;;  %29623 = vmatprep.mubr.msk.f32.mxu1 %vm449_vm0, %v14629_v11 }
 0x86d   : > { %v35873_v63 = vmul.f32 %v14526_v1, %v37899_v9  ;;  %v14492_v43 = vadd.f32 %v35809_v36, %v14448_v4  ;;  %29624 = vmatmul.mubr.msk.f32.gmra.mrb[80].mxu1 %vm449_vm0, %v14630_v37  ;;  %v37905_v37 = vld [vmem:[#allocation28_spill] sm:$0xff] }
 0x86e   : > { %v35878_v32 = vmul.f32 %v14525_v19, %v37900_v57  ;;  %v14491_v59 = vadd.f32 %v35809_v36, %v14447_v62  ;;  %v29575_v31 = vpop.f32.mrb[52].mxu0 }
 0x86f   : > { %14598 = vst [vmem:[#allocation2 + $0x80] sm:$0xff] %v35873_v63  ;;  %v14528_v56 = vmax.f32 %v14492_v43, 0.0  ;;  %v14450_v41 = vmul.f32 %v29575_v31, %v35804_v20  ;;  %v14182_v26 = vpop.f32.mrb[53].mxu0  ;;  %v14631_v0 = vld [vmem:[#allocation2 + $0x55] sm:$0xff]  ;;  %v14632_v17 = vld [vmem:[#allocation2 + $0x5d] sm:$0xff]  ;;  %v37906_v43 = vld [vmem:[#allocation29_spill] sm:$0xff] }
 0x870   : > { %14597 = vst [vmem:[#allocation2 + $0x78] sm:$0xff] %v35878_v32  ;;  %v14527_v34 = vmax.f32 %v14491_v59, 0.0  ;;  %v14449_v39 = vmul.f32 %v35804_v20, %v14182_v26  ;;  %29626 = vmatprep.mubr.msk.f32.mxu1 %vm449_vm0, %v14631_v0 }
 0x871   : > { %v35887_v24 = vmul.f32 %v14528_v56, %v37901_v45  ;;  %v14494_v52 = vadd.f32 %v35809_v36, %v14450_v41  ;;  %29627 = vmatmul.mubr.msk.f32.gmra.mrb[82].mxu1 %vm449_vm0, %v14632_v17 }
 0x872   : > { %v35892_v6 = vmul.f32 %v14527_v34, %v37902_v7  ;;  %v14493_v35 = vadd.f32 %v35809_v36, %v14449_v39  ;;  %v29578_v28 = vpop.f32.mrb[54].mxu0 }
 0x873   : > { %14600 = vst [vmem:[#allocation2 + $0x90] sm:$0xff] %v35887_v24  ;;  %v14530_v18 = vmax.f32 %v14494_v52, 0.0  ;;  %v14452_v46 = vmul.f32 %v29578_v28, %v35804_v20  ;;  %v14192_v29 = vpop.f32.mrb[55].mxu0  ;;  %v14633_v40 = vld [vmem:[#allocation2 + $0x65] sm:$0xff]  ;;  %v14634_v48 = vld [vmem:[#allocation2 + $0x6d] sm:$0xff] }
 0x874   : > { %14599 = vst [vmem:[#allocation2 + $0x88] sm:$0xff] %v35892_v6  ;;  %v14529_v54 = vmax.f32 %v14493_v35, 0.0  ;;  %v14451_v42 = vmul.f32 %v35804_v20, %v14192_v29  ;;  %29629 = vmatprep.mubr.msk.f32.mxu1 %vm449_vm0, %v14633_v40  ;;  %v37907_v35 = vld [vmem:[#allocation30_spill] sm:$0xff] }
 0x875   : > { %v35901_v61 = vmul.f32 %v14530_v18, %v37903_v47  ;;  %v14496_v23 = vadd.f32 %v35809_v36, %v14452_v46  ;;  %29630 = vmatmul.mubr.msk.f32.gmra.mrb[84].mxu1 %vm449_vm0, %v14634_v48  ;;  %v37908_v46 = vld [vmem:[#allocation31_spill] sm:$0xff] }
 0x876   : > { %v35906_v14 = vmul.f32 %v14529_v54, %v37904_v21  ;;  %v14495_v38 = vadd.f32 %v35809_v36, %v14451_v42  ;;  %v29581_v44 = vpop.f32.mrb[56].mxu0 }
 0x877   : > { %14602 = vst [vmem:[#allocation2 + $0xa0] sm:$0xff] %v35901_v61  ;;  %v14532_v49 = vmax.f32 %v14496_v23, 0.0  ;;  %v14454_v55 = vmul.f32 %v29581_v44, %v35804_v20  ;;  %v14202_v22 = vpop.f32.mrb[57].mxu0  ;;  %v14635_v1 = vld [vmem:[#allocation2 + $0x75] sm:$0xff]  ;;  %v14636_v4 = vld [vmem:[#allocation2 + $0x7d] sm:$0xff] }
 0x878   : > { %14601 = vst [vmem:[#allocation2 + $0x98] sm:$0xff] %v35906_v14  ;;  %v14531_v30 = vmax.f32 %v14495_v38, 0.0  ;;  %v14453_v11 = vmul.f32 %v35804_v20, %v14202_v22  ;;  %29632 = vmatprep.mubr.msk.f32.mxu1 %vm449_vm0, %v14635_v1  ;;  %v37909_v22 = vld [vmem:[#allocation32_spill] sm:$0xff] }
 0x879   : > { %v35915_v19 = vmul.f32 %v14532_v49, %v37905_v37  ;;  %v14498_v62 = vadd.f32 %v35809_v36, %v14454_v55  ;;  %29633 = vmatmul.mubr.msk.f32.gmra.mrb[86].mxu1 %vm449_vm0, %v14636_v4 }
 0x87a   : > { %v35920_v59 = vmul.f32 %v14531_v30, %v37906_v43  ;;  %v14497_v31 = vadd.f32 %v35809_v36, %v14453_v11  ;;  %v29584_v56 = vpop.f32.mrb[58].mxu0  ;;  %v37910_v30 = vld [vmem:[#allocation33_spill] sm:$0xff] }
 0x87b   : > { %14604 = vst [vmem:[#allocation2 + $0xb0] sm:$0xff] %v35915_v19  ;;  %v14534_v41 = vmax.f32 %v14498_v62, 0.0  ;;  %v14456_v26 = vmul.f32 %v29584_v56, %v35804_v20  ;;  %v14212_v0 = vpop.f32.mrb[59].mxu0  ;;  %v14637_v17 = vld [vmem:[#allocation2 + $0x85] sm:$0xff]  ;;  %v14638_v34 = vld [vmem:[#allocation2 + $0x8d] sm:$0xff] }
 0x87c   : > { %14603 = vst [vmem:[#allocation2 + $0xa8] sm:$0xff] %v35920_v59  ;;  %v14533_v39 = vmax.f32 %v14497_v31, 0.0  ;;  %v14455_v52 = vmul.f32 %v35804_v20, %v14212_v0  ;;  %29635 = vmatprep.mubr.msk.f32.mxu1 %vm449_vm0, %v14637_v17  ;;  %v36167_v43 = vld [vmem:[#allocation2 + $0x8f] sm:$0xff] }
 0x87d   : > { %v35929_v28 = vmul.f32 %v14534_v41, %v37907_v35  ;;  %v14500_v18 = vadd.f32 %v35809_v36, %v14456_v26  ;;  %29636 = vmatmul.mubr.msk.f32.gmra.mrb[88].mxu1 %vm449_vm0, %v14638_v34  ;;  %v36163_v35 = vld [vmem:[#allocation2 + $0x87] sm:$0xff] }
 0x87e   : > { %v35934_v29 = vmul.f32 %v14533_v39, %v37908_v46  ;;  %v14499_v40 = vadd.f32 %v35809_v36, %v14455_v52  ;;  %v29587_v48 = vpop.f32.mrb[60].mxu0  ;;  %v37911_v52 = vld [vmem:[#allocation34_spill] sm:$0xff] }
 0x87f   : > { %14606 = vst [vmem:[#allocation2 + $0xc0] sm:$0xff] %v35929_v28  ;;  %v14536_v54 = vmax.f32 %v14500_v18, 0.0  ;;  %v14458_v42 = vmul.f32 %v29587_v48, %v35804_v20  ;;  %v14222_v23 = vpop.f32.mrb[61].mxu0  ;;  %v14639_v38 = vld [vmem:[#allocation2 + $0x95] sm:$0xff]  ;;  %v14640_v44 = vld [vmem:[#allocation2 + $0x9d] sm:$0xff] }
 0x880   : > { %14605 = vst [vmem:[#allocation2 + $0xb8] sm:$0xff] %v35934_v29  ;;  %v14535_v49 = vmax.f32 %v14499_v40, 0.0  ;;  %v14457_v55 = vmul.f32 %v35804_v20, %v14222_v23  ;;  %29638 = vmatprep.mubr.msk.f32.mxu1 %vm449_vm0, %v14639_v38  ;;  %v37912_v48 = vld [vmem:[#allocation35_spill] sm:$0xff] }
 0x881   : > { %v35943_v1 = vmul.f32 %v14536_v54, %v37909_v22  ;;  %v14502_v4 = vadd.f32 %v35809_v36, %v14458_v42  ;;  %29639 = vmatmul.mubr.msk.f32.gmra.mrb[90].mxu1 %vm449_vm0, %v14640_v44  ;;  %v15571_v37 = vld [vmem:[#allocation2 + $0x97] sm:$0xff]  ;;  %v15572_v21 = vld [vmem:[#allocation2 + $0x9f] sm:$0xff] }
 0x882   : > { %v35948_v11 = vmul.f32 %v14535_v49, %v37910_v30  ;;  %v14501_v62 = vadd.f32 %v35809_v36, %v14457_v55  ;;  %v29590_v31 = vpop.f32.mrb[62].mxu0 }
 0x883   : > { %14608 = vst [vmem:[#allocation2 + $0xd0] sm:$0xff] %v35943_v1  ;;  %v14538_v56 = vmax.f32 %v14502_v4, 0.0  ;;  %v14460_v41 = vmul.f32 %v29590_v31, %v35804_v20  ;;  %v14232_v26 = vpop.f32.mrb[63].mxu0  ;;  %v14641_v0 = vld [vmem:[#allocation2 + $0xa5] sm:$0xff]  ;;  %v14642_v17 = vld [vmem:[#allocation2 + $0xad] sm:$0xff] }
 0x884   : > { %14607 = vst [vmem:[#allocation2 + $0xc8] sm:$0xff] %v35948_v11  ;;  %v14537_v34 = vmax.f32 %v14501_v62, 0.0  ;;  %v14459_v39 = vmul.f32 %v35804_v20, %v14232_v26  ;;  %29641 = vmatprep.mubr.msk.f32.mxu1 %vm449_vm0, %v14641_v0  ;;  %v37914_v0 = vld [vmem:[#allocation37_spill] sm:$0xff] }
 0x885   : > { %v35957_v18 = vmul.f32 %v14538_v56, %v37911_v52  ;;  %v14504_v40 = vadd.f32 %v35809_v36, %v14460_v41  ;;  %29642 = vmatmul.mubr.msk.f32.gmra.mrb[92].mxu1 %vm449_vm0, %v14642_v17  ;;  %v37913_v56 = vld [vmem:[#allocation36_spill] sm:$0xff]  ;;  %v15574_v7 = vld [vmem:[#allocation2 + $0xaf] sm:$0xff] }
 0x886   : > { %v35962_v54 = vmul.f32 %v14537_v34, %v37912_v48  ;;  %v14503_v42 = vadd.f32 %v35809_v36, %v14459_v39  ;;  %v29593_v23 = vpop.f32.mrb[64].mxu0  ;;  %v15573_v47 = vld [vmem:[#allocation2 + $0xa7] sm:$0xff] }
 0x887   : > { %14610 = vst [vmem:[#allocation2 + $0xe0] sm:$0xff] %v35957_v18  ;;  %v14540_v38 = vmax.f32 %v14504_v40, 0.0  ;;  %v14462_v44 = vmul.f32 %v29593_v23, %v35804_v20  ;;  %v14242_v49 = vpop.f32.mrb[65].mxu0  ;;  %v14643_v55 = vld [vmem:[#allocation2 + $0xb5] sm:$0xff]  ;;  %v14644_v4 = vld [vmem:[#allocation2 + $0xbd] sm:$0xff] }
 0x888   : > { %14609 = vst [vmem:[#allocation2 + $0xd8] sm:$0xff] %v35962_v54  ;;  %v14539_v62 = vmax.f32 %v14503_v42, 0.0  ;;  %v14461_v31 = vmul.f32 %v35804_v20, %v14242_v49  ;;  %29644 = vmatprep.mubr.msk.f32.mxu1 %vm449_vm0, %v14643_v55  ;;  %v15575_v45 = vld [vmem:[#allocation2 + $0xb7] sm:$0xff]  ;;  %v15576_v57 = vld [vmem:[#allocation2 + $0xbf] sm:$0xff] }
 0x889   : > { %v35971_v41 = vmul.f32 %v14540_v38, %v37913_v56  ;;  %v14506_v26 = vadd.f32 %v35809_v36, %v14462_v44  ;;  %29645 = vmatmul.mubr.msk.f32.gmra.mrb[94].mxu1 %vm449_vm0, %v14644_v4  ;;  %v37915_v4 = vld [vmem:[#allocation38_spill] sm:$0xff] }
 0x88a   : > { %v35976_v17 = vmul.f32 %v14539_v62, %v37914_v0  ;;  %v14505_v34 = vadd.f32 %v35809_v36, %v14461_v31  ;;  %v29596_v39 = vpop.f32.mrb[66].mxu0 }
 0x88b   : > { %14612 = vst [vmem:[#allocation2 + $0xf0] sm:$0xff] %v35971_v41  ;;  %v14542_v40 = vmax.f32 %v14506_v26, 0.0  ;;  %v14464_v42 = vmul.f32 %v29596_v39, %v35804_v20  ;;  %v14252_v23 = vpop.f32.mrb[67].mxu0  ;;  %v14645_v49 = vld [vmem:[#allocation2 + $0xc5] sm:$0xff]  ;;  %v14646_v55 = vld [vmem:[#allocation2 + $0xcd] sm:$0xff]  ;;  %v37916_v26 = vld [vmem:[#allocation39_spill] sm:$0xff] }
 0x88c   : > { %14611 = vst [vmem:[#allocation2 + $0xe8] sm:$0xff] %v35976_v17  ;;  %v14541_v38 = vmax.f32 %v14505_v34, 0.0  ;;  %v14463_v44 = vmul.f32 %v35804_v20, %v14252_v23  ;;  %29647 = vmatprep.mubr.msk.f32.mxu1 %vm449_vm0, %v14645_v49  ;;  %v15577_v9 = vld [vmem:[#allocation2 + $0xc7] sm:$0xff]  ;;  %v15578_v51 = vld [vmem:[#allocation2 + $0xcf] sm:$0xff] }
 0x88d   : > { %v35985_v62 = vmul.f32 %v14542_v40, %v37915_v4  ;;  %v14508_v31 = vadd.f32 %v35809_v36, %v14464_v42  ;;  %29648 = vmatmul.mubr.msk.f32.gmra.mrb[96].mxu1 %vm449_vm0, %v14646_v55  ;;  %v37917_v55 = vld [vmem:[#allocation40_spill] sm:$0xff] }
 0x88e   : > { %v35990_v0 = vmul.f32 %v14541_v38, %v37916_v26  ;;  %v14507_v39 = vadd.f32 %v35809_v36, %v14463_v44  ;;  %v29599_v56 = vpop.f32.mrb[68].mxu0 }
 0x88f   : > { %14614 = vst [vmem:[#allocation2 + $0x100] sm:$0xff] %v35985_v62  ;;  %v14544_v34 = vmax.f32 %v14508_v31, 0.0  ;;  %v14466_v23 = vmul.f32 %v29599_v56, %v35804_v20  ;;  %v14262_v48 = vpop.f32.mrb[69].mxu0  ;;  %v14647_v49 = vld [vmem:[#allocation2 + $0xd5] sm:$0xff]  ;;  %v14648_v52 = vld [vmem:[#allocation2 + $0xdd] sm:$0xff]  ;;  %v37919_v31 = vld [vmem:[#allocation41_spill] sm:$0xff] }
 0x890   : > { %14613 = vst [vmem:[#allocation2 + $0xf8] sm:$0xff] %v35990_v0  ;;  %v14543_v40 = vmax.f32 %v14507_v39, 0.0  ;;  %v14465_v42 = vmul.f32 %v35804_v20, %v14262_v48  ;;  %29650 = vmatprep.mubr.msk.f32.mxu1 %vm449_vm0, %v14647_v49  ;;  %v15579_v10 = vld [vmem:[#allocation2 + $0xd7] sm:$0xff]  ;;  %v15580_v12 = vld [vmem:[#allocation2 + $0xdf] sm:$0xff] }
 0x891   : > { %v35999_v38 = vmul.f32 %v14544_v34, %v37917_v55  ;;  %v14510_v44 = vadd.f32 %v35809_v36, %v14466_v23  ;;  %29651 = vmatmul.mubr.msk.f32.gmra.mrb[98].mxu1 %vm449_vm0, %v14648_v52  ;;  %v37920_v52 = vld [vmem:[#allocation42_spill] sm:$0xff] }
 0x892   : > { %v36004_v26 = vmul.f32 %v14543_v40, %v37919_v31  ;;  %v14509_v56 = vadd.f32 %v35809_v36, %v14465_v42  ;;  %v29602_v4 = vpop.f32.mrb[70].mxu0 }
 0x893   : > { %37918 = vst [vmem:[#allocation46_spill] sm:$0xff] %v35999_v38  ;;  %14616 = vst [vmem:[#allocation2 + $0x110] sm:$0xff] %v35999_v38  ;;  %v14546_v39 = vmax.f32 %v14510_v44, 0.0  ;;  %v14468_v48 = vmul.f32 %v29602_v4, %v35804_v20  ;;  %v14272_v30 = vpop.f32.mrb[71].mxu0  ;;  %v14649_v49 = vld [vmem:[#allocation2 + $0xe5] sm:$0xff]  ;;  %v14650_v22 = vld [vmem:[#allocation2 + $0xed] sm:$0xff] }
 0x894   : > { %14615 = vst [vmem:[#allocation2 + $0x108] sm:$0xff] %v36004_v26  ;;  %v14545_v34 = vmax.f32 %v14509_v56, 0.0  ;;  %v14467_v23 = vmul.f32 %v35804_v20, %v14272_v30  ;;  %29653 = vmatprep.mubr.msk.f32.mxu1 %vm449_vm0, %v14649_v49  ;;  %v37922_v44 = vld [vmem:[#allocation43_spill] sm:$0xff]  ;;  %v37924_v30 = vld [vmem:[#allocation44_spill] sm:$0xff]  ;;  %v15582_v5 = vld [vmem:[#allocation2 + $0xef] sm:$0xff] }
 0x895   : > { %v36013_v40 = vmul.f32 %v14546_v39, %v37920_v52  ;;  %v14512_v42 = vadd.f32 %v35809_v36, %v14468_v48  ;;  %29654 = vmatmul.mubr.msk.f32.gmra.mrb[100].mxu1 %vm449_vm0, %v14650_v22  ;;  %v37926_v22 = vld [vmem:[#allocation45_spill] sm:$0xff]  ;;  %v36159_v52 = vld [vmem:[#allocation2 + $0x7f] sm:$0xff] }
 0x896   : > { %v36018_v31 = vmul.f32 %v14545_v34, %v37922_v44  ;;  %v14511_v4 = vadd.f32 %v35809_v36, %v14467_v23  ;;  %v36155_v44 = vld [vmem:[#allocation2 + $0x77] sm:$0xff]  ;;  %v15581_v13 = vld [vmem:[#allocation2 + $0xe7] sm:$0xff] }
 0x897   : > { %37921 = vst [vmem:[#allocation48_spill] sm:$0xff] %v36013_v40  ;;  %14618 = vst [vmem:[#allocation2 + $0x120] sm:$0xff] %v36013_v40  ;;  %v14548_v55 = vmax.f32 %v14512_v42, 0.0  ;;  %v14651_v56 = vld [vmem:[#allocation2 + $0xf5] sm:$0xff]  ;;  %v14652_v46 = vld [vmem:[#allocation2 + $0xfd] sm:$0xff] }
 0x898   : > { %37923 = vst [vmem:[#allocation47_spill] sm:$0xff] %v36018_v31  ;;  %14617 = vst [vmem:[#allocation2 + $0x118] sm:$0xff] %v36018_v31  ;;  %v14547_v20 = vmax.f32 %v14511_v4, 0.0  ;;  %29656 = vmatprep.mubr.msk.f32.mxu1 %vm449_vm0, %v14651_v56  ;;  %v15051_v42 = vld [vmem:[#allocation2 + $0x6] sm:$0xff]  ;;  %v15052_v4 = vld [vmem:[#allocation2 + $0xe] sm:$0xff] }
 0x899   : > { %v36025_v39 = vmul.f32 %v14548_v55, %v37924_v30  ;;  %29657 = vmatmul.mubr.msk.f32.gmra.mrb[102].mxu1 %vm449_vm0, %v14652_v46  ;;  %v25445_v46 = vld [vmem:[%s37701_s2 + $0x3b0] sm:$0xff]  ;;  %v25446_v55 = vld [vmem:[%s37701_s2 + $0x3b8] sm:$0xff]  ;;  %v25563_v40 = vld [vmem:[%s37701_s2 + $0x400] sm:$0xff] }
 0x89a   : > { %v36029_v48 = vmul.f32 %v14547_v20, %v37926_v22  ;;  %v31025_v56 = vpack.c.bf16 %v25446_v55, %v25445_v46  ;;  %v25483_v20 = vld [vmem:[%s37701_s2 + $0x3c0] sm:$0xff]  ;;  %v15056_v46 = vld [vmem:[#allocation2 + $0x2e] sm:$0xff]  ;;  %v15057_v55 = vld [vmem:[#allocation2 + $0x36] sm:$0xff] }
 0x89b   : > { %37925 = vst [vmem:[#allocation50_spill] sm:$0xff] %v36025_v39  ;;  %14620 = vst [vmem:[#allocation2 + $0x130] sm:$0xff] %v36025_v39  ;;  %v14653_v36 = vld [vmem:[#allocation2 + $0x105] sm:$0xff]  ;;  %v14654_v49 = vld [vmem:[#allocation2 + $0x10d] sm:$0xff] }
 0x89c   : > { %37927 = vst [vmem:[#allocation49_spill] sm:$0xff] %v36029_v48  ;;  %14619 = vst [vmem:[#allocation2 + $0x128] sm:$0xff] %v36029_v48  ;;  %29659 = vmatprep.mubr.msk.f32.mxu1 %vm449_vm0, %v14653_v36  ;;  %v25484_v36 = vld [vmem:[%s37701_s2 + $0x3c8] sm:$0xff]  ;;  %v15583_v15 = vld [vmem:[#allocation2 + $0xf7] sm:$0xff] }
 0x89d   : > { %29660 = vmatmul.mubr.msk.f32.gmra.mrb[104].mxu1 %vm449_vm0, %v14654_v49  ;;  %v15053_v49 = vld [vmem:[#allocation2 + $0x16] sm:$0xff]  ;;  %v36147_v22 = vld [vmem:[#allocation2 + $0x67] sm:$0xff]  ;;  %v15584_v58 = vld [vmem:[#allocation2 + $0xff] sm:$0xff] }
 0x89e   : > { %v36151_v30 = vld [vmem:[#allocation2 + $0x6f] sm:$0xff]  ;;  %v15585_v16 = vld [vmem:[#allocation2 + $0x107] sm:$0xff]  ;;  %v25526_v39 = vld [vmem:[%s37701_s2 + $0x3f8] sm:$0xff] }
 0x89f   : > { %v14655_v34 = vld [vmem:[#allocation2 + $0x115] sm:$0xff]  ;;  %v14656_v23 = vld [vmem:[#allocation2 + $0x11d] sm:$0xff]  ;;  %v31041_v48 = vpack.c.bf16 %v25526_v39, %v25525_v33  ;;  %v25564_v31 = vld [vmem:[%s37701_s2 + $0x408] sm:$0xff] }
 0x8a0   : > { %29662 = vmatprep.mubr.msk.f32.mxu1 %vm449_vm0, %v14655_v34  ;;  %v36053_v34 = vpack.c.bf16 %v25484_v36, %v25483_v20  ;;  %v15060_v20 = vld [vmem:[#allocation2 + $0x4e] sm:$0xff]  ;;  %v15061_v36 = vld [vmem:[#allocation2 + $0x56] sm:$0xff]  ;;  %v15588_v53 = vld [vmem:[#allocation2 + $0x11f] sm:$0xff]  ;;  %v31045_v38 = vpack.c.bf16 %v25564_v31, %v25563_v40 }
 0x8a1   : > { %29663 = vmatmul.mubr.msk.f32.gmra.mrb[106].mxu1 %vm449_vm0, %v14656_v23  ;;  %v15054_v23 = vld [vmem:[#allocation2 + $0x1e] sm:$0xff]  ;;  %v15586_v60 = vld [vmem:[#allocation2 + $0x10f] sm:$0xff] }
 0x8a2   : > { %29673 = vmatprep.mubr.msk.f32.mxu1 %vm449_vm0, %v15051_v42  ;;  %v15055_v42 = vld [vmem:[#allocation2 + $0x26] sm:$0xff]  ;;  %v15587_v3 = vld [vmem:[#allocation2 + $0x117] sm:$0xff] }
 0x8a3   : > { %v16089_v33 = vld [vmem:[#allocation2 + $0x127] sm:$0xff]  ;;  %v17079_v40 = vld [vmem:[#allocation2 + $0xb9] sm:$0xff]  ;;  %v17082_v39 = vld [vmem:[#allocation2 + $0xd1] sm:$0xff] }
 0x8a4   : > { %v17077_v31 = vld [vmem:[#allocation2 + $0xa9] sm:$0xff] }
 0x8a5   : > { %29674 = vmatmul.mubr.msk.f32.vlgmr.msra.gmra.mrb[72].mxu1 %vm449_vm0, %v15052_v4  ;;  %v15058_v4 = vld [vmem:[#allocation2 + $0x3e] sm:$0xff] }
 0x8a6   : > { %29676 = vmatprep.mubr.msk.f32.mxu1 %vm449_vm0, %v15053_v49  ;;  %31024 = vmatpush3.bf16.msra.mxu1 %v35798_v8  ;;  %v15059_v8 = vld [vmem:[#allocation2 + $0x46] sm:$0xff] }
 0x8a7   : > { %31026 = vmatprep.subr.bf16.mxu1 %v31025_v56  ;;  %v15063_v49 = vld [vmem:[#allocation2 + $0x66] sm:$0xff] }
 0x8a9   : > { %29677 = vmatmul.mubr.msk.f32.gmra.mrb[74].mxu1 %vm449_vm0, %v15054_v23  ;;  %v15064_v23 = vld [vmem:[#allocation2 + $0x6e] sm:$0xff] }
 0x8aa   : > { %29679 = vmatprep.mubr.msk.f32.mxu1 %vm449_vm0, %v15055_v42  ;;  %31028 = vmatpush3.bf16.msra.mxu1 %v31025_v56  ;;  %v15062_v56 = vld [vmem:[#allocation2 + $0x5e] sm:$0xff]  ;;  %v15065_v42 = vld [vmem:[#allocation2 + $0x76] sm:$0xff] }
 0x8ab   : > { %31030 = vmatprep.subr.bf16.mxu1 %v36053_v34 }
 0x8ad   : > { %29680 = vmatmul.mubr.msk.f32.gmra.mrb[76].mxu1 %vm449_vm0, %v15056_v46  ;;  %v15066_v46 = vld [vmem:[#allocation2 + $0x7e] sm:$0xff] }
 0x8ae   : > { %29682 = vmatprep.mubr.msk.f32.mxu1 %vm449_vm0, %v15057_v55  ;;  %v15067_v55 = vld [vmem:[#allocation2 + $0x86] sm:$0xff] }
 0x8b1   : > { %29683 = vmatmul.mubr.msk.f32.gmra.mrb[78].mxu1 %vm449_vm0, %v15058_v4  ;;  %v15068_v4 = vld [vmem:[#allocation2 + $0x8e] sm:$0xff] }
 0x8b2   : > { %29685 = vmatprep.mubr.msk.f32.mxu1 %vm449_vm0, %v15059_v8  ;;  %v15069_v8 = vld [vmem:[#allocation2 + $0x96] sm:$0xff] }
 0x8b5   : > { %29686 = vmatmul.mubr.msk.f32.gmra.mrb[80].mxu1 %vm449_vm0, %v15060_v20  ;;  %v15070_v20 = vld [vmem:[#allocation2 + $0x9e] sm:$0xff] }
 0x8b6   : > { %29688 = vmatprep.mubr.msk.f32.mxu1 %vm449_vm0, %v15061_v36  ;;  %v15071_v36 = vld [vmem:[#allocation2 + $0xa6] sm:$0xff] }
 0x8b9   : > { %29689 = vmatmul.mubr.msk.f32.gmra.mrb[82].mxu1 %vm449_vm0, %v15062_v56  ;;  %v15072_v56 = vld [vmem:[#allocation2 + $0xae] sm:$0xff] }
 0x8ba   : > { %29691 = vmatprep.mubr.msk.f32.mxu1 %vm449_vm0, %v15063_v49  ;;  %v15073_v49 = vld [vmem:[#allocation2 + $0xb6] sm:$0xff] }
 0x8bd   : > { %29692 = vmatmul.mubr.msk.f32.gmra.mrb[84].mxu1 %vm449_vm0, %v15064_v23  ;;  %v15074_v23 = vld [vmem:[#allocation2 + $0xbe] sm:$0xff] }
 0x8be   : > { %29694 = vmatprep.mubr.msk.f32.mxu1 %vm449_vm0, %v15065_v42  ;;  %v15075_v42 = vld [vmem:[#allocation2 + $0xc6] sm:$0xff] }
 0x8c1   : > { %29695 = vmatmul.mubr.msk.f32.gmra.mrb[86].mxu1 %vm449_vm0, %v15066_v46  ;;  %v15076_v46 = vld [vmem:[#allocation2 + $0xce] sm:$0xff] }
 0x8c2   : > { %29697 = vmatprep.mubr.msk.f32.mxu1 %vm449_vm0, %v15067_v55  ;;  %v15077_v55 = vld [vmem:[#allocation2 + $0xd6] sm:$0xff] }
 0x8c5   : > { %29698 = vmatmul.mubr.msk.f32.gmra.mrb[88].mxu1 %vm449_vm0, %v15068_v4  ;;  %v15078_v4 = vld [vmem:[#allocation2 + $0xde] sm:$0xff] }
 0x8c6   : > { %29700 = vmatprep.mubr.msk.f32.mxu1 %vm449_vm0, %v15069_v8  ;;  %v15079_v8 = vld [vmem:[#allocation2 + $0xe6] sm:$0xff] }
 0x8c9   : > { %29701 = vmatmul.mubr.msk.f32.gmra.mrb[90].mxu1 %vm449_vm0, %v15070_v20  ;;  %v15080_v20 = vld [vmem:[#allocation2 + $0xee] sm:$0xff] }
 0x8ca   : > { %29703 = vmatprep.mubr.msk.f32.mxu1 %vm449_vm0, %v15071_v36  ;;  %v15081_v36 = vld [vmem:[#allocation2 + $0xf6] sm:$0xff] }
 0x8cd   : > { %29704 = vmatmul.mubr.msk.f32.gmra.mrb[92].mxu1 %vm449_vm0, %v15072_v56  ;;  %v15082_v56 = vld [vmem:[#allocation2 + $0xfe] sm:$0xff] }
 0x8ce   : > { %29706 = vmatprep.mubr.msk.f32.mxu1 %vm449_vm0, %v15073_v49  ;;  %v15083_v49 = vld [vmem:[#allocation2 + $0x106] sm:$0xff] }
 0x8d1   : > { %29707 = vmatmul.mubr.msk.f32.gmra.mrb[94].mxu1 %vm449_vm0, %v15074_v23  ;;  %v15084_v23 = vld [vmem:[#allocation2 + $0x10e] sm:$0xff] }
 0x8d2   : > { %29709 = vmatprep.mubr.msk.f32.mxu1 %vm449_vm0, %v15075_v42  ;;  %v15085_v42 = vld [vmem:[#allocation2 + $0x116] sm:$0xff] }
 0x8d5   : > { %29710 = vmatmul.mubr.msk.f32.gmra.mrb[96].mxu1 %vm449_vm0, %v15076_v46  ;;  %v15553_v46 = vld [vmem:[#allocation2 + $0x7] sm:$0xff] }
 0x8d6   : > { %29712 = vmatprep.mubr.msk.f32.mxu1 %vm449_vm0, %v15077_v55  ;;  %v15086_v55 = vld [vmem:[#allocation2 + $0x11e] sm:$0xff] }
 0x8d9   : > { %29713 = vmatmul.mubr.msk.f32.gmra.mrb[98].mxu1 %vm449_vm0, %v15078_v4  ;;  %v25485_v4 = vld [vmem:[%s37701_s2 + $0x3d0] sm:$0xff] }
 0x8da   : > { %29715 = vmatprep.mubr.msk.f32.mxu1 %vm449_vm0, %v15079_v8  ;;  %v25486_v8 = vld [vmem:[%s37701_s2 + $0x3d8] sm:$0xff] }
 0x8dd   : > { %29716 = vmatmul.mubr.msk.f32.gmra.mrb[100].mxu1 %vm449_vm0, %v15080_v20  ;;  %v15554_v20 = vld [vmem:[#allocation2 + $0xf] sm:$0xff] }
 0x8de   : > { %29718 = vmatprep.mubr.msk.f32.mxu1 %vm449_vm0, %v15081_v36  ;;  %v31033_v36 = vpack.c.bf16 %v25486_v8, %v25485_v4  ;;  %v36119_v4 = vld [vmem:[#allocation2 + $0x2f] sm:$0xff]  ;;  %v36127_v8 = vld [vmem:[#allocation2 + $0x3f] sm:$0xff] }
 0x8e1   : > { %29719 = vmatmul.mubr.msk.f32.gmra.mrb[102].mxu1 %vm449_vm0, %v15082_v56  ;;  %v25523_v56 = vld [vmem:[%s37701_s2 + $0x3e0] sm:$0xff] }
 0x8e2   : > { %29721 = vmatprep.mubr.msk.f32.mxu1 %vm449_vm0, %v15083_v49  ;;  %v25524_v49 = vld [vmem:[%s37701_s2 + $0x3e8] sm:$0xff] }
 0x8e5   : > { %29722 = vmatmul.mubr.msk.f32.gmra.mrb[104].mxu1 %vm449_vm0, %v15084_v23  ;;  %v36103_v23 = vld [vmem:[#allocation2 + $0x17] sm:$0xff] }
 0x8e6   : > { %29724 = vmatprep.mubr.msk.f32.mxu1 %vm449_vm0, %v15085_v42  ;;  %v36108_v42 = vpack.c.bf16 %v25524_v49, %v25523_v56  ;;  %v36139_v56 = vld [vmem:[#allocation2 + $0x57] sm:$0xff]  ;;  %v36143_v49 = vld [vmem:[#allocation2 + $0x5f] sm:$0xff] }
 0x8e9   : > { %29725 = vmatmul.mubr.msk.f32.gmra.mrb[106].mxu1 %vm449_vm0, %v15086_v55  ;;  %v36114_v55 = vld [vmem:[#allocation2 + $0x27] sm:$0xff] }
 0x8ea   : > { %29735 = vmatprep.mubr.msk.f32.mxu1 %vm449_vm0, %v15553_v46  ;;  %v36110_v46 = vld [vmem:[#allocation2 + $0x1f] sm:$0xff] }
 0x8ed   : > { %29736 = vmatmul.mubr.msk.f32.vlgmr.msra.gmra.mrb[72].mxu1 %vm449_vm0, %v15554_v20  ;;  %v36131_v20 = vld [vmem:[#allocation2 + $0x47] sm:$0xff] }
 0x8ee   : > { %29738 = vmatprep.mubr.msk.f32.mxu1 %vm449_vm0, %v36103_v23  ;;  %31032 = vmatpush3.bf16.msra.mxu1 %v36053_v34  ;;  %v36123_v34 = vld [vmem:[#allocation2 + $0x37] sm:$0xff] }
 0x8ef   : > { %31034 = vmatprep.subr.bf16.mxu1 %v31033_v36 }
 0x8f1   : > { %29739 = vmatmul.mubr.msk.f32.gmra.mrb[74].mxu1 %vm449_vm0, %v36110_v46 }
 0x8f2   : > { %29741 = vmatprep.mubr.msk.f32.mxu1 %vm449_vm0, %v36114_v55  ;;  %31036 = vmatpush3.bf16.msra.mxu1 %v31033_v36  ;;  %v36135_v36 = vld [vmem:[#allocation2 + $0x4f] sm:$0xff] }
 0x8f3   : > { %31038 = vmatprep.subr.bf16.mxu1 %v36108_v42 }
 0x8f5   : > { %29742 = vmatmul.mubr.msk.f32.gmra.mrb[76].mxu1 %vm449_vm0, %v36119_v4 }
 0x8f6   : > { %29744 = vmatprep.mubr.msk.f32.mxu1 %vm449_vm0, %v36123_v34 }
 0x8f9   : > { %29745 = vmatmul.mubr.msk.f32.gmra.mrb[78].mxu1 %vm449_vm0, %v36127_v8 }
 0x8fa   : > { %29747 = vmatprep.mubr.msk.f32.mxu1 %vm449_vm0, %v36131_v20 }
 0x8fd   : > { %29748 = vmatmul.mubr.msk.f32.gmra.mrb[80].mxu1 %vm449_vm0, %v36135_v36 }
 0x8fe   : > { %29750 = vmatprep.mubr.msk.f32.mxu1 %vm449_vm0, %v36139_v56 }
 0x901   : > { %29751 = vmatmul.mubr.msk.f32.gmra.mrb[82].mxu1 %vm449_vm0, %v36143_v49 }
 0x902   : > { %29753 = vmatprep.mubr.msk.f32.mxu1 %vm449_vm0, %v36147_v22 }
 0x905   : > { %29754 = vmatmul.mubr.msk.f32.gmra.mrb[84].mxu1 %vm449_vm0, %v36151_v30 }
 0x906   : > { %29756 = vmatprep.mubr.msk.f32.mxu1 %vm449_vm0, %v36155_v44 }
 0x909   : > { %29757 = vmatmul.mubr.msk.f32.gmra.mrb[86].mxu1 %vm449_vm0, %v36159_v52 }
 0x90a   : > { %29759 = vmatprep.mubr.msk.f32.mxu1 %vm449_vm0, %v36163_v35 }
 0x90d   : > { %29760 = vmatmul.mubr.msk.f32.gmra.mrb[88].mxu1 %vm449_vm0, %v36167_v43 }
 0x90e   : > { %29762 = vmatprep.mubr.msk.f32.mxu1 %vm449_vm0, %v15571_v37 }
 0x911   : > { %29763 = vmatmul.mubr.msk.f32.gmra.mrb[90].mxu1 %vm449_vm0, %v15572_v21 }
 0x912   : > { %29765 = vmatprep.mubr.msk.f32.mxu1 %vm449_vm0, %v15573_v47 }
 0x915   : > { %29766 = vmatmul.mubr.msk.f32.gmra.mrb[92].mxu1 %vm449_vm0, %v15574_v7 }
 0x916   : > { %29768 = vmatprep.mubr.msk.f32.mxu1 %vm449_vm0, %v15575_v45 }
 0x919   : > { %29769 = vmatmul.mubr.msk.f32.gmra.mrb[94].mxu1 %vm449_vm0, %v15576_v57 }
 0x91a   : > { %29771 = vmatprep.mubr.msk.f32.mxu1 %vm449_vm0, %v15577_v9 }
 0x91d   : > { %29772 = vmatmul.mubr.msk.f32.gmra.mrb[96].mxu1 %vm449_vm0, %v15578_v51 }
 0x91e   : > { %29774 = vmatprep.mubr.msk.f32.mxu1 %vm449_vm0, %v15579_v10 }
 0x921   : > { %29775 = vmatmul.mubr.msk.f32.gmra.mrb[98].mxu1 %vm449_vm0, %v15580_v12 }
 0x922   : > { %29777 = vmatprep.mubr.msk.f32.mxu1 %vm449_vm0, %v15581_v13 }
 0x925   : > { %29778 = vmatmul.mubr.msk.f32.gmra.mrb[100].mxu1 %vm449_vm0, %v15582_v5 }
 0x926   : > { %29780 = vmatprep.mubr.msk.f32.mxu1 %vm449_vm0, %v15583_v15 }
 0x929   : > { %29781 = vmatmul.mubr.msk.f32.gmra.mrb[102].mxu1 %vm449_vm0, %v15584_v58 }
 0x92a   : > { %29783 = vmatprep.mubr.msk.f32.mxu1 %vm449_vm0, %v15585_v16 }
 0x92d   : > { %29784 = vmatmul.mubr.msk.f32.gmra.mrb[104].mxu1 %vm449_vm0, %v15586_v60 }
 0x92e   : > { %29786 = vmatprep.mubr.msk.f32.mxu1 %vm449_vm0, %v15587_v3 }
 0x931   : > { %29787 = vmatmul.mubr.msk.f32.gmra.mrb[106].mxu1 %vm449_vm0, %v15588_v53 }
 0x932   : > { %29797 = vmatprep.mubr.msk.f32.mxu1 %vm449_vm0, %v36103_v23  ;;  %v17085_v23 = vld [vmem:[#allocation2 + $0xe9] sm:$0xff] }
 0x935   : > { %29798 = vmatmul.mubr.msk.f32.vlgmr.msra.gmra.mrb[72].mxu1 %vm449_vm0, %v36110_v46  ;;  %v17087_v46 = vld [vmem:[#allocation2 + $0xf9] sm:$0xff] }
 0x936   : > { %29800 = vmatprep.mubr.msk.f32.mxu1 %vm449_vm0, %v36114_v55  ;;  %31040 = vmatpush3.bf16.msra.mxu1 %v36108_v42  ;;  %v17086_v42 = vld [vmem:[#allocation2 + $0xf1] sm:$0xff]  ;;  %v17088_v55 = vld [vmem:[#allocation2 + $0x101] sm:$0xff] }
 0x937   : > { %31042 = vmatprep.subr.bf16.mxu1 %v31041_v48 }
 0x939   : > { %29801 = vmatmul.mubr.msk.f32.gmra.mrb[74].mxu1 %vm449_vm0, %v36119_v4  ;;  %v17089_v4 = vld [vmem:[#allocation2 + $0x109] sm:$0xff] }
 0x93a   : > { %29803 = vmatprep.mubr.msk.f32.mxu1 %vm449_vm0, %v36123_v34  ;;  %31044 = vmatpush3.bf16.msra.mxu1 %v31041_v48  ;;  %v17084_v48 = vld [vmem:[#allocation2 + $0xe1] sm:$0xff]  ;;  %v17090_v34 = vld [vmem:[#allocation2 + $0x111] sm:$0xff] }
 0x93b   : > { %31046 = vmatprep.subr.bf16.mxu1 %v31045_v38 }
 0x93d   : > { %29804 = vmatmul.mubr.msk.f32.gmra.mrb[76].mxu1 %vm449_vm0, %v36127_v8  ;;  %v17091_v8 = vld [vmem:[#allocation2 + $0x119] sm:$0xff] }
 0x93e   : > { %29806 = vmatprep.mubr.msk.f32.mxu1 %vm449_vm0, %v36131_v20  ;;  %v17092_v20 = vld [vmem:[#allocation2 + $0x121] sm:$0xff] }
 0x941   : > { %29807 = vmatmul.mubr.msk.f32.gmra.mrb[78].mxu1 %vm449_vm0, %v36135_v36  ;;  %v17093_v36 = vld [vmem:[#allocation2 + $0x129] sm:$0xff] }
 0x942   : > { %29809 = vmatprep.mubr.msk.f32.mxu1 %vm449_vm0, %v36139_v56  ;;  %v17094_v56 = vld [vmem:[#allocation2 + $0x131] sm:$0xff] }
 0x945   : > { %29810 = vmatmul.mubr.msk.f32.gmra.mrb[80].mxu1 %vm449_vm0, %v36143_v49  ;;  %v25645_v49 = vld [vmem:[%s37701_s2 + $0x450] sm:$0xff] }
 0x946   : > { %29812 = vmatprep.mubr.msk.f32.mxu1 %vm449_vm0, %v36147_v22  ;;  %v17083_v22 = vld [vmem:[#allocation2 + $0xd9] sm:$0xff] }
 0x949   : > { %29813 = vmatmul.mubr.msk.f32.gmra.mrb[82].mxu1 %vm449_vm0, %v36151_v30  ;;  %v17081_v30 = vld [vmem:[#allocation2 + $0xc9] sm:$0xff] }
 0x94a   : > { %29815 = vmatprep.mubr.msk.f32.mxu1 %vm449_vm0, %v36155_v44  ;;  %v17080_v44 = vld [vmem:[#allocation2 + $0xc1] sm:$0xff] }
 0x94d   : > { %29816 = vmatmul.mubr.msk.f32.gmra.mrb[84].mxu1 %vm449_vm0, %v36159_v52  ;;  %v17078_v52 = vld [vmem:[#allocation2 + $0xb1] sm:$0xff] }
 0x94e   : > { %29818 = vmatprep.mubr.msk.f32.mxu1 %vm449_vm0, %v36163_v35  ;;  %v36359_v35 = vld [vmem:[#allocation2 + $0x41] sm:$0xff] }
 0x951   : > { %29819 = vmatmul.mubr.msk.f32.gmra.mrb[86].mxu1 %vm449_vm0, %v36167_v43  ;;  %v36350_v43 = vld [vmem:[#allocation2 + $0x31] sm:$0xff] }
 0x952   : > { %29821 = vmatprep.mubr.msk.f32.mxu1 %vm449_vm0, %v15571_v37  ;;  %v36344_v37 = vld [vmem:[#allocation2 + $0x29] sm:$0xff] }
 0x955   : > { %29822 = vmatmul.mubr.msk.f32.gmra.mrb[88].mxu1 %vm449_vm0, %v15572_v21  ;;  %v25643_v21 = vld [vmem:[%s37701_s2 + $0x440] sm:$0xff] }
 0x956   : > { %29824 = vmatprep.mubr.msk.f32.mxu1 %vm449_vm0, %v15573_v47 }
 0x959   : > { %29825 = vmatmul.mubr.msk.f32.gmra.mrb[90].mxu1 %vm449_vm0, %v15574_v7  ;;  %v16564_v7 = vld [vmem:[#allocation2 + $0x50] sm:$0xff] }
 0x95a   : > { %29827 = vmatprep.mubr.msk.f32.mxu1 %vm449_vm0, %v15575_v45  ;;  %v16563_v45 = vld [vmem:[#allocation2 + $0x48] sm:$0xff] }
 0x95d   : > { %29828 = vmatmul.mubr.msk.f32.gmra.mrb[92].mxu1 %vm449_vm0, %v15576_v57  ;;  %v16562_v57 = vld [vmem:[#allocation2 + $0x40] sm:$0xff] }
 0x95e   : > { %29830 = vmatprep.mubr.msk.f32.mxu1 %vm449_vm0, %v15577_v9  ;;  %v16561_v9 = vld [vmem:[#allocation2 + $0x38] sm:$0xff] }
 0x961   : > { %29831 = vmatmul.mubr.msk.f32.gmra.mrb[94].mxu1 %vm449_vm0, %v15578_v51  ;;  %v16560_v51 = vld [vmem:[#allocation2 + $0x30] sm:$0xff] }
 0x962   : > { %29833 = vmatprep.mubr.msk.f32.mxu1 %vm449_vm0, %v15579_v10 }
 0x965   : > { %29834 = vmatmul.mubr.msk.f32.gmra.mrb[96].mxu1 %vm449_vm0, %v15580_v12  ;;  %v16090_v12 = vld [vmem:[#allocation2 + $0x12f] sm:$0xff] }
 0x966   : > { %29836 = vmatprep.mubr.msk.f32.mxu1 %vm449_vm0, %v15581_v13  ;;  %v16559_v13 = vld [vmem:[#allocation2 + $0x28] sm:$0xff] }
 0x969   : > { %29837 = vmatmul.mubr.msk.f32.gmra.mrb[98].mxu1 %vm449_vm0, %v15582_v5  ;;  %v25565_v5 = vld [vmem:[%s37701_s2 + $0x410] sm:$0xff] }
 0x96a   : > { %29839 = vmatprep.mubr.msk.f32.mxu1 %vm449_vm0, %v15583_v15  ;;  %v25604_v15 = vld [vmem:[%s37701_s2 + $0x428] sm:$0xff] }
 0x96d   : > { %29840 = vmatmul.mubr.msk.f32.gmra.mrb[100].mxu1 %vm449_vm0, %v15584_v58  ;;  %v25566_v58 = vld [vmem:[%s37701_s2 + $0x418] sm:$0xff] }
 0x96e   : > { %29842 = vmatprep.mubr.msk.f32.mxu1 %vm449_vm0, %v15585_v16  ;;  %v16557_v16 = vld [vmem:[#allocation2 + $0x18] sm:$0xff] }
 0x971   : > { %29843 = vmatmul.mubr.msk.f32.gmra.mrb[102].mxu1 %vm449_vm0, %v15586_v60  ;;  %v16558_v60 = vld [vmem:[#allocation2 + $0x20] sm:$0xff] }
 0x972   : > { %29845 = vmatprep.mubr.msk.f32.mxu1 %vm449_vm0, %v15587_v3  ;;  %v31049_v3 = vpack.c.bf16 %v25566_v58, %v25565_v5  ;;  %v25683_v5 = vld [vmem:[%s37701_s2 + $0x460] sm:$0xff]  ;;  %v25684_v58 = vld [vmem:[%s37701_s2 + $0x468] sm:$0xff] }
 0x975   : > { %29846 = vmatmul.mubr.msk.f32.gmra.mrb[104].mxu1 %vm449_vm0, %v15588_v53  ;;  %v25603_v53 = vld [vmem:[%s37701_s2 + $0x420] sm:$0xff] }
 0x976   : > { %29848 = vmatprep.mubr.msk.f32.mxu1 %vm449_vm0, %v16089_v33  ;;  %v31053_v10 = vpack.c.bf16 %v25604_v15, %v25603_v53  ;;  %v25646_v33 = vld [vmem:[%s37701_s2 + $0x458] sm:$0xff]  ;;  %v25685_v53 = vld [vmem:[%s37701_s2 + $0x470] sm:$0xff] }
 0x977   : > { %v25686_v15 = vld [vmem:[%s37701_s2 + $0x478] sm:$0xff] }
 0x979   : > { %29849 = vmatmul.mubr.msk.f32.gmra.mrb[106].mxu1 %vm449_vm0, %v16090_v12  ;;  %v31065_v12 = vpack.c.bf16 %v25646_v33, %v25645_v49  ;;  %v18576_v49 = vld [vmem:[#allocation2 + $0x83] sm:$0xff]  ;;  %v18577_v33 = vld [vmem:[#allocation2 + $0x8b] sm:$0xff] }
 0x97a   : > { %29859 = vmatprep.mubr.msk.f32.mxu1 %vm449_vm0, %v16557_v16  ;;  %v31069_v16 = vpack.c.bf16 %v25684_v58, %v25683_v5  ;;  %v18579_v5 = vld [vmem:[#allocation2 + $0x9b] sm:$0xff]  ;;  %v18580_v58 = vld [vmem:[#allocation2 + $0xa3] sm:$0xff] }
 0x97d   : > { %29860 = vmatmul.mubr.msk.f32.vlgmr.msra.gmra.mrb[72].mxu1 %vm449_vm0, %v16558_v60  ;;  %v17596_v60 = vld [vmem:[#allocation2 + $0x141] sm:$0xff] }
 0x97e   : > { %29862 = vmatprep.mubr.msk.f32.mxu1 %vm449_vm0, %v16559_v13  ;;  %31048 = vmatpush3.bf16.msra.mxu1 %v31045_v38  ;;  %v36407_v38 = vld [vmem:[#allocation2 + $0xa1] sm:$0xff]  ;;  %v18063_v13 = vld [vmem:[#allocation2 + $0x2a] sm:$0xff] }
 0x97f   : > { %31050 = vmatprep.subr.bf16.mxu1 %v31049_v3 }
 0x981   : > { %29863 = vmatmul.mubr.msk.f32.gmra.mrb[74].mxu1 %vm449_vm0, %v16560_v51  ;;  %v18064_v51 = vld [vmem:[#allocation2 + $0x32] sm:$0xff] }
 0x982   : > { %29865 = vmatprep.mubr.msk.f32.mxu1 %vm449_vm0, %v16561_v9  ;;  %31052 = vmatpush3.bf16.msra.mxu1 %v31049_v3  ;;  %v17595_v3 = vld [vmem:[#allocation2 + $0x139] sm:$0xff] }
 0x983   : > { %31054 = vmatprep.subr.bf16.mxu1 %v31053_v10  ;;  %v18065_v9 = vld [vmem:[#allocation2 + $0x3a] sm:$0xff] }
 0x985   : > { %29866 = vmatmul.mubr.msk.f32.gmra.mrb[76].mxu1 %vm449_vm0, %v16562_v57  ;;  %v18066_v57 = vld [vmem:[#allocation2 + $0x42] sm:$0xff] }
 0x986   : > { %29868 = vmatprep.mubr.msk.f32.mxu1 %vm449_vm0, %v16563_v45  ;;  %v18067_v45 = vld [vmem:[#allocation2 + $0x4a] sm:$0xff] }
 0x989   : > { %29869 = vmatmul.mubr.msk.f32.gmra.mrb[78].mxu1 %vm449_vm0, %v16564_v7  ;;  %v18068_v7 = vld [vmem:[#allocation2 + $0x52] sm:$0xff] }
 0x98a   : > { %29871 = vmatprep.mubr.msk.f32.mxu1 %vm449_vm0, %v35850_v2  ;;  %v37929_v2 = vld [vmem:[#allocation47_spill] sm:$0xff] }
 0x98d   : > { %29872 = vmatmul.mubr.msk.f32.gmra.mrb[80].mxu1 %vm449_vm0, %v35845_v25  ;;  %v37928_v25 = vld [vmem:[#allocation46_spill] sm:$0xff] }
 0x98e   : > { %29874 = vmatprep.mubr.msk.f32.mxu1 %vm449_vm0, %v35864_v50  ;;  %v37931_v50 = vld [vmem:[#allocation49_spill] sm:$0xff] }
 0x991   : > { %29875 = vmatmul.mubr.msk.f32.gmra.mrb[82].mxu1 %vm449_vm0, %v35859_v27  ;;  %v37930_v27 = vld [vmem:[#allocation48_spill] sm:$0xff] }
 0x992   : > { %29877 = vmatprep.mubr.msk.f32.mxu1 %vm449_vm0, %v35878_v32  ;;  %v25606_v32 = vld [vmem:[%s37701_s2 + $0x438] sm:$0xff] }
 0x995   : > { %29878 = vmatmul.mubr.msk.f32.gmra.mrb[84].mxu1 %vm449_vm0, %v35873_v63  ;;  %v25605_v63 = vld [vmem:[%s37701_s2 + $0x430] sm:$0xff] }
 0x996   : > { %29880 = vmatprep.mubr.msk.f32.mxu1 %vm449_vm0, %v35892_v6  ;;  %v17059_v6 = vld [vmem:[#allocation2 + $0x19] sm:$0xff]  ;;  %v31057_v47 = vpack.c.bf16 %v25606_v32, %v25605_v63  ;;  %v25728_v63 = vld [vmem:[%s37701_s2 + $0x488] sm:$0xff]  ;;  %v25729_v32 = vld [vmem:[%s37701_s2 + $0x490] sm:$0xff] }
 0x999   : > { %29881 = vmatmul.mubr.msk.f32.gmra.mrb[86].mxu1 %vm449_vm0, %v35887_v24  ;;  %v37932_v24 = vld [vmem:[#allocation50_spill] sm:$0xff] }
 0x99a   : > { %29883 = vmatprep.mubr.msk.f32.mxu1 %vm449_vm0, %v35906_v14  ;;  %v25644_v14 = vld [vmem:[%s37701_s2 + $0x448] sm:$0xff] }
 0x99d   : > { %29884 = vmatmul.mubr.msk.f32.gmra.mrb[88].mxu1 %vm449_vm0, %v35901_v61  ;;  %v17060_v61 = vld [vmem:[#allocation2 + $0x21] sm:$0xff] }
 0x99e   : > { %29886 = vmatprep.mubr.msk.f32.mxu1 %vm449_vm0, %v35920_v59  ;;  %v36354_v59 = vld [vmem:[#allocation2 + $0x39] sm:$0xff] }
 0x9a1   : > { %29887 = vmatmul.mubr.msk.f32.gmra.mrb[90].mxu1 %vm449_vm0, %v35915_v19  ;;  %v36348_v19 = vpack.c.bf16 %v25644_v14, %v25643_v21  ;;  %v18073_v21 = vld [vmem:[#allocation2 + $0x7a] sm:$0xff]  ;;  %v18074_v14 = vld [vmem:[#allocation2 + $0x82] sm:$0xff] }
 0x9a2   : > { %29889 = vmatprep.mubr.msk.f32.mxu1 %vm449_vm0, %v35934_v29  ;;  %v36367_v29 = vld [vmem:[#allocation2 + $0x51] sm:$0xff] }
 0x9a5   : > { %29890 = vmatmul.mubr.msk.f32.gmra.mrb[92].mxu1 %vm449_vm0, %v35929_v28  ;;  %v36363_v28 = vld [vmem:[#allocation2 + $0x49] sm:$0xff] }
 0x9a6   : > { %29892 = vmatprep.mubr.msk.f32.mxu1 %vm449_vm0, %v35948_v11  ;;  %v36375_v11 = vld [vmem:[#allocation2 + $0x61] sm:$0xff] }
 0x9a9   : > { %29893 = vmatmul.mubr.msk.f32.gmra.mrb[94].mxu1 %vm449_vm0, %v35943_v1  ;;  %v36371_v1 = vld [vmem:[#allocation2 + $0x59] sm:$0xff] }
 0x9aa   : > { %29895 = vmatprep.mubr.msk.f32.mxu1 %vm449_vm0, %v35962_v54  ;;  %v36383_v54 = vld [vmem:[#allocation2 + $0x71] sm:$0xff] }
 0x9ad   : > { %29896 = vmatmul.mubr.msk.f32.gmra.mrb[96].mxu1 %vm449_vm0, %v35957_v18  ;;  %v36379_v18 = vld [vmem:[#allocation2 + $0x69] sm:$0xff] }
 0x9ae   : > { %29898 = vmatprep.mubr.msk.f32.mxu1 %vm449_vm0, %v35976_v17  ;;  %v36395_v17 = vld [vmem:[#allocation2 + $0x89] sm:$0xff] }
 0x9b1   : > { %29899 = vmatmul.mubr.msk.f32.gmra.mrb[98].mxu1 %vm449_vm0, %v35971_v41  ;;  %v36387_v41 = vld [vmem:[#allocation2 + $0x79] sm:$0xff] }
 0x9b2   : > { %29901 = vmatprep.mubr.msk.f32.mxu1 %vm449_vm0, %v35990_v0  ;;  %v36391_v0 = vld [vmem:[#allocation2 + $0x81] sm:$0xff] }
 0x9b5   : > { %29902 = vmatmul.mubr.msk.f32.gmra.mrb[100].mxu1 %vm449_vm0, %v35985_v62  ;;  %v36399_v62 = vld [vmem:[#allocation2 + $0x91] sm:$0xff] }
 0x9b6   : > { %29904 = vmatprep.mubr.msk.f32.mxu1 %vm449_vm0, %v36004_v26  ;;  %v36403_v26 = vld [vmem:[#allocation2 + $0x99] sm:$0xff] }
 0x9b9   : > { %29905 = vmatmul.mubr.msk.f32.gmra.mrb[102].mxu1 %vm449_vm0, %v37928_v25  ;;  %v18069_v25 = vld [vmem:[#allocation2 + $0x5a] sm:$0xff] }
 0x9ba   : > { %29907 = vmatprep.mubr.msk.f32.mxu1 %vm449_vm0, %v37929_v2  ;;  %v18070_v2 = vld [vmem:[#allocation2 + $0x62] sm:$0xff] }
 0x9bd   : > { %29908 = vmatmul.mubr.msk.f32.gmra.mrb[104].mxu1 %vm449_vm0, %v37930_v27  ;;  %v18071_v27 = vld [vmem:[#allocation2 + $0x6a] sm:$0xff] }
 0x9be   : > { %29910 = vmatprep.mubr.msk.f32.mxu1 %vm449_vm0, %v37931_v50  ;;  %v25727_v50 = vld [vmem:[%s37701_s2 + $0x480] sm:$0xff] }
 0x9c1   : > { %29911 = vmatmul.mubr.msk.f32.gmra.mrb[106].mxu1 %vm449_vm0, %v37932_v24  ;;  %v31077_v24 = vpack.c.bf16 %v25728_v63, %v25727_v50  ;;  %v18596_v50 = vld [vmem:[#allocation2 + $0x123] sm:$0xff]  ;;  %v18597_v63 = vld [vmem:[#allocation2 + $0x12b] sm:$0xff] }
 0x9c2   : > { %29921 = vmatprep.mubr.msk.f32.mxu1 %vm449_vm0, %v17059_v6  ;;  %v25730_v6 = vld [vmem:[%s37701_s2 + $0x498] sm:$0xff] }
 0x9c3   : > { %31078 = vmatprep.subr.bf16.mxu0 %v31077_v24 }
 0x9c4   : > { %31080 = vmatpush3.bf16.msra.mxu0 %v31077_v24  ;;  %v18598_v24 = vld [vmem:[#allocation2 + $0x133] sm:$0xff] }
 0x9c5   : > { %29922 = vmatmul.mubr.msk.f32.vlgmr.msra.gmra.mrb[72].mxu1 %vm449_vm0, %v17060_v61  ;;  %v18072_v61 = vld [vmem:[#allocation2 + $0x72] sm:$0xff] }
 0x9c6   : > { %29924 = vmatprep.mubr.msk.f32.mxu1 %vm449_vm0, %v36344_v37  ;;  %31056 = vmatpush3.bf16.msra.mxu1 %v31053_v10  ;;  %v31073_v10 = vpack.c.bf16 %v25686_v15, %v25685_v53  ;;  %v18584_v53 = vld [vmem:[#allocation2 + $0xc3] sm:$0xff]  ;;  %v18585_v15 = vld [vmem:[#allocation2 + $0xcb] sm:$0xff] }
 0x9c7   : > { %31058 = vmatprep.subr.bf16.mxu1 %v31057_v47 }
 0x9c9   : > { %29925 = vmatmul.mubr.msk.f32.gmra.mrb[74].mxu1 %vm449_vm0, %v36350_v43 }
 0x9ca   : > { %29927 = vmatprep.mubr.msk.f32.mxu1 %vm449_vm0, %v36354_v59  ;;  %31060 = vmatpush3.bf16.msra.mxu1 %v31057_v47  ;;  %v31081_v47 = vpack.c.bf16 %v25730_v6, %v25729_v32  ;;  %v18599_v32 = vld [vmem:[#allocation2 + $0x13b] sm:$0xff]  ;;  %v18600_v6 = vld [vmem:[#allocation2 + $0x143] sm:$0xff] }
 0x9cb   : > { %31062 = vmatprep.subr.bf16.mxu1 %v36348_v19 }
 0x9cc   : > { %31082 = vmatprep.subr.bf16.mxu0 %v31081_v47 }
 0x9cd   : > { %29928 = vmatmul.mubr.msk.f32.gmra.mrb[76].mxu1 %vm449_vm0, %v36359_v35  ;;  %31084 = vmatpush3.bf16.msra.mxu0 %v31081_v47  ;;  %v19299_v47 = vld [vmem:[#allocation2 + $0x5] sm:$0xff] }
 0x9ce   : > { %29930 = vmatprep.mubr.msk.f32.mxu1 %vm449_vm0, %v36363_v28  ;;  %30169 = vmatprep.mubr.msk.f32.mxu0 %vm449_vm0, %v19299_v47 }
 0x9d1   : > { %29931 = vmatmul.mubr.msk.f32.gmra.mrb[78].mxu1 %vm449_vm0, %v36367_v29 }
 0x9d2   : > { %29933 = vmatprep.mubr.msk.f32.mxu1 %vm449_vm0, %v36371_v1 }
 0x9d5   : > { %29934 = vmatmul.mubr.msk.f32.gmra.mrb[80].mxu1 %vm449_vm0, %v36375_v11 }
 0x9d6   : > { %29936 = vmatprep.mubr.msk.f32.mxu1 %vm449_vm0, %v36379_v18 }
 0x9d9   : > { %29937 = vmatmul.mubr.msk.f32.gmra.mrb[82].mxu1 %vm449_vm0, %v36383_v54 }
 0x9da   : > { %29939 = vmatprep.mubr.msk.f32.mxu1 %vm449_vm0, %v36387_v41 }
 0x9dd   : > { %29940 = vmatmul.mubr.msk.f32.gmra.mrb[84].mxu1 %vm449_vm0, %v36391_v0 }
 0x9de   : > { %29942 = vmatprep.mubr.msk.f32.mxu1 %vm449_vm0, %v36395_v17 }
 0x9e1   : > { %29943 = vmatmul.mubr.msk.f32.gmra.mrb[86].mxu1 %vm449_vm0, %v36399_v62 }
 0x9e2   : > { %29945 = vmatprep.mubr.msk.f32.mxu1 %vm449_vm0, %v36403_v26 }
 0x9e5   : > { %29946 = vmatmul.mubr.msk.f32.gmra.mrb[88].mxu1 %vm449_vm0, %v36407_v38 }
 0x9e6   : > { %29948 = vmatprep.mubr.msk.f32.mxu1 %vm449_vm0, %v17077_v31 }
 0x9e9   : > { %29949 = vmatmul.mubr.msk.f32.gmra.mrb[90].mxu1 %vm449_vm0, %v17078_v52 }
 0x9ea   : > { %29951 = vmatprep.mubr.msk.f32.mxu1 %vm449_vm0, %v17079_v40 }
 0x9ed   : > { %29952 = vmatmul.mubr.msk.f32.gmra.mrb[92].mxu1 %vm449_vm0, %v17080_v44 }
 0x9ee   : > { %29954 = vmatprep.mubr.msk.f32.mxu1 %vm449_vm0, %v17081_v30 }
 0x9f1   : > { %29955 = vmatmul.mubr.msk.f32.gmra.mrb[94].mxu1 %vm449_vm0, %v17082_v39 }
 0x9f2   : > { %29957 = vmatprep.mubr.msk.f32.mxu1 %vm449_vm0, %v17083_v22 }
 0x9f5   : > { %29958 = vmatmul.mubr.msk.f32.gmra.mrb[96].mxu1 %vm449_vm0, %v17084_v48 }
 0x9f6   : > { %29960 = vmatprep.mubr.msk.f32.mxu1 %vm449_vm0, %v17085_v23 }
 0x9f9   : > { %29961 = vmatmul.mubr.msk.f32.gmra.mrb[98].mxu1 %vm449_vm0, %v17086_v42 }
 0x9fa   : > { %29963 = vmatprep.mubr.msk.f32.mxu1 %vm449_vm0, %v17087_v46 }
 0x9fd   : > { %29964 = vmatmul.mubr.msk.f32.gmra.mrb[100].mxu1 %vm449_vm0, %v17088_v55 }
 0x9fe   : > { %29966 = vmatprep.mubr.msk.f32.mxu1 %vm449_vm0, %v17089_v4 }
 0xa01   : > { %29967 = vmatmul.mubr.msk.f32.gmra.mrb[102].mxu1 %vm449_vm0, %v17090_v34 }
 0xa02   : > { %29969 = vmatprep.mubr.msk.f32.mxu1 %vm449_vm0, %v17091_v8 }
 0xa05   : > { %29970 = vmatmul.mubr.msk.f32.gmra.mrb[104].mxu1 %vm449_vm0, %v17092_v20 }
 0xa06   : > { %29972 = vmatprep.mubr.msk.f32.mxu1 %vm449_vm0, %v17093_v36 }
 0xa09   : > { %29973 = vmatmul.mubr.msk.f32.gmra.mrb[106].mxu1 %vm449_vm0, %v17094_v56 }
 0xa0a   : > { %29983 = vmatprep.mubr.msk.f32.mxu1 %vm449_vm0, %v36344_v37  ;;  %v18075_v37 = vld [vmem:[#allocation2 + $0x8a] sm:$0xff] }
 0xa0d   : > { %29984 = vmatmul.mubr.msk.f32.vlgmr.msra.gmra.mrb[72].mxu1 %vm449_vm0, %v36350_v43  ;;  %v18077_v43 = vld [vmem:[#allocation2 + $0x9a] sm:$0xff] }
 0xa0e   : > { %29986 = vmatprep.mubr.msk.f32.mxu1 %vm449_vm0, %v36354_v59  ;;  %31064 = vmatpush3.bf16.msra.mxu1 %v36348_v19  ;;  %v18076_v19 = vld [vmem:[#allocation2 + $0x92] sm:$0xff]  ;;  %v18078_v59 = vld [vmem:[#allocation2 + $0xa2] sm:$0xff] }
 0xa0f   : > { %31066 = vmatprep.subr.bf16.mxu1 %v31065_v12 }
 0xa11   : > { %29987 = vmatmul.mubr.msk.f32.gmra.mrb[74].mxu1 %vm449_vm0, %v36359_v35  ;;  %v18079_v35 = vld [vmem:[#allocation2 + $0xaa] sm:$0xff] }
 0xa12   : > { %29989 = vmatprep.mubr.msk.f32.mxu1 %vm449_vm0, %v36363_v28  ;;  %31068 = vmatpush3.bf16.msra.mxu1 %v31065_v12  ;;  %v18080_v28 = vld [vmem:[#allocation2 + $0xb2] sm:$0xff] }
 0xa13   : > { %31070 = vmatprep.subr.bf16.mxu1 %v31069_v16  ;;  %v18578_v12 = vld [vmem:[#allocation2 + $0x93] sm:$0xff] }
 0xa15   : > { %29990 = vmatmul.mubr.msk.f32.gmra.mrb[76].mxu1 %vm449_vm0, %v36367_v29  ;;  %v18081_v29 = vld [vmem:[#allocation2 + $0xba] sm:$0xff] }
 0xa16   : > { %29992 = vmatprep.mubr.msk.f32.mxu1 %vm449_vm0, %v36371_v1  ;;  %v18082_v1 = vld [vmem:[#allocation2 + $0xc2] sm:$0xff] }
 0xa19   : > { %29993 = vmatmul.mubr.msk.f32.gmra.mrb[78].mxu1 %vm449_vm0, %v36375_v11  ;;  %v18083_v11 = vld [vmem:[#allocation2 + $0xca] sm:$0xff] }
 0xa1a   : > { %29995 = vmatprep.mubr.msk.f32.mxu1 %vm449_vm0, %v36379_v18  ;;  %v18084_v18 = vld [vmem:[#allocation2 + $0xd2] sm:$0xff] }
 0xa1d   : > { %29996 = vmatmul.mubr.msk.f32.gmra.mrb[80].mxu1 %vm449_vm0, %v36383_v54  ;;  %v18085_v54 = vld [vmem:[#allocation2 + $0xda] sm:$0xff] }
 0xa1e   : > { %29998 = vmatprep.mubr.msk.f32.mxu1 %vm449_vm0, %v36387_v41  ;;  %v18086_v41 = vld [vmem:[#allocation2 + $0xe2] sm:$0xff] }
 0xa21   : > { %29999 = vmatmul.mubr.msk.f32.gmra.mrb[82].mxu1 %vm449_vm0, %v36391_v0  ;;  %v18087_v0 = vld [vmem:[#allocation2 + $0xea] sm:$0xff] }
 0xa22   : > { %30001 = vmatprep.mubr.msk.f32.mxu1 %vm449_vm0, %v36395_v17  ;;  %v18088_v17 = vld [vmem:[#allocation2 + $0xf2] sm:$0xff] }
 0xa25   : > { %30002 = vmatmul.mubr.msk.f32.gmra.mrb[84].mxu1 %vm449_vm0, %v36399_v62  ;;  %v18089_v62 = vld [vmem:[#allocation2 + $0xfa] sm:$0xff] }
 0xa26   : > { %30004 = vmatprep.mubr.msk.f32.mxu1 %vm449_vm0, %v36403_v26  ;;  %v18090_v26 = vld [vmem:[#allocation2 + $0x102] sm:$0xff] }
 0xa29   : > { %30005 = vmatmul.mubr.msk.f32.gmra.mrb[86].mxu1 %vm449_vm0, %v36407_v38  ;;  %v18091_v38 = vld [vmem:[#allocation2 + $0x10a] sm:$0xff] }
 0xa2a   : > { %30007 = vmatprep.mubr.msk.f32.mxu1 %vm449_vm0, %v17077_v31  ;;  %v18092_v31 = vld [vmem:[#allocation2 + $0x112] sm:$0xff] }
 0xa2d   : > { %30008 = vmatmul.mubr.msk.f32.gmra.mrb[88].mxu1 %vm449_vm0, %v17078_v52  ;;  %v18093_v52 = vld [vmem:[#allocation2 + $0x11a] sm:$0xff] }
 0xa2e   : > { %30010 = vmatprep.mubr.msk.f32.mxu1 %vm449_vm0, %v17079_v40  ;;  %v18094_v40 = vld [vmem:[#allocation2 + $0x122] sm:$0xff] }
 0xa31   : > { %30011 = vmatmul.mubr.msk.f32.gmra.mrb[90].mxu1 %vm449_vm0, %v17080_v44  ;;  %v18095_v44 = vld [vmem:[#allocation2 + $0x12a] sm:$0xff] }
 0xa32   : > { %30013 = vmatprep.mubr.msk.f32.mxu1 %vm449_vm0, %v17081_v30  ;;  %v18097_v30 = vld [vmem:[#allocation2 + $0x13a] sm:$0xff] }
 0xa35   : > { %30014 = vmatmul.mubr.msk.f32.gmra.mrb[92].mxu1 %vm449_vm0, %v17082_v39  ;;  %v18096_v39 = vld [vmem:[#allocation2 + $0x132] sm:$0xff] }
 0xa36   : > { %30016 = vmatprep.mubr.msk.f32.mxu1 %vm449_vm0, %v17083_v22  ;;  %v18098_v22 = vld [vmem:[#allocation2 + $0x142] sm:$0xff] }
 0xa39   : > { %30017 = vmatmul.mubr.msk.f32.gmra.mrb[94].mxu1 %vm449_vm0, %v17084_v48  ;;  %v18565_v48 = vld [vmem:[#allocation2 + $0x2b] sm:$0xff] }
 0xa3a   : > { %30019 = vmatprep.mubr.msk.f32.mxu1 %vm449_vm0, %v17085_v23  ;;  %v18566_v23 = vld [vmem:[#allocation2 + $0x33] sm:$0xff] }
 0xa3d   : > { %30020 = vmatmul.mubr.msk.f32.gmra.mrb[96].mxu1 %vm449_vm0, %v17086_v42  ;;  %v18567_v42 = vld [vmem:[#allocation2 + $0x3b] sm:$0xff] }
 0xa3e   : > { %30022 = vmatprep.mubr.msk.f32.mxu1 %vm449_vm0, %v17087_v46  ;;  %v18568_v46 = vld [vmem:[#allocation2 + $0x43] sm:$0xff] }
 0xa41   : > { %30023 = vmatmul.mubr.msk.f32.gmra.mrb[98].mxu1 %vm449_vm0, %v17088_v55  ;;  %v18569_v55 = vld [vmem:[#allocation2 + $0x4b] sm:$0xff] }
 0xa42   : > { %30025 = vmatprep.mubr.msk.f32.mxu1 %vm449_vm0, %v17089_v4  ;;  %v18570_v4 = vld [vmem:[#allocation2 + $0x53] sm:$0xff] }
 0xa45   : > { %30026 = vmatmul.mubr.msk.f32.gmra.mrb[100].mxu1 %vm449_vm0, %v17090_v34  ;;  %v18571_v34 = vld [vmem:[#allocation2 + $0x5b] sm:$0xff] }
 0xa46   : > { %30028 = vmatprep.mubr.msk.f32.mxu1 %vm449_vm0, %v17091_v8  ;;  %v18572_v8 = vld [vmem:[#allocation2 + $0x63] sm:$0xff] }
 0xa49   : > { %30029 = vmatmul.mubr.msk.f32.gmra.mrb[102].mxu1 %vm449_vm0, %v17092_v20  ;;  %v18573_v20 = vld [vmem:[#allocation2 + $0x6b] sm:$0xff] }
 0xa4a   : > { %30031 = vmatprep.mubr.msk.f32.mxu1 %vm449_vm0, %v17093_v36  ;;  %v18574_v36 = vld [vmem:[#allocation2 + $0x73] sm:$0xff] }
 0xa4d   : > { %30032 = vmatmul.mubr.msk.f32.gmra.mrb[104].mxu1 %vm449_vm0, %v17094_v56  ;;  %v18575_v56 = vld [vmem:[#allocation2 + $0x7b] sm:$0xff] }
 0xa4e   : > { %30034 = vmatprep.mubr.msk.f32.mxu1 %vm449_vm0, %v17595_v3  ;;  %v18582_v3 = vld [vmem:[#allocation2 + $0xb3] sm:$0xff] }
 0xa51   : > { %30035 = vmatmul.mubr.msk.f32.gmra.mrb[106].mxu1 %vm449_vm0, %v17596_v60  ;;  %v18583_v60 = vld [vmem:[#allocation2 + $0xbb] sm:$0xff] }
 0xa52   : > { %30045 = vmatprep.mubr.msk.f32.mxu1 %vm449_vm0, %v18063_v13  ;;  %v18586_v13 = vld [vmem:[#allocation2 + $0xd3] sm:$0xff] }
 0xa55   : > { %30046 = vmatmul.mubr.msk.f32.vlgmr.msra.gmra.mrb[72].mxu1 %vm449_vm0, %v18064_v51  ;;  %v18588_v51 = vld [vmem:[#allocation2 + $0xe3] sm:$0xff] }
 0xa56   : > { %30048 = vmatprep.mubr.msk.f32.mxu1 %vm449_vm0, %v18065_v9  ;;  %31072 = vmatpush3.bf16.msra.mxu1 %v31069_v16  ;;  %v18581_v16 = vld [vmem:[#allocation2 + $0xab] sm:$0xff] }
 0xa57   : > { %31074 = vmatprep.subr.bf16.mxu1 %v31073_v10  ;;  %v18589_v9 = vld [vmem:[#allocation2 + $0xeb] sm:$0xff] }
 0xa59   : > { %30049 = vmatmul.mubr.msk.f32.gmra.mrb[74].mxu1 %vm449_vm0, %v18066_v57  ;;  %v18590_v57 = vld [vmem:[#allocation2 + $0xf3] sm:$0xff] }
 0xa5a   : > { %30051 = vmatprep.mubr.msk.f32.mxu1 %vm449_vm0, %v18067_v45  ;;  %31076 = vmatpush3.bf16.msra.mxu1 %v31073_v10  ;;  %v18587_v10 = vld [vmem:[#allocation2 + $0xdb] sm:$0xff] }
 0xa5b   : > { %v18591_v45 = vld [vmem:[#allocation2 + $0xfb] sm:$0xff] }
 0xa5d   : > { %30052 = vmatmul.mubr.msk.f32.gmra.mrb[76].mxu1 %vm449_vm0, %v18068_v7  ;;  %v18592_v7 = vld [vmem:[#allocation2 + $0x103] sm:$0xff] }
 0xa5e   : > { %30054 = vmatprep.mubr.msk.f32.mxu1 %vm449_vm0, %v18069_v25  ;;  %v18593_v25 = vld [vmem:[#allocation2 + $0x10b] sm:$0xff] }
 0xa61   : > { %30055 = vmatmul.mubr.msk.f32.gmra.mrb[78].mxu1 %vm449_vm0, %v18070_v2  ;;  %v18594_v2 = vld [vmem:[#allocation2 + $0x113] sm:$0xff] }
 0xa62   : > { %30057 = vmatprep.mubr.msk.f32.mxu1 %vm449_vm0, %v18071_v27  ;;  %v18595_v27 = vld [vmem:[#allocation2 + $0x11b] sm:$0xff] }
 0xa65   : > { %30058 = vmatmul.mubr.msk.f32.gmra.mrb[80].mxu1 %vm449_vm0, %v18072_v61  ;;  %v19300_v61 = vld [vmem:[#allocation2 + $0xd] sm:$0xff] }
 0xa66   : > { %30060 = vmatprep.mubr.msk.f32.mxu1 %vm449_vm0, %v18073_v21  ;;  %v25767_v21 = vld [vmem:[%s37701_s2 + $0x4a0] sm:$0xff]  ;;  %30170 = vmatmul.mubr.msk.f32.vlgmr.msra.gmra.mrb[72].mxu0 %vm449_vm0, %v19300_v61 }
 0xa69   : > { %30061 = vmatmul.mubr.msk.f32.gmra.mrb[82].mxu1 %vm449_vm0, %v18074_v14  ;;  %v25768_v14 = vld [vmem:[%s37701_s2 + $0x4a8] sm:$0xff] }
 0xa6a   : > { %30063 = vmatprep.mubr.msk.f32.mxu1 %vm449_vm0, %v18075_v37  ;;  %v31085_v37 = vpack.c.bf16 %v25768_v14, %v25767_v21  ;;  %v37940_v21 = vld [vmem:[#allocation17_spill] sm:$0xff] }
 0xa6c   : > { %31086 = vmatprep.subr.bf16.mxu0 %v31085_v37 }
 0xa6d   : > { %30064 = vmatmul.mubr.msk.f32.gmra.mrb[84].mxu1 %vm449_vm0, %v18076_v19  ;;  %31088 = vmatpush3.bf16.msra.mxu0 %v31085_v37  ;;  %v25769_v19 = vld [vmem:[%s37701_s2 + $0x4b0] sm:$0xff] }
 0xa6e   : > { %30066 = vmatprep.mubr.msk.f32.mxu1 %vm449_vm0, %v18077_v43  ;;  %v25770_v43 = vld [vmem:[%s37701_s2 + $0x4b8] sm:$0xff] }
 0xa71   : > { %30067 = vmatmul.mubr.msk.f32.gmra.mrb[86].mxu1 %vm449_vm0, %v18078_v59  ;;  %v31089_v59 = vpack.c.bf16 %v25770_v43, %v25769_v19 }
 0xa72   : > { %30069 = vmatprep.mubr.msk.f32.mxu1 %vm449_vm0, %v18079_v35  ;;  %v25807_v35 = vld [vmem:[%s37701_s2 + $0x4c0] sm:$0xff] }
 0xa73   : > { %31090 = vmatprep.subr.bf16.mxu0 %v31089_v59 }
 0xa74   : > { %31092 = vmatpush3.bf16.msra.mxu0 %v31089_v59 }
 0xa75   : > { %30070 = vmatmul.mubr.msk.f32.gmra.mrb[88].mxu1 %vm449_vm0, %v18080_v28  ;;  %v25808_v28 = vld [vmem:[%s37701_s2 + $0x4c8] sm:$0xff] }
 0xa76   : > { %30072 = vmatprep.mubr.msk.f32.mxu1 %vm449_vm0, %v18081_v29  ;;  %v36604_v29 = vpack.c.bf16 %v25808_v28, %v25807_v35 }
 0xa78   : > { %31094 = vmatprep.subr.bf16.mxu0 %v36604_v29 }
 0xa79   : > { %30073 = vmatmul.mubr.msk.f32.gmra.mrb[90].mxu1 %vm449_vm0, %v18082_v1  ;;  %v36610_v1 = vld [vmem:[%s37702_s3 + $0x3] ss:$0 sm:$0xff] }
 0xa7a   : > { %30075 = vmatprep.mubr.msk.f32.mxu1 %vm449_vm0, %v18083_v11 }
 0xa7d   : > { %30076 = vmatmul.mubr.msk.f32.gmra.mrb[92].mxu1 %vm449_vm0, %v18084_v18  ;;  %v36615_v18 = vld [vmem:[%s37703_s4 + $0x3] ss:$0 sm:$0xff] }
 0xa7e   : > { %30078 = vmatprep.mubr.msk.f32.mxu1 %vm449_vm0, %v18085_v54 }
 0xa81   : > { %30079 = vmatmul.mubr.msk.f32.gmra.mrb[94].mxu1 %vm449_vm0, %v18086_v41 }
 0xa82   : > { %30081 = vmatprep.mubr.msk.f32.mxu1 %vm449_vm0, %v18087_v0 }
 0xa85   : > { %30082 = vmatmul.mubr.msk.f32.gmra.mrb[96].mxu1 %vm449_vm0, %v18088_v17 }
 0xa86   : > { %30084 = vmatprep.mubr.msk.f32.mxu1 %vm449_vm0, %v18089_v62 }
 0xa89   : > { %30085 = vmatmul.mubr.msk.f32.gmra.mrb[98].mxu1 %vm449_vm0, %v18090_v26 }
 0xa8a   : > { %30087 = vmatprep.mubr.msk.f32.mxu1 %vm449_vm0, %v18091_v38 }
 0xa8d   : > { %30088 = vmatmul.mubr.msk.f32.gmra.mrb[100].mxu1 %vm449_vm0, %v18092_v31 }
 0xa8e   : > { %30090 = vmatprep.mubr.msk.f32.mxu1 %vm449_vm0, %v18093_v52 }
 0xa91   : > { %30091 = vmatmul.mubr.msk.f32.gmra.mrb[102].mxu1 %vm449_vm0, %v18094_v40 }
 0xa92   : > { %30093 = vmatprep.mubr.msk.f32.mxu1 %vm449_vm0, %v18095_v44 }
 0xa95   : > { %30094 = vmatmul.mubr.msk.f32.gmra.mrb[104].mxu1 %vm449_vm0, %v18096_v39 }
 0xa96   : > { %30096 = vmatprep.mubr.msk.f32.mxu1 %vm449_vm0, %v18097_v30  ;;  %v37933_v30 = vld [vmem:[#allocation13_spill] sm:$0xff] }
 0xa99   : > { %30097 = vmatmul.mubr.msk.f32.gmra.mrb[106].mxu1 %vm449_vm0, %v18098_v22 }
 0xa9a   : > { %30107 = vmatprep.mubr.msk.f32.mxu1 %vm449_vm0, %v18565_v48  ;;  %v37934_v48 = vld [vmem:[#allocation11_spill] sm:$0xff] }
 0xa9d   : > { %30108 = vmatmul.mubr.msk.f32.vlgmr.msra.gmra.mrb[72].mxu1 %vm449_vm0, %v18566_v23 }
 0xa9e   : > { %30110 = vmatprep.mubr.msk.f32.mxu1 %vm449_vm0, %v18567_v42 }
 0xaa1   : > { %30111 = vmatmul.mubr.msk.f32.gmra.mrb[74].mxu1 %vm449_vm0, %v18568_v46 }
 0xaa2   : > { %30113 = vmatprep.mubr.msk.f32.mxu1 %vm449_vm0, %v18569_v55 }
 0xaa5   : > { %30114 = vmatmul.mubr.msk.f32.gmra.mrb[76].mxu1 %vm449_vm0, %v18570_v4 }
 0xaa6   : > { %30116 = vmatprep.mubr.msk.f32.mxu1 %vm449_vm0, %v18571_v34 }
 0xaa9   : > { %30117 = vmatmul.mubr.msk.f32.gmra.mrb[78].mxu1 %vm449_vm0, %v18572_v8 }
 0xaaa   : > { %30119 = vmatprep.mubr.msk.f32.mxu1 %vm449_vm0, %v18573_v20 }
 0xaad   : > { %30120 = vmatmul.mubr.msk.f32.gmra.mrb[80].mxu1 %vm449_vm0, %v18574_v36  ;;  %v37935_v36 = vld [vmem:[#allocation12_spill] sm:$0xff] }
 0xaae   : > { %30122 = vmatprep.mubr.msk.f32.mxu1 %vm449_vm0, %v18575_v56 }
 0xab1   : > { %30123 = vmatmul.mubr.msk.f32.gmra.mrb[82].mxu1 %vm449_vm0, %v18576_v49 }
 0xab2   : > { %30125 = vmatprep.mubr.msk.f32.mxu1 %vm449_vm0, %v18577_v33  ;;  %v37936_v33 = vld [vmem:[#allocation10_spill] sm:$0xff] }
 0xab5   : > { %30126 = vmatmul.mubr.msk.f32.gmra.mrb[84].mxu1 %vm449_vm0, %v18578_v12 }
 0xab6   : > { %30128 = vmatprep.mubr.msk.f32.mxu1 %vm449_vm0, %v18579_v5 }
 0xab9   : > { %30129 = vmatmul.mubr.msk.f32.gmra.mrb[86].mxu1 %vm449_vm0, %v18580_v58 }
 0xaba   : > { %30131 = vmatprep.mubr.msk.f32.mxu1 %vm449_vm0, %v18581_v16 }
 0xabd   : > { %30132 = vmatmul.mubr.msk.f32.gmra.mrb[88].mxu1 %vm449_vm0, %v18582_v3 }
 0xabe   : > { %30134 = vmatprep.mubr.msk.f32.mxu1 %vm449_vm0, %v18583_v60 }
 0xac1   : > { %30135 = vmatmul.mubr.msk.f32.gmra.mrb[90].mxu1 %vm449_vm0, %v18584_v53 }
 0xac2   : > { %30137 = vmatprep.mubr.msk.f32.mxu1 %vm449_vm0, %v18585_v15 }
 0xac5   : > { %30138 = vmatmul.mubr.msk.f32.gmra.mrb[92].mxu1 %vm449_vm0, %v18586_v13  ;;  %v37937_v13 = vld [vmem:[#allocation14_spill] sm:$0xff] }
 0xac6   : > { %30140 = vmatprep.mubr.msk.f32.mxu1 %vm449_vm0, %v18587_v10 }
 0xac9   : > { %30141 = vmatmul.mubr.msk.f32.gmra.mrb[94].mxu1 %vm449_vm0, %v18588_v51 }
 0xaca   : > { %30143 = vmatprep.mubr.msk.f32.mxu1 %vm449_vm0, %v18589_v9  ;;  %v37938_v9 = vld [vmem:[#allocation15_spill] sm:$0xff] }
 0xacd   : > { %30144 = vmatmul.mubr.msk.f32.gmra.mrb[96].mxu1 %vm449_vm0, %v18590_v57 }
 0xace   : > { %30146 = vmatprep.mubr.msk.f32.mxu1 %vm449_vm0, %v18591_v45 }
 0xad1   : > { %30147 = vmatmul.mubr.msk.f32.gmra.mrb[98].mxu1 %vm449_vm0, %v18592_v7 }
 0xad2   : > { %30149 = vmatprep.mubr.msk.f32.mxu1 %vm449_vm0, %v18593_v25 }
 0xad5   : > { %30150 = vmatmul.mubr.msk.f32.gmra.mrb[100].mxu1 %vm449_vm0, %v18594_v2 }
 0xad6   : > { %30152 = vmatprep.mubr.msk.f32.mxu1 %vm449_vm0, %v18595_v27 }
 0xad9   : > { %30153 = vmatmul.mubr.msk.f32.gmra.mrb[102].mxu1 %vm449_vm0, %v18596_v50 }
 0xada   : > { %30155 = vmatprep.mubr.msk.f32.mxu1 %vm449_vm0, %v18597_v63 }
 0xadd   : > { %30156 = vmatmul.mubr.msk.f32.gmra.mrb[104].mxu1 %vm449_vm0, %v18598_v24 }
 0xade   : > { %30158 = vmatprep.mubr.msk.f32.mxu1 %vm449_vm0, %v18599_v32 }
 0xae1   : > { %30159 = vmatmul.mubr.msk.f32.gmra.mrb[106].mxu1 %vm449_vm0, %v18600_v6  ;;  %v37939_v6 = vld [vmem:[#allocation16_spill] sm:$0xff] }
 0xb70   : > { %v30109_v11 = vpop.f32.mrb[72].mxu1 }
 0xb71   : > { %v19112_v54 = vmul.f32 %v30109_v11, %v36610_v1  ;;  %v18780_v41 = vpop.f32.mrb[73].mxu1 }
 0xb72   : > { %v19111_v0 = vmul.f32 %v36610_v1, %v18780_v41 }
 0xb73   : > { %v19156_v17 = vadd.f32 %v36615_v18, %v19112_v54 }
 0xb74   : > { %v19155_v62 = vadd.f32 %v36615_v18, %v19111_v0  ;;  %v30112_v26 = vpop.f32.mrb[74].mxu1  ;;  %v37941_v0 = vld [vmem:[#allocation18_spill] sm:$0xff] }
 0xb75   : > { %v19192_v38 = vmax.f32 %v19156_v17, 0.0  ;;  %v19114_v31 = vmul.f32 %v30112_v26, %v36610_v1  ;;  %v18790_v52 = vpop.f32.mrb[75].mxu1  ;;  %v37942_v26 = vld [vmem:[#allocation19_spill] sm:$0xff] }
 0xb76   : > { %v19191_v40 = vmax.f32 %v19155_v62, 0.0  ;;  %v19113_v44 = vmul.f32 %v36610_v1, %v18790_v52 }
 0xb77   : > { %v19228_v39 = vmul.f32 %v19192_v38, %v37933_v30  ;;  %v19158_v22 = vadd.f32 %v36615_v18, %v19114_v31  ;;  %v25889_v30 = vld [vmem:[%s37701_s2 + $0x510] sm:$0xff] }
 0xb78   : > { %v19227_v23 = vmul.f32 %v19191_v40, %v37934_v48  ;;  %v19157_v42 = vadd.f32 %v36615_v18, %v19113_v44  ;;  %v30115_v46 = vpop.f32.mrb[76].mxu1 }
 0xb79   : > { %19264 = vst [vmem:[#allocation2 + $0x20] sm:$0xff] %v19228_v39  ;;  %v19194_v55 = vmax.f32 %v19158_v22, 0.0  ;;  %v19116_v4 = vmul.f32 %v30115_v46, %v36610_v1  ;;  %v18800_v34 = vpop.f32.mrb[77].mxu1 }
 0xb7a   : > { %19263 = vst [vmem:[#allocation2 + $0x18] sm:$0xff] %v19227_v23  ;;  %v19193_v8 = vmax.f32 %v19157_v42, 0.0  ;;  %v19115_v20 = vmul.f32 %v36610_v1, %v18800_v34 }
 0xb7b   : > { %v19230_v56 = vmul.f32 %v19194_v55, %v37935_v36  ;;  %v19160_v49 = vadd.f32 %v36615_v18, %v19116_v4  ;;  %v37943_v55 = vld [vmem:[#allocation20_spill] sm:$0xff] }
 0xb7c   : > { %v19229_v12 = vmul.f32 %v19193_v8, %v37936_v33  ;;  %v19159_v5 = vadd.f32 %v36615_v18, %v19115_v20  ;;  %v30118_v58 = vpop.f32.mrb[78].mxu1  ;;  %v37944_v8 = vld [vmem:[#allocation21_spill] sm:$0xff] }
 0xb7d   : > { %19266 = vst [vmem:[#allocation2 + $0x30] sm:$0xff] %v19230_v56  ;;  %v19196_v16 = vmax.f32 %v19160_v49, 0.0  ;;  %v19118_v3 = vmul.f32 %v30118_v58, %v36610_v1  ;;  %v18810_v60 = vpop.f32.mrb[79].mxu1 }
 0xb7e   : > { %19265 = vst [vmem:[#allocation2 + $0x28] sm:$0xff] %v19229_v12  ;;  %v19195_v53 = vmax.f32 %v19159_v5, 0.0  ;;  %v19117_v15 = vmul.f32 %v36610_v1, %v18810_v60 }
 0xb7f   : > { %v19232_v10 = vmul.f32 %v19196_v16, %v37937_v13  ;;  %v19162_v51 = vadd.f32 %v36615_v18, %v19118_v3 }
 0xb80   : > { %v19231_v57 = vmul.f32 %v19195_v53, %v37938_v9  ;;  %v19161_v45 = vadd.f32 %v36615_v18, %v19117_v15  ;;  %v30121_v7 = vpop.f32.mrb[80].mxu1  ;;  %v37945_v15 = vld [vmem:[#allocation22_spill] sm:$0xff] }
 0xb81   : > { %19268 = vst [vmem:[#allocation2 + $0x40] sm:$0xff] %v19232_v10  ;;  %v19198_v25 = vmax.f32 %v19162_v51, 0.0  ;;  %v19120_v2 = vmul.f32 %v30121_v7, %v36610_v1  ;;  %v18820_v27 = vpop.f32.mrb[81].mxu1  ;;  %v19301_v50 = vld [vmem:[#allocation2 + $0x15] sm:$0xff]  ;;  %v19302_v63 = vld [vmem:[#allocation2 + $0x1d] sm:$0xff] }
 0xb82   : > { %19267 = vst [vmem:[#allocation2 + $0x38] sm:$0xff] %v19231_v57  ;;  %v19197_v32 = vmax.f32 %v19161_v45, 0.0  ;;  %v19119_v24 = vmul.f32 %v36610_v1, %v18820_v27  ;;  %30172 = vmatprep.mubr.msk.f32.mxu0 %vm449_vm0, %v19301_v50  ;;  %v37946_v57 = vld [vmem:[#allocation23_spill] sm:$0xff] }
 0xb83   : > { %v19234_v47 = vmul.f32 %v19198_v25, %v37939_v6  ;;  %v19164_v61 = vadd.f32 %v36615_v18, %v19120_v2  ;;  %30173 = vmatmul.mubr.msk.f32.gmra.mrb[74].mxu0 %vm449_vm0, %v19302_v63 }
 0xb84   : > { %v19233_v14 = vmul.f32 %v19197_v32, %v37940_v21  ;;  %v19163_v37 = vadd.f32 %v36615_v18, %v19119_v24  ;;  %v30124_v19 = vpop.f32.mrb[82].mxu1 }
 0xb85   : > { %19270 = vst [vmem:[#allocation2 + $0x50] sm:$0xff] %v19234_v47  ;;  %v19200_v43 = vmax.f32 %v19164_v61, 0.0  ;;  %v19122_v59 = vmul.f32 %v30124_v19, %v36610_v1  ;;  %v18830_v35 = vpop.f32.mrb[83].mxu1  ;;  %v19303_v28 = vld [vmem:[#allocation2 + $0x25] sm:$0xff]  ;;  %v19304_v11 = vld [vmem:[#allocation2 + $0x2d] sm:$0xff] }
 0xb86   : > { %19269 = vst [vmem:[#allocation2 + $0x48] sm:$0xff] %v19233_v14  ;;  %v19199_v54 = vmax.f32 %v19163_v37, 0.0  ;;  %v19121_v41 = vmul.f32 %v36610_v1, %v18830_v35  ;;  %30175 = vmatprep.mubr.msk.f32.mxu0 %vm449_vm0, %v19303_v28  ;;  %v37947_v61 = vld [vmem:[#allocation24_spill] sm:$0xff]  ;;  %v37948_v19 = vld [vmem:[#allocation25_spill] sm:$0xff] }
 0xb87   : > { %v36651_v17 = vmul.f32 %v19200_v43, %v37941_v0  ;;  %v19166_v62 = vadd.f32 %v36615_v18, %v19122_v59  ;;  %30176 = vmatmul.mubr.msk.f32.gmra.mrb[76].mxu0 %vm449_vm0, %v19304_v11 }
 0xb88   : > { %v36656_v38 = vmul.f32 %v19199_v54, %v37942_v26  ;;  %v19165_v31 = vadd.f32 %v36615_v18, %v19121_v41  ;;  %v30127_v52 = vpop.f32.mrb[84].mxu1 }
 0xb89   : > { %19272 = vst [vmem:[#allocation2 + $0x60] sm:$0xff] %v36651_v17  ;;  %v19202_v40 = vmax.f32 %v19166_v62, 0.0  ;;  %v19124_v44 = vmul.f32 %v30127_v52, %v36610_v1  ;;  %v18840_v39 = vpop.f32.mrb[85].mxu1  ;;  %v19305_v22 = vld [vmem:[#allocation2 + $0x35] sm:$0xff]  ;;  %v19306_v23 = vld [vmem:[#allocation2 + $0x3d] sm:$0xff] }
 0xb8a   : > { %19271 = vst [vmem:[#allocation2 + $0x58] sm:$0xff] %v36656_v38  ;;  %v19201_v42 = vmax.f32 %v19165_v31, 0.0  ;;  %v19123_v46 = vmul.f32 %v36610_v1, %v18840_v39  ;;  %30178 = vmatprep.mubr.msk.f32.mxu0 %vm449_vm0, %v19305_v22  ;;  %v37950_v22 = vld [vmem:[#allocation27_spill] sm:$0xff] }
 0xb8b   : > { %v36665_v4 = vmul.f32 %v19202_v40, %v37943_v55  ;;  %v19168_v34 = vadd.f32 %v36615_v18, %v19124_v44  ;;  %30179 = vmatmul.mubr.msk.f32.gmra.mrb[78].mxu0 %vm449_vm0, %v19306_v23  ;;  %v37949_v40 = vld [vmem:[#allocation26_spill] sm:$0xff] }
 0xb8c   : > { %v36670_v20 = vmul.f32 %v19201_v42, %v37944_v8  ;;  %v19167_v56 = vadd.f32 %v36615_v18, %v19123_v46  ;;  %v30130_v49 = vpop.f32.mrb[86].mxu1 }
 0xb8d   : > { %19274 = vst [vmem:[#allocation2 + $0x70] sm:$0xff] %v36665_v4  ;;  %v19204_v12 = vmax.f32 %v19168_v34, 0.0  ;;  %v19126_v5 = vmul.f32 %v30130_v49, %v36610_v1  ;;  %v18850_v58 = vpop.f32.mrb[87].mxu1  ;;  %v19307_v16 = vld [vmem:[#allocation2 + $0x45] sm:$0xff]  ;;  %v19308_v3 = vld [vmem:[#allocation2 + $0x4d] sm:$0xff] }
 0xb8e   : > { %19273 = vst [vmem:[#allocation2 + $0x68] sm:$0xff] %v36670_v20  ;;  %v19203_v60 = vmax.f32 %v19167_v56, 0.0  ;;  %v19125_v53 = vmul.f32 %v36610_v1, %v18850_v58  ;;  %30181 = vmatprep.mubr.msk.f32.mxu0 %vm449_vm0, %v19307_v16 }
 0xb8f   : > { %v36679_v10 = vmul.f32 %v19204_v12, %v37945_v15  ;;  %v19170_v51 = vadd.f32 %v36615_v18, %v19126_v5  ;;  %30182 = vmatmul.mubr.msk.f32.gmra.mrb[80].mxu0 %vm449_vm0, %v19308_v3  ;;  %v37951_v3 = vld [vmem:[#allocation28_spill] sm:$0xff] }
 0xb90   : > { %v36684_v45 = vmul.f32 %v19203_v60, %v37946_v57  ;;  %v19169_v7 = vadd.f32 %v36615_v18, %v19125_v53  ;;  %v30133_v25 = vpop.f32.mrb[88].mxu1 }
 0xb91   : > { %19276 = vst [vmem:[#allocation2 + $0x80] sm:$0xff] %v36679_v10  ;;  %v19206_v2 = vmax.f32 %v19170_v51, 0.0  ;;  %v19128_v27 = vmul.f32 %v30133_v25, %v36610_v1  ;;  %v18860_v50 = vpop.f32.mrb[89].mxu1  ;;  %v19309_v63 = vld [vmem:[#allocation2 + $0x55] sm:$0xff]  ;;  %v19310_v32 = vld [vmem:[#allocation2 + $0x5d] sm:$0xff]  ;;  %v37952_v51 = vld [vmem:[#allocation29_spill] sm:$0xff] }
 0xb92   : > { %19275 = vst [vmem:[#allocation2 + $0x78] sm:$0xff] %v36684_v45  ;;  %v19205_v24 = vmax.f32 %v19169_v7, 0.0  ;;  %v19127_v47 = vmul.f32 %v36610_v1, %v18860_v50  ;;  %30184 = vmatprep.mubr.msk.f32.mxu0 %vm449_vm0, %v19309_v63 }
 0xb93   : > { %v36693_v14 = vmul.f32 %v19206_v2, %v37947_v61  ;;  %v19172_v37 = vadd.f32 %v36615_v18, %v19128_v27  ;;  %30185 = vmatmul.mubr.msk.f32.gmra.mrb[82].mxu0 %vm449_vm0, %v19310_v32 }
 0xb94   : > { %v36698_v43 = vmul.f32 %v19205_v24, %v37948_v19  ;;  %v19171_v59 = vadd.f32 %v36615_v18, %v19127_v47  ;;  %v30136_v35 = vpop.f32.mrb[90].mxu1 }
 0xb95   : > { %19278 = vst [vmem:[#allocation2 + $0x90] sm:$0xff] %v36693_v14  ;;  %v19208_v28 = vmax.f32 %v19172_v37, 0.0  ;;  %v19130_v11 = vmul.f32 %v30136_v35, %v36610_v1  ;;  %v18870_v54 = vpop.f32.mrb[91].mxu1  ;;  %v19311_v41 = vld [vmem:[#allocation2 + $0x65] sm:$0xff]  ;;  %v19312_v62 = vld [vmem:[#allocation2 + $0x6d] sm:$0xff] }
 0xb96   : > { %19277 = vst [vmem:[#allocation2 + $0x88] sm:$0xff] %v36698_v43  ;;  %v19207_v31 = vmax.f32 %v19171_v59, 0.0  ;;  %v19129_v52 = vmul.f32 %v36610_v1, %v18870_v54  ;;  %30187 = vmatprep.mubr.msk.f32.mxu0 %vm449_vm0, %v19311_v41  ;;  %v37953_v59 = vld [vmem:[#allocation30_spill] sm:$0xff] }
 0xb97   : > { %v36707_v44 = vmul.f32 %v19208_v28, %v37949_v40  ;;  %v19174_v39 = vadd.f32 %v36615_v18, %v19130_v11  ;;  %30188 = vmatmul.mubr.msk.f32.gmra.mrb[84].mxu0 %vm449_vm0, %v19312_v62  ;;  %v37954_v11 = vld [vmem:[#allocation31_spill] sm:$0xff] }
 0xb98   : > { %v36712_v23 = vmul.f32 %v19207_v31, %v37950_v22  ;;  %v19173_v42 = vadd.f32 %v36615_v18, %v19129_v52  ;;  %v30139_v46 = vpop.f32.mrb[92].mxu1 }
 0xb99   : > { %19280 = vst [vmem:[#allocation2 + $0xa0] sm:$0xff] %v36707_v44  ;;  %v19210_v34 = vmax.f32 %v19174_v39, 0.0  ;;  %v19132_v56 = vmul.f32 %v30139_v46, %v36610_v1  ;;  %v18880_v49 = vpop.f32.mrb[93].mxu1  ;;  %v19313_v12 = vld [vmem:[#allocation2 + $0x75] sm:$0xff]  ;;  %v19314_v5 = vld [vmem:[#allocation2 + $0x7d] sm:$0xff] }
 0xb9a   : > { %19279 = vst [vmem:[#allocation2 + $0x98] sm:$0xff] %v36712_v23  ;;  %v19209_v58 = vmax.f32 %v19173_v42, 0.0  ;;  %v19131_v16 = vmul.f32 %v36610_v1, %v18880_v49  ;;  %30190 = vmatprep.mubr.msk.f32.mxu0 %vm449_vm0, %v19313_v12  ;;  %v37955_v49 = vld [vmem:[#allocation32_spill] sm:$0xff] }
 0xb9b   : > { %v36721_v60 = vmul.f32 %v19210_v34, %v37951_v3  ;;  %v19176_v53 = vadd.f32 %v36615_v18, %v19132_v56  ;;  %30191 = vmatmul.mubr.msk.f32.gmra.mrb[86].mxu0 %vm449_vm0, %v19314_v5 }
 0xb9c   : > { %v36726_v7 = vmul.f32 %v19209_v58, %v37952_v51  ;;  %v19175_v25 = vadd.f32 %v36615_v18, %v19131_v16  ;;  %v30142_v2 = vpop.f32.mrb[94].mxu1  ;;  %v37956_v58 = vld [vmem:[#allocation33_spill] sm:$0xff] }
 0xb9d   : > { %19282 = vst [vmem:[#allocation2 + $0xb0] sm:$0xff] %v36721_v60  ;;  %v19212_v27 = vmax.f32 %v19176_v53, 0.0  ;;  %v19134_v50 = vmul.f32 %v30142_v2, %v36610_v1  ;;  %v18890_v63 = vpop.f32.mrb[95].mxu1  ;;  %v19315_v32 = vld [vmem:[#allocation2 + $0x85] sm:$0xff]  ;;  %v19316_v24 = vld [vmem:[#allocation2 + $0x8d] sm:$0xff] }
 0xb9e   : > { %19281 = vst [vmem:[#allocation2 + $0xa8] sm:$0xff] %v36726_v7  ;;  %v19211_v47 = vmax.f32 %v19175_v25, 0.0  ;;  %v19133_v37 = vmul.f32 %v36610_v1, %v18890_v63  ;;  %30193 = vmatprep.mubr.msk.f32.mxu0 %vm449_vm0, %v19315_v32  ;;  %v36973_v3 = vld [vmem:[#allocation2 + $0x8f] sm:$0xff] }
 0xb9f   : > { %v36735_v35 = vmul.f32 %v19212_v27, %v37953_v59  ;;  %v19178_v28 = vadd.f32 %v36615_v18, %v19134_v50  ;;  %30194 = vmatmul.mubr.msk.f32.gmra.mrb[88].mxu0 %vm449_vm0, %v19316_v24 }
 0xba0   : > { %v36740_v54 = vmul.f32 %v19211_v47, %v37954_v11  ;;  %v19177_v41 = vadd.f32 %v36615_v18, %v19133_v37  ;;  %v30145_v62 = vpop.f32.mrb[96].mxu1  ;;  %v37957_v37 = vld [vmem:[#allocation34_spill] sm:$0xff]  ;;  %v36969_v11 = vld [vmem:[#allocation2 + $0x87] sm:$0xff] }
 0xba1   : > { %19284 = vst [vmem:[#allocation2 + $0xc0] sm:$0xff] %v36735_v35  ;;  %v19214_v31 = vmax.f32 %v19178_v28, 0.0  ;;  %v19136_v52 = vmul.f32 %v30145_v62, %v36610_v1  ;;  %v18900_v39 = vpop.f32.mrb[97].mxu1  ;;  %v19317_v42 = vld [vmem:[#allocation2 + $0x95] sm:$0xff]  ;;  %v19318_v46 = vld [vmem:[#allocation2 + $0x9d] sm:$0xff] }
 0xba2   : > { %19283 = vst [vmem:[#allocation2 + $0xb8] sm:$0xff] %v36740_v54  ;;  %v19213_v34 = vmax.f32 %v19177_v41, 0.0  ;;  %v19135_v56 = vmul.f32 %v36610_v1, %v18900_v39  ;;  %30196 = vmatprep.mubr.msk.f32.mxu0 %vm449_vm0, %v19317_v42  ;;  %v37958_v62 = vld [vmem:[#allocation35_spill] sm:$0xff] }
 0xba3   : > { %v36749_v12 = vmul.f32 %v19214_v31, %v37955_v49  ;;  %v19180_v5 = vadd.f32 %v36615_v18, %v19136_v52  ;;  %30197 = vmatmul.mubr.msk.f32.gmra.mrb[90].mxu0 %vm449_vm0, %v19318_v46  ;;  %v20249_v51 = vld [vmem:[#allocation2 + $0x97] sm:$0xff]  ;;  %v20250_v40 = vld [vmem:[#allocation2 + $0x9f] sm:$0xff] }
 0xba4   : > { %v36754_v16 = vmul.f32 %v19213_v34, %v37956_v58  ;;  %v19179_v53 = vadd.f32 %v36615_v18, %v19135_v56  ;;  %v30148_v25 = vpop.f32.mrb[98].mxu1 }
 0xba5   : > { %19286 = vst [vmem:[#allocation2 + $0xd0] sm:$0xff] %v36749_v12  ;;  %v19216_v2 = vmax.f32 %v19180_v5, 0.0  ;;  %v19138_v27 = vmul.f32 %v30148_v25, %v36610_v1  ;;  %v18910_v50 = vpop.f32.mrb[99].mxu1  ;;  %v19319_v63 = vld [vmem:[#allocation2 + $0xa5] sm:$0xff]  ;;  %v19320_v32 = vld [vmem:[#allocation2 + $0xad] sm:$0xff] }
 0xba6   : > { %19285 = vst [vmem:[#allocation2 + $0xc8] sm:$0xff] %v36754_v16  ;;  %v19215_v24 = vmax.f32 %v19179_v53, 0.0  ;;  %v19137_v47 = vmul.f32 %v36610_v1, %v18910_v50  ;;  %30199 = vmatprep.mubr.msk.f32.mxu0 %vm449_vm0, %v19319_v63  ;;  %v37960_v63 = vld [vmem:[#allocation37_spill] sm:$0xff] }
 0xba7   : > { %v36763_v28 = vmul.f32 %v19216_v2, %v37957_v37  ;;  %v19182_v41 = vadd.f32 %v36615_v18, %v19138_v27  ;;  %30200 = vmatmul.mubr.msk.f32.gmra.mrb[92].mxu0 %vm449_vm0, %v19320_v32  ;;  %v37959_v2 = vld [vmem:[#allocation36_spill] sm:$0xff]  ;;  %v20252_v61 = vld [vmem:[#allocation2 + $0xaf] sm:$0xff] }
 0xba8   : > { %v36768_v31 = vmul.f32 %v19215_v24, %v37958_v62  ;;  %v19181_v52 = vadd.f32 %v36615_v18, %v19137_v47  ;;  %v30151_v39 = vpop.f32.mrb[100].mxu1  ;;  %v20251_v22 = vld [vmem:[#allocation2 + $0xa7] sm:$0xff] }
 0xba9   : > { %19288 = vst [vmem:[#allocation2 + $0xe0] sm:$0xff] %v36763_v28  ;;  %v19218_v42 = vmax.f32 %v19182_v41, 0.0  ;;  %v19140_v46 = vmul.f32 %v30151_v39, %v36610_v1  ;;  %v18920_v34 = vpop.f32.mrb[101].mxu1  ;;  %v19321_v56 = vld [vmem:[#allocation2 + $0xb5] sm:$0xff]  ;;  %v19322_v5 = vld [vmem:[#allocation2 + $0xbd] sm:$0xff] }
 0xbaa   : > { %19287 = vst [vmem:[#allocation2 + $0xd8] sm:$0xff] %v36768_v31  ;;  %v19217_v53 = vmax.f32 %v19181_v52, 0.0  ;;  %v19139_v25 = vmul.f32 %v36610_v1, %v18920_v34  ;;  %30202 = vmatprep.mubr.msk.f32.mxu0 %vm449_vm0, %v19321_v56  ;;  %v20253_v19 = vld [vmem:[#allocation2 + $0xb7] sm:$0xff]  ;;  %v20254_v15 = vld [vmem:[#allocation2 + $0xbf] sm:$0xff] }
 0xbab   : > { %v36777_v27 = vmul.f32 %v19218_v42, %v37959_v2  ;;  %v19184_v50 = vadd.f32 %v36615_v18, %v19140_v46  ;;  %30203 = vmatmul.mubr.msk.f32.gmra.mrb[94].mxu0 %vm449_vm0, %v19322_v5  ;;  %v37961_v5 = vld [vmem:[#allocation38_spill] sm:$0xff] }
 0xbac   : > { %v36782_v32 = vmul.f32 %v19217_v53, %v37960_v63  ;;  %v19183_v24 = vadd.f32 %v36615_v18, %v19139_v25  ;;  %v30154_v47 = vpop.f32.mrb[102].mxu1 }
 0xbad   : > { %19290 = vst [vmem:[#allocation2 + $0xf0] sm:$0xff] %v36777_v27  ;;  %v19220_v41 = vmax.f32 %v19184_v50, 0.0  ;;  %v19142_v52 = vmul.f32 %v30154_v47, %v36610_v1  ;;  %v18930_v39 = vpop.f32.mrb[103].mxu1  ;;  %v19323_v34 = vld [vmem:[#allocation2 + $0xc5] sm:$0xff]  ;;  %v19324_v56 = vld [vmem:[#allocation2 + $0xcd] sm:$0xff]  ;;  %v37962_v50 = vld [vmem:[#allocation39_spill] sm:$0xff] }
 0xbae   : > { %19289 = vst [vmem:[#allocation2 + $0xe8] sm:$0xff] %v36782_v32  ;;  %v19219_v42 = vmax.f32 %v19183_v24, 0.0  ;;  %v19141_v46 = vmul.f32 %v36610_v1, %v18930_v39  ;;  %30205 = vmatprep.mubr.msk.f32.mxu0 %vm449_vm0, %v19323_v34  ;;  %v20255_v57 = vld [vmem:[#allocation2 + $0xc7] sm:$0xff]  ;;  %v20256_v55 = vld [vmem:[#allocation2 + $0xcf] sm:$0xff] }
 0xbaf   : > { %v36791_v53 = vmul.f32 %v19220_v41, %v37961_v5  ;;  %v19186_v25 = vadd.f32 %v36615_v18, %v19142_v52  ;;  %30206 = vmatmul.mubr.msk.f32.gmra.mrb[96].mxu0 %vm449_vm0, %v19324_v56  ;;  %v37963_v56 = vld [vmem:[#allocation40_spill] sm:$0xff] }
 0xbb0   : > { %v36796_v2 = vmul.f32 %v19219_v42, %v37962_v50  ;;  %v19185_v47 = vadd.f32 %v36615_v18, %v19141_v46  ;;  %v30157_v63 = vpop.f32.mrb[104].mxu1 }
 0xbb1   : > { %19292 = vst [vmem:[#allocation2 + $0x100] sm:$0xff] %v36791_v53  ;;  %v19222_v24 = vmax.f32 %v19186_v25, 0.0  ;;  %v19144_v39 = vmul.f32 %v30157_v63, %v36610_v1  ;;  %v18940_v37 = vpop.f32.mrb[105].mxu1  ;;  %v19325_v34 = vld [vmem:[#allocation2 + $0xd5] sm:$0xff]  ;;  %v19326_v62 = vld [vmem:[#allocation2 + $0xdd] sm:$0xff]  ;;  %v37965_v25 = vld [vmem:[#allocation41_spill] sm:$0xff] }
 0xbb2   : > { %19291 = vst [vmem:[#allocation2 + $0xf8] sm:$0xff] %v36796_v2  ;;  %v19221_v41 = vmax.f32 %v19185_v47, 0.0  ;;  %v19143_v52 = vmul.f32 %v36610_v1, %v18940_v37  ;;  %30208 = vmatprep.mubr.msk.f32.mxu0 %vm449_vm0, %v19325_v34  ;;  %v20257_v8 = vld [vmem:[#allocation2 + $0xd7] sm:$0xff]  ;;  %v20258_v0 = vld [vmem:[#allocation2 + $0xdf] sm:$0xff] }
 0xbb3   : > { %v36805_v42 = vmul.f32 %v19222_v24, %v37963_v56  ;;  %v19188_v46 = vadd.f32 %v36615_v18, %v19144_v39  ;;  %30209 = vmatmul.mubr.msk.f32.gmra.mrb[98].mxu0 %vm449_vm0, %v19326_v62  ;;  %v37966_v62 = vld [vmem:[#allocation42_spill] sm:$0xff] }
 0xbb4   : > { %v36810_v5 = vmul.f32 %v19221_v41, %v37965_v25  ;;  %v19187_v63 = vadd.f32 %v36615_v18, %v19143_v52  ;;  %v30160_v50 = vpop.f32.mrb[106].mxu1 }
 0xbb5   : > { %37964 = vst [vmem:[#allocation46_spill] sm:$0xff] %v36805_v42  ;;  %19294 = vst [vmem:[#allocation2 + $0x110] sm:$0xff] %v36805_v42  ;;  %v19224_v47 = vmax.f32 %v19188_v46, 0.0  ;;  %v19146_v37 = vmul.f32 %v30160_v50, %v36610_v1  ;;  %v18950_v49 = vpop.f32.mrb[107].mxu1  ;;  %v19327_v34 = vld [vmem:[#allocation2 + $0xe5] sm:$0xff]  ;;  %v19328_v58 = vld [vmem:[#allocation2 + $0xed] sm:$0xff] }
 0xbb6   : > { %19293 = vst [vmem:[#allocation2 + $0x108] sm:$0xff] %v36810_v5  ;;  %v19223_v24 = vmax.f32 %v19187_v63, 0.0  ;;  %v19145_v39 = vmul.f32 %v36610_v1, %v18950_v49  ;;  %30211 = vmatprep.mubr.msk.f32.mxu0 %vm449_vm0, %v19327_v34  ;;  %v37968_v46 = vld [vmem:[#allocation43_spill] sm:$0xff]  ;;  %v37970_v49 = vld [vmem:[#allocation44_spill] sm:$0xff]  ;;  %v20260_v6 = vld [vmem:[#allocation2 + $0xef] sm:$0xff] }
 0xbb7   : > { %v36819_v41 = vmul.f32 %v19224_v47, %v37966_v62  ;;  %v19190_v52 = vadd.f32 %v36615_v18, %v19146_v37  ;;  %30212 = vmatmul.mubr.msk.f32.gmra.mrb[100].mxu0 %vm449_vm0, %v19328_v58  ;;  %v37972_v58 = vld [vmem:[#allocation45_spill] sm:$0xff]  ;;  %v36961_v62 = vld [vmem:[#allocation2 + $0x77] sm:$0xff] }
 0xbb8   : > { %v36824_v56 = vmul.f32 %v19223_v24, %v37968_v46  ;;  %v19189_v50 = vadd.f32 %v36615_v18, %v19145_v39  ;;  %v36965_v46 = vld [vmem:[#allocation2 + $0x7f] sm:$0xff]  ;;  %v20259_v26 = vld [vmem:[#allocation2 + $0xe7] sm:$0xff] }
 0xbb9   : > { %37967 = vst [vmem:[#allocation47_spill] sm:$0xff] %v36819_v41  ;;  %19296 = vst [vmem:[#allocation2 + $0x120] sm:$0xff] %v36819_v41  ;;  %v19226_v25 = vmax.f32 %v19190_v52, 0.0  ;;  %v19329_v63 = vld [vmem:[#allocation2 + $0xf5] sm:$0xff]  ;;  %v19330_v59 = vld [vmem:[#allocation2 + $0xfd] sm:$0xff] }
 0xbba   : > { %37969 = vst [vmem:[#allocation48_spill] sm:$0xff] %v36824_v56  ;;  %19295 = vst [vmem:[#allocation2 + $0x118] sm:$0xff] %v36824_v56  ;;  %v19225_v1 = vmax.f32 %v19189_v50, 0.0  ;;  %30214 = vmatprep.mubr.msk.f32.mxu0 %vm449_vm0, %v19329_v63  ;;  %v19729_v52 = vld [vmem:[#allocation2 + $0x6] sm:$0xff]  ;;  %v19730_v50 = vld [vmem:[#allocation2 + $0xe] sm:$0xff] }
 0xbbb   : > { %v36831_v47 = vmul.f32 %v19226_v25, %v37970_v49  ;;  %30215 = vmatmul.mubr.msk.f32.gmra.mrb[102].mxu0 %vm449_vm0, %v19330_v59  ;;  %v25809_v59 = vld [vmem:[%s37701_s2 + $0x4d0] sm:$0xff]  ;;  %v25810_v25 = vld [vmem:[%s37701_s2 + $0x4d8] sm:$0xff]  ;;  %v36953_v49 = vld [vmem:[#allocation2 + $0x67] sm:$0xff] }
 0xbbc   : > { %v36835_v37 = vmul.f32 %v19225_v1, %v37972_v58  ;;  %v31097_v63 = vpack.c.bf16 %v25810_v25, %v25809_v59  ;;  %v25847_v1 = vld [vmem:[%s37701_s2 + $0x4e0] sm:$0xff]  ;;  %v19734_v59 = vld [vmem:[#allocation2 + $0x2e] sm:$0xff]  ;;  %v19735_v25 = vld [vmem:[#allocation2 + $0x36] sm:$0xff] }
 0xbbd   : > { %37971 = vst [vmem:[#allocation49_spill] sm:$0xff] %v36831_v47  ;;  %19298 = vst [vmem:[#allocation2 + $0x130] sm:$0xff] %v36831_v47  ;;  %v19331_v18 = vld [vmem:[#allocation2 + $0x105] sm:$0xff]  ;;  %v19332_v34 = vld [vmem:[#allocation2 + $0x10d] sm:$0xff] }
 0xbbe   : > { %37973 = vst [vmem:[#allocation50_spill] sm:$0xff] %v36835_v37  ;;  %19297 = vst [vmem:[#allocation2 + $0x128] sm:$0xff] %v36835_v37  ;;  %30217 = vmatprep.mubr.msk.f32.mxu0 %vm449_vm0, %v19331_v18  ;;  %v25848_v18 = vld [vmem:[%s37701_s2 + $0x4e8] sm:$0xff]  ;;  %v20261_v21 = vld [vmem:[#allocation2 + $0xf7] sm:$0xff] }
 0xbbf   : > { %30218 = vmatmul.mubr.msk.f32.gmra.mrb[104].mxu0 %vm449_vm0, %v19332_v34  ;;  %v19731_v34 = vld [vmem:[#allocation2 + $0x16] sm:$0xff]  ;;  %v20262_v13 = vld [vmem:[#allocation2 + $0xff] sm:$0xff]  ;;  %v20263_v9 = vld [vmem:[#allocation2 + $0x107] sm:$0xff] }
 0xbc0   : > { %v36957_v58 = vld [vmem:[#allocation2 + $0x6f] sm:$0xff]  ;;  %v25890_v47 = vld [vmem:[%s37701_s2 + $0x518] sm:$0xff]  ;;  %v25927_v41 = vld [vmem:[%s37701_s2 + $0x520] sm:$0xff] }
 0xbc1   : > { %v19333_v24 = vld [vmem:[#allocation2 + $0x115] sm:$0xff]  ;;  %v19334_v39 = vld [vmem:[#allocation2 + $0x11d] sm:$0xff]  ;;  %v31113_v37 = vpack.c.bf16 %v25890_v47, %v25889_v30  ;;  %v25928_v56 = vld [vmem:[%s37701_s2 + $0x528] sm:$0xff] }
 0xbc2   : > { %30220 = vmatprep.mubr.msk.f32.mxu0 %vm449_vm0, %v19333_v24  ;;  %v36859_v24 = vpack.c.bf16 %v25848_v18, %v25847_v1  ;;  %v19738_v1 = vld [vmem:[#allocation2 + $0x4e] sm:$0xff]  ;;  %v19739_v18 = vld [vmem:[#allocation2 + $0x56] sm:$0xff]  ;;  %v20266_v48 = vld [vmem:[#allocation2 + $0x11f] sm:$0xff]  ;;  %v31117_v42 = vpack.c.bf16 %v25928_v56, %v25927_v41 }
 0xbc3   : > { %30221 = vmatmul.mubr.msk.f32.gmra.mrb[106].mxu0 %vm449_vm0, %v19334_v39  ;;  %v19732_v39 = vld [vmem:[#allocation2 + $0x1e] sm:$0xff]  ;;  %v20264_v36 = vld [vmem:[#allocation2 + $0x10f] sm:$0xff] }
 0xbc4   : > { %30231 = vmatprep.mubr.msk.f32.mxu0 %vm449_vm0, %v19729_v52  ;;  %v19733_v52 = vld [vmem:[#allocation2 + $0x26] sm:$0xff]  ;;  %v20265_v33 = vld [vmem:[#allocation2 + $0x117] sm:$0xff] }
 0xbc5   : > { %v20767_v30 = vld [vmem:[#allocation2 + $0x127] sm:$0xff]  ;;  %v21757_v41 = vld [vmem:[#allocation2 + $0xb9] sm:$0xff]  ;;  %v21760_v47 = vld [vmem:[#allocation2 + $0xd1] sm:$0xff] }
 0xbc6   : > { %v37213_v56 = vld [vmem:[#allocation2 + $0xa1] sm:$0xff] }
 0xbc7   : > { %30232 = vmatmul.mubr.msk.f32.vlgmr.msra.gmra.mrb[72].mxu0 %vm449_vm0, %v19730_v50  ;;  %v19736_v50 = vld [vmem:[#allocation2 + $0x3e] sm:$0xff] }
 0xbc8   : > { %30234 = vmatprep.mubr.msk.f32.mxu0 %vm449_vm0, %v19731_v34  ;;  %31096 = vmatpush3.bf16.msra.mxu0 %v36604_v29  ;;  %v19737_v29 = vld [vmem:[#allocation2 + $0x46] sm:$0xff] }
 0xbc9   : > { %31098 = vmatprep.subr.bf16.mxu0 %v31097_v63  ;;  %v19741_v34 = vld [vmem:[#allocation2 + $0x66] sm:$0xff] }
 0xbcb   : > { %30235 = vmatmul.mubr.msk.f32.gmra.mrb[74].mxu0 %vm449_vm0, %v19732_v39  ;;  %v19742_v39 = vld [vmem:[#allocation2 + $0x6e] sm:$0xff] }
 0xbcc   : > { %30237 = vmatprep.mubr.msk.f32.mxu0 %vm449_vm0, %v19733_v52  ;;  %31100 = vmatpush3.bf16.msra.mxu0 %v31097_v63  ;;  %v19740_v63 = vld [vmem:[#allocation2 + $0x5e] sm:$0xff]  ;;  %v19743_v52 = vld [vmem:[#allocation2 + $0x76] sm:$0xff] }
 0xbcd   : > { %31102 = vmatprep.subr.bf16.mxu0 %v36859_v24 }
 0xbcf   : > { %30238 = vmatmul.mubr.msk.f32.gmra.mrb[76].mxu0 %vm449_vm0, %v19734_v59  ;;  %v19744_v59 = vld [vmem:[#allocation2 + $0x7e] sm:$0xff] }
 0xbd0   : > { %30240 = vmatprep.mubr.msk.f32.mxu0 %vm449_vm0, %v19735_v25  ;;  %v19745_v25 = vld [vmem:[#allocation2 + $0x86] sm:$0xff] }
 0xbd3   : > { %30241 = vmatmul.mubr.msk.f32.gmra.mrb[78].mxu0 %vm449_vm0, %v19736_v50  ;;  %v19746_v50 = vld [vmem:[#allocation2 + $0x8e] sm:$0xff] }
 0xbd4   : > { %30243 = vmatprep.mubr.msk.f32.mxu0 %vm449_vm0, %v19737_v29  ;;  %v19747_v29 = vld [vmem:[#allocation2 + $0x96] sm:$0xff] }
 0xbd7   : > { %30244 = vmatmul.mubr.msk.f32.gmra.mrb[80].mxu0 %vm449_vm0, %v19738_v1  ;;  %v19748_v1 = vld [vmem:[#allocation2 + $0x9e] sm:$0xff] }
 0xbd8   : > { %30246 = vmatprep.mubr.msk.f32.mxu0 %vm449_vm0, %v19739_v18  ;;  %v19749_v18 = vld [vmem:[#allocation2 + $0xa6] sm:$0xff] }
 0xbdb   : > { %30247 = vmatmul.mubr.msk.f32.gmra.mrb[82].mxu0 %vm449_vm0, %v19740_v63  ;;  %v19750_v63 = vld [vmem:[#allocation2 + $0xae] sm:$0xff] }
 0xbdc   : > { %30249 = vmatprep.mubr.msk.f32.mxu0 %vm449_vm0, %v19741_v34  ;;  %v19751_v34 = vld [vmem:[#allocation2 + $0xb6] sm:$0xff] }
 0xbdf   : > { %30250 = vmatmul.mubr.msk.f32.gmra.mrb[84].mxu0 %vm449_vm0, %v19742_v39  ;;  %v19752_v39 = vld [vmem:[#allocation2 + $0xbe] sm:$0xff] }
 0xbe0   : > { %30252 = vmatprep.mubr.msk.f32.mxu0 %vm449_vm0, %v19743_v52  ;;  %v19753_v52 = vld [vmem:[#allocation2 + $0xc6] sm:$0xff] }
 0xbe3   : > { %30253 = vmatmul.mubr.msk.f32.gmra.mrb[86].mxu0 %vm449_vm0, %v19744_v59  ;;  %v19754_v59 = vld [vmem:[#allocation2 + $0xce] sm:$0xff] }
 0xbe4   : > { %30255 = vmatprep.mubr.msk.f32.mxu0 %vm449_vm0, %v19745_v25  ;;  %v19755_v25 = vld [vmem:[#allocation2 + $0xd6] sm:$0xff] }
 0xbe7   : > { %30256 = vmatmul.mubr.msk.f32.gmra.mrb[88].mxu0 %vm449_vm0, %v19746_v50  ;;  %v19756_v50 = vld [vmem:[#allocation2 + $0xde] sm:$0xff] }
 0xbe8   : > { %30258 = vmatprep.mubr.msk.f32.mxu0 %vm449_vm0, %v19747_v29  ;;  %v19757_v29 = vld [vmem:[#allocation2 + $0xe6] sm:$0xff] }
 0xbeb   : > { %30259 = vmatmul.mubr.msk.f32.gmra.mrb[90].mxu0 %vm449_vm0, %v19748_v1  ;;  %v19758_v1 = vld [vmem:[#allocation2 + $0xee] sm:$0xff] }
 0xbec   : > { %30261 = vmatprep.mubr.msk.f32.mxu0 %vm449_vm0, %v19749_v18  ;;  %v19759_v18 = vld [vmem:[#allocation2 + $0xf6] sm:$0xff] }
 0xbef   : > { %30262 = vmatmul.mubr.msk.f32.gmra.mrb[92].mxu0 %vm449_vm0, %v19750_v63  ;;  %v19760_v63 = vld [vmem:[#allocation2 + $0xfe] sm:$0xff] }
 0xbf0   : > { %30264 = vmatprep.mubr.msk.f32.mxu0 %vm449_vm0, %v19751_v34  ;;  %v19761_v34 = vld [vmem:[#allocation2 + $0x106] sm:$0xff] }
 0xbf3   : > { %30265 = vmatmul.mubr.msk.f32.gmra.mrb[94].mxu0 %vm449_vm0, %v19752_v39  ;;  %v19762_v39 = vld [vmem:[#allocation2 + $0x10e] sm:$0xff] }
 0xbf4   : > { %30267 = vmatprep.mubr.msk.f32.mxu0 %vm449_vm0, %v19753_v52  ;;  %v19763_v52 = vld [vmem:[#allocation2 + $0x116] sm:$0xff] }
 0xbf7   : > { %30268 = vmatmul.mubr.msk.f32.gmra.mrb[96].mxu0 %vm449_vm0, %v19754_v59  ;;  %v20231_v59 = vld [vmem:[#allocation2 + $0x7] sm:$0xff] }
 0xbf8   : > { %30270 = vmatprep.mubr.msk.f32.mxu0 %vm449_vm0, %v19755_v25  ;;  %v19764_v25 = vld [vmem:[#allocation2 + $0x11e] sm:$0xff] }
 0xbfb   : > { %30271 = vmatmul.mubr.msk.f32.gmra.mrb[98].mxu0 %vm449_vm0, %v19756_v50  ;;  %v25849_v50 = vld [vmem:[%s37701_s2 + $0x4f0] sm:$0xff] }
 0xbfc   : > { %30273 = vmatprep.mubr.msk.f32.mxu0 %vm449_vm0, %v19757_v29  ;;  %v25850_v29 = vld [vmem:[%s37701_s2 + $0x4f8] sm:$0xff] }
 0xbff   : > { %30274 = vmatmul.mubr.msk.f32.gmra.mrb[100].mxu0 %vm449_vm0, %v19758_v1  ;;  %v20232_v1 = vld [vmem:[#allocation2 + $0xf] sm:$0xff] }
 0xc00   : > { %30276 = vmatprep.mubr.msk.f32.mxu0 %vm449_vm0, %v19759_v18  ;;  %v31105_v18 = vpack.c.bf16 %v25850_v29, %v25849_v50  ;;  %v36925_v50 = vld [vmem:[#allocation2 + $0x2f] sm:$0xff]  ;;  %v36933_v29 = vld [vmem:[#allocation2 + $0x3f] sm:$0xff] }
 0xc03   : > { %30277 = vmatmul.mubr.msk.f32.gmra.mrb[102].mxu0 %vm449_vm0, %v19760_v63  ;;  %v25887_v63 = vld [vmem:[%s37701_s2 + $0x500] sm:$0xff] }
 0xc04   : > { %30279 = vmatprep.mubr.msk.f32.mxu0 %vm449_vm0, %v19761_v34  ;;  %v25888_v34 = vld [vmem:[%s37701_s2 + $0x508] sm:$0xff] }
 0xc07   : > { %30280 = vmatmul.mubr.msk.f32.gmra.mrb[104].mxu0 %vm449_vm0, %v19762_v39  ;;  %v36909_v39 = vld [vmem:[#allocation2 + $0x17] sm:$0xff] }
 0xc08   : > { %30282 = vmatprep.mubr.msk.f32.mxu0 %vm449_vm0, %v19763_v52  ;;  %v36914_v52 = vpack.c.bf16 %v25888_v34, %v25887_v63  ;;  %v36945_v63 = vld [vmem:[#allocation2 + $0x57] sm:$0xff]  ;;  %v36949_v34 = vld [vmem:[#allocation2 + $0x5f] sm:$0xff] }
 0xc0b   : > { %30283 = vmatmul.mubr.msk.f32.gmra.mrb[106].mxu0 %vm449_vm0, %v19764_v25  ;;  %v36920_v25 = vld [vmem:[#allocation2 + $0x27] sm:$0xff] }
 0xc0c   : > { %30293 = vmatprep.mubr.msk.f32.mxu0 %vm449_vm0, %v20231_v59  ;;  %v36916_v59 = vld [vmem:[#allocation2 + $0x1f] sm:$0xff] }
 0xc0f   : > { %30294 = vmatmul.mubr.msk.f32.vlgmr.msra.gmra.mrb[72].mxu0 %vm449_vm0, %v20232_v1  ;;  %v36937_v1 = vld [vmem:[#allocation2 + $0x47] sm:$0xff] }
 0xc10   : > { %30296 = vmatprep.mubr.msk.f32.mxu0 %vm449_vm0, %v36909_v39  ;;  %31104 = vmatpush3.bf16.msra.mxu0 %v36859_v24  ;;  %v36929_v24 = vld [vmem:[#allocation2 + $0x37] sm:$0xff] }
 0xc11   : > { %31106 = vmatprep.subr.bf16.mxu0 %v31105_v18 }
 0xc13   : > { %30297 = vmatmul.mubr.msk.f32.gmra.mrb[74].mxu0 %vm449_vm0, %v36916_v59 }
 0xc14   : > { %30299 = vmatprep.mubr.msk.f32.mxu0 %vm449_vm0, %v36920_v25  ;;  %31108 = vmatpush3.bf16.msra.mxu0 %v31105_v18  ;;  %v36941_v18 = vld [vmem:[#allocation2 + $0x4f] sm:$0xff] }
 0xc15   : > { %31110 = vmatprep.subr.bf16.mxu0 %v36914_v52 }
 0xc17   : > { %30300 = vmatmul.mubr.msk.f32.gmra.mrb[76].mxu0 %vm449_vm0, %v36925_v50 }
 0xc18   : > { %30302 = vmatprep.mubr.msk.f32.mxu0 %vm449_vm0, %v36929_v24 }
 0xc1b   : > { %30303 = vmatmul.mubr.msk.f32.gmra.mrb[78].mxu0 %vm449_vm0, %v36933_v29 }
 0xc1c   : > { %30305 = vmatprep.mubr.msk.f32.mxu0 %vm449_vm0, %v36937_v1 }
 0xc1f   : > { %30306 = vmatmul.mubr.msk.f32.gmra.mrb[80].mxu0 %vm449_vm0, %v36941_v18 }
 0xc20   : > { %30308 = vmatprep.mubr.msk.f32.mxu0 %vm449_vm0, %v36945_v63 }
 0xc23   : > { %30309 = vmatmul.mubr.msk.f32.gmra.mrb[82].mxu0 %vm449_vm0, %v36949_v34 }
 0xc24   : > { %30311 = vmatprep.mubr.msk.f32.mxu0 %vm449_vm0, %v36953_v49 }
 0xc27   : > { %30312 = vmatmul.mubr.msk.f32.gmra.mrb[84].mxu0 %vm449_vm0, %v36957_v58 }
 0xc28   : > { %30314 = vmatprep.mubr.msk.f32.mxu0 %vm449_vm0, %v36961_v62 }
 0xc2b   : > { %30315 = vmatmul.mubr.msk.f32.gmra.mrb[86].mxu0 %vm449_vm0, %v36965_v46 }
 0xc2c   : > { %30317 = vmatprep.mubr.msk.f32.mxu0 %vm449_vm0, %v36969_v11 }
 0xc2f   : > { %30318 = vmatmul.mubr.msk.f32.gmra.mrb[88].mxu0 %vm449_vm0, %v36973_v3 }
 0xc30   : > { %30320 = vmatprep.mubr.msk.f32.mxu0 %vm449_vm0, %v20249_v51 }
 0xc33   : > { %30321 = vmatmul.mubr.msk.f32.gmra.mrb[90].mxu0 %vm449_vm0, %v20250_v40 }
 0xc34   : > { %30323 = vmatprep.mubr.msk.f32.mxu0 %vm449_vm0, %v20251_v22 }
 0xc37   : > { %30324 = vmatmul.mubr.msk.f32.gmra.mrb[92].mxu0 %vm449_vm0, %v20252_v61 }
 0xc38   : > { %30326 = vmatprep.mubr.msk.f32.mxu0 %vm449_vm0, %v20253_v19 }
 0xc3b   : > { %30327 = vmatmul.mubr.msk.f32.gmra.mrb[94].mxu0 %vm449_vm0, %v20254_v15 }
 0xc3c   : > { %30329 = vmatprep.mubr.msk.f32.mxu0 %vm449_vm0, %v20255_v57 }
 0xc3f   : > { %30330 = vmatmul.mubr.msk.f32.gmra.mrb[96].mxu0 %vm449_vm0, %v20256_v55 }
 0xc40   : > { %30332 = vmatprep.mubr.msk.f32.mxu0 %vm449_vm0, %v20257_v8 }
 0xc43   : > { %30333 = vmatmul.mubr.msk.f32.gmra.mrb[98].mxu0 %vm449_vm0, %v20258_v0 }
 0xc44   : > { %30335 = vmatprep.mubr.msk.f32.mxu0 %vm449_vm0, %v20259_v26 }
 0xc47   : > { %30336 = vmatmul.mubr.msk.f32.gmra.mrb[100].mxu0 %vm449_vm0, %v20260_v6 }
 0xc48   : > { %30338 = vmatprep.mubr.msk.f32.mxu0 %vm449_vm0, %v20261_v21 }
 0xc4b   : > { %30339 = vmatmul.mubr.msk.f32.gmra.mrb[102].mxu0 %vm449_vm0, %v20262_v13 }
 0xc4c   : > { %30341 = vmatprep.mubr.msk.f32.mxu0 %vm449_vm0, %v20263_v9 }
 0xc4f   : > { %30342 = vmatmul.mubr.msk.f32.gmra.mrb[104].mxu0 %vm449_vm0, %v20264_v36 }
 0xc50   : > { %30344 = vmatprep.mubr.msk.f32.mxu0 %vm449_vm0, %v20265_v33 }
 0xc53   : > { %30345 = vmatmul.mubr.msk.f32.gmra.mrb[106].mxu0 %vm449_vm0, %v20266_v48 }
 0xc54   : > { %30355 = vmatprep.mubr.msk.f32.mxu0 %vm449_vm0, %v36909_v39  ;;  %v21763_v39 = vld [vmem:[#allocation2 + $0xe9] sm:$0xff] }
 0xc57   : > { %30356 = vmatmul.mubr.msk.f32.vlgmr.msra.gmra.mrb[72].mxu0 %vm449_vm0, %v36916_v59  ;;  %v21765_v59 = vld [vmem:[#allocation2 + $0xf9] sm:$0xff] }
 0xc58   : > { %30358 = vmatprep.mubr.msk.f32.mxu0 %vm449_vm0, %v36920_v25  ;;  %31112 = vmatpush3.bf16.msra.mxu0 %v36914_v52  ;;  %v21764_v52 = vld [vmem:[#allocation2 + $0xf1] sm:$0xff]  ;;  %v21766_v25 = vld [vmem:[#allocation2 + $0x101] sm:$0xff] }
 0xc59   : > { %31114 = vmatprep.subr.bf16.mxu0 %v31113_v37 }
 0xc5b   : > { %30359 = vmatmul.mubr.msk.f32.gmra.mrb[74].mxu0 %vm449_vm0, %v36925_v50  ;;  %v21767_v50 = vld [vmem:[#allocation2 + $0x109] sm:$0xff] }
 0xc5c   : > { %30361 = vmatprep.mubr.msk.f32.mxu0 %vm449_vm0, %v36929_v24  ;;  %31116 = vmatpush3.bf16.msra.mxu0 %v31113_v37  ;;  %v21762_v37 = vld [vmem:[#allocation2 + $0xe1] sm:$0xff]  ;;  %v21768_v24 = vld [vmem:[#allocation2 + $0x111] sm:$0xff] }
 0xc5d   : > { %31118 = vmatprep.subr.bf16.mxu0 %v31117_v42 }
 0xc5f   : > { %30362 = vmatmul.mubr.msk.f32.gmra.mrb[76].mxu0 %vm449_vm0, %v36933_v29  ;;  %v21769_v29 = vld [vmem:[#allocation2 + $0x119] sm:$0xff] }
 0xc60   : > { %30364 = vmatprep.mubr.msk.f32.mxu0 %vm449_vm0, %v36937_v1  ;;  %v21770_v1 = vld [vmem:[#allocation2 + $0x121] sm:$0xff] }
 0xc63   : > { %30365 = vmatmul.mubr.msk.f32.gmra.mrb[78].mxu0 %vm449_vm0, %v36941_v18  ;;  %v21771_v18 = vld [vmem:[#allocation2 + $0x129] sm:$0xff] }
 0xc64   : > { %30367 = vmatprep.mubr.msk.f32.mxu0 %vm449_vm0, %v36945_v63  ;;  %v21772_v63 = vld [vmem:[#allocation2 + $0x131] sm:$0xff] }
 0xc67   : > { %30368 = vmatmul.mubr.msk.f32.gmra.mrb[80].mxu0 %vm449_vm0, %v36949_v34  ;;  %v26009_v34 = vld [vmem:[%s37701_s2 + $0x570] sm:$0xff] }
 0xc68   : > { %30370 = vmatprep.mubr.msk.f32.mxu0 %vm449_vm0, %v36953_v49  ;;  %v21759_v49 = vld [vmem:[#allocation2 + $0xc9] sm:$0xff] }
 0xc6b   : > { %30371 = vmatmul.mubr.msk.f32.gmra.mrb[82].mxu0 %vm449_vm0, %v36957_v58  ;;  %v21761_v58 = vld [vmem:[#allocation2 + $0xd9] sm:$0xff] }
 0xc6c   : > { %30373 = vmatprep.mubr.msk.f32.mxu0 %vm449_vm0, %v36961_v62  ;;  %v21756_v62 = vld [vmem:[#allocation2 + $0xb1] sm:$0xff] }
 0xc6f   : > { %30374 = vmatmul.mubr.msk.f32.gmra.mrb[84].mxu0 %vm449_vm0, %v36965_v46  ;;  %v21758_v46 = vld [vmem:[#allocation2 + $0xc1] sm:$0xff] }
 0xc70   : > { %30376 = vmatprep.mubr.msk.f32.mxu0 %vm449_vm0, %v36969_v11  ;;  %v37169_v11 = vld [vmem:[#allocation2 + $0x49] sm:$0xff] }
 0xc73   : > { %30377 = vmatmul.mubr.msk.f32.gmra.mrb[86].mxu0 %vm449_vm0, %v36973_v3  ;;  %v37150_v3 = vld [vmem:[#allocation2 + $0x29] sm:$0xff] }
 0xc74   : > { %30379 = vmatprep.mubr.msk.f32.mxu0 %vm449_vm0, %v20249_v51  ;;  %v37156_v51 = vld [vmem:[#allocation2 + $0x31] sm:$0xff] }
 0xc77   : > { %30380 = vmatmul.mubr.msk.f32.gmra.mrb[88].mxu0 %vm449_vm0, %v20250_v40 }
 0xc78   : > { %30382 = vmatprep.mubr.msk.f32.mxu0 %vm449_vm0, %v20251_v22  ;;  %v26007_v22 = vld [vmem:[%s37701_s2 + $0x560] sm:$0xff] }
 0xc7b   : > { %30383 = vmatmul.mubr.msk.f32.gmra.mrb[90].mxu0 %vm449_vm0, %v20252_v61  ;;  %v21241_v61 = vld [vmem:[#allocation2 + $0x48] sm:$0xff] }
 0xc7c   : > { %30385 = vmatprep.mubr.msk.f32.mxu0 %vm449_vm0, %v20253_v19  ;;  %v21242_v19 = vld [vmem:[#allocation2 + $0x50] sm:$0xff] }
 0xc7f   : > { %30386 = vmatmul.mubr.msk.f32.gmra.mrb[92].mxu0 %vm449_vm0, %v20254_v15  ;;  %v21239_v15 = vld [vmem:[#allocation2 + $0x38] sm:$0xff] }
 0xc80   : > { %30388 = vmatprep.mubr.msk.f32.mxu0 %vm449_vm0, %v20255_v57  ;;  %v21240_v57 = vld [vmem:[#allocation2 + $0x40] sm:$0xff] }
 0xc83   : > { %30389 = vmatmul.mubr.msk.f32.gmra.mrb[94].mxu0 %vm449_vm0, %v20256_v55 }
 0xc84   : > { %30391 = vmatprep.mubr.msk.f32.mxu0 %vm449_vm0, %v20257_v8  ;;  %v21238_v8 = vld [vmem:[#allocation2 + $0x30] sm:$0xff] }
 0xc87   : > { %30392 = vmatmul.mubr.msk.f32.gmra.mrb[96].mxu0 %vm449_vm0, %v20258_v0  ;;  %v20768_v0 = vld [vmem:[#allocation2 + $0x12f] sm:$0xff] }
 0xc88   : > { %30394 = vmatprep.mubr.msk.f32.mxu0 %vm449_vm0, %v20259_v26  ;;  %v21237_v26 = vld [vmem:[#allocation2 + $0x28] sm:$0xff] }
 0xc8b   : > { %30395 = vmatmul.mubr.msk.f32.gmra.mrb[98].mxu0 %vm449_vm0, %v20260_v6  ;;  %v25929_v6 = vld [vmem:[%s37701_s2 + $0x530] sm:$0xff] }
 0xc8c   : > { %30397 = vmatprep.mubr.msk.f32.mxu0 %vm449_vm0, %v20261_v21  ;;  %v25968_v21 = vld [vmem:[%s37701_s2 + $0x548] sm:$0xff] }
 0xc8f   : > { %30398 = vmatmul.mubr.msk.f32.gmra.mrb[100].mxu0 %vm449_vm0, %v20262_v13  ;;  %v25930_v13 = vld [vmem:[%s37701_s2 + $0x538] sm:$0xff] }
 0xc90   : > { %30400 = vmatprep.mubr.msk.f32.mxu0 %vm449_vm0, %v20263_v9  ;;  %v21235_v9 = vld [vmem:[#allocation2 + $0x18] sm:$0xff] }
 0xc93   : > { %30401 = vmatmul.mubr.msk.f32.gmra.mrb[102].mxu0 %vm449_vm0, %v20264_v36  ;;  %v31121_v36 = vpack.c.bf16 %v25930_v13, %v25929_v6  ;;  %v26047_v6 = vld [vmem:[%s37701_s2 + $0x580] sm:$0xff]  ;;  %v26048_v13 = vld [vmem:[%s37701_s2 + $0x588] sm:$0xff] }
 0xc94   : > { %30403 = vmatprep.mubr.msk.f32.mxu0 %vm449_vm0, %v20265_v33  ;;  %v21236_v33 = vld [vmem:[#allocation2 + $0x20] sm:$0xff] }
 0xc97   : > { %30404 = vmatmul.mubr.msk.f32.gmra.mrb[104].mxu0 %vm449_vm0, %v20266_v48  ;;  %v25967_v48 = vld [vmem:[%s37701_s2 + $0x540] sm:$0xff] }
 0xc98   : > { %30406 = vmatprep.mubr.msk.f32.mxu0 %vm449_vm0, %v20767_v30  ;;  %v31125_v55 = vpack.c.bf16 %v25968_v21, %v25967_v48  ;;  %v26010_v30 = vld [vmem:[%s37701_s2 + $0x578] sm:$0xff]  ;;  %v26049_v48 = vld [vmem:[%s37701_s2 + $0x590] sm:$0xff] }
 0xc99   : > { %v26050_v21 = vld [vmem:[%s37701_s2 + $0x598] sm:$0xff] }
 0xc9b   : > { %30407 = vmatmul.mubr.msk.f32.gmra.mrb[106].mxu0 %vm449_vm0, %v20768_v0  ;;  %v31137_v0 = vpack.c.bf16 %v26010_v30, %v26009_v34  ;;  %v23260_v34 = vld [vmem:[#allocation2 + $0xb3] sm:$0xff]  ;;  %v23261_v30 = vld [vmem:[#allocation2 + $0xbb] sm:$0xff] }
 0xc9c   : > { %30417 = vmatprep.mubr.msk.f32.mxu0 %vm449_vm0, %v21235_v9  ;;  %v31141_v9 = vpack.c.bf16 %v26048_v13, %v26047_v6  ;;  %v23263_v6 = vld [vmem:[#allocation2 + $0xcb] sm:$0xff]  ;;  %v23264_v13 = vld [vmem:[#allocation2 + $0xd3] sm:$0xff] }
 0xc9f   : > { %30418 = vmatmul.mubr.msk.f32.vlgmr.msra.gmra.mrb[72].mxu0 %vm449_vm0, %v21236_v33  ;;  %v22274_v33 = vld [vmem:[#allocation2 + $0x141] sm:$0xff] }
 0xca0   : > { %30420 = vmatprep.mubr.msk.f32.mxu0 %vm449_vm0, %v21237_v26  ;;  %31120 = vmatpush3.bf16.msra.mxu0 %v31117_v42  ;;  %v21755_v42 = vld [vmem:[#allocation2 + $0xa9] sm:$0xff] }
 0xca1   : > { %31122 = vmatprep.subr.bf16.mxu0 %v31121_v36  ;;  %v22741_v26 = vld [vmem:[#allocation2 + $0x2a] sm:$0xff] }
 0xca3   : > { %30421 = vmatmul.mubr.msk.f32.gmra.mrb[74].mxu0 %vm449_vm0, %v21238_v8  ;;  %v22742_v8 = vld [vmem:[#allocation2 + $0x32] sm:$0xff] }
 0xca4   : > { %30423 = vmatprep.mubr.msk.f32.mxu0 %vm449_vm0, %v21239_v15  ;;  %31124 = vmatpush3.bf16.msra.mxu0 %v31121_v36  ;;  %v22273_v36 = vld [vmem:[#allocation2 + $0x139] sm:$0xff] }
 0xca5   : > { %31126 = vmatprep.subr.bf16.mxu0 %v31125_v55  ;;  %v22743_v15 = vld [vmem:[#allocation2 + $0x3a] sm:$0xff] }
 0xca7   : > { %30424 = vmatmul.mubr.msk.f32.gmra.mrb[76].mxu0 %vm449_vm0, %v21240_v57  ;;  %v22744_v57 = vld [vmem:[#allocation2 + $0x42] sm:$0xff] }
 0xca8   : > { %30426 = vmatprep.mubr.msk.f32.mxu0 %vm449_vm0, %v21241_v61  ;;  %v22745_v61 = vld [vmem:[#allocation2 + $0x4a] sm:$0xff] }
 0xcab   : > { %30427 = vmatmul.mubr.msk.f32.gmra.mrb[78].mxu0 %vm449_vm0, %v21242_v19  ;;  %v22746_v19 = vld [vmem:[#allocation2 + $0x52] sm:$0xff] }
 0xcac   : > { %30429 = vmatprep.mubr.msk.f32.mxu0 %vm449_vm0, %v36656_v38  ;;  %v37975_v38 = vld [vmem:[#allocation48_spill] sm:$0xff] }
 0xcaf   : > { %30430 = vmatmul.mubr.msk.f32.gmra.mrb[80].mxu0 %vm449_vm0, %v36651_v17  ;;  %v37974_v17 = vld [vmem:[#allocation46_spill] sm:$0xff] }
 0xcb0   : > { %30432 = vmatprep.mubr.msk.f32.mxu0 %vm449_vm0, %v36670_v20  ;;  %v37977_v20 = vld [vmem:[#allocation50_spill] sm:$0xff] }
 0xcb3   : > { %30433 = vmatmul.mubr.msk.f32.gmra.mrb[82].mxu0 %vm449_vm0, %v36665_v4  ;;  %v37976_v4 = vld [vmem:[#allocation47_spill] sm:$0xff] }
 0xcb4   : > { %30435 = vmatprep.mubr.msk.f32.mxu0 %vm449_vm0, %v36684_v45  ;;  %v25970_v45 = vld [vmem:[%s37701_s2 + $0x558] sm:$0xff] }
 0xcb7   : > { %30436 = vmatmul.mubr.msk.f32.gmra.mrb[84].mxu0 %vm449_vm0, %v36679_v10  ;;  %v25969_v10 = vld [vmem:[%s37701_s2 + $0x550] sm:$0xff] }
 0xcb8   : > { %30438 = vmatprep.mubr.msk.f32.mxu0 %vm449_vm0, %v36698_v43  ;;  %v21737_v43 = vld [vmem:[#allocation2 + $0x19] sm:$0xff]  ;;  %v31129_v40 = vpack.c.bf16 %v25970_v45, %v25969_v10  ;;  %v22752_v45 = vld [vmem:[#allocation2 + $0x82] sm:$0xff] }
 0xcb9   : > { %v22751_v10 = vld [vmem:[#allocation2 + $0x7a] sm:$0xff] }
 0xcbb   : > { %30439 = vmatmul.mubr.msk.f32.gmra.mrb[86].mxu0 %vm449_vm0, %v36693_v14  ;;  %v37978_v14 = vld [vmem:[#allocation49_spill] sm:$0xff] }
 0xcbc   : > { %30441 = vmatprep.mubr.msk.f32.mxu0 %vm449_vm0, %v36712_v23  ;;  %v26008_v23 = vld [vmem:[%s37701_s2 + $0x568] sm:$0xff] }
 0xcbf   : > { %30442 = vmatmul.mubr.msk.f32.gmra.mrb[88].mxu0 %vm449_vm0, %v36707_v44  ;;  %v21738_v44 = vld [vmem:[#allocation2 + $0x21] sm:$0xff] }
 0xcc0   : > { %30444 = vmatprep.mubr.msk.f32.mxu0 %vm449_vm0, %v36726_v7  ;;  %v37160_v7 = vld [vmem:[#allocation2 + $0x39] sm:$0xff] }
 0xcc3   : > { %30445 = vmatmul.mubr.msk.f32.gmra.mrb[90].mxu0 %vm449_vm0, %v36721_v60  ;;  %v37154_v60 = vpack.c.bf16 %v26008_v23, %v26007_v22  ;;  %v22757_v22 = vld [vmem:[#allocation2 + $0xaa] sm:$0xff]  ;;  %v22758_v23 = vld [vmem:[#allocation2 + $0xb2] sm:$0xff] }
 0xcc4   : > { %30447 = vmatprep.mubr.msk.f32.mxu0 %vm449_vm0, %v36740_v54  ;;  %v37173_v54 = vld [vmem:[#allocation2 + $0x51] sm:$0xff] }
 0xcc7   : > { %30448 = vmatmul.mubr.msk.f32.gmra.mrb[92].mxu0 %vm449_vm0, %v36735_v35  ;;  %v37165_v35 = vld [vmem:[#allocation2 + $0x41] sm:$0xff] }
 0xcc8   : > { %30450 = vmatprep.mubr.msk.f32.mxu0 %vm449_vm0, %v36754_v16  ;;  %v37181_v16 = vld [vmem:[#allocation2 + $0x61] sm:$0xff] }
 0xccb   : > { %30451 = vmatmul.mubr.msk.f32.gmra.mrb[94].mxu0 %vm449_vm0, %v36749_v12  ;;  %v37177_v12 = vld [vmem:[#allocation2 + $0x59] sm:$0xff] }
 0xccc   : > { %30453 = vmatprep.mubr.msk.f32.mxu0 %vm449_vm0, %v36768_v31  ;;  %v37189_v31 = vld [vmem:[#allocation2 + $0x71] sm:$0xff] }
 0xccf   : > { %30454 = vmatmul.mubr.msk.f32.gmra.mrb[96].mxu0 %vm449_vm0, %v36763_v28  ;;  %v37185_v28 = vld [vmem:[#allocation2 + $0x69] sm:$0xff] }
 0xcd0   : > { %30456 = vmatprep.mubr.msk.f32.mxu0 %vm449_vm0, %v36782_v32  ;;  %v37201_v32 = vld [vmem:[#allocation2 + $0x89] sm:$0xff] }
 0xcd3   : > { %30457 = vmatmul.mubr.msk.f32.gmra.mrb[98].mxu0 %vm449_vm0, %v36777_v27  ;;  %v37197_v27 = vld [vmem:[#allocation2 + $0x81] sm:$0xff] }
 0xcd4   : > { %30459 = vmatprep.mubr.msk.f32.mxu0 %vm449_vm0, %v36796_v2  ;;  %v37193_v2 = vld [vmem:[#allocation2 + $0x79] sm:$0xff] }
 0xcd7   : > { %30460 = vmatmul.mubr.msk.f32.gmra.mrb[100].mxu0 %vm449_vm0, %v36791_v53  ;;  %v37209_v53 = vld [vmem:[#allocation2 + $0x99] sm:$0xff] }
 0xcd8   : > { %30462 = vmatprep.mubr.msk.f32.mxu0 %vm449_vm0, %v36810_v5  ;;  %v37205_v5 = vld [vmem:[#allocation2 + $0x91] sm:$0xff] }
 0xcdb   : > { %30463 = vmatmul.mubr.msk.f32.gmra.mrb[102].mxu0 %vm449_vm0, %v37974_v17  ;;  %v22747_v17 = vld [vmem:[#allocation2 + $0x5a] sm:$0xff] }
 0xcdc   : > { %30465 = vmatprep.mubr.msk.f32.mxu0 %vm449_vm0, %v37975_v38  ;;  %v22748_v38 = vld [vmem:[#allocation2 + $0x62] sm:$0xff] }
 0xcdf   : > { %30466 = vmatmul.mubr.msk.f32.gmra.mrb[104].mxu0 %vm449_vm0, %v37976_v4  ;;  %v22749_v4 = vld [vmem:[#allocation2 + $0x6a] sm:$0xff] }
 0xce0   : > { %30468 = vmatprep.mubr.msk.f32.mxu0 %vm449_vm0, %v37977_v20  ;;  %v22750_v20 = vld [vmem:[#allocation2 + $0x72] sm:$0xff] }
 0xce3   : > { %30469 = vmatmul.mubr.msk.f32.gmra.mrb[106].mxu0 %vm449_vm0, %v37978_v14  ;;  %v22753_v14 = vld [vmem:[#allocation2 + $0x8a] sm:$0xff] }
 0xce4   : > { %30479 = vmatprep.mubr.msk.f32.mxu0 %vm449_vm0, %v21737_v43  ;;  %v22754_v43 = vld [vmem:[#allocation2 + $0x92] sm:$0xff] }
 0xce7   : > { %30480 = vmatmul.mubr.msk.f32.vlgmr.msra.gmra.mrb[72].mxu0 %vm449_vm0, %v21738_v44  ;;  %v22756_v44 = vld [vmem:[#allocation2 + $0xa2] sm:$0xff] }
 0xce8   : > { %30482 = vmatprep.mubr.msk.f32.mxu0 %vm449_vm0, %v37150_v3  ;;  %31128 = vmatpush3.bf16.msra.mxu0 %v31125_v55  ;;  %v31145_v55 = vpack.c.bf16 %v26050_v21, %v26049_v48  ;;  %v23268_v48 = vld [vmem:[#allocation2 + $0xf3] sm:$0xff]  ;;  %v23269_v21 = vld [vmem:[#allocation2 + $0xfb] sm:$0xff] }
 0xce9   : > { %31130 = vmatprep.subr.bf16.mxu0 %v31129_v40 }
 0xceb   : > { %30483 = vmatmul.mubr.msk.f32.gmra.mrb[74].mxu0 %vm449_vm0, %v37156_v51 }
 0xcec   : > { %30485 = vmatprep.mubr.msk.f32.mxu0 %vm449_vm0, %v37160_v7  ;;  %31132 = vmatpush3.bf16.msra.mxu0 %v31129_v40  ;;  %v22755_v40 = vld [vmem:[#allocation2 + $0x9a] sm:$0xff] }
 0xced   : > { %31134 = vmatprep.subr.bf16.mxu0 %v37154_v60 }
 0xcef   : > { %30486 = vmatmul.mubr.msk.f32.gmra.mrb[76].mxu0 %vm449_vm0, %v37165_v35 }
 0xcf0   : > { %30488 = vmatprep.mubr.msk.f32.mxu0 %vm449_vm0, %v37169_v11 }
 0xcf3   : > { %30489 = vmatmul.mubr.msk.f32.gmra.mrb[78].mxu0 %vm449_vm0, %v37173_v54 }
 0xcf4   : > { %30491 = vmatprep.mubr.msk.f32.mxu0 %vm449_vm0, %v37177_v12 }
 0xcf7   : > { %30492 = vmatmul.mubr.msk.f32.gmra.mrb[80].mxu0 %vm449_vm0, %v37181_v16 }
 0xcf8   : > { %30494 = vmatprep.mubr.msk.f32.mxu0 %vm449_vm0, %v37185_v28 }
 0xcfb   : > { %30495 = vmatmul.mubr.msk.f32.gmra.mrb[82].mxu0 %vm449_vm0, %v37189_v31 }
 0xcfc   : > { %30497 = vmatprep.mubr.msk.f32.mxu0 %vm449_vm0, %v37193_v2 }
 0xcff   : > { %30498 = vmatmul.mubr.msk.f32.gmra.mrb[84].mxu0 %vm449_vm0, %v37197_v27 }
 0xd00   : > { %30500 = vmatprep.mubr.msk.f32.mxu0 %vm449_vm0, %v37201_v32 }
 0xd03   : > { %30501 = vmatmul.mubr.msk.f32.gmra.mrb[86].mxu0 %vm449_vm0, %v37205_v5 }
 0xd04   : > { %30503 = vmatprep.mubr.msk.f32.mxu0 %vm449_vm0, %v37209_v53 }
 0xd07   : > { %30504 = vmatmul.mubr.msk.f32.gmra.mrb[88].mxu0 %vm449_vm0, %v37213_v56 }
 0xd08   : > { %30506 = vmatprep.mubr.msk.f32.mxu0 %vm449_vm0, %v21755_v42 }
 0xd0b   : > { %30507 = vmatmul.mubr.msk.f32.gmra.mrb[90].mxu0 %vm449_vm0, %v21756_v62 }
 0xd0c   : > { %30509 = vmatprep.mubr.msk.f32.mxu0 %vm449_vm0, %v21757_v41 }
 0xd0f   : > { %30510 = vmatmul.mubr.msk.f32.gmra.mrb[92].mxu0 %vm449_vm0, %v21758_v46 }
 0xd10   : > { %30512 = vmatprep.mubr.msk.f32.mxu0 %vm449_vm0, %v21759_v49 }
 0xd13   : > { %30513 = vmatmul.mubr.msk.f32.gmra.mrb[94].mxu0 %vm449_vm0, %v21760_v47 }
 0xd14   : > { %30515 = vmatprep.mubr.msk.f32.mxu0 %vm449_vm0, %v21761_v58 }
 0xd17   : > { %30516 = vmatmul.mubr.msk.f32.gmra.mrb[96].mxu0 %vm449_vm0, %v21762_v37 }
 0xd18   : > { %30518 = vmatprep.mubr.msk.f32.mxu0 %vm449_vm0, %v21763_v39 }
 0xd1b   : > { %30519 = vmatmul.mubr.msk.f32.gmra.mrb[98].mxu0 %vm449_vm0, %v21764_v52 }
 0xd1c   : > { %30521 = vmatprep.mubr.msk.f32.mxu0 %vm449_vm0, %v21765_v59 }
 0xd1f   : > { %30522 = vmatmul.mubr.msk.f32.gmra.mrb[100].mxu0 %vm449_vm0, %v21766_v25 }
 0xd20   : > { %30524 = vmatprep.mubr.msk.f32.mxu0 %vm449_vm0, %v21767_v50 }
 0xd23   : > { %30525 = vmatmul.mubr.msk.f32.gmra.mrb[102].mxu0 %vm449_vm0, %v21768_v24 }
 0xd24   : > { %30527 = vmatprep.mubr.msk.f32.mxu0 %vm449_vm0, %v21769_v29 }
 0xd27   : > { %30528 = vmatmul.mubr.msk.f32.gmra.mrb[104].mxu0 %vm449_vm0, %v21770_v1 }
 0xd28   : > { %30530 = vmatprep.mubr.msk.f32.mxu0 %vm449_vm0, %v21771_v18 }
 0xd2b   : > { %30531 = vmatmul.mubr.msk.f32.gmra.mrb[106].mxu0 %vm449_vm0, %v21772_v63 }
 0xd2c   : > { %30541 = vmatprep.mubr.msk.f32.mxu0 %vm449_vm0, %v37150_v3  ;;  %v22759_v3 = vld [vmem:[#allocation2 + $0xba] sm:$0xff] }
 0xd2f   : > { %30542 = vmatmul.mubr.msk.f32.vlgmr.msra.gmra.mrb[72].mxu0 %vm449_vm0, %v37156_v51  ;;  %v22761_v51 = vld [vmem:[#allocation2 + $0xca] sm:$0xff] }
 0xd30   : > { %30544 = vmatprep.mubr.msk.f32.mxu0 %vm449_vm0, %v37160_v7  ;;  %31136 = vmatpush3.bf16.msra.mxu0 %v37154_v60  ;;  %v22760_v60 = vld [vmem:[#allocation2 + $0xc2] sm:$0xff]  ;;  %v22762_v7 = vld [vmem:[#allocation2 + $0xd2] sm:$0xff] }
 0xd31   : > { %31138 = vmatprep.subr.bf16.mxu0 %v31137_v0 }
 0xd33   : > { %30545 = vmatmul.mubr.msk.f32.gmra.mrb[74].mxu0 %vm449_vm0, %v37165_v35  ;;  %v22763_v35 = vld [vmem:[#allocation2 + $0xda] sm:$0xff] }
 0xd34   : > { %30547 = vmatprep.mubr.msk.f32.mxu0 %vm449_vm0, %v37169_v11  ;;  %31140 = vmatpush3.bf16.msra.mxu0 %v31137_v0  ;;  %v22764_v11 = vld [vmem:[#allocation2 + $0xe2] sm:$0xff] }
 0xd35   : > { %31142 = vmatprep.subr.bf16.mxu0 %v31141_v9  ;;  %v23262_v0 = vld [vmem:[#allocation2 + $0xc3] sm:$0xff] }
 0xd37   : > { %30548 = vmatmul.mubr.msk.f32.gmra.mrb[76].mxu0 %vm449_vm0, %v37173_v54  ;;  %v22765_v54 = vld [vmem:[#allocation2 + $0xea] sm:$0xff] }
 0xd38   : > { %30550 = vmatprep.mubr.msk.f32.mxu0 %vm449_vm0, %v37177_v12  ;;  %v22766_v12 = vld [vmem:[#allocation2 + $0xf2] sm:$0xff] }
 0xd3b   : > { %30551 = vmatmul.mubr.msk.f32.gmra.mrb[78].mxu0 %vm449_vm0, %v37181_v16  ;;  %v22767_v16 = vld [vmem:[#allocation2 + $0xfa] sm:$0xff] }
 0xd3c   : > { %30553 = vmatprep.mubr.msk.f32.mxu0 %vm449_vm0, %v37185_v28  ;;  %v22768_v28 = vld [vmem:[#allocation2 + $0x102] sm:$0xff] }
 0xd3f   : > { %30554 = vmatmul.mubr.msk.f32.gmra.mrb[80].mxu0 %vm449_vm0, %v37189_v31  ;;  %v22769_v31 = vld [vmem:[#allocation2 + $0x10a] sm:$0xff] }
 0xd40   : > { %30556 = vmatprep.mubr.msk.f32.mxu0 %vm449_vm0, %v37193_v2  ;;  %v22770_v2 = vld [vmem:[#allocation2 + $0x112] sm:$0xff] }
 0xd43   : > { %30557 = vmatmul.mubr.msk.f32.gmra.mrb[82].mxu0 %vm449_vm0, %v37197_v27  ;;  %v22771_v27 = vld [vmem:[#allocation2 + $0x11a] sm:$0xff] }
 0xd44   : > { %30559 = vmatprep.mubr.msk.f32.mxu0 %vm449_vm0, %v37201_v32  ;;  %v22772_v32 = vld [vmem:[#allocation2 + $0x122] sm:$0xff] }
 0xd47   : > { %30560 = vmatmul.mubr.msk.f32.gmra.mrb[84].mxu0 %vm449_vm0, %v37205_v5  ;;  %v22773_v5 = vld [vmem:[#allocation2 + $0x12a] sm:$0xff] }
 0xd48   : > { %30562 = vmatprep.mubr.msk.f32.mxu0 %vm449_vm0, %v37209_v53  ;;  %v22775_v53 = vld [vmem:[#allocation2 + $0x13a] sm:$0xff] }
 0xd4b   : > { %30563 = vmatmul.mubr.msk.f32.gmra.mrb[86].mxu0 %vm449_vm0, %v37213_v56  ;;  %v22774_v56 = vld [vmem:[#allocation2 + $0x132] sm:$0xff] }
 0xd4c   : > { %30565 = vmatprep.mubr.msk.f32.mxu0 %vm449_vm0, %v21755_v42  ;;  %v22776_v42 = vld [vmem:[#allocation2 + $0x142] sm:$0xff] }
 0xd4f   : > { %30566 = vmatmul.mubr.msk.f32.gmra.mrb[88].mxu0 %vm449_vm0, %v21756_v62  ;;  %v23243_v62 = vld [vmem:[#allocation2 + $0x2b] sm:$0xff] }
 0xd50   : > { %30568 = vmatprep.mubr.msk.f32.mxu0 %vm449_vm0, %v21757_v41  ;;  %v23244_v41 = vld [vmem:[#allocation2 + $0x33] sm:$0xff] }
 0xd53   : > { %30569 = vmatmul.mubr.msk.f32.gmra.mrb[90].mxu0 %vm449_vm0, %v21758_v46  ;;  %v23245_v46 = vld [vmem:[#allocation2 + $0x3b] sm:$0xff] }
 0xd54   : > { %30571 = vmatprep.mubr.msk.f32.mxu0 %vm449_vm0, %v21759_v49  ;;  %v23246_v49 = vld [vmem:[#allocation2 + $0x43] sm:$0xff] }
 0xd57   : > { %30572 = vmatmul.mubr.msk.f32.gmra.mrb[92].mxu0 %vm449_vm0, %v21760_v47  ;;  %v23247_v47 = vld [vmem:[#allocation2 + $0x4b] sm:$0xff] }
 0xd58   : > { %30574 = vmatprep.mubr.msk.f32.mxu0 %vm449_vm0, %v21761_v58  ;;  %v23248_v58 = vld [vmem:[#allocation2 + $0x53] sm:$0xff] }
 0xd5b   : > { %30575 = vmatmul.mubr.msk.f32.gmra.mrb[94].mxu0 %vm449_vm0, %v21762_v37  ;;  %v23249_v37 = vld [vmem:[#allocation2 + $0x5b] sm:$0xff] }
 0xd5c   : > { %30577 = vmatprep.mubr.msk.f32.mxu0 %vm449_vm0, %v21763_v39  ;;  %v23250_v39 = vld [vmem:[#allocation2 + $0x63] sm:$0xff] }
 0xd5f   : > { %30578 = vmatmul.mubr.msk.f32.gmra.mrb[96].mxu0 %vm449_vm0, %v21764_v52  ;;  %v23251_v52 = vld [vmem:[#allocation2 + $0x6b] sm:$0xff] }
 0xd60   : > { %30580 = vmatprep.mubr.msk.f32.mxu0 %vm449_vm0, %v21765_v59  ;;  %v23252_v59 = vld [vmem:[#allocation2 + $0x73] sm:$0xff] }
 0xd63   : > { %30581 = vmatmul.mubr.msk.f32.gmra.mrb[98].mxu0 %vm449_vm0, %v21766_v25  ;;  %v23253_v25 = vld [vmem:[#allocation2 + $0x7b] sm:$0xff] }
 0xd64   : > { %30583 = vmatprep.mubr.msk.f32.mxu0 %vm449_vm0, %v21767_v50  ;;  %v23254_v50 = vld [vmem:[#allocation2 + $0x83] sm:$0xff] }
 0xd67   : > { %30584 = vmatmul.mubr.msk.f32.gmra.mrb[100].mxu0 %vm449_vm0, %v21768_v24  ;;  %v23255_v24 = vld [vmem:[#allocation2 + $0x8b] sm:$0xff] }
 0xd68   : > { %30586 = vmatprep.mubr.msk.f32.mxu0 %vm449_vm0, %v21769_v29  ;;  %v23256_v29 = vld [vmem:[#allocation2 + $0x93] sm:$0xff] }
 0xd6b   : > { %30587 = vmatmul.mubr.msk.f32.gmra.mrb[102].mxu0 %vm449_vm0, %v21770_v1  ;;  %v23257_v1 = vld [vmem:[#allocation2 + $0x9b] sm:$0xff] }
 0xd6c   : > { %30589 = vmatprep.mubr.msk.f32.mxu0 %vm449_vm0, %v21771_v18  ;;  %v23258_v18 = vld [vmem:[#allocation2 + $0xa3] sm:$0xff] }
 0xd6f   : > { %30590 = vmatmul.mubr.msk.f32.gmra.mrb[104].mxu0 %vm449_vm0, %v21772_v63  ;;  %v23259_v63 = vld [vmem:[#allocation2 + $0xab] sm:$0xff] }
 0xd70   : > { %30592 = vmatprep.mubr.msk.f32.mxu0 %vm449_vm0, %v22273_v36  ;;  %v23266_v36 = vld [vmem:[#allocation2 + $0xe3] sm:$0xff] }
 0xd73   : > { %30593 = vmatmul.mubr.msk.f32.gmra.mrb[106].mxu0 %vm449_vm0, %v22274_v33  ;;  %v23267_v33 = vld [vmem:[#allocation2 + $0xeb] sm:$0xff] }
 0xd74   : > { %30603 = vmatprep.mubr.msk.f32.mxu0 %vm449_vm0, %v22741_v26  ;;  %v23270_v26 = vld [vmem:[#allocation2 + $0x103] sm:$0xff] }
 0xd77   : > { %30604 = vmatmul.mubr.msk.f32.vlgmr.msra.gmra.mrb[72].mxu0 %vm449_vm0, %v22742_v8  ;;  %v23272_v8 = vld [vmem:[#allocation2 + $0x113] sm:$0xff] }
 0xd78   : > { %30606 = vmatprep.mubr.msk.f32.mxu0 %vm449_vm0, %v22743_v15  ;;  %31144 = vmatpush3.bf16.msra.mxu0 %v31141_v9  ;;  %v23265_v9 = vld [vmem:[#allocation2 + $0xdb] sm:$0xff] }
 0xd79   : > { %31146 = vmatprep.subr.bf16.mxu0 %v31145_v55  ;;  %v23273_v15 = vld [vmem:[#allocation2 + $0x11b] sm:$0xff] }
 0xd7b   : > { %30607 = vmatmul.mubr.msk.f32.gmra.mrb[74].mxu0 %vm449_vm0, %v22744_v57  ;;  %v23274_v57 = vld [vmem:[#allocation2 + $0x123] sm:$0xff] }
 0xd7c   : > { %30609 = vmatprep.mubr.msk.f32.mxu0 %vm449_vm0, %v22745_v61  ;;  %31148 = vmatpush3.bf16.msra.mxu0 %v31145_v55  ;;  %v23271_v55 = vld [vmem:[#allocation2 + $0x10b] sm:$0xff] }
 0xd7d   : > { %v23275_v61 = vld [vmem:[#allocation2 + $0x12b] sm:$0xff] }
 0xd7f   : > { %30610 = vmatmul.mubr.msk.f32.gmra.mrb[76].mxu0 %vm449_vm0, %v22746_v19  ;;  %v23277_v19 = vld [vmem:[#allocation2 + $0x13b] sm:$0xff] }
 0xd80   : > { %30612 = vmatprep.mubr.msk.f32.mxu0 %vm449_vm0, %v22747_v17  ;;  %v23276_v17 = vld [vmem:[#allocation2 + $0x133] sm:$0xff] }
 0xd83   : > { %30613 = vmatmul.mubr.msk.f32.gmra.mrb[78].mxu0 %vm449_vm0, %v22748_v38  ;;  %v23278_v38 = vld [vmem:[#allocation2 + $0x143] sm:$0xff] }
 0xd84   : > { %30615 = vmatprep.mubr.msk.f32.mxu0 %vm449_vm0, %v22749_v4  ;;  %v32791_v4 = vmov 0.0|0.0  }
 0xd85   : > { %31149 = vmatprep.subr.bf16.mxu1 %v32791_v4 }
 0xd87   : > { %30616 = vmatmul.mubr.msk.f32.gmra.mrb[80].mxu0 %vm449_vm0, %v22750_v20  ;;  %v23983_v20 = vld [vmem:[%s37704_s5] sm:$0xff] }
 0xd88   : > { %30618 = vmatprep.mubr.msk.f32.mxu0 %vm449_vm0, %v22751_v10  ;;  %v23984_v10 = vld [vmem:[%s37704_s5 + $0x8] sm:$0xff] }
 0xd8b   : > { %30619 = vmatmul.mubr.msk.f32.gmra.mrb[82].mxu0 %vm449_vm0, %v22752_v45  ;;  %v31150_v45 = vpack.c.bf16 %v23984_v10, %v23983_v20 }
 0xd8c   : > { %30621 = vmatprep.mubr.msk.f32.mxu0 %vm449_vm0, %v22753_v14  ;;  %v23985_v14 = vld [vmem:[%s37704_s5 + $0x10] sm:$0xff] }
 0xd8d   : > { %31151 = vmatpush3.bf16.msra.mxu1 %v31150_v45 }
 0xd8e   : > { %31152 = vmatprep.subr.bf16.mxu1 %v32791_v4 }
 0xd8f   : > { %30622 = vmatmul.mubr.msk.f32.gmra.mrb[84].mxu0 %vm449_vm0, %v22754_v43  ;;  %v23986_v43 = vld [vmem:[%s37704_s5 + $0x18] sm:$0xff] }
 0xd90   : > { %30624 = vmatprep.mubr.msk.f32.mxu0 %vm449_vm0, %v22755_v40  ;;  %v31153_v40 = vpack.c.bf16 %v23986_v43, %v23985_v14  ;;  %v37983_v14 = vld [vmem:[#allocation15_spill] sm:$0xff] }
 0xd92   : > { %31154 = vmatpush3.bf16.msra.mxu1 %v31153_v40 }
 0xd93   : > { %30625 = vmatmul.mubr.msk.f32.gmra.mrb[86].mxu0 %vm449_vm0, %v22756_v44  ;;  %31155 = vmatprep.subr.bf16.mxu1 %v32791_v4  ;;  %v23987_v44 = vld [vmem:[%s37704_s5 + $0x20] sm:$0xff] }
 0xd94   : > { %30627 = vmatprep.mubr.msk.f32.mxu0 %vm449_vm0, %v22757_v22  ;;  %v23988_v22 = vld [vmem:[%s37704_s5 + $0x28] sm:$0xff] }
 0xd97   : > { %30628 = vmatmul.mubr.msk.f32.gmra.mrb[88].mxu0 %vm449_vm0, %v22758_v23  ;;  %v31156_v23 = vpack.c.bf16 %v23988_v22, %v23987_v44 }
 0xd98   : > { %30630 = vmatprep.mubr.msk.f32.mxu0 %vm449_vm0, %v22759_v3  ;;  %v23989_v3 = vld [vmem:[%s37704_s5 + $0x30] sm:$0xff] }
 0xd99   : > { %31157 = vmatpush3.bf16.msra.mxu1 %v31156_v23 }
 0xd9a   : > { %31158 = vmatprep.subr.bf16.mxu1 %v32791_v4 }
 0xd9b   : > { %30631 = vmatmul.mubr.msk.f32.gmra.mrb[90].mxu0 %vm449_vm0, %v22760_v60  ;;  %v23990_v60 = vld [vmem:[%s37704_s5 + $0x38] sm:$0xff] }
 0xd9c   : > { %30633 = vmatprep.mubr.msk.f32.mxu0 %vm449_vm0, %v22761_v51  ;;  %v31159_v51 = vpack.c.bf16 %v23990_v60, %v23989_v3 }
 0xd9e   : > { %31160 = vmatpush3.bf16.msra.mxu1 %v31159_v51  ;;  %v37984_v51 = vld [vmem:[#allocation14_spill] sm:$0xff] }
 0xd9f   : > { %30634 = vmatmul.mubr.msk.f32.gmra.mrb[92].mxu0 %vm449_vm0, %v22762_v7  ;;  %31161 = vmatprep.subr.bf16.mxu1 %v32791_v4  ;;  %v23991_v7 = vld [vmem:[%s37704_s5 + $0x40] sm:$0xff] }
 0xda0   : > { %30636 = vmatprep.mubr.msk.f32.mxu0 %vm449_vm0, %v22763_v35  ;;  %v23992_v35 = vld [vmem:[%s37704_s5 + $0x48] sm:$0xff] }
 0xda3   : > { %30637 = vmatmul.mubr.msk.f32.gmra.mrb[94].mxu0 %vm449_vm0, %v22764_v11  ;;  %v31162_v11 = vpack.c.bf16 %v23992_v35, %v23991_v7 }
 0xda4   : > { %30639 = vmatprep.mubr.msk.f32.mxu0 %vm449_vm0, %v22765_v54  ;;  %v23993_v54 = vld [vmem:[%s37704_s5 + $0x50] sm:$0xff] }
 0xda5   : > { %31163 = vmatpush3.bf16.msra.mxu1 %v31162_v11 }
 0xda6   : > { %31164 = vmatprep.subr.bf16.mxu1 %v32791_v4 }
 0xda7   : > { %30640 = vmatmul.mubr.msk.f32.gmra.mrb[96].mxu0 %vm449_vm0, %v22766_v12  ;;  %v23994_v12 = vld [vmem:[%s37704_s5 + $0x58] sm:$0xff] }
 0xda8   : > { %30642 = vmatprep.mubr.msk.f32.mxu0 %vm449_vm0, %v22767_v16  ;;  %v23995_v16 = vld [vmem:[%s37704_s5 + $0x60] sm:$0xff] }
 0xdab   : > { %30643 = vmatmul.mubr.msk.f32.gmra.mrb[98].mxu0 %vm449_vm0, %v22768_v28  ;;  %v31165_v28 = vpack.c.bf16 %v23994_v12, %v23993_v54 }
 0xdac   : > { %30645 = vmatprep.mubr.msk.f32.mxu0 %vm449_vm0, %v22769_v31  ;;  %v23996_v31 = vld [vmem:[%s37704_s5 + $0x68] sm:$0xff] }
 0xdad   : > { %31166 = vmatpush3.bf16.msra.mxu1 %v31165_v28 }
 0xdae   : > { %31167 = vmatprep.subr.bf16.mxu1 %v32791_v4 }
 0xdaf   : > { %30646 = vmatmul.mubr.msk.f32.gmra.mrb[100].mxu0 %vm449_vm0, %v22770_v2  ;;  %v37426_v2 = vld [vmem:[#allocation2] sm:$0xff] }
 0xdb0   : > { %30648 = vmatprep.mubr.msk.f32.mxu0 %vm449_vm0, %v22771_v27  ;;  %30751 = vmatprep.mubr.msk.f32.mxu1 %vm32792_vm1, %v37426_v2  ;;  %v31168_v27 = vpack.c.bf16 %v23996_v31, %v23995_v16  ;;  %v37985_v16 = vld [vmem:[#allocation17_spill] sm:$0xff] }
 0xdb2   : > { %31169 = vmatpush3.bf16.msra.mxu1 %v31168_v27 }
 0xdb3   : > { %30649 = vmatmul.mubr.msk.f32.gmra.mrb[102].mxu0 %vm449_vm0, %v22772_v32  ;;  %v23997_v32 = vld [vmem:[%s37704_s5 + $0x70] sm:$0xff]  ;;  %31170 = vmatprep.subr.bf16.mxu1 %v32791_v4 }
 0xdb4   : > { %30651 = vmatprep.mubr.msk.f32.mxu0 %vm449_vm0, %v22773_v5  ;;  %v23998_v5 = vld [vmem:[%s37704_s5 + $0x78] sm:$0xff] }
 0xdb7   : > { %30652 = vmatmul.mubr.msk.f32.gmra.mrb[104].mxu0 %vm449_vm0, %v22774_v56  ;;  %v37442_v56 = vld [vmem:[%s37702_s3 + $0x4] ss:$0 sm:$0xff] }
 0xdb8   : > { %30654 = vmatprep.mubr.msk.f32.mxu0 %vm449_vm0, %v22775_v53  ;;  %v31171_v53 = vpack.c.bf16 %v23998_v5, %v23997_v32  ;;  %v37986_v5 = vld [vmem:[#allocation16_spill] sm:$0xff] }
 0xdba   : > { %31172 = vmatpush3.bf16.msra.mxu1 %v31171_v53 }
 0xdbb   : > { %30655 = vmatmul.mubr.msk.f32.gmra.mrb[106].mxu0 %vm449_vm0, %v22776_v42  ;;  %31173 = vmatprep.subr.bf16.mxu1 %v32791_v4 }
 0xdbc   : > { %30665 = vmatprep.mubr.msk.f32.mxu0 %vm449_vm0, %v23243_v62  ;;  %v37447_v62 = vld [vmem:[%s37703_s4 + $0x4] ss:$0 sm:$0xff] }
 0xdbf   : > { %30666 = vmatmul.mubr.msk.f32.vlgmr.msra.gmra.mrb[72].mxu0 %vm449_vm0, %v23244_v41 }
 0xdc0   : > { %30668 = vmatprep.mubr.msk.f32.mxu0 %vm449_vm0, %v23245_v46 }
 0xdc3   : > { %30669 = vmatmul.mubr.msk.f32.gmra.mrb[74].mxu0 %vm449_vm0, %v23246_v49 }
 0xdc4   : > { %30671 = vmatprep.mubr.msk.f32.mxu0 %vm449_vm0, %v23247_v47 }
 0xdc7   : > { %30672 = vmatmul.mubr.msk.f32.gmra.mrb[76].mxu0 %vm449_vm0, %v23248_v58 }
 0xdc8   : > { %30674 = vmatprep.mubr.msk.f32.mxu0 %vm449_vm0, %v23249_v37 }
 0xdcb   : > { %30675 = vmatmul.mubr.msk.f32.gmra.mrb[78].mxu0 %vm449_vm0, %v23250_v39 }
 0xdcc   : > { %30677 = vmatprep.mubr.msk.f32.mxu0 %vm449_vm0, %v23251_v52 }
 0xdcf   : > { %30678 = vmatmul.mubr.msk.f32.gmra.mrb[80].mxu0 %vm449_vm0, %v23252_v59 }
 0xdd0   : > { %30680 = vmatprep.mubr.msk.f32.mxu0 %vm449_vm0, %v23253_v25 }
 0xdd3   : > { %30681 = vmatmul.mubr.msk.f32.gmra.mrb[82].mxu0 %vm449_vm0, %v23254_v50 }
 0xdd4   : > { %30683 = vmatprep.mubr.msk.f32.mxu0 %vm449_vm0, %v23255_v24  ;;  %v37979_v24 = vld [vmem:[#allocation13_spill] sm:$0xff] }
 0xdd7   : > { %30684 = vmatmul.mubr.msk.f32.gmra.mrb[84].mxu0 %vm449_vm0, %v23256_v29 }
 0xdd8   : > { %30686 = vmatprep.mubr.msk.f32.mxu0 %vm449_vm0, %v23257_v1 }
 0xddb   : > { %30687 = vmatmul.mubr.msk.f32.gmra.mrb[86].mxu0 %vm449_vm0, %v23258_v18  ;;  %v37980_v18 = vld [vmem:[#allocation11_spill] sm:$0xff] }
 0xddc   : > { %30689 = vmatprep.mubr.msk.f32.mxu0 %vm449_vm0, %v23259_v63 }
 0xddf   : > { %30690 = vmatmul.mubr.msk.f32.gmra.mrb[88].mxu0 %vm449_vm0, %v23260_v34 }
 0xde0   : > { %30692 = vmatprep.mubr.msk.f32.mxu0 %vm449_vm0, %v23261_v30 }
 0xde3   : > { %30693 = vmatmul.mubr.msk.f32.gmra.mrb[90].mxu0 %vm449_vm0, %v23262_v0 }
 0xde4   : > { %30695 = vmatprep.mubr.msk.f32.mxu0 %vm449_vm0, %v23263_v6 }
 0xde7   : > { %30696 = vmatmul.mubr.msk.f32.gmra.mrb[92].mxu0 %vm449_vm0, %v23264_v13 }
 0xde8   : > { %30698 = vmatprep.mubr.msk.f32.mxu0 %vm449_vm0, %v23265_v9 }
 0xdeb   : > { %30699 = vmatmul.mubr.msk.f32.gmra.mrb[94].mxu0 %vm449_vm0, %v23266_v36 }
 0xdec   : > { %30701 = vmatprep.mubr.msk.f32.mxu0 %vm449_vm0, %v23267_v33 }
 0xdef   : > { %30702 = vmatmul.mubr.msk.f32.gmra.mrb[96].mxu0 %vm449_vm0, %v23268_v48 }
 0xdf0   : > { %30704 = vmatprep.mubr.msk.f32.mxu0 %vm449_vm0, %v23269_v21  ;;  %v37981_v21 = vld [vmem:[#allocation10_spill] sm:$0xff] }
 0xdf3   : > { %30705 = vmatmul.mubr.msk.f32.gmra.mrb[98].mxu0 %vm449_vm0, %v23270_v26 }
 0xdf4   : > { %30707 = vmatprep.mubr.msk.f32.mxu0 %vm449_vm0, %v23271_v55 }
 0xdf7   : > { %30708 = vmatmul.mubr.msk.f32.gmra.mrb[100].mxu0 %vm449_vm0, %v23272_v8 }
 0xdf8   : > { %30710 = vmatprep.mubr.msk.f32.mxu0 %vm449_vm0, %v23273_v15  ;;  %v37982_v15 = vld [vmem:[#allocation12_spill] sm:$0xff] }
 0xdfb   : > { %30711 = vmatmul.mubr.msk.f32.gmra.mrb[102].mxu0 %vm449_vm0, %v23274_v57 }
 0xdfc   : > { %30713 = vmatprep.mubr.msk.f32.mxu0 %vm449_vm0, %v23275_v61 }
 0xdff   : > { %30714 = vmatmul.mubr.msk.f32.gmra.mrb[104].mxu0 %vm449_vm0, %v23276_v17 }
 0xe00   : > { %30716 = vmatprep.mubr.msk.f32.mxu0 %vm449_vm0, %v23277_v19 }
 0xe03   : > { %30717 = vmatmul.mubr.msk.f32.gmra.mrb[106].mxu0 %vm449_vm0, %v23278_v38 }
 0xe92   : > { %v30667_v42 = vpop.f32.mrb[72].mxu0 }
 0xe93   : > { %v23790_v41 = vmul.f32 %v30667_v42, %v37442_v56  ;;  %v23458_v46 = vpop.f32.mrb[73].mxu0 }
 0xe94   : > { %v23789_v49 = vmul.f32 %v37442_v56, %v23458_v46 }
 0xe95   : > { %v23834_v47 = vadd.f32 %v37447_v62, %v23790_v41 }
 0xe96   : > { %v23833_v58 = vadd.f32 %v37447_v62, %v23789_v49  ;;  %v30670_v37 = vpop.f32.mrb[74].mxu0 }
 0xe97   : > { %v23870_v39 = vmax.f32 %v23834_v47, 0.0  ;;  %v23792_v52 = vmul.f32 %v30670_v37, %v37442_v56  ;;  %v23468_v59 = vpop.f32.mrb[75].mxu0 }
 0xe98   : > { %v23869_v25 = vmax.f32 %v23833_v58, 0.0  ;;  %v23791_v50 = vmul.f32 %v37442_v56, %v23468_v59 }
 0xe99   : > { %v23906_v29 = vmul.f32 %v23870_v39, %v37979_v24  ;;  %v23836_v1 = vadd.f32 %v37447_v62, %v23792_v52  ;;  %v37987_v39 = vld [vmem:[#allocation19_spill] sm:$0xff] }
 0xe9a   : > { %v23905_v63 = vmul.f32 %v23869_v25, %v37980_v18  ;;  %v23835_v34 = vadd.f32 %v37447_v62, %v23791_v50  ;;  %v30673_v30 = vpop.f32.mrb[76].mxu0  ;;  %v37988_v18 = vld [vmem:[#allocation18_spill] sm:$0xff] }
 0xe9b   : > { %v23872_v0 = vmax.f32 %v23836_v1, 0.0  ;;  %v23794_v6 = vmul.f32 %v30673_v30, %v37442_v56  ;;  %v23478_v13 = vpop.f32.mrb[77].mxu0 }
 0xe9c   : > { %v23941_v9 = vadd.f32 %v23906_v29, %v23905_v63  ;;  %v23871_v36 = vmax.f32 %v23835_v34, 0.0  ;;  %v23793_v33 = vmul.f32 %v37442_v56, %v23478_v13  ;;  %v37989_v13 = vld [vmem:[#allocation21_spill] sm:$0xff] }
 0xe9d   : > { %v23838_v48 = vadd.f32 %v37447_v62, %v23794_v6  ;;  %v23908_v57 = vmul.f32 %v23872_v0, %v37982_v15 }
 0xe9e   : > { %v23907_v26 = vmul.f32 %v23871_v36, %v37981_v21  ;;  %v23837_v55 = vadd.f32 %v37447_v62, %v23793_v33  ;;  %v30676_v8 = vpop.f32.mrb[78].mxu0  ;;  %v37990_v21 = vld [vmem:[#allocation20_spill] sm:$0xff] }
 0xe9f   : > { %v23796_v61 = vmul.f32 %v30676_v8, %v37442_v56  ;;  %v23488_v19 = vpop.f32.mrb[79].mxu0  ;;  %v23874_v38 = vmax.f32 %v23838_v48, 0.0 }
 0xea0   : > { %v23942_v17 = vadd.f32 %v23941_v9, %v23907_v26  ;;  %v23873_v20 = vmax.f32 %v23837_v55, 0.0  ;;  %v23795_v10 = vmul.f32 %v37442_v56, %v23488_v19 }
 0xea1   : > { %v23840_v45 = vadd.f32 %v37447_v62, %v23796_v61  ;;  %v23910_v7 = vmul.f32 %v23874_v38, %v37984_v51  ;;  %v37991_v38 = vld [vmem:[#allocation23_spill] sm:$0xff] }
 0xea2   : > { %v23909_v43 = vmul.f32 %v23873_v20, %v37983_v14  ;;  %v23943_v40 = vadd.f32 %v23942_v17, %v23908_v57  ;;  %v23839_v44 = vadd.f32 %v37447_v62, %v23795_v10  ;;  %v30679_v22 = vpop.f32.mrb[80].mxu0 }
 0xea3   : > { %v23876_v23 = vmax.f32 %v23840_v45, 0.0  ;;  %v23798_v3 = vmul.f32 %v30679_v22, %v37442_v56  ;;  %v23498_v60 = vpop.f32.mrb[81].mxu0  ;;  %v37992_v22 = vld [vmem:[#allocation22_spill] sm:$0xff] }
 0xea4   : > { %v23944_v35 = vadd.f32 %v23943_v40, %v23909_v43  ;;  %v23875_v11 = vmax.f32 %v23839_v44, 0.0  ;;  %v23797_v54 = vmul.f32 %v37442_v56, %v23498_v60 }
 0xea5   : > { %v23842_v12 = vadd.f32 %v37447_v62, %v23798_v3  ;;  %v23912_v53 = vmul.f32 %v23876_v23, %v37986_v5 }
 0xea6   : > { %v23911_v28 = vmul.f32 %v23875_v11, %v37985_v16  ;;  %v23945_v31 = vadd.f32 %v23944_v35, %v23910_v7  ;;  %v23841_v27 = vadd.f32 %v37447_v62, %v23797_v54  ;;  %v30682_v32 = vpop.f32.mrb[82].mxu0  ;;  %v37993_v35 = vld [vmem:[#allocation25_spill] sm:$0xff] }
 0xea7   : > { %v23800_v42 = vmul.f32 %v30682_v32, %v37442_v56  ;;  %v23508_v41 = vpop.f32.mrb[83].mxu0  ;;  %v23878_v49 = vmax.f32 %v23842_v12, 0.0 }
 0xea8   : > { %v23946_v46 = vadd.f32 %v23945_v31, %v23911_v28  ;;  %v23877_v47 = vmax.f32 %v23841_v27, 0.0  ;;  %v23799_v58 = vmul.f32 %v37442_v56, %v23508_v41  ;;  %v37994_v28 = vld [vmem:[#allocation24_spill] sm:$0xff] }
 0xea9   : > { %v23844_v37 = vadd.f32 %v37447_v62, %v23800_v42  ;;  %v23914_v63 = vmul.f32 %v23878_v49, %v37988_v18  ;;  %v37995_v49 = vld [vmem:[#allocation27_spill] sm:$0xff] }
 0xeaa   : > { %v23913_v52 = vmul.f32 %v23877_v47, %v37987_v39  ;;  %v23947_v59 = vadd.f32 %v23946_v46, %v23912_v53  ;;  %v23843_v25 = vadd.f32 %v37447_v62, %v23799_v58  ;;  %v30685_v50 = vpop.f32.mrb[84].mxu0 }
 0xeab   : > { %v23880_v24 = vmax.f32 %v23844_v37, 0.0  ;;  %v23802_v29 = vmul.f32 %v30685_v50, %v37442_v56  ;;  %v23518_v1 = vpop.f32.mrb[85].mxu0  ;;  %v37996_v50 = vld [vmem:[#allocation26_spill] sm:$0xff] }
 0xeac   : > { %v23948_v34 = vadd.f32 %v23947_v59, %v23913_v52  ;;  %v23879_v30 = vmax.f32 %v23843_v25, 0.0  ;;  %v23801_v0 = vmul.f32 %v37442_v56, %v23518_v1 }
 0xead   : > { %v23846_v6 = vadd.f32 %v37447_v62, %v23802_v29  ;;  %v23916_v26 = vmul.f32 %v23880_v24, %v37990_v21 }
 0xeae   : > { %v23915_v9 = vmul.f32 %v23879_v30, %v37989_v13  ;;  %v23949_v36 = vadd.f32 %v23948_v34, %v23914_v63  ;;  %v23845_v33 = vadd.f32 %v37447_v62, %v23801_v0  ;;  %v30688_v48 = vpop.f32.mrb[86].mxu0  ;;  %v37997_v34 = vld [vmem:[#allocation29_spill] sm:$0xff] }
 0xeaf   : > { %v23804_v55 = vmul.f32 %v30688_v48, %v37442_v56  ;;  %v23528_v8 = vpop.f32.mrb[87].mxu0  ;;  %v23882_v57 = vmax.f32 %v23846_v6, 0.0 }
 0xeb0   : > { %v23950_v15 = vadd.f32 %v23949_v36, %v23915_v9  ;;  %v23881_v61 = vmax.f32 %v23845_v33, 0.0  ;;  %v23803_v19 = vmul.f32 %v37442_v56, %v23528_v8  ;;  %v37998_v9 = vld [vmem:[#allocation28_spill] sm:$0xff] }
 0xeb1   : > { %v23848_v17 = vadd.f32 %v37447_v62, %v23804_v55  ;;  %v23918_v23 = vmul.f32 %v23882_v57, %v37992_v22  ;;  %v37999_v57 = vld [vmem:[#allocation31_spill] sm:$0xff] }
 0xeb2   : > { %v23917_v20 = vmul.f32 %v23881_v61, %v37991_v38  ;;  %v23951_v10 = vadd.f32 %v23950_v15, %v23916_v26  ;;  %v23847_v45 = vadd.f32 %v37447_v62, %v23803_v19  ;;  %v30691_v14 = vpop.f32.mrb[88].mxu0 }
 0xeb3   : > { %v23884_v43 = vmax.f32 %v23848_v17, 0.0  ;;  %v23806_v40 = vmul.f32 %v30691_v14, %v37442_v56  ;;  %v23538_v44 = vpop.f32.mrb[89].mxu0  ;;  %v38000_v14 = vld [vmem:[#allocation30_spill] sm:$0xff] }
 0xeb4   : > { %v23952_v3 = vadd.f32 %v23951_v10, %v23917_v20  ;;  %v23883_v60 = vmax.f32 %v23847_v45, 0.0  ;;  %v23805_v51 = vmul.f32 %v37442_v56, %v23538_v44 }
 0xeb5   : > { %v23850_v7 = vadd.f32 %v37447_v62, %v23806_v40  ;;  %v23920_v31 = vmul.f32 %v23884_v43, %v37994_v28 }
 0xeb6   : > { %v23919_v11 = vmul.f32 %v23883_v60, %v37993_v35  ;;  %v23953_v54 = vadd.f32 %v23952_v3, %v23918_v23  ;;  %v23849_v12 = vadd.f32 %v37447_v62, %v23805_v51  ;;  %v30694_v16 = vpop.f32.mrb[90].mxu0  ;;  %v38001_v3 = vld [vmem:[#allocation33_spill] sm:$0xff] }
 0xeb7   : > { %v23808_v27 = vmul.f32 %v30694_v16, %v37442_v56  ;;  %v23548_v32 = vpop.f32.mrb[91].mxu0  ;;  %v23886_v53 = vmax.f32 %v23850_v7, 0.0 }
 0xeb8   : > { %v23954_v5 = vadd.f32 %v23953_v54, %v23919_v11  ;;  %v23885_v42 = vmax.f32 %v23849_v12, 0.0  ;;  %v23807_v41 = vmul.f32 %v37442_v56, %v23548_v32  ;;  %v38002_v11 = vld [vmem:[#allocation32_spill] sm:$0xff] }
 0xeb9   : > { %v23852_v46 = vadd.f32 %v37447_v62, %v23808_v27  ;;  %v23922_v24 = vmul.f32 %v23886_v53, %v37996_v50  ;;  %v38003_v53 = vld [vmem:[#allocation35_spill] sm:$0xff] }
 0xeba   : > { %v23921_v47 = vmul.f32 %v23885_v42, %v37995_v49  ;;  %v23955_v58 = vadd.f32 %v23954_v5, %v23920_v31  ;;  %v23851_v37 = vadd.f32 %v37447_v62, %v23807_v41  ;;  %v30697_v39 = vpop.f32.mrb[92].mxu0 }
 0xebb   : > { %v23888_v52 = vmax.f32 %v23852_v46, 0.0  ;;  %v23810_v59 = vmul.f32 %v30697_v39, %v37442_v56  ;;  %v23558_v25 = vpop.f32.mrb[93].mxu0  ;;  %v38004_v39 = vld [vmem:[#allocation34_spill] sm:$0xff] }
 0xebc   : > { %v23956_v29 = vadd.f32 %v23955_v58, %v23921_v47  ;;  %v23887_v1 = vmax.f32 %v23851_v37, 0.0  ;;  %v23809_v18 = vmul.f32 %v37442_v56, %v23558_v25 }
 0xebd   : > { %v23854_v63 = vadd.f32 %v37447_v62, %v23810_v59  ;;  %v23924_v36 = vmul.f32 %v23888_v52, %v37998_v9 }
 0xebe   : > { %v23923_v30 = vmul.f32 %v23887_v1, %v37997_v34  ;;  %v23957_v0 = vadd.f32 %v23956_v29, %v23922_v24  ;;  %v23853_v6 = vadd.f32 %v37447_v62, %v23809_v18  ;;  %v30700_v13 = vpop.f32.mrb[94].mxu0  ;;  %v38005_v29 = vld [vmem:[#allocation37_spill] sm:$0xff] }
 0xebf   : > { %v23812_v33 = vmul.f32 %v30700_v13, %v37442_v56  ;;  %v23568_v48 = vpop.f32.mrb[95].mxu0  ;;  %v23890_v26 = vmax.f32 %v23854_v63, 0.0 }
 0xec0   : > { %v23958_v21 = vadd.f32 %v23957_v0, %v23923_v30  ;;  %v23889_v55 = vmax.f32 %v23853_v6, 0.0  ;;  %v23811_v8 = vmul.f32 %v37442_v56, %v23568_v48  ;;  %v38006_v30 = vld [vmem:[#allocation36_spill] sm:$0xff] }
 0xec1   : > { %v23856_v15 = vadd.f32 %v37447_v62, %v23812_v33  ;;  %v23926_v43 = vmul.f32 %v23890_v26, %v38000_v14  ;;  %v38007_v26 = vld [vmem:[#allocation39_spill] sm:$0xff] }
 0xec2   : > { %v23925_v61 = vmul.f32 %v23889_v55, %v37999_v57  ;;  %v23959_v19 = vadd.f32 %v23958_v21, %v23924_v36  ;;  %v23855_v17 = vadd.f32 %v37447_v62, %v23811_v8  ;;  %v30703_v38 = vpop.f32.mrb[96].mxu0 }
 0xec3   : > { %v23892_v20 = vmax.f32 %v23856_v15, 0.0  ;;  %v23814_v10 = vmul.f32 %v30703_v38, %v37442_v56  ;;  %v23578_v45 = vpop.f32.mrb[97].mxu0  ;;  %v38008_v38 = vld [vmem:[#allocation38_spill] sm:$0xff] }
 0xec4   : > { %v23960_v40 = vadd.f32 %v23959_v19, %v23925_v61  ;;  %v23891_v44 = vmax.f32 %v23855_v17, 0.0  ;;  %v23813_v22 = vmul.f32 %v37442_v56, %v23578_v45 }
 0xec5   : > { %v23858_v23 = vadd.f32 %v37447_v62, %v23814_v10  ;;  %v23928_v54 = vmul.f32 %v23892_v20, %v38002_v11 }
 0xec6   : > { %v23927_v60 = vmul.f32 %v23891_v44, %v38001_v3  ;;  %v23961_v51 = vadd.f32 %v23960_v40, %v23926_v43  ;;  %v23857_v7 = vadd.f32 %v37447_v62, %v23813_v22  ;;  %v30706_v35 = vpop.f32.mrb[98].mxu0  ;;  %v38009_v40 = vld [vmem:[#allocation41_spill] sm:$0xff] }
 0xec7   : > { %v23816_v12 = vmul.f32 %v30706_v35, %v37442_v56  ;;  %v23588_v16 = vpop.f32.mrb[99].mxu0  ;;  %v23894_v31 = vmax.f32 %v23858_v23, 0.0 }
 0xec8   : > { %v23962_v28 = vadd.f32 %v23961_v51, %v23927_v60  ;;  %v23893_v27 = vmax.f32 %v23857_v7, 0.0  ;;  %v23815_v32 = vmul.f32 %v37442_v56, %v23588_v16  ;;  %v38010_v60 = vld [vmem:[#allocation40_spill] sm:$0xff] }
 0xec9   : > { %v23860_v5 = vadd.f32 %v37447_v62, %v23816_v12  ;;  %v23930_v52 = vmul.f32 %v23894_v31, %v38004_v39  ;;  %v38011_v31 = vld [vmem:[#allocation43_spill] sm:$0xff]  ;;  %v38014_v39 = vld [vmem:[#allocation44_spill] sm:$0xff] }
 0xeca   : > { %v23929_v42 = vmul.f32 %v23893_v27, %v38003_v53  ;;  %v23963_v41 = vadd.f32 %v23962_v28, %v23928_v54  ;;  %v23859_v46 = vadd.f32 %v37447_v62, %v23815_v32  ;;  %v30709_v49 = vpop.f32.mrb[100].mxu0  ;;  %v38012_v53 = vld [vmem:[#allocation42_spill] sm:$0xff] }
 0xecb   : > { %v23896_v47 = vmax.f32 %v23860_v5, 0.0  ;;  %v23818_v58 = vmul.f32 %v30709_v49, %v37442_v56  ;;  %v23598_v37 = vpop.f32.mrb[101].mxu0 }
 0xecc   : > { %v23964_v59 = vadd.f32 %v23963_v41, %v23929_v42  ;;  %v23895_v25 = vmax.f32 %v23859_v46, 0.0  ;;  %v23817_v50 = vmul.f32 %v37442_v56, %v23598_v37 }
 0xecd   : > { %v23862_v24 = vadd.f32 %v37447_v62, %v23818_v58  ;;  %v23932_v0 = vmul.f32 %v23896_v47, %v38006_v30  ;;  %v38013_v47 = vld [vmem:[#allocation45_spill] sm:$0xff] }
 0xece   : > { %v23931_v1 = vmul.f32 %v23895_v25, %v38005_v29  ;;  %v23965_v18 = vadd.f32 %v23964_v59, %v23930_v52  ;;  %v23861_v63 = vadd.f32 %v37447_v62, %v23817_v50  ;;  %v30712_v34 = vpop.f32.mrb[102].mxu0 }
 0xecf   : > { %v23820_v6 = vmul.f32 %v30712_v34, %v37442_v56  ;;  %v23608_v13 = vpop.f32.mrb[103].mxu0  ;;  %v23898_v36 = vmax.f32 %v23862_v24, 0.0 }
 0xed0   : > { %v23966_v9 = vadd.f32 %v23965_v18, %v23931_v1  ;;  %v23897_v33 = vmax.f32 %v23861_v63, 0.0  ;;  %v23819_v48 = vmul.f32 %v37442_v56, %v23608_v13  ;;  %v24071_v18 = vld [vmem:[%s37706_s7 + $0x8] sm:$0xff] }
 0xed1   : > { %v23864_v21 = vadd.f32 %v37447_v62, %v23820_v6  ;;  %v23934_v20 = vmul.f32 %v23898_v36, %v38008_v38  ;;  %v24073_v6 = vld [vmem:[%s37706_s7 + $0x18] sm:$0xff]  ;;  %v24075_v36 = vld [vmem:[%s37706_s7 + $0x28] sm:$0xff] }
 0xed2   : > { %v23933_v55 = vmul.f32 %v23897_v33, %v38007_v26  ;;  %v23967_v8 = vadd.f32 %v23966_v9, %v23932_v0  ;;  %v23863_v15 = vadd.f32 %v37447_v62, %v23819_v48  ;;  %v30715_v57 = vpop.f32.mrb[104].mxu0  ;;  %v24072_v0 = vld [vmem:[%s37706_s7 + $0x10] sm:$0xff]  ;;  %v24074_v9 = vld [vmem:[%s37706_s7 + $0x20] sm:$0xff] }
 0xed3   : > { %v23900_v61 = vmax.f32 %v23864_v21, 0.0  ;;  %v23822_v19 = vmul.f32 %v30715_v57, %v37442_v56  ;;  %v23618_v17 = vpop.f32.mrb[105].mxu0  ;;  %v31177_v13 = vpack.c.bf16 %v24073_v6, %v24072_v0  ;;  %v31180_v33 = vpack.c.bf16 %v24075_v36, %v24074_v9  ;;  %v24076_v48 = vld [vmem:[%s37706_s7 + $0x30] sm:$0xff]  ;;  %v24078_v26 = vld [vmem:[%s37706_s7 + $0x40] sm:$0xff]  ;;  %v24081_v57 = vld [vmem:[%s37706_s7 + $0x58] sm:$0xff] }
 0xed4   : > { %v23968_v10 = vadd.f32 %v23967_v8, %v23933_v55  ;;  %v23899_v45 = vmax.f32 %v23863_v15, 0.0  ;;  %v23821_v14 = vmul.f32 %v37442_v56, %v23618_v17  ;;  %v24079_v55 = vld [vmem:[%s37706_s7 + $0x48] sm:$0xff]  ;;  %v24080_v15 = vld [vmem:[%s37706_s7 + $0x50] sm:$0xff] }
 0xed5   : > { %v23866_v43 = vadd.f32 %v37447_v62, %v23822_v19  ;;  %v23936_v51 = vmul.f32 %v23900_v61, %v38010_v60  ;;  %v31186_v8 = vpack.c.bf16 %v24079_v55, %v24078_v26  ;;  %v31189_v61 = vpack.c.bf16 %v24081_v57, %v24080_v15  ;;  %v24082_v19 = vld [vmem:[%s37706_s7 + $0x60] sm:$0xff]  ;;  %v24083_v17 = vld [vmem:[%s37706_s7 + $0x68] sm:$0xff] }
 0xed6   : > { %v23935_v44 = vmul.f32 %v23899_v45, %v38009_v40  ;;  %v23969_v22 = vadd.f32 %v23968_v10, %v23934_v20  ;;  %v23865_v23 = vadd.f32 %v37447_v62, %v23821_v14  ;;  %v30718_v3 = vpop.f32.mrb[106].mxu0  ;;  %v31192_v38 = vpack.c.bf16 %v24083_v17, %v24082_v19  ;;  %v24084_v20 = vld [vmem:[%s37706_s7 + $0x70] sm:$0xff]  ;;  %v24085_v10 = vld [vmem:[%s37706_s7 + $0x78] sm:$0xff]  ;;  %v23999_v14 = vld [vmem:[%s37705_s6] sm:$0x1] }
 0xed7   : > { %v23824_v7 = vmul.f32 %v30718_v3, %v37442_v56  ;;  %v23628_v35 = vpop.f32.mrb[107].mxu0  ;;  %v23902_v54 = vmax.f32 %v23866_v43, 0.0  ;;  %v31195_v45 = vpack.c.bf16 %v24085_v10, %v24084_v20 }
 0xed8   : > { %v23970_v11 = vadd.f32 %v23969_v22, %v23935_v44  ;;  %v23901_v12 = vmax.f32 %v23865_v23, 0.0  ;;  %v23823_v16 = vmul.f32 %v37442_v56, %v23628_v35 }
 0xed9   : > { %v23868_v28 = vadd.f32 %v37447_v62, %v23824_v7  ;;  %v23938_v42 = vmul.f32 %v23902_v54, %v38012_v53 }
 0xeda   : > { %v23937_v27 = vmul.f32 %v23901_v12, %v38011_v31  ;;  %v23971_v32 = vadd.f32 %v23970_v11, %v23936_v51  ;;  %v23867_v5 = vadd.f32 %v37447_v62, %v23823_v16  ;;  %v24070_v62 = vld [vmem:[%s37706_s7] sm:$0xff] }
 0xedb   : > { %v23904_v46 = vmax.f32 %v23868_v28, 0.0  ;;  %v31174_v34 = vpack.c.bf16 %v24071_v18, %v24070_v62 }
 0xedc   : > { %v23972_v41 = vadd.f32 %v23971_v32, %v23937_v27  ;;  %v23903_v49 = vmax.f32 %v23867_v5, 0.0 }
 0xedd   : > { %v23940_v52 = vmul.f32 %v23904_v46, %v38014_v39 }
 0xede   : > { %v23939_v58 = vmul.f32 %v23903_v49, %v38013_v47  ;;  %v23973_v37 = vadd.f32 %v23972_v41, %v23938_v42 }
 0xee0   : > { %v23974_v59 = vadd.f32 %v23973_v37, %v23939_v58 }
 0xee2   : > { %v23975_v25 = vadd.f32 %v23974_v59, %v23940_v52 }
 0xee4   : > { %v23976_v56 = vrot.slane %v23975_v25, 4 }
 0xee6   : > { %v23977_v50 = vadd.f32 %v23976_v56, %v23975_v25 }
 0xee8   : > { %v23978_v24 = vrot.slane %v23977_v50, 2 }
 0xeea   : > { %v23979_v29 = vadd.f32 %v23978_v24, %v23977_v50 }
 0xeec   : > { %v23980_v1 = vrot.slane %v23979_v29, 1 }
 0xeee   : > { %v23981_v63 = vadd.f32 %v23980_v1, %v23979_v29 }
 0xef0   : > { %v23982_v30 = vmul.f32 0.00390625, %v23981_v63 }
 0xef2   : > { %30752 = vmatmul.mubr.f32.vlgmr.msra.gmra.mrb[108].mxu1 %v23982_v30 }
 0xef3   : > { %31175 = vmatpush3.bf16.msra.mxu1 %v31174_v34  ;;  %30786 = vmatprep.mubr.msk.f32.mxu1 %vm32792_vm1, %v37426_v2  ;;  %v24077_v2 = vld [vmem:[%s37706_s7 + $0x38] sm:$0xff] }
 0xef4   : > { %31176 = vmatprep.subr.bf16.mxu1 %v32791_v4  ;;  %v31183_v21 = vpack.c.bf16 %v24077_v2, %v24076_v48 }
 0xef7   : > { %31178 = vmatpush3.bf16.msra.mxu1 %v31177_v13 }
 0xef8   : > { %31179 = vmatprep.subr.bf16.mxu1 %v32791_v4 }
 0xefb   : > { %31181 = vmatpush3.bf16.msra.mxu1 %v31180_v33 }
 0xefc   : > { %31182 = vmatprep.subr.bf16.mxu1 %v32791_v4 }
 0xeff   : > { %31184 = vmatpush3.bf16.msra.mxu1 %v31183_v21 }
 0xf00   : > { %31185 = vmatprep.subr.bf16.mxu1 %v32791_v4 }
 0xf03   : > { %31187 = vmatpush3.bf16.msra.mxu1 %v31186_v8 }
 0xf04   : > { %31188 = vmatprep.subr.bf16.mxu1 %v32791_v4 }
 0xf07   : > { %31190 = vmatpush3.bf16.msra.mxu1 %v31189_v61 }
 0xf08   : > { %31191 = vmatprep.subr.bf16.mxu1 %v32791_v4 }
 0xf0b   : > { %31193 = vmatpush3.bf16.msra.mxu1 %v31192_v38 }
 0xf0c   : > { %31194 = vmatprep.subr.bf16.mxu1 %v32791_v4 }
 0xf0f   : > { %31196 = vmatpush3.bf16.msra.mxu1 %v31195_v45 }
 0xfc5   : > { %v24066_v4 = vpop.f32.mrb[108].mxu1 }
 0xfc6   : > { %v24067_v43 = vadd.f32 %v24066_v4, %v23999_v14  ;;  %v30753_v40 = vpop.f32.mrb[109].mxu1 }
 0xfc8   : > { %24157 = vst [vmem:[%s355_s18] sm:$0x1] %v24067_v43  ;;  %30787 = vmatmul.mubr.f32.vlgmr.msra.gmra.mrb[110].mxu1 %v24067_v43 }
 0xfc9   : > { %32706 = shalt.err (!%p32703_p3)
}
 0xfca   : > { %s32707_s18 = scalar_lea.hbm %s37627_s21, 16  ;;  %s32711_s11 = scalar_lea.hbm %s37708_s9, 32 }
 0xfcb   : > { %p32708_p4 = scmp.ne.s32.totalorder %s37627_s21, %s32707_s18  ;;  %p32712_p9 = scmp.lt.u32.totalorder %s37627_s21, %s37708_s9 }
 0xfcc   : > { %p32713_p10 = scmp.lt.u32.totalorder %s32711_s11, %s32707_s18  ;;  %p32715_p12 = scmp.lt.u32.totalorder %s32707_s18, %s37627_s21 }
 0xfcd   : > { %p32709_p7 = pnand %p32708_p4, %p32888_p5 }
 0xfce   : > { %p32714_p11 = por %p32713_p10, %p32712_p9 }
 0xfcf   : > { %p32710_p8 = pneg %p32709_p7 }
 0xfd0   : > { %p32716_p13 = por %p32715_p12, %p32714_p11 }
 0xfd2   : > { %p32717_p0 = pnand %p32716_p13, %p32710_p8 }
 0xfd4   : > { %32720 = shalt.err (!%p32717_p0)
}
 0xfd5   : > { %32642 = dma.vmem_to_hbm [thread:$0]  (%p32888_p5), %s24177_s26, 16, %s37627_s21, %s24160_s27   ;;  %v24086_v44 = vld [vmem:[%s37707_s8] sm:$0x1] }
 0xfd6   : > { %s361_s20 = scalar_lea.vmem [#allocation6], %s37615_s29  ;;  %s38015_s18 = sshll.u32 %s32871_s17, 4 }
 0xfd7   : > { %s24189_s25 = sshll.u32 %s361_s20, 4  ;;  %s37656_s30 = scalar_lea.hbm %s37709_s10, %s38015_s18  ;;  %s37658_s25 = int_to_ptr.vmem [resolvable:$true] %s24189_s25 }
 0xfd8   : > { %s24164_s21 = scalar_lea.sflag [#allocation7], %s37615_s29  ;;  %s32721_s26 = scalar_lea.vmem %s37658_s25, 16 }
 0xfd9   : > { %p32722_p1 = scmp.ne.s32.totalorder %s37658_s25, %s32721_s26  ;;  %s32794_s27 = smov [#allocation6]  }
 0xfda   : > { %s32725_s0 = sshll.u32 %s32794_s27, 4  ;;  %s32726_s0 = int_to_ptr.vmem [resolvable:$false] %s32725_s0 }
 0xfdb   : > { %p32723_p2 = pnand %p32722_p1, %p32888_p5  ;;  %s32727_s17 = scalar_lea.vmem %s32726_s0, 32 }
 0xfdc   : > { %p32728_p4 = scmp.lt.s32.totalorder %s37658_s25, %s32726_s0  ;;  %p32729_p7 = scmp.lt.s32.totalorder %s32727_s17, %s32721_s26 }
 0xfdd   : > { %p32724_p3 = pneg %p32723_p2 }
 0xfde   : > { %p32730_p8 = por %p32729_p7, %p32728_p4 }
 0xfe0   : > { %p32731_p9 = pnand %p32730_p8, %p32724_p3 }
0x109b   : > { %v24153_v22 = vpop.f32.mrb[110].mxu1 }
0x109c   : > { %v24154_v23 = vadd.f32 %v24153_v22, %v24086_v44  ;;  %v30788_v3 = vpop.f32.mrb[111].mxu1 }
0x109e   : > { %24158 = vst [vmem:[%s361_s20] sm:$0x1] %v24154_v23 }
0x109f   : > { %32734 = shalt.err (!%p32731_p9)
}
0x10a0   : > { %s32735_s29 = scalar_lea.hbm %s37656_s30, 16  ;;  %s32739_s18 = scalar_lea.hbm %s37709_s10, 32 }
0x10a1   : > { %p32736_p10 = scmp.ne.s32.totalorder %s37656_s30, %s32735_s29  ;;  %p32740_p13 = scmp.lt.u32.totalorder %s37656_s30, %s37709_s10 }
0x10a2   : > { %p32741_p0 = scmp.lt.u32.totalorder %s32739_s18, %s32735_s29  ;;  %p32743_p2 = scmp.lt.u32.totalorder %s32735_s29, %s37656_s30 }
0x10a3   : > { %p32737_p11 = pnand %p32736_p10, %p32888_p5 }
0x10a4   : > { %p32742_p1 = por %p32741_p0, %p32740_p13 }
0x10a5   : > { %p32738_p12 = pneg %p32737_p11 }
0x10a6   : > { %p32744_p3 = por %p32743_p2, %p32742_p1 }
0x10a8   : > { %p32745_p4 = pnand %p32744_p3, %p32738_p12 }
0x10aa   : > { %32748 = shalt.err (!%p32745_p4)
}
0x10ab   : > { %32643 = dma.vmem_to_hbm [thread:$0]  (%p32888_p5), %s37658_s25, 16, %s37656_s30, %s24164_s21  }
0x10ac PF: > { %p32653_p7 = scmp.ge.s32.totalorder %s32787_s16, 2  ;;  %s24201_s26 = sand.u32 1, %s32775_s13  }
0x10ad   : > { %s24202_s27 = scalar_lea.sflag [#allocation5], %s24201_s26 }
0x10ae   : > { %p32647_p8 = pnand %p32653_p7, %p32892_p6 }
0x10b0   : > { %32766 = dma.done.wait (!%p32647_p8), %s24202_s27, 16  }
0x10b1   : > { %32768 = vsyncadd (!%p32647_p8), %s24202_s27, 4294967280  ;;  %s24210_s0 = scalar_lea.sflag [#allocation7], %s24201_s26 }
0x10b2   : > { %32770 = dma.done.wait (!%p32647_p8), %s24210_s0, 16  }
0x10b3   : > { %32772 = vsyncadd (!%p32647_p8), %s24210_s0, 4294967280  ;;  %p24_p5 = scmp.ge.s32.totalorder %s32875_s19, 4   ;;  %s38016_s13 = smov %s32779_s14 }
0x10b4   : > { %s38017_s14 = smov %s32783_s15  ;;  %s38018_s15 = smov %s32886_s22 }
0x10b5   : > { %s38019_s16 = smov %s32875_s19  ;;  %26 = sbr.rel (!%p24_p5) target bundleno = 7 (0x7), region = 160 }
0x10bc   :  { %24214 = vsyncpa [#allocation5], 1 }
0x10bd   :  { %24216 = vsyncpa [#allocation5 + $0x1], 1 }
0x10be   :  { %24217 = vsyncpa [#allocation7], 1 }
0x10bf   :  { %24219 = vsyncpa [#allocation7 + $0x1], 1 }

</bundles_post_ra>
